<compile_context>
chip_gen: v5e
topology: v5e:2x2
jax: 0.10.0
libtpu: 0.0.40
codegen_flags: <defaults>
</compile_context>

<pallas_src>
import jax
import jax.numpy as jnp
from jax import lax
from jax.experimental import pallas as pl
from jax.experimental.pallas import tpu as pltpu

# ---- synthetic stand-ins for map / env_setup derived sizes ----------------
GRAPH_SIZE = 16                      # map.get_graph_size()
EMB_SIZE = 8                         # GRAPH_OBS_TOKEN['embedding_size']
GAT_LAYERS = 4
N_HEADS = 4
HIDDEN_DIM = 4
GAT_DIM = N_HEADS * HIDDEN_DIM       # 16 == gats.embedding_h.out_features
SELF_SHAPE, RED_SHAPE, BLUE_SHAPE = 20, 6, 6
OBS_DIM = SELF_SHAPE + RED_SHAPE + BLUE_SHAPE   # 32
NUM_OUTPUTS = 15                     # action_space.n
PROJ_H1, PROJ_H2 = 45, 45            # hidden_proj_sizes
VF_HIDDEN = 64                       # fcnet_hiddens[-1]
BATCH = 2

# padded / fused layout sizes
TILE_B = 8                           # batch rows per grid step (full sublanes)
BN = TILE_B * GRAPH_SIZE             # 128 folded node rows / tile (lane-dense scores)
FEAT_PAD = 16                        # EMB_SIZE + ones column + zero pad
KV_W = 2 * GAT_DIM                   # 32 : [k | v] lanes (and [q | 0])
PROJ_PAD = 64                        # 45 -> 64
HEAD_IN = PROJ_PAD + VF_HIDDEN       # 128 : [h2_pad | value_hidden]
OUT_PAD = 128                        # [logits(15) | value(1) | zeros]

# packed head-slab row offsets (all multiples of 16: clean bf16 sublane tiles)
_W1G_OFF = 0                         # [16,128] gat part of merged stage-1 weight
_W1O_OFF = 16                        # [32,128] obs part (value branch in lanes 64:)
_W2_OFF = 48                         # [128,128] o_proj L1 (vh passthrough rows = 0)
_WH_OFF = 176                        # [128,128] merged logits / value head
_MISC_OFF = 304                      # [16,128] b1v, b2, bh, vf-lane-mask, zeros
HEAD_ROWS = 320


# ============================ fused Pallas kernel ==========================

def hybrid_fused_kernel(feat_ref, gather_ref, obs_ref, bias_ref, mask_ref,
                        we_ref, wqkv_ref, wo_ref, whead_ref, out_ref):
    """One batch tile (TILE_B rows): GAT + readout + o_proj + value branch."""
    f32 = jnp.float32
    bf16 = jnp.bfloat16

    masks = mask_ref[...]                       # [2*H, 32] 0/1 head-column masks
    bias = bias_ref[...]                        # [H*BN, BN] additive adjacency mask

    # embedding_h (its bias is folded in via the ones column of feat)
    h = jnp.dot(feat_ref[...].astype(bf16), we_ref[...],
                preferred_element_type=f32)     # [BN, GAT_DIM]

    # TODO(synk): exact GraphTransformer internals (LayerNorm/FFN/move_map action
    # masking) live in the external initialize_graph_transformer; this keeps the
    # adjacency-masked multi-head attention + residual + ReLU core.
    for l in range(GAT_LAYERS):
        hb = h.astype(bf16)
        # fused per-layer projections: 2*l -> [Wq*scale | 0], 2*l+1 -> [Wk | Wv]
        q = jnp.dot(hb, wqkv_ref[2 * l], preferred_element_type=f32)      # [BN,32]
        kv = jnp.dot(hb, wqkv_ref[2 * l + 1], preferred_element_type=f32)  # [BN,32]

        # stack heads along sublanes with 0/1 column masks (no lane extraction):
        # head hd keeps q columns 4hd:4hd+4, which line up with k's columns in kv.
        q_t = jnp.concatenate(
            [q * masks[hd:hd + 1, :] for hd in range(N_HEADS)], axis=0)   # [H*BN,32]

        s = lax.dot_general(q_t.astype(bf16), kv.astype(bf16),
                            (((1,), (1,)), ((), ())),
                            preferred_element_type=f32) + bias            # [H*BN,BN]
        s = s - jnp.max(s, axis=-1, keepdims=True)
        p = jnp.exp(s)
        p = p * pl.reciprocal(jnp.sum(p, axis=-1, keepdims=True), approx=True)

        pv = jnp.dot(p.astype(bf16), kv.astype(bf16),
                     preferred_element_type=f32)                          # [H*BN,32]
        # head hd's output sits in lanes 16+4hd:16+4hd+4 of its sublane block;
        # mask + sum of the 4 blocks rebuilds the head concat in lanes 16:32.
        hv = pv[0:BN, :] * masks[N_HEADS:N_HEADS + 1, :]
        for hd in range(1, N_HEADS):
            hv = hv + (pv[hd * BN:(hd + 1) * BN, :]
                       * masks[N_HEADS + hd:N_HEADS + hd + 1, :])
        attn = jnp.dot(hv.astype(bf16), wo_ref[l],
                       preferred_element_type=f32)                        # [BN,16]
        h = jnp.maximum(h + attn, 0.0)          # residual + ReLU

    # readout='none' + agent_nodes: per-tile one-hot gather stays on the MXU.
    gat_out = jnp.dot(gather_ref[...].astype(bf16), h.astype(bf16),
                      preferred_element_type=f32)                         # [TB,16]
    obs = obs_ref[...]                                                    # [TB,32]

    # packed head/value slab (bf16 weights; biases read back in f32)
    w1g = whead_ref[_W1G_OFF:_W1G_OFF + GAT_DIM, :]
    w1o = whead_ref[_W1O_OFF:_W1O_OFF + OBS_DIM, :]
    w2 = whead_ref[_W2_OFF:_W2_OFF + HEAD_IN, :]
    wh = whead_ref[_WH_OFF:_WH_OFF + HEAD_IN, :]
    misc = whead_ref[_MISC_OFF:_MISC_OFF + 16, :].astype(f32)
    b1v, b2, bh, vf_mask = misc[0:1], misc[1:2], misc[2:3], misc[3:4]

    # o_proj layer 0 and the value-branch hidden fused into one [*,128] result:
    # lanes 0:64 = tanh(cat(gat,obs)@W1 + b1), lanes 64:128 = tanh(obs@Wv1 + bv1)
    h1v = jnp.tanh(jnp.dot(gat_out.astype(bf16), w1g, preferred_element_type=f32)
                   + jnp.dot(obs.astype(bf16), w1o, preferred_element_type=f32)
                   + b1v)                                                 # [TB,128]
    # o_proj layer 1 on lanes 0:64; value hidden passed through lanes 64:128.
    z = jnp.tanh(jnp.dot(h1v.astype(bf16), w2, preferred_element_type=f32) + b2)
    z = z + h1v * vf_mask
    # merged final layer -> [logits | value | zeros]: lane-dense unmasked store.
    out_ref[...] = jnp.dot(z.astype(bf16), wh, preferred_element_type=f32) + bh


def run_hybrid(feat_aug, gather, obs, bias_stacked, prepared):
    masks, we_aug, wqkv, wo_pad, whead = prepared
    b_pad = obs.shape[0]
    grid = (b_pad // TILE_B,)

    # advisory cost estimate so XLA schedules the surrounding glue correctly
    flops_step = 2 * (
        BN * FEAT_PAD * GAT_DIM
        + GAT_LAYERS * (2 * BN * GAT_DIM * KV_W
                        + N_HEADS * BN * KV_W * BN
                        + N_HEADS * BN * BN * KV_W
                        + BN * KV_W * GAT_DIM)
        + TILE_B * BN * GAT_DIM
        + TILE_B * (GAT_DIM + OBS_DIM + 2 * HEAD_IN) * OUT_PAD)
    transc_step = GAT_LAYERS * (N_HEADS * BN * BN + N_HEADS * BN) + 3 * TILE_B * OUT_PAD
    const_bytes = sum(int(x.size) * x.dtype.itemsize
                      for x in (bias_stacked, masks, we_aug, wqkv, wo_pad, whead))
    tile_bytes = (BN * FEAT_PAD + TILE_B * BN + TILE_B * OBS_DIM + TILE_B * OUT_PAD) * 4
    cost = pl.CostEstimate(flops=flops_step * grid[0],
                           transcendentals=transc_step * grid[0],
                           bytes_accessed=const_bytes + tile_bytes * grid[0])

    const2 = lambda i: (0, 0)
    in_specs = [
        pl.BlockSpec((BN, FEAT_PAD), lambda i: (i, 0)),        # node features / tile
        pl.BlockSpec((TILE_B, BN), lambda i: (i, 0)),          # agent one-hot / tile
        pl.BlockSpec((TILE_B, OBS_DIM), lambda i: (i, 0)),     # flat obs / tile
        pl.BlockSpec(bias_stacked.shape, const2),              # VMEM-resident constants:
        pl.BlockSpec(masks.shape, const2),
        pl.BlockSpec(we_aug.shape, const2),
        pl.BlockSpec(wqkv.shape, lambda i: (0, 0, 0)),
        pl.BlockSpec(wo_pad.shape, lambda i: (0, 0, 0)),
        pl.BlockSpec(whead.shape, const2),
    ]
    return pl.pallas_call(
        hybrid_fused_kernel,
        out_shape=jax.ShapeDtypeStruct((b_pad, OUT_PAD), jnp.float32),
        grid=grid,
        in_specs=in_specs,
        out_specs=pl.BlockSpec((TILE_B, OUT_PAD), lambda i: (i, 0)),
        compiler_params=pltpu.CompilerParams(dimension_semantics=("parallel",)),
        cost_estimate=cost,
    )(feat_aug, gather, obs, bias_stacked, masks, we_aug, wqkv, wo_pad, whead)


# ============================ glue (plain JAX) =============================

def build_ring_adjacency(n):
    # TODO(synk): map.g_acs connectivity is external (TIGRE map graph); use a
    # deterministic ring graph with self-loops as a stand-in.
    idx = jnp.arange(n)
    adj = jnp.zeros((n, n), jnp.float32)
    adj = adj.at[idx, idx].set(1.0)
    adj = adj.at[idx, (idx + 1) % n].set(1.0)
    adj = adj.at[idx, (idx - 1) % n].set(1.0)
    return adj


def build_attn_bias(adj):
    """Per-tile block-diagonal additive mask, pre-stacked over heads (constant)."""
    block = jnp.kron(jnp.eye(TILE_B, dtype=jnp.float32), adj)       # [BN, BN]
    bias = jnp.where(block > 0, 0.0, -1e9).astype(jnp.float32)
    return jnp.tile(bias, (N_HEADS, 1))                             # [H*BN, BN]


def embed_obs_in_map(obs, agent_nodes):
    # TODO(synk): efficient_embed_obs_in_map / get_loc are env-specific; stand-in
    # scatters obs-derived features onto the agent's node.
    onehot = jax.nn.one_hot(agent_nodes, GRAPH_SIZE, dtype=jnp.float32)   # [B, N]
    feat = obs[:, :EMB_SIZE]                                              # [B, E]
    return onehot[:, :, None] * feat[:, None, :]                          # [B, N, E]


def init_params(key):
    """Parameters with the original (PyTorch-shaped) widths, stored [in, out]."""
    ks = iter(jax.random.split(key, 20))

    def lin(kk, i, o, scale=0.2):
        return jax.random.normal(kk, (i, o), jnp.float32) * scale

    gat = (
        lin(next(ks), EMB_SIZE, GAT_DIM),                                   # emb W
        jnp.zeros((1, GAT_DIM), jnp.float32),                               # emb b
        jax.random.normal(next(ks), (GAT_LAYERS, GAT_DIM, GAT_DIM), jnp.float32) * 0.2,
        jax.random.normal(next(ks), (GAT_LAYERS, GAT_DIM, GAT_DIM), jnp.float32) * 0.2,
        jax.random.normal(next(ks), (GAT_LAYERS, GAT_DIM, GAT_DIM), jnp.float32) * 0.2,
        jax.random.normal(next(ks), (GAT_LAYERS, GAT_DIM, GAT_DIM), jnp.float32) * 0.2,
    )
    o_proj = (
        lin(next(ks), GAT_DIM + OBS_DIM, PROJ_H1),
        jnp.zeros((1, PROJ_H1), jnp.float32),
        lin(next(ks), PROJ_H1, PROJ_H2),
        jnp.zeros((1, PROJ_H2), jnp.float32),
        lin(next(ks), PROJ_H2, NUM_OUTPUTS),
        jnp.zeros((1, NUM_OUTPUTS), jnp.float32),
    )
    value = (
        lin(next(ks), OBS_DIM, VF_HIDDEN),
        jnp.zeros((1, VF_HIDDEN), jnp.float32),
        lin(next(ks), VF_HIDDEN, 1, scale=0.01),
        jnp.zeros((1, 1), jnp.float32),
    )
    return {"gat": gat, "o_proj": o_proj, "value": value}


def prepare_params(params):
    """Fold scale/biases, pad, stack per-layer weights, pack the head slab (once)."""
    we, be, wq, wk, wv, wo = params["gat"]
    w1, b1, w2, b2, w3, b3 = params["o_proj"]
    wv1, bv1, wv2, bv2 = params["value"]
    f32 = jnp.float32
    scale = 1.0 / (HIDDEN_DIM ** 0.5)

    # head-isolation masks: rows 0:H pick q columns 4h:4h+4 (score path),
    # rows H:2H pick the p@v output columns 16+4h:16+4h+4 (head-concat path).
    masks = jnp.zeros((2 * N_HEADS, KV_W), f32)
    for hd in range(N_HEADS):
        masks = masks.at[hd, hd * HIDDEN_DIM:(hd + 1) * HIDDEN_DIM].set(1.0)
        masks = masks.at[N_HEADS + hd,
                         GAT_DIM + hd * HIDDEN_DIM:GAT_DIM + (hd + 1) * HIDDEN_DIM].set(1.0)

    # embedding weight with its bias folded in (feat carries a ones column).
    we_aug = jnp.zeros((FEAT_PAD, GAT_DIM), f32)
    we_aug = we_aug.at[:EMB_SIZE, :].set(we).at[EMB_SIZE, :].set(be[0])

    # per-layer fused projections: slot 2l = [Wq*scale | 0], slot 2l+1 = [Wk | Wv].
    wqkv = jnp.zeros((2 * GAT_LAYERS, GAT_DIM, KV_W), f32)
    wo_pad = jnp.zeros((GAT_LAYERS, KV_W, GAT_DIM), f32)
    for l in range(GAT_LAYERS):
        wqkv = wqkv.at[2 * l, :, :GAT_DIM].set(wq[l] * scale)
        wqkv = wqkv.at[2 * l + 1, :, :GAT_DIM].set(wk[l])
        wqkv = wqkv.at[2 * l + 1, :, GAT_DIM:].set(wv[l])
        wo_pad = wo_pad.at[l, GAT_DIM:, :].set(wo[l])     # rows 16:32 match hv lanes

    # packed head slab: o_proj L0 fused with the value hidden, o_proj L1 with a
    # passthrough for the value lanes, merged logits/value final layer, biases.
    whead = jnp.zeros((HEAD_ROWS, OUT_PAD), f32)
    whead = whead.at[_W1G_OFF:_W1G_OFF + GAT_DIM, :PROJ_H1].set(w1[:GAT_DIM])
    whead = whead.at[_W1O_OFF:_W1O_OFF + OBS_DIM, :PROJ_H1].set(w1[GAT_DIM:])
    whead = whead.at[_W1O_OFF:_W1O_OFF + OBS_DIM, PROJ_PAD:].set(wv1)
    whead = whead.at[_W2_OFF:_W2_OFF + PROJ_H1, :PROJ_H2].set(w2)
    whead = whead.at[_WH_OFF:_WH_OFF + PROJ_H2, :NUM_OUTPUTS].set(w3)
    whead = whead.at[_WH_OFF + PROJ_PAD:_WH_OFF + PROJ_PAD + VF_HIDDEN,
                     NUM_OUTPUTS:NUM_OUTPUTS + 1].set(wv2)
    whead = whead.at[_MISC_OFF + 0, :PROJ_H1].set(b1[0])
    whead = whead.at[_MISC_OFF + 0, PROJ_PAD:].set(bv1[0])
    whead = whead.at[_MISC_OFF + 1, :PROJ_H2].set(b2[0])
    whead = whead.at[_MISC_OFF + 2, :NUM_OUTPUTS].set(b3[0])
    whead = whead.at[_MISC_OFF + 2, NUM_OUTPUTS].set(bv2[0, 0])
    whead = whead.at[_MISC_OFF + 3, PROJ_PAD:].set(1.0)   # value-passthrough lane mask

    bf16 = jnp.bfloat16
    return (masks, we_aug.astype(bf16), wqkv.astype(bf16),
            wo_pad.astype(bf16), whead.astype(bf16))


@jax.jit
def hybrid_policy_forward(obs, prepared, attn_bias):
    obs = obs.astype(jnp.float32)
    b = obs.shape[0]
    b_pad = ((b + TILE_B - 1) // TILE_B) * TILE_B
    obs_p = jnp.zeros((b_pad, OBS_DIM), jnp.float32).at[:b].set(obs)
    # get_loc(gx, graph_size) stand-in: agent node index from obs prefix.
    agent_nodes = jnp.argmax(obs_p[:, :GRAPH_SIZE], axis=-1)
    node_feats = embed_obs_in_map(obs_p, agent_nodes)                 # [B_pad, N, E]
    feat = node_feats.reshape(b_pad * GRAPH_SIZE, EMB_SIZE)
    feat_aug = jnp.zeros((b_pad * GRAPH_SIZE, FEAT_PAD), jnp.float32)
    feat_aug = feat_aug.at[:, :EMB_SIZE].set(feat).at[:, EMB_SIZE].set(1.0)
    # per-tile local one-hot gather (linear in batch, no [B, B*N] blow-up)
    local_idx = (jnp.arange(b_pad) % TILE_B) * GRAPH_SIZE + agent_nodes
    gather = jax.nn.one_hot(local_idx, BN, dtype=jnp.float32)         # [B_pad, 128]
    out = run_hybrid(feat_aug, gather, obs_p, attn_bias, prepared)    # [B_pad, 128]
    return out[:b, :NUM_OUTPUTS], out[:b, NUM_OUTPUTS]


if __name__ == "__main__":
    key = jax.random.PRNGKey(0)
    k_obs, k_params = jax.random.split(key)
    obs = jax.random.uniform(k_obs, (BATCH, OBS_DIM), jnp.float32)
    params = init_params(k_params)
    prepared = prepare_params(params)
    adj = build_ring_adjacency(GRAPH_SIZE)
    # per-tile static graph mask (batch-size independent, unlike the PyTorch
    # per-batch-size dgl cache — the tile size is fixed at TILE_B)
    attn_bias = build_attn_bias(adj)

    logits, value = hybrid_policy_forward(obs, prepared, attn_bias)
    jax.block_until_ready((logits, value))

    assert logits.shape == (BATCH, NUM_OUTPUTS)
    assert value.shape == (BATCH,)
    assert bool(jnp.all(jnp.isfinite(logits))) and bool(jnp.all(jnp.isfinite(value)))
    print("KERNEL_OK")
</pallas_src>

<mosaic_0001>
module attributes {stable_mosaic.version = 11 : i64} {
  func.func @hybrid_fused_kernel(%arg0: i32, %arg1: memref<128x16xf32, #tpu.memory_space<vmem>>, %arg2: memref<8x128xf32, #tpu.memory_space<vmem>>, %arg3: memref<8x32xf32, #tpu.memory_space<vmem>>, %arg4: memref<512x128xf32, #tpu.memory_space<vmem>>, %arg5: memref<8x32xf32, #tpu.memory_space<vmem>>, %arg6: memref<16x16xbf16, #tpu.memory_space<vmem>>, %arg7: memref<8x16x32xbf16, #tpu.memory_space<vmem>>, %arg8: memref<4x32x16xbf16, #tpu.memory_space<vmem>>, %arg9: memref<320x128xbf16, #tpu.memory_space<vmem>>, %arg10: memref<8x128xf32, #tpu.memory_space<vmem>>) attributes {dimension_semantics = [#tpu.dimension_semantics<parallel>], iteration_bounds = array<i64: 1>, scalar_prefetch = 0 : i64, scratch_operands = 0 : i64, tpu.core_type = #tpu.core_type<tc>, window_params = [{transform_indices = @transform_0, window_bounds = array<i64: 128, 16>}, {transform_indices = @transform_1, window_bounds = array<i64: 8, 128>}, {transform_indices = @transform_2, window_bounds = array<i64: 8, 32>}, {pipeline_mode = #tpu.pipeline_mode<synchronous>, transform_indices = @transform_3, window_bounds = array<i64: 512, 128>}, {pipeline_mode = #tpu.pipeline_mode<synchronous>, transform_indices = @transform_4, window_bounds = array<i64: 8, 32>}, {pipeline_mode = #tpu.pipeline_mode<synchronous>, transform_indices = @transform_5, window_bounds = array<i64: 16, 16>}, {pipeline_mode = #tpu.pipeline_mode<synchronous>, transform_indices = @transform_6, window_bounds = array<i64: 8, 16, 32>}, {pipeline_mode = #tpu.pipeline_mode<synchronous>, transform_indices = @transform_7, window_bounds = array<i64: 4, 32, 16>}, {pipeline_mode = #tpu.pipeline_mode<synchronous>, transform_indices = @transform_8, window_bounds = array<i64: 320, 128>}, {transform_indices = @transform_9, window_bounds = array<i64: 8, 128>}]} {
    %c0 = arith.constant 0 : index
    %c0_0 = arith.constant 0 : index
    %0 = vector.load %arg5[%c0, %c0_0] : memref<8x32xf32, #tpu.memory_space<vmem>>, vector<8x32xf32>
    %c0_1 = arith.constant 0 : index
    %c0_2 = arith.constant 0 : index
    %1 = vector.load %arg4[%c0_1, %c0_2] : memref<512x128xf32, #tpu.memory_space<vmem>>, vector<512x128xf32>
    %c0_3 = arith.constant 0 : index
    %c0_4 = arith.constant 0 : index
    %2 = vector.load %arg1[%c0_3, %c0_4] : memref<128x16xf32, #tpu.memory_space<vmem>>, vector<128x16xf32>
    %3 = arith.truncf %2 : vector<128x16xf32> to vector<128x16xbf16>
    %c0_5 = arith.constant 0 : index
    %c0_6 = arith.constant 0 : index
    %4 = vector.load %arg6[%c0_5, %c0_6] : memref<16x16xbf16, #tpu.memory_space<vmem>>, vector<16x16xbf16>
    %cst = arith.constant dense<0.000000e+00> : vector<128x16xf32>
    %5 = tpu.matmul %3, %4, %cst {dimension_numbers = #tpu.dot_dimension_numbers<[1], [0], [0], [1], [0, 0, 1, 1], [], []>} : vector<128x16xbf16>, vector<16x16xbf16>, vector<128x16xf32> -> vector<128x16xf32>
    %6 = arith.truncf %5 : vector<128x16xf32> to vector<128x16xbf16>
    %c0_7 = arith.constant 0 : index
    %c0_8 = arith.constant 0 : index
    %c0_9 = arith.constant 0 : index
    %7 = vector.load %arg7[%c0_7, %c0_8, %c0_9] : memref<8x16x32xbf16, #tpu.memory_space<vmem>>, vector<1x16x32xbf16>
    %8 = vector.shape_cast %7 : vector<1x16x32xbf16> to vector<16x32xbf16>
    %cst_10 = arith.constant dense<0.000000e+00> : vector<128x32xf32>
    %9 = tpu.matmul %6, %8, %cst_10 {dimension_numbers = #tpu.dot_dimension_numbers<[1], [0], [0], [1], [0, 0, 1, 1], [], []>} : vector<128x16xbf16>, vector<16x32xbf16>, vector<128x32xf32> -> vector<128x32xf32>
    %c1 = arith.constant 1 : index
    %c0_11 = arith.constant 0 : index
    %c0_12 = arith.constant 0 : index
    %10 = vector.load %arg7[%c1, %c0_11, %c0_12] : memref<8x16x32xbf16, #tpu.memory_space<vmem>>, vector<1x16x32xbf16>
    %11 = vector.shape_cast %10 : vector<1x16x32xbf16> to vector<16x32xbf16>
    %cst_13 = arith.constant dense<0.000000e+00> : vector<128x32xf32>
    %12 = tpu.matmul %6, %11, %cst_13 {dimension_numbers = #tpu.dot_dimension_numbers<[1], [0], [0], [1], [0, 0, 1, 1], [], []>} : vector<128x16xbf16>, vector<16x32xbf16>, vector<128x32xf32> -> vector<128x32xf32>
    %13 = vector.extract_strided_slice %0 {offsets = [0, 0], sizes = [1, 32], strides = [1, 1]} : vector<8x32xf32> to vector<1x32xf32>
    %14 = vector.broadcast %13 : vector<1x32xf32> to vector<128x32xf32>
    %15 = arith.mulf %9, %14 : vector<128x32xf32>
    %16 = vector.extract_strided_slice %0 {offsets = [1, 0], sizes = [1, 32], strides = [1, 1]} : vector<8x32xf32> to vector<1x32xf32>
    %17 = vector.broadcast %16 : vector<1x32xf32> to vector<128x32xf32>
    %18 = arith.mulf %9, %17 : vector<128x32xf32>
    %19 = vector.extract_strided_slice %0 {offsets = [2, 0], sizes = [1, 32], strides = [1, 1]} : vector<8x32xf32> to vector<1x32xf32>
    %20 = vector.broadcast %19 : vector<1x32xf32> to vector<128x32xf32>
    %21 = arith.mulf %9, %20 : vector<128x32xf32>
    %22 = vector.extract_strided_slice %0 {offsets = [3, 0], sizes = [1, 32], strides = [1, 1]} : vector<8x32xf32> to vector<1x32xf32>
    %23 = vector.broadcast %22 : vector<1x32xf32> to vector<128x32xf32>
    %24 = arith.mulf %9, %23 : vector<128x32xf32>
    %25 = tpu.concatenate %15, %18, %21, %24 in 0 : vector<128x32xf32>, vector<128x32xf32>, vector<128x32xf32>, vector<128x32xf32> -> vector<512x32xf32>
    %26 = arith.truncf %25 : vector<512x32xf32> to vector<512x32xbf16>
    %27 = arith.truncf %12 : vector<128x32xf32> to vector<128x32xbf16>
    %cst_14 = arith.constant dense<0.000000e+00> : vector<512x128xf32>
    %28 = tpu.matmul %26, %27, %cst_14 {dimension_numbers = #tpu.dot_dimension_numbers<[1], [1], [0], [0], [0, 0, 1, 0], [], []>} : vector<512x32xbf16>, vector<128x32xbf16>, vector<512x128xf32> -> vector<512x128xf32>
    %29 = arith.addf %28, %1 : vector<512x128xf32>
    %cst_15 = arith.constant dense<0xFF800000> : vector<512xf32>
    %30 = vector.multi_reduction <maximumf>, %29, %cst_15 [1] : vector<512x128xf32> to vector<512xf32>
    %31 = vector.shape_cast %30 : vector<512xf32> to vector<512x1xf32>
    %32 = vector.broadcast %31 : vector<512x1xf32> to vector<512x128xf32>
    %33 = arith.subf %29, %32 : vector<512x128xf32>
    %34 = math.exp %33 : vector<512x128xf32>
    %cst_16 = arith.constant dense<0.000000e+00> : vector<512xf32>
    %35 = vector.multi_reduction <add>, %34, %cst_16 [1] : vector<512x128xf32> to vector<512xf32>
    %36 = vector.shape_cast %35 : vector<512xf32> to vector<512x1xf32>
    %37 = tpu.reciprocal %36 {approx = true} : vector<512x1xf32> -> vector<512x1xf32>
    %38 = vector.broadcast %37 : vector<512x1xf32> to vector<512x128xf32>
    %39 = arith.mulf %34, %38 : vector<512x128xf32>
    %40 = arith.truncf %39 : vector<512x128xf32> to vector<512x128xbf16>
    %41 = arith.truncf %12 : vector<128x32xf32> to vector<128x32xbf16>
    %cst_17 = arith.constant dense<0.000000e+00> : vector<512x32xf32>
    %42 = tpu.matmul %40, %41, %cst_17 {dimension_numbers = #tpu.dot_dimension_numbers<[1], [0], [0], [1], [0, 0, 1, 1], [], []>} : vector<512x128xbf16>, vector<128x32xbf16>, vector<512x32xf32> -> vector<512x32xf32>
    %43 = vector.extract_strided_slice %42 {offsets = [0, 0], sizes = [128, 32], strides = [1, 1]} : vector<512x32xf32> to vector<128x32xf32>
    %44 = vector.extract_strided_slice %0 {offsets = [4, 0], sizes = [1, 32], strides = [1, 1]} : vector<8x32xf32> to vector<1x32xf32>
    %45 = vector.broadcast %44 : vector<1x32xf32> to vector<128x32xf32>
    %46 = arith.mulf %43, %45 : vector<128x32xf32>
    %47 = vector.extract_strided_slice %42 {offsets = [128, 0], sizes = [128, 32], strides = [1, 1]} : vector<512x32xf32> to vector<128x32xf32>
    %48 = vector.extract_strided_slice %0 {offsets = [5, 0], sizes = [1, 32], strides = [1, 1]} : vector<8x32xf32> to vector<1x32xf32>
    %49 = vector.broadcast %48 : vector<1x32xf32> to vector<128x32xf32>
    %50 = arith.mulf %47, %49 : vector<128x32xf32>
    %51 = arith.addf %46, %50 : vector<128x32xf32>
    %52 = vector.extract_strided_slice %42 {offsets = [256, 0], sizes = [128, 32], strides = [1, 1]} : vector<512x32xf32> to vector<128x32xf32>
    %53 = vector.extract_strided_slice %0 {offsets = [6, 0], sizes = [1, 32], strides = [1, 1]} : vector<8x32xf32> to vector<1x32xf32>
    %54 = vector.broadcast %53 : vector<1x32xf32> to vector<128x32xf32>
    %55 = arith.mulf %52, %54 : vector<128x32xf32>
    %56 = arith.addf %51, %55 : vector<128x32xf32>
    %57 = vector.extract_strided_slice %42 {offsets = [384, 0], sizes = [128, 32], strides = [1, 1]} : vector<512x32xf32> to vector<128x32xf32>
    %58 = vector.extract_strided_slice %0 {offsets = [7, 0], sizes = [1, 32], strides = [1, 1]} : vector<8x32xf32> to vector<1x32xf32>
    %59 = vector.broadcast %58 : vector<1x32xf32> to vector<128x32xf32>
    %60 = arith.mulf %57, %59 : vector<128x32xf32>
    %61 = arith.addf %56, %60 : vector<128x32xf32>
    %62 = arith.truncf %61 : vector<128x32xf32> to vector<128x32xbf16>
    %c0_18 = arith.constant 0 : index
    %c0_19 = arith.constant 0 : index
    %c0_20 = arith.constant 0 : index
    %63 = vector.load %arg8[%c0_18, %c0_19, %c0_20] : memref<4x32x16xbf16, #tpu.memory_space<vmem>>, vector<1x32x16xbf16>
    %64 = vector.shape_cast %63 : vector<1x32x16xbf16> to vector<32x16xbf16>
    %cst_21 = arith.constant dense<0.000000e+00> : vector<128x16xf32>
    %65 = tpu.matmul %62, %64, %cst_21 {dimension_numbers = #tpu.dot_dimension_numbers<[1], [0], [0], [1], [0, 0, 1, 1], [], []>} : vector<128x32xbf16>, vector<32x16xbf16>, vector<128x16xf32> -> vector<128x16xf32>
    %66 = arith.addf %5, %65 : vector<128x16xf32>
    %cst_22 = arith.constant 0.000000e+00 : f32
    %67 = vector.broadcast %cst_22 : f32 to vector<128x16xf32>
    %68 = arith.maximumf %66, %67 : vector<128x16xf32>
    %69 = arith.truncf %68 : vector<128x16xf32> to vector<128x16xbf16>
    %c2 = arith.constant 2 : index
    %c0_23 = arith.constant 0 : index
    %c0_24 = arith.constant 0 : index
    %70 = vector.load %arg7[%c2, %c0_23, %c0_24] : memref<8x16x32xbf16, #tpu.memory_space<vmem>>, vector<1x16x32xbf16>
    %71 = vector.shape_cast %70 : vector<1x16x32xbf16> to vector<16x32xbf16>
    %cst_25 = arith.constant dense<0.000000e+00> : vector<128x32xf32>
    %72 = tpu.matmul %69, %71, %cst_25 {dimension_numbers = #tpu.dot_dimension_numbers<[1], [0], [0], [1], [0, 0, 1, 1], [], []>} : vector<128x16xbf16>, vector<16x32xbf16>, vector<128x32xf32> -> vector<128x32xf32>
    %c3 = arith.constant 3 : index
    %c0_26 = arith.constant 0 : index
    %c0_27 = arith.constant 0 : index
    %73 = vector.load %arg7[%c3, %c0_26, %c0_27] : memref<8x16x32xbf16, #tpu.memory_space<vmem>>, vector<1x16x32xbf16>
    %74 = vector.shape_cast %73 : vector<1x16x32xbf16> to vector<16x32xbf16>
    %cst_28 = arith.constant dense<0.000000e+00> : vector<128x32xf32>
    %75 = tpu.matmul %69, %74, %cst_28 {dimension_numbers = #tpu.dot_dimension_numbers<[1], [0], [0], [1], [0, 0, 1, 1], [], []>} : vector<128x16xbf16>, vector<16x32xbf16>, vector<128x32xf32> -> vector<128x32xf32>
    %76 = vector.extract_strided_slice %0 {offsets = [0, 0], sizes = [1, 32], strides = [1, 1]} : vector<8x32xf32> to vector<1x32xf32>
    %77 = vector.broadcast %76 : vector<1x32xf32> to vector<128x32xf32>
    %78 = arith.mulf %72, %77 : vector<128x32xf32>
    %79 = vector.extract_strided_slice %0 {offsets = [1, 0], sizes = [1, 32], strides = [1, 1]} : vector<8x32xf32> to vector<1x32xf32>
    %80 = vector.broadcast %79 : vector<1x32xf32> to vector<128x32xf32>
    %81 = arith.mulf %72, %80 : vector<128x32xf32>
    %82 = vector.extract_strided_slice %0 {offsets = [2, 0], sizes = [1, 32], strides = [1, 1]} : vector<8x32xf32> to vector<1x32xf32>
    %83 = vector.broadcast %82 : vector<1x32xf32> to vector<128x32xf32>
    %84 = arith.mulf %72, %83 : vector<128x32xf32>
    %85 = vector.extract_strided_slice %0 {offsets = [3, 0], sizes = [1, 32], strides = [1, 1]} : vector<8x32xf32> to vector<1x32xf32>
    %86 = vector.broadcast %85 : vector<1x32xf32> to vector<128x32xf32>
    %87 = arith.mulf %72, %86 : vector<128x32xf32>
    %88 = tpu.concatenate %78, %81, %84, %87 in 0 : vector<128x32xf32>, vector<128x32xf32>, vector<128x32xf32>, vector<128x32xf32> -> vector<512x32xf32>
    %89 = arith.truncf %88 : vector<512x32xf32> to vector<512x32xbf16>
    %90 = arith.truncf %75 : vector<128x32xf32> to vector<128x32xbf16>
    %cst_29 = arith.constant dense<0.000000e+00> : vector<512x128xf32>
    %91 = tpu.matmul %89, %90, %cst_29 {dimension_numbers = #tpu.dot_dimension_numbers<[1], [1], [0], [0], [0, 0, 1, 0], [], []>} : vector<512x32xbf16>, vector<128x32xbf16>, vector<512x128xf32> -> vector<512x128xf32>
    %92 = arith.addf %91, %1 : vector<512x128xf32>
    %cst_30 = arith.constant dense<0xFF800000> : vector<512xf32>
    %93 = vector.multi_reduction <maximumf>, %92, %cst_30 [1] : vector<512x128xf32> to vector<512xf32>
    %94 = vector.shape_cast %93 : vector<512xf32> to vector<512x1xf32>
    %95 = vector.broadcast %94 : vector<512x1xf32> to vector<512x128xf32>
    %96 = arith.subf %92, %95 : vector<512x128xf32>
    %97 = math.exp %96 : vector<512x128xf32>
    %cst_31 = arith.constant dense<0.000000e+00> : vector<512xf32>
    %98 = vector.multi_reduction <add>, %97, %cst_31 [1] : vector<512x128xf32> to vector<512xf32>
    %99 = vector.shape_cast %98 : vector<512xf32> to vector<512x1xf32>
    %100 = tpu.reciprocal %99 {approx = true} : vector<512x1xf32> -> vector<512x1xf32>
    %101 = vector.broadcast %100 : vector<512x1xf32> to vector<512x128xf32>
    %102 = arith.mulf %97, %101 : vector<512x128xf32>
    %103 = arith.truncf %102 : vector<512x128xf32> to vector<512x128xbf16>
    %104 = arith.truncf %75 : vector<128x32xf32> to vector<128x32xbf16>
    %cst_32 = arith.constant dense<0.000000e+00> : vector<512x32xf32>
    %105 = tpu.matmul %103, %104, %cst_32 {dimension_numbers = #tpu.dot_dimension_numbers<[1], [0], [0], [1], [0, 0, 1, 1], [], []>} : vector<512x128xbf16>, vector<128x32xbf16>, vector<512x32xf32> -> vector<512x32xf32>
    %106 = vector.extract_strided_slice %105 {offsets = [0, 0], sizes = [128, 32], strides = [1, 1]} : vector<512x32xf32> to vector<128x32xf32>
    %107 = vector.extract_strided_slice %0 {offsets = [4, 0], sizes = [1, 32], strides = [1, 1]} : vector<8x32xf32> to vector<1x32xf32>
    %108 = vector.broadcast %107 : vector<1x32xf32> to vector<128x32xf32>
    %109 = arith.mulf %106, %108 : vector<128x32xf32>
    %110 = vector.extract_strided_slice %105 {offsets = [128, 0], sizes = [128, 32], strides = [1, 1]} : vector<512x32xf32> to vector<128x32xf32>
    %111 = vector.extract_strided_slice %0 {offsets = [5, 0], sizes = [1, 32], strides = [1, 1]} : vector<8x32xf32> to vector<1x32xf32>
    %112 = vector.broadcast %111 : vector<1x32xf32> to vector<128x32xf32>
    %113 = arith.mulf %110, %112 : vector<128x32xf32>
    %114 = arith.addf %109, %113 : vector<128x32xf32>
    %115 = vector.extract_strided_slice %105 {offsets = [256, 0], sizes = [128, 32], strides = [1, 1]} : vector<512x32xf32> to vector<128x32xf32>
    %116 = vector.extract_strided_slice %0 {offsets = [6, 0], sizes = [1, 32], strides = [1, 1]} : vector<8x32xf32> to vector<1x32xf32>
    %117 = vector.broadcast %116 : vector<1x32xf32> to vector<128x32xf32>
    %118 = arith.mulf %115, %117 : vector<128x32xf32>
    %119 = arith.addf %114, %118 : vector<128x32xf32>
    %120 = vector.extract_strided_slice %105 {offsets = [384, 0], sizes = [128, 32], strides = [1, 1]} : vector<512x32xf32> to vector<128x32xf32>
    %121 = vector.extract_strided_slice %0 {offsets = [7, 0], sizes = [1, 32], strides = [1, 1]} : vector<8x32xf32> to vector<1x32xf32>
    %122 = vector.broadcast %121 : vector<1x32xf32> to vector<128x32xf32>
    %123 = arith.mulf %120, %122 : vector<128x32xf32>
    %124 = arith.addf %119, %123 : vector<128x32xf32>
    %125 = arith.truncf %124 : vector<128x32xf32> to vector<128x32xbf16>
    %c1_33 = arith.constant 1 : index
    %c0_34 = arith.constant 0 : index
    %c0_35 = arith.constant 0 : index
    %126 = vector.load %arg8[%c1_33, %c0_34, %c0_35] : memref<4x32x16xbf16, #tpu.memory_space<vmem>>, vector<1x32x16xbf16>
    %127 = vector.shape_cast %126 : vector<1x32x16xbf16> to vector<32x16xbf16>
    %cst_36 = arith.constant dense<0.000000e+00> : vector<128x16xf32>
    %128 = tpu.matmul %125, %127, %cst_36 {dimension_numbers = #tpu.dot_dimension_numbers<[1], [0], [0], [1], [0, 0, 1, 1], [], []>} : vector<128x32xbf16>, vector<32x16xbf16>, vector<128x16xf32> -> vector<128x16xf32>
    %129 = arith.addf %68, %128 : vector<128x16xf32>
    %cst_37 = arith.constant 0.000000e+00 : f32
    %130 = vector.broadcast %cst_37 : f32 to vector<128x16xf32>
    %131 = arith.maximumf %129, %130 : vector<128x16xf32>
    %132 = arith.truncf %131 : vector<128x16xf32> to vector<128x16xbf16>
    %c4 = arith.constant 4 : index
    %c0_38 = arith.constant 0 : index
    %c0_39 = arith.constant 0 : index
    %133 = vector.load %arg7[%c4, %c0_38, %c0_39] : memref<8x16x32xbf16, #tpu.memory_space<vmem>>, vector<1x16x32xbf16>
    %134 = vector.shape_cast %133 : vector<1x16x32xbf16> to vector<16x32xbf16>
    %cst_40 = arith.constant dense<0.000000e+00> : vector<128x32xf32>
    %135 = tpu.matmul %132, %134, %cst_40 {dimension_numbers = #tpu.dot_dimension_numbers<[1], [0], [0], [1], [0, 0, 1, 1], [], []>} : vector<128x16xbf16>, vector<16x32xbf16>, vector<128x32xf32> -> vector<128x32xf32>
    %c5 = arith.constant 5 : index
    %c0_41 = arith.constant 0 : index
    %c0_42 = arith.constant 0 : index
    %136 = vector.load %arg7[%c5, %c0_41, %c0_42] : memref<8x16x32xbf16, #tpu.memory_space<vmem>>, vector<1x16x32xbf16>
    %137 = vector.shape_cast %136 : vector<1x16x32xbf16> to vector<16x32xbf16>
    %cst_43 = arith.constant dense<0.000000e+00> : vector<128x32xf32>
    %138 = tpu.matmul %132, %137, %cst_43 {dimension_numbers = #tpu.dot_dimension_numbers<[1], [0], [0], [1], [0, 0, 1, 1], [], []>} : vector<128x16xbf16>, vector<16x32xbf16>, vector<128x32xf32> -> vector<128x32xf32>
    %139 = vector.extract_strided_slice %0 {offsets = [0, 0], sizes = [1, 32], strides = [1, 1]} : vector<8x32xf32> to vector<1x32xf32>
    %140 = vector.broadcast %139 : vector<1x32xf32> to vector<128x32xf32>
    %141 = arith.mulf %135, %140 : vector<128x32xf32>
    %142 = vector.extract_strided_slice %0 {offsets = [1, 0], sizes = [1, 32], strides = [1, 1]} : vector<8x32xf32> to vector<1x32xf32>
    %143 = vector.broadcast %142 : vector<1x32xf32> to vector<128x32xf32>
    %144 = arith.mulf %135, %143 : vector<128x32xf32>
    %145 = vector.extract_strided_slice %0 {offsets = [2, 0], sizes = [1, 32], strides = [1, 1]} : vector<8x32xf32> to vector<1x32xf32>
    %146 = vector.broadcast %145 : vector<1x32xf32> to vector<128x32xf32>
    %147 = arith.mulf %135, %146 : vector<128x32xf32>
    %148 = vector.extract_strided_slice %0 {offsets = [3, 0], sizes = [1, 32], strides = [1, 1]} : vector<8x32xf32> to vector<1x32xf32>
    %149 = vector.broadcast %148 : vector<1x32xf32> to vector<128x32xf32>
    %150 = arith.mulf %135, %149 : vector<128x32xf32>
    %151 = tpu.concatenate %141, %144, %147, %150 in 0 : vector<128x32xf32>, vector<128x32xf32>, vector<128x32xf32>, vector<128x32xf32> -> vector<512x32xf32>
    %152 = arith.truncf %151 : vector<512x32xf32> to vector<512x32xbf16>
    %153 = arith.truncf %138 : vector<128x32xf32> to vector<128x32xbf16>
    %cst_44 = arith.constant dense<0.000000e+00> : vector<512x128xf32>
    %154 = tpu.matmul %152, %153, %cst_44 {dimension_numbers = #tpu.dot_dimension_numbers<[1], [1], [0], [0], [0, 0, 1, 0], [], []>} : vector<512x32xbf16>, vector<128x32xbf16>, vector<512x128xf32> -> vector<512x128xf32>
    %155 = arith.addf %154, %1 : vector<512x128xf32>
    %cst_45 = arith.constant dense<0xFF800000> : vector<512xf32>
    %156 = vector.multi_reduction <maximumf>, %155, %cst_45 [1] : vector<512x128xf32> to vector<512xf32>
    %157 = vector.shape_cast %156 : vector<512xf32> to vector<512x1xf32>
    %158 = vector.broadcast %157 : vector<512x1xf32> to vector<512x128xf32>
    %159 = arith.subf %155, %158 : vector<512x128xf32>
    %160 = math.exp %159 : vector<512x128xf32>
    %cst_46 = arith.constant dense<0.000000e+00> : vector<512xf32>
    %161 = vector.multi_reduction <add>, %160, %cst_46 [1] : vector<512x128xf32> to vector<512xf32>
    %162 = vector.shape_cast %161 : vector<512xf32> to vector<512x1xf32>
    %163 = tpu.reciprocal %162 {approx = true} : vector<512x1xf32> -> vector<512x1xf32>
    %164 = vector.broadcast %163 : vector<512x1xf32> to vector<512x128xf32>
    %165 = arith.mulf %160, %164 : vector<512x128xf32>
    %166 = arith.truncf %165 : vector<512x128xf32> to vector<512x128xbf16>
    %167 = arith.truncf %138 : vector<128x32xf32> to vector<128x32xbf16>
    %cst_47 = arith.constant dense<0.000000e+00> : vector<512x32xf32>
    %168 = tpu.matmul %166, %167, %cst_47 {dimension_numbers = #tpu.dot_dimension_numbers<[1], [0], [0], [1], [0, 0, 1, 1], [], []>} : vector<512x128xbf16>, vector<128x32xbf16>, vector<512x32xf32> -> vector<512x32xf32>
    %169 = vector.extract_strided_slice %168 {offsets = [0, 0], sizes = [128, 32], strides = [1, 1]} : vector<512x32xf32> to vector<128x32xf32>
    %170 = vector.extract_strided_slice %0 {offsets = [4, 0], sizes = [1, 32], strides = [1, 1]} : vector<8x32xf32> to vector<1x32xf32>
    %171 = vector.broadcast %170 : vector<1x32xf32> to vector<128x32xf32>
    %172 = arith.mulf %169, %171 : vector<128x32xf32>
    %173 = vector.extract_strided_slice %168 {offsets = [128, 0], sizes = [128, 32], strides = [1, 1]} : vector<512x32xf32> to vector<128x32xf32>
    %174 = vector.extract_strided_slice %0 {offsets = [5, 0], sizes = [1, 32], strides = [1, 1]} : vector<8x32xf32> to vector<1x32xf32>
    %175 = vector.broadcast %174 : vector<1x32xf32> to vector<128x32xf32>
    %176 = arith.mulf %173, %175 : vector<128x32xf32>
    %177 = arith.addf %172, %176 : vector<128x32xf32>
    %178 = vector.extract_strided_slice %168 {offsets = [256, 0], sizes = [128, 32], strides = [1, 1]} : vector<512x32xf32> to vector<128x32xf32>
    %179 = vector.extract_strided_slice %0 {offsets = [6, 0], sizes = [1, 32], strides = [1, 1]} : vector<8x32xf32> to vector<1x32xf32>
    %180 = vector.broadcast %179 : vector<1x32xf32> to vector<128x32xf32>
    %181 = arith.mulf %178, %180 : vector<128x32xf32>
    %182 = arith.addf %177, %181 : vector<128x32xf32>
    %183 = vector.extract_strided_slice %168 {offsets = [384, 0], sizes = [128, 32], strides = [1, 1]} : vector<512x32xf32> to vector<128x32xf32>
    %184 = vector.extract_strided_slice %0 {offsets = [7, 0], sizes = [1, 32], strides = [1, 1]} : vector<8x32xf32> to vector<1x32xf32>
    %185 = vector.broadcast %184 : vector<1x32xf32> to vector<128x32xf32>
    %186 = arith.mulf %183, %185 : vector<128x32xf32>
    %187 = arith.addf %182, %186 : vector<128x32xf32>
    %188 = arith.truncf %187 : vector<128x32xf32> to vector<128x32xbf16>
    %c2_48 = arith.constant 2 : index
    %c0_49 = arith.constant 0 : index
    %c0_50 = arith.constant 0 : index
    %189 = vector.load %arg8[%c2_48, %c0_49, %c0_50] : memref<4x32x16xbf16, #tpu.memory_space<vmem>>, vector<1x32x16xbf16>
    %190 = vector.shape_cast %189 : vector<1x32x16xbf16> to vector<32x16xbf16>
    %cst_51 = arith.constant dense<0.000000e+00> : vector<128x16xf32>
    %191 = tpu.matmul %188, %190, %cst_51 {dimension_numbers = #tpu.dot_dimension_numbers<[1], [0], [0], [1], [0, 0, 1, 1], [], []>} : vector<128x32xbf16>, vector<32x16xbf16>, vector<128x16xf32> -> vector<128x16xf32>
    %192 = arith.addf %131, %191 : vector<128x16xf32>
    %cst_52 = arith.constant 0.000000e+00 : f32
    %193 = vector.broadcast %cst_52 : f32 to vector<128x16xf32>
    %194 = arith.maximumf %192, %193 : vector<128x16xf32>
    %195 = arith.truncf %194 : vector<128x16xf32> to vector<128x16xbf16>
    %c6 = arith.constant 6 : index
    %c0_53 = arith.constant 0 : index
    %c0_54 = arith.constant 0 : index
    %196 = vector.load %arg7[%c6, %c0_53, %c0_54] : memref<8x16x32xbf16, #tpu.memory_space<vmem>>, vector<1x16x32xbf16>
    %197 = vector.shape_cast %196 : vector<1x16x32xbf16> to vector<16x32xbf16>
    %cst_55 = arith.constant dense<0.000000e+00> : vector<128x32xf32>
    %198 = tpu.matmul %195, %197, %cst_55 {dimension_numbers = #tpu.dot_dimension_numbers<[1], [0], [0], [1], [0, 0, 1, 1], [], []>} : vector<128x16xbf16>, vector<16x32xbf16>, vector<128x32xf32> -> vector<128x32xf32>
    %c7 = arith.constant 7 : index
    %c0_56 = arith.constant 0 : index
    %c0_57 = arith.constant 0 : index
    %199 = vector.load %arg7[%c7, %c0_56, %c0_57] : memref<8x16x32xbf16, #tpu.memory_space<vmem>>, vector<1x16x32xbf16>
    %200 = vector.shape_cast %199 : vector<1x16x32xbf16> to vector<16x32xbf16>
    %cst_58 = arith.constant dense<0.000000e+00> : vector<128x32xf32>
    %201 = tpu.matmul %195, %200, %cst_58 {dimension_numbers = #tpu.dot_dimension_numbers<[1], [0], [0], [1], [0, 0, 1, 1], [], []>} : vector<128x16xbf16>, vector<16x32xbf16>, vector<128x32xf32> -> vector<128x32xf32>
    %202 = vector.extract_strided_slice %0 {offsets = [0, 0], sizes = [1, 32], strides = [1, 1]} : vector<8x32xf32> to vector<1x32xf32>
    %203 = vector.broadcast %202 : vector<1x32xf32> to vector<128x32xf32>
    %204 = arith.mulf %198, %203 : vector<128x32xf32>
    %205 = vector.extract_strided_slice %0 {offsets = [1, 0], sizes = [1, 32], strides = [1, 1]} : vector<8x32xf32> to vector<1x32xf32>
    %206 = vector.broadcast %205 : vector<1x32xf32> to vector<128x32xf32>
    %207 = arith.mulf %198, %206 : vector<128x32xf32>
    %208 = vector.extract_strided_slice %0 {offsets = [2, 0], sizes = [1, 32], strides = [1, 1]} : vector<8x32xf32> to vector<1x32xf32>
    %209 = vector.broadcast %208 : vector<1x32xf32> to vector<128x32xf32>
    %210 = arith.mulf %198, %209 : vector<128x32xf32>
    %211 = vector.extract_strided_slice %0 {offsets = [3, 0], sizes = [1, 32], strides = [1, 1]} : vector<8x32xf32> to vector<1x32xf32>
    %212 = vector.broadcast %211 : vector<1x32xf32> to vector<128x32xf32>
    %213 = arith.mulf %198, %212 : vector<128x32xf32>
    %214 = tpu.concatenate %204, %207, %210, %213 in 0 : vector<128x32xf32>, vector<128x32xf32>, vector<128x32xf32>, vector<128x32xf32> -> vector<512x32xf32>
    %215 = arith.truncf %214 : vector<512x32xf32> to vector<512x32xbf16>
    %216 = arith.truncf %201 : vector<128x32xf32> to vector<128x32xbf16>
    %cst_59 = arith.constant dense<0.000000e+00> : vector<512x128xf32>
    %217 = tpu.matmul %215, %216, %cst_59 {dimension_numbers = #tpu.dot_dimension_numbers<[1], [1], [0], [0], [0, 0, 1, 0], [], []>} : vector<512x32xbf16>, vector<128x32xbf16>, vector<512x128xf32> -> vector<512x128xf32>
    %218 = arith.addf %217, %1 : vector<512x128xf32>
    %cst_60 = arith.constant dense<0xFF800000> : vector<512xf32>
    %219 = vector.multi_reduction <maximumf>, %218, %cst_60 [1] : vector<512x128xf32> to vector<512xf32>
    %220 = vector.shape_cast %219 : vector<512xf32> to vector<512x1xf32>
    %221 = vector.broadcast %220 : vector<512x1xf32> to vector<512x128xf32>
    %222 = arith.subf %218, %221 : vector<512x128xf32>
    %223 = math.exp %222 : vector<512x128xf32>
    %cst_61 = arith.constant dense<0.000000e+00> : vector<512xf32>
    %224 = vector.multi_reduction <add>, %223, %cst_61 [1] : vector<512x128xf32> to vector<512xf32>
    %225 = vector.shape_cast %224 : vector<512xf32> to vector<512x1xf32>
    %226 = tpu.reciprocal %225 {approx = true} : vector<512x1xf32> -> vector<512x1xf32>
    %227 = vector.broadcast %226 : vector<512x1xf32> to vector<512x128xf32>
    %228 = arith.mulf %223, %227 : vector<512x128xf32>
    %229 = arith.truncf %228 : vector<512x128xf32> to vector<512x128xbf16>
    %230 = arith.truncf %201 : vector<128x32xf32> to vector<128x32xbf16>
    %cst_62 = arith.constant dense<0.000000e+00> : vector<512x32xf32>
    %231 = tpu.matmul %229, %230, %cst_62 {dimension_numbers = #tpu.dot_dimension_numbers<[1], [0], [0], [1], [0, 0, 1, 1], [], []>} : vector<512x128xbf16>, vector<128x32xbf16>, vector<512x32xf32> -> vector<512x32xf32>
    %232 = vector.extract_strided_slice %231 {offsets = [0, 0], sizes = [128, 32], strides = [1, 1]} : vector<512x32xf32> to vector<128x32xf32>
    %233 = vector.extract_strided_slice %0 {offsets = [4, 0], sizes = [1, 32], strides = [1, 1]} : vector<8x32xf32> to vector<1x32xf32>
    %234 = vector.broadcast %233 : vector<1x32xf32> to vector<128x32xf32>
    %235 = arith.mulf %232, %234 : vector<128x32xf32>
    %236 = vector.extract_strided_slice %231 {offsets = [128, 0], sizes = [128, 32], strides = [1, 1]} : vector<512x32xf32> to vector<128x32xf32>
    %237 = vector.extract_strided_slice %0 {offsets = [5, 0], sizes = [1, 32], strides = [1, 1]} : vector<8x32xf32> to vector<1x32xf32>
    %238 = vector.broadcast %237 : vector<1x32xf32> to vector<128x32xf32>
    %239 = arith.mulf %236, %238 : vector<128x32xf32>
    %240 = arith.addf %235, %239 : vector<128x32xf32>
    %241 = vector.extract_strided_slice %231 {offsets = [256, 0], sizes = [128, 32], strides = [1, 1]} : vector<512x32xf32> to vector<128x32xf32>
    %242 = vector.extract_strided_slice %0 {offsets = [6, 0], sizes = [1, 32], strides = [1, 1]} : vector<8x32xf32> to vector<1x32xf32>
    %243 = vector.broadcast %242 : vector<1x32xf32> to vector<128x32xf32>
    %244 = arith.mulf %241, %243 : vector<128x32xf32>
    %245 = arith.addf %240, %244 : vector<128x32xf32>
    %246 = vector.extract_strided_slice %231 {offsets = [384, 0], sizes = [128, 32], strides = [1, 1]} : vector<512x32xf32> to vector<128x32xf32>
    %247 = vector.extract_strided_slice %0 {offsets = [7, 0], sizes = [1, 32], strides = [1, 1]} : vector<8x32xf32> to vector<1x32xf32>
    %248 = vector.broadcast %247 : vector<1x32xf32> to vector<128x32xf32>
    %249 = arith.mulf %246, %248 : vector<128x32xf32>
    %250 = arith.addf %245, %249 : vector<128x32xf32>
    %251 = arith.truncf %250 : vector<128x32xf32> to vector<128x32xbf16>
    %c3_63 = arith.constant 3 : index
    %c0_64 = arith.constant 0 : index
    %c0_65 = arith.constant 0 : index
    %252 = vector.load %arg8[%c3_63, %c0_64, %c0_65] : memref<4x32x16xbf16, #tpu.memory_space<vmem>>, vector<1x32x16xbf16>
    %253 = vector.shape_cast %252 : vector<1x32x16xbf16> to vector<32x16xbf16>
    %cst_66 = arith.constant dense<0.000000e+00> : vector<128x16xf32>
    %254 = tpu.matmul %251, %253, %cst_66 {dimension_numbers = #tpu.dot_dimension_numbers<[1], [0], [0], [1], [0, 0, 1, 1], [], []>} : vector<128x32xbf16>, vector<32x16xbf16>, vector<128x16xf32> -> vector<128x16xf32>
    %255 = arith.addf %194, %254 : vector<128x16xf32>
    %cst_67 = arith.constant 0.000000e+00 : f32
    %256 = vector.broadcast %cst_67 : f32 to vector<128x16xf32>
    %257 = arith.maximumf %255, %256 : vector<128x16xf32>
    %c0_68 = arith.constant 0 : index
    %c0_69 = arith.constant 0 : index
    %258 = vector.load %arg2[%c0_68, %c0_69] : memref<8x128xf32, #tpu.memory_space<vmem>>, vector<8x128xf32>
    %259 = arith.truncf %258 : vector<8x128xf32> to vector<8x128xbf16>
    %260 = arith.truncf %257 : vector<128x16xf32> to vector<128x16xbf16>
    %cst_70 = arith.constant dense<0.000000e+00> : vector<8x16xf32>
    %261 = tpu.matmul %259, %260, %cst_70 {dimension_numbers = #tpu.dot_dimension_numbers<[1], [0], [0], [1], [0, 0, 1, 1], [], []>} : vector<8x128xbf16>, vector<128x16xbf16>, vector<8x16xf32> -> vector<8x16xf32>
    %c0_71 = arith.constant 0 : index
    %c0_72 = arith.constant 0 : index
    %262 = vector.load %arg3[%c0_71, %c0_72] : memref<8x32xf32, #tpu.memory_space<vmem>>, vector<8x32xf32>
    %c0_73 = arith.constant 0 : index
    %c0_74 = arith.constant 0 : index
    %263 = vector.load %arg9[%c0_73, %c0_74] : memref<320x128xbf16, #tpu.memory_space<vmem>>, vector<16x128xbf16>
    %c16 = arith.constant 16 : index
    %c0_75 = arith.constant 0 : index
    %264 = vector.load %arg9[%c16, %c0_75] : memref<320x128xbf16, #tpu.memory_space<vmem>>, vector<32x128xbf16>
    %c48 = arith.constant 48 : index
    %c0_76 = arith.constant 0 : index
    %265 = vector.load %arg9[%c48, %c0_76] : memref<320x128xbf16, #tpu.memory_space<vmem>>, vector<128x128xbf16>
    %c176 = arith.constant 176 : index
    %c0_77 = arith.constant 0 : index
    %266 = vector.load %arg9[%c176, %c0_77] : memref<320x128xbf16, #tpu.memory_space<vmem>>, vector<128x128xbf16>
    %c304 = arith.constant 304 : index
    %c0_78 = arith.constant 0 : index
    %267 = vector.load %arg9[%c304, %c0_78] : memref<320x128xbf16, #tpu.memory_space<vmem>>, vector<16x128xbf16>
    %268 = arith.extf %267 : vector<16x128xbf16> to vector<16x128xf32>
    %269 = vector.extract_strided_slice %268 {offsets = [0, 0], sizes = [1, 128], strides = [1, 1]} : vector<16x128xf32> to vector<1x128xf32>
    %270 = vector.extract_strided_slice %268 {offsets = [1, 0], sizes = [1, 128], strides = [1, 1]} : vector<16x128xf32> to vector<1x128xf32>
    %271 = vector.extract_strided_slice %268 {offsets = [2, 0], sizes = [1, 128], strides = [1, 1]} : vector<16x128xf32> to vector<1x128xf32>
    %272 = vector.extract_strided_slice %268 {offsets = [3, 0], sizes = [1, 128], strides = [1, 1]} : vector<16x128xf32> to vector<1x128xf32>
    %273 = arith.truncf %261 : vector<8x16xf32> to vector<8x16xbf16>
    %cst_79 = arith.constant dense<0.000000e+00> : vector<8x128xf32>
    %274 = tpu.matmul %273, %263, %cst_79 {dimension_numbers = #tpu.dot_dimension_numbers<[1], [0], [0], [1], [0, 0, 1, 1], [], []>} : vector<8x16xbf16>, vector<16x128xbf16>, vector<8x128xf32> -> vector<8x128xf32>
    %275 = arith.truncf %262 : vector<8x32xf32> to vector<8x32xbf16>
    %cst_80 = arith.constant dense<0.000000e+00> : vector<8x128xf32>
    %276 = tpu.matmul %275, %264, %cst_80 {dimension_numbers = #tpu.dot_dimension_numbers<[1], [0], [0], [1], [0, 0, 1, 1], [], []>} : vector<8x32xbf16>, vector<32x128xbf16>, vector<8x128xf32> -> vector<8x128xf32>
    %277 = arith.addf %274, %276 : vector<8x128xf32>
    %278 = vector.broadcast %269 : vector<1x128xf32> to vector<8x128xf32>
    %279 = arith.addf %277, %278 : vector<8x128xf32>
    %280 = math.tanh %279 : vector<8x128xf32>
    %281 = arith.truncf %280 : vector<8x128xf32> to vector<8x128xbf16>
    %cst_81 = arith.constant dense<0.000000e+00> : vector<8x128xf32>
    %282 = tpu.matmul %281, %265, %cst_81 {dimension_numbers = #tpu.dot_dimension_numbers<[1], [0], [0], [1], [0, 0, 1, 1], [], []>} : vector<8x128xbf16>, vector<128x128xbf16>, vector<8x128xf32> -> vector<8x128xf32>
    %283 = vector.broadcast %270 : vector<1x128xf32> to vector<8x128xf32>
    %284 = arith.addf %282, %283 : vector<8x128xf32>
    %285 = math.tanh %284 : vector<8x128xf32>
    %286 = vector.broadcast %272 : vector<1x128xf32> to vector<8x128xf32>
    %287 = arith.mulf %280, %286 : vector<8x128xf32>
    %288 = arith.addf %285, %287 : vector<8x128xf32>
    %289 = arith.truncf %288 : vector<8x128xf32> to vector<8x128xbf16>
    %cst_82 = arith.constant dense<0.000000e+00> : vector<8x128xf32>
    %290 = tpu.matmul %289, %266, %cst_82 {dimension_numbers = #tpu.dot_dimension_numbers<[1], [0], [0], [1], [0, 0, 1, 1], [], []>} : vector<8x128xbf16>, vector<128x128xbf16>, vector<8x128xf32> -> vector<8x128xf32>
    %291 = vector.broadcast %271 : vector<1x128xf32> to vector<8x128xf32>
    %292 = arith.addf %290, %291 : vector<8x128xf32>
    %c0_83 = arith.constant 0 : index
    %c0_84 = arith.constant 0 : index
    %293 = vector.load %arg10[%c0_83, %c0_84] : memref<8x128xf32, #tpu.memory_space<vmem>>, vector<8x128xf32>
    tpu.vector_store %arg10[%c0_83, %c0_84], %292 {strides = array<i32>} : memref<8x128xf32, #tpu.memory_space<vmem>>, vector<8x128xf32>,
    return
  }
  func.func @transform_0(%arg0: i32) -> (i32, i32) {
    %c0_i32 = arith.constant 0 : i32
    %c0_i32_0 = arith.constant 0 : i32
    return %arg0, %c0_i32 : i32, i32
  }
  func.func @transform_1(%arg0: i32) -> (i32, i32) {
    %c0_i32 = arith.constant 0 : i32
    %c0_i32_0 = arith.constant 0 : i32
    return %arg0, %c0_i32 : i32, i32
  }
  func.func @transform_2(%arg0: i32) -> (i32, i32) {
    %c0_i32 = arith.constant 0 : i32
    %c0_i32_0 = arith.constant 0 : i32
    return %arg0, %c0_i32 : i32, i32
  }
  func.func @transform_3(%arg0: i32) -> (i32, i32) {
    %c0_i32 = arith.constant 0 : i32
    %c0_i32_0 = arith.constant 0 : i32
    %c0_i32_1 = arith.constant 0 : i32
    return %c0_i32, %c0_i32_0 : i32, i32
  }
  func.func @transform_4(%arg0: i32) -> (i32, i32) {
    %c0_i32 = arith.constant 0 : i32
    %c0_i32_0 = arith.constant 0 : i32
    %c0_i32_1 = arith.constant 0 : i32
    return %c0_i32, %c0_i32_0 : i32, i32
  }
  func.func @transform_5(%arg0: i32) -> (i32, i32) {
    %c0_i32 = arith.constant 0 : i32
    %c0_i32_0 = arith.constant 0 : i32
    %c0_i32_1 = arith.constant 0 : i32
    return %c0_i32, %c0_i32_0 : i32, i32
  }
  func.func @transform_6(%arg0: i32) -> (i32, i32, i32) {
    %c0_i32 = arith.constant 0 : i32
    %c0_i32_0 = arith.constant 0 : i32
    %c0_i32_1 = arith.constant 0 : i32
    %c0_i32_2 = arith.constant 0 : i32
    return %c0_i32, %c0_i32_0, %c0_i32_1 : i32, i32, i32
  }
  func.func @transform_7(%arg0: i32) -> (i32, i32, i32) {
    %c0_i32 = arith.constant 0 : i32
    %c0_i32_0 = arith.constant 0 : i32
    %c0_i32_1 = arith.constant 0 : i32
    %c0_i32_2 = arith.constant 0 : i32
    return %c0_i32, %c0_i32_0, %c0_i32_1 : i32, i32, i32
  }
  func.func @transform_8(%arg0: i32) -> (i32, i32) {
    %c0_i32 = arith.constant 0 : i32
    %c0_i32_0 = arith.constant 0 : i32
    %c0_i32_1 = arith.constant 0 : i32
    return %c0_i32, %c0_i32_0 : i32, i32
  }
  func.func @transform_9(%arg0: i32) -> (i32, i32) {
    %c0_i32 = arith.constant 0 : i32
    %c0_i32_0 = arith.constant 0 : i32
    return %arg0, %c0_i32 : i32, i32
  }
}

</mosaic_0001>

<bundles_post_ra>
// kernel: hybrid_policy_forward.1
= control target key start
LH: loop header
LB: loop body
LE: loop exit
PB: predicated region body
PF: predicated region fallthrough
CT: control target
= control target key end

     0   :  { %vm130_vm0 = vcmask 130048   ;;  %vm459_vm1 = vcmask 261120   ;;  %s14007_s5 = inlined_call_operand.vmem [shape: bf16[16,16], index: 5, kind: input, shape index: {}]   ;;  %s14008_s0 = inlined_call_operand.vmem [shape: f32[128,16], index: 0, kind: input, shape index: {}]   ;;  %s14009_s6 = inlined_call_operand.vmem [shape: bf16[8,16,32], index: 6, kind: input, shape index: {}]   ;;  %s14010_s4 = inlined_call_operand.vmem [shape: f32[8,32], index: 4, kind: input, shape index: {}]   ;;  %s14011_s3 = inlined_call_operand.vmem [shape: f32[512,128], index: 3, kind: input, shape index: {}]   ;;  %s14012_s7 = inlined_call_operand.vmem [shape: bf16[4,32,16], index: 7, kind: input, shape index: {}]   ;;  %s14013_s1 = inlined_call_operand.vmem [shape: f32[8,128], index: 1, kind: input, shape index: {}]   ;;  %s14014_s8 = inlined_call_operand.vmem [shape: bf16[320,128], index: 8, kind: input, shape index: {}]   ;;  %s14015_s2 = inlined_call_operand.vmem [shape: f32[8,32], index: 2, kind: input, shape index: {}]   ;;  %s14016_s9 = inlined_call_operand.vmem [shape: f32[8,128], index: 9, kind: output, shape index: {}]  }
   0x1   :  { %v7109_v0 = vld [vmem:[%s14007_s5] sm:$0xff]  ;;  %v99_v2 = vld [vmem:[%s14008_s0 + $0x8] sm:$0xff]  ;;  %v100_v4 = vld [vmem:[%s14008_s0 + $0x10] sm:$0xff] }
   0x2   :  { %v98_v1 = vld [vmem:[%s14008_s0] sm:$0xff]  ;;  %162 = vmatpush.bf16.msra.mxu0 %v7109_v0  ;;  %v101_v5 = vld [vmem:[%s14008_s0 + $0x18] sm:$0xff]  ;;  %v103_v8 = vld [vmem:[%s14008_s0 + $0x28] sm:$0xff] }
   0x3   :  { %v114_v3 = vpack.c.bf16 %v99_v2, %v98_v1  ;;  %v115_v6 = vpack.c.bf16 %v101_v5, %v100_v4  ;;  %v102_v7 = vld [vmem:[%s14008_s0 + $0x20] sm:$0xff]  ;;  %v104_v10 = vld [vmem:[%s14008_s0 + $0x30] sm:$0xff]  ;;  %v105_v11 = vld [vmem:[%s14008_s0 + $0x38] sm:$0xff] }
   0x4   :  { %v116_v9 = vpack.c.bf16 %v103_v8, %v102_v7  ;;  %v117_v12 = vpack.c.bf16 %v105_v11, %v104_v10  ;;  %v106_v13 = vld [vmem:[%s14008_s0 + $0x40] sm:$0xff]  ;;  %v107_v14 = vld [vmem:[%s14008_s0 + $0x48] sm:$0xff]  ;;  %v108_v16 = vld [vmem:[%s14008_s0 + $0x50] sm:$0xff] }
   0x5   :  { %6709 = vmatmul.msk.bf16.vlgmr.msra.gmra.mxu0 %vm130_vm0, %v114_v3  ;;  %v118_v15 = vpack.c.bf16 %v107_v14, %v106_v13  ;;  %v109_v17 = vld [vmem:[%s14008_s0 + $0x58] sm:$0xff]  ;;  %v110_v19 = vld [vmem:[%s14008_s0 + $0x60] sm:$0xff]  ;;  %v111_v20 = vld [vmem:[%s14008_s0 + $0x68] sm:$0xff] }
   0x6   :  { %v119_v18 = vpack.c.bf16 %v109_v17, %v108_v16  ;;  %v120_v21 = vpack.c.bf16 %v111_v20, %v110_v19  ;;  %v7110_v22 = vld [vmem:[%s14009_s6] sm:$0xff]  ;;  %v7111_v23 = vld [vmem:[%s14009_s6 + $0x8] sm:$0xff]  ;;  %v112_v24 = vld [vmem:[%s14008_s0 + $0x70] sm:$0xff] }
   0x7   :  { %251 = vmatpush.bf16.msra.mxu1 %v7110_v22  ;;  %309 = vmatpush.bf16.msra.mxu2 %v7111_v23  ;;  %v113_v25 = vld [vmem:[%s14008_s0 + $0x78] sm:$0xff]  ;;  %v8568_v22 = vld [vmem:[%s14010_s4] sm:$0xff] }
   0x8   :  { %v121_v26 = vpack.c.bf16 %v113_v25, %v112_v24  ;;  %v8571_v23 = vperm.slane %v8568_v22, 0 }
   0xa   :  { %14146 = vst [vmem:[#allocation14_spill] sm:$0xff] %v8571_v23 }
  0x15   :  { %6710 = vmatmul.msk.bf16.gmra.mxu0 %vm130_vm0, %v115_v6 }
  0x25   :  { %6711 = vmatmul.msk.bf16.gmra.mxu0 %vm130_vm0, %v116_v9 }
  0x35   :  { %6712 = vmatmul.msk.bf16.gmra.mxu0 %vm130_vm0, %v117_v12 }
  0x45   :  { %6713 = vmatmul.msk.bf16.gmra.mxu0 %vm130_vm0, %v118_v15 }
  0x55   :  { %6714 = vmatmul.msk.bf16.gmra.mxu0 %vm130_vm0, %v119_v18 }
  0x65   :  { %6715 = vmatmul.msk.bf16.gmra.mxu0 %vm130_vm0, %v120_v21 }
  0x75   :  { %6716 = vmatmul.msk.bf16.gmra.mxu0 %vm130_vm0, %v121_v26 }
  0x82   :  { %v8486_v27 = vpop.f32.mrf.mxu0 }
  0x8a   :  { %v8488_v28 = vpop.f32.mrf.mxu0 }
  0x8b   :  { %v204_v29 = vpack.c.bf16 %v8488_v28, %v8486_v27 }
  0x8d   :  { %6721 = vmatmul.msk.bf16.vlgmr.msra.gmra.mxu1 %vm130_vm0, %v204_v29  ;;  %6735 = vmatmul.msk.bf16.vlgmr.msra.gmra.mxu2 %vm130_vm0, %v204_v29 }
  0x92   :  { %v8494_v30 = vpop.f32.mrf.mxu0 }
  0x9a   :  { %v8496_v31 = vpop.f32.mrf.mxu0 }
  0x9b   :  { %v205_v32 = vpack.c.bf16 %v8496_v31, %v8494_v30 }
  0x9d   :  { %6722 = vmatmul.msk.bf16.gmra.mxu1 %vm130_vm0, %v205_v32  ;;  %6736 = vmatmul.msk.bf16.gmra.mxu2 %vm130_vm0, %v205_v32 }
  0xa2   :  { %v8502_v33 = vpop.f32.mrf.mxu0 }
  0xa3   :  { %14134 = vst [vmem:[#allocation2_spill] sm:$0xff] %v8502_v33 }
  0xaa   :  { %v8504_v34 = vpop.f32.mrf.mxu0 }
  0xab   :  { %14135 = vst [vmem:[#allocation3_spill] sm:$0xff] %v8504_v34  ;;  %v206_v35 = vpack.c.bf16 %v8504_v34, %v8502_v33 }
  0xad   :  { %6723 = vmatmul.msk.bf16.gmra.mxu1 %vm130_vm0, %v206_v35  ;;  %6737 = vmatmul.msk.bf16.gmra.mxu2 %vm130_vm0, %v206_v35 }
  0xb2   :  { %v8510_v36 = vpop.f32.mrf.mxu0 }
  0xb3   :  { %14136 = vst [vmem:[#allocation4_spill] sm:$0xff] %v8510_v36 }
  0xba   :  { %v8512_v37 = vpop.f32.mrf.mxu0 }
  0xbb   :  { %14137 = vst [vmem:[#allocation5_spill] sm:$0xff] %v8512_v37  ;;  %v207_v38 = vpack.c.bf16 %v8512_v37, %v8510_v36 }
  0xbd   :  { %6724 = vmatmul.msk.bf16.gmra.mxu1 %vm130_vm0, %v207_v38  ;;  %6738 = vmatmul.msk.bf16.gmra.mxu2 %vm130_vm0, %v207_v38 }
  0xc2   :  { %v8518_v39 = vpop.f32.mrf.mxu0 }
  0xc3   :  { %14138 = vst [vmem:[#allocation6_spill] sm:$0xff] %v8518_v39 }
  0xca   :  { %v8520_v40 = vpop.f32.mrf.mxu0 }
  0xcb   :  { %14139 = vst [vmem:[#allocation7_spill] sm:$0xff] %v8520_v40  ;;  %v208_v41 = vpack.c.bf16 %v8520_v40, %v8518_v39 }
  0xcd   :  { %6725 = vmatmul.msk.bf16.gmra.mxu1 %vm130_vm0, %v208_v41  ;;  %6739 = vmatmul.msk.bf16.gmra.mxu2 %vm130_vm0, %v208_v41 }
  0xd2   :  { %v8526_v42 = vpop.f32.mrf.mxu0 }
  0xd3   :  { %14140 = vst [vmem:[#allocation8_spill] sm:$0xff] %v8526_v42 }
  0xda   :  { %v8528_v43 = vpop.f32.mrf.mxu0 }
  0xdb   :  { %14141 = vst [vmem:[#allocation9_spill] sm:$0xff] %v8528_v43  ;;  %v209_v44 = vpack.c.bf16 %v8528_v43, %v8526_v42  ;;  %v8914_v43 = vperm.slane %v8568_v22, 3 }
  0xdd   :  { %6726 = vmatmul.msk.bf16.gmra.mxu1 %vm130_vm0, %v209_v44  ;;  %6740 = vmatmul.msk.bf16.gmra.mxu2 %vm130_vm0, %v209_v44  ;;  %14149 = vst [vmem:[#allocation17_spill] sm:$0xff] %v8914_v43 }
  0xe2   :  { %v8534_v45 = vpop.f32.mrf.mxu0 }
  0xe3   :  { %14142 = vst [vmem:[#allocation10_spill] sm:$0xff] %v8534_v45 }
  0xea   :  { %v8536_v46 = vpop.f32.mrf.mxu0 }
  0xeb   :  { %14143 = vst [vmem:[#allocation11_spill] sm:$0xff] %v8536_v46  ;;  %v210_v47 = vpack.c.bf16 %v8536_v46, %v8534_v45 }
  0xed   :  { %6727 = vmatmul.msk.bf16.gmra.mxu1 %vm130_vm0, %v210_v47  ;;  %6741 = vmatmul.msk.bf16.gmra.mxu2 %vm130_vm0, %v210_v47 }
  0xf2   :  { %v8542_v48 = vpop.f32.mrf.mxu0 }
  0xf3   :  { %14144 = vst [vmem:[#allocation12_spill] sm:$0xff] %v8542_v48 }
  0xfa   :  { %v8544_v49 = vpop.f32.mrf.mxu0 }
  0xfb   :  { %14145 = vst [vmem:[#allocation13_spill] sm:$0xff] %v8544_v49  ;;  %v211_v50 = vpack.c.bf16 %v8544_v49, %v8542_v48 }
  0xfd   :  { %6728 = vmatmul.msk.bf16.gmra.mxu1 %vm130_vm0, %v211_v50  ;;  %6742 = vmatmul.msk.bf16.gmra.mxu2 %vm130_vm0, %v211_v50 }
 0x10a   :  { %v8553_v11 = vpop.f32.mrf.mxu1 }
 0x10b   :  { %v352_v29 = vmul.f32 %v8571_v23, %v8553_v11 }
 0x110   :  { %v311_v51 = vpop.f32.mrf.mxu2 }
 0x112   :  { %v8556_v16 = vpop.f32.mrf.mxu1 }
 0x113   :  { %v353_v26 = vmul.f32 %v8571_v23, %v8556_v16 }
 0x115   :  { %v419_v32 = vpack.c.bf16 %v353_v26, %v352_v29  ;;  %v35_v29 = vld [vmem:[%s14011_s3 + $0x8] sm:$0xff] }
 0x118   :  { %v313_v52 = vpop.f32.mrf.mxu2 }
 0x119   :  { %v451_v15 = vpack.c.bf16 %v313_v52, %v311_v51 }
 0x11a   :  { %v8559_v18 = vpop.f32.mrf.mxu1 }
 0x11b   :  { %v557_v24 = vsel %vm459_vm1, %v451_v15, 0  ;;  %v354_v41 = vmul.f32 %v8571_v23, %v8559_v18 }
 0x120   :  { %v316_v53 = vpop.f32.mrf.mxu2 }
 0x122   :  { %v8562_v20 = vpop.f32.mrf.mxu1 }
 0x123   :  { %v355_v38 = vmul.f32 %v8571_v23, %v8562_v20 }
 0x125   :  { %v420_v47 = vpack.c.bf16 %v355_v38, %v354_v41 }
 0x128   :  { %v318_v54 = vpop.f32.mrf.mxu2 }
 0x129   :  { %v452_v13 = vpack.c.bf16 %v318_v54, %v316_v53 }
 0x12a   :  { %v8574_v25 = vpop.f32.mrf.mxu1 }
 0x12b   :  { %v560_v21 = vsel %vm459_vm1, %v452_v13, 0  ;;  %v356_v52 = vmul.f32 %v8571_v23, %v8574_v25 }
 0x130   :  { %v321_v55 = vpop.f32.mrf.mxu2 }
 0x132   :  { %v8581_v35 = vpop.f32.mrf.mxu1 }
 0x133   :  { %v357_v51 = vmul.f32 %v8571_v23, %v8581_v35 }
 0x135   :  { %v421_v53 = vpack.c.bf16 %v357_v51, %v356_v52  ;;  %v36_v52 = vld [vmem:[%s14011_s3 + $0x10] sm:$0xff] }
 0x138   :  { %v323_v56 = vpop.f32.mrf.mxu2 }
 0x139   :  { %v453_v12 = vpack.c.bf16 %v323_v56, %v321_v55 }
 0x13a   :  { %v8587_v44 = vpop.f32.mrf.mxu1 }
 0x13b   :  { %v563_v19 = vsel %vm459_vm1, %v453_v12, 0 }
 0x140   :  { %v326_v57 = vpop.f32.mrf.mxu2 }
 0x142   :  { %v8590_v50 = vpop.f32.mrf.mxu1 }
 0x143   :  { %v359_v55 = vmul.f32 %v8571_v23, %v8590_v50 }
 0x148   :  { %v328_v58 = vpop.f32.mrf.mxu2 }
 0x149   :  { %v454_v9 = vpack.c.bf16 %v328_v58, %v326_v57  ;;  %v358_v57 = vmul.f32 %v8571_v23, %v8587_v44 }
 0x14a   :  { %v8597_v54 = vpop.f32.mrf.mxu1 }
 0x14b   :  { %v566_v17 = vsel %vm459_vm1, %v454_v9, 0  ;;  %v422_v58 = vpack.c.bf16 %v359_v55, %v358_v57  ;;  %v37_v57 = vld [vmem:[%s14011_s3 + $0x18] sm:$0xff] }
 0x150   :  { %v331_v59 = vpop.f32.mrf.mxu2 }
 0x152   :  { %v8601_v56 = vpop.f32.mrf.mxu1 }
 0x158   :  { %v333_v60 = vpop.f32.mrf.mxu2 }
 0x159   :  { %v455_v8 = vpack.c.bf16 %v333_v60, %v331_v59  ;;  %v361_v60 = vmul.f32 %v8571_v23, %v8601_v56 }
 0x15a   :  { %v8606_v59 = vpop.f32.mrf.mxu1 }
 0x15b   :  { %v569_v14 = vsel %vm459_vm1, %v455_v8, 0 }
 0x160   :  { %v336_v61 = vpop.f32.mrf.mxu2 }
 0x168   :  { %v338_v62 = vpop.f32.mrf.mxu2 }
 0x169   :  { %v456_v6 = vpack.c.bf16 %v338_v62, %v336_v61  ;;  %v360_v61 = vmul.f32 %v8571_v23, %v8597_v54 }
 0x16b   :  { %v572_v10 = vsel %vm459_vm1, %v456_v6, 0  ;;  %v423_v62 = vpack.c.bf16 %v361_v60, %v360_v61 }
 0x170   :  { %v341_v63 = vpop.f32.mrf.mxu2 }
 0x178   :  { %v343_v0 = vpop.f32.mrf.mxu2 }
 0x179   :  { %v457_v5 = vpack.c.bf16 %v343_v0, %v341_v63  ;;  %v8612_v63 = vpop.f32.mrf.mxu1 }
 0x17b   :  { %v575_v7 = vsel %vm459_vm1, %v457_v5, 0 }
 0x180   :  { %v346_v1 = vpop.f32.mrf.mxu2 }
 0x181   :  { %v8615_v0 = vpop.f32.mrf.mxu1 }
 0x188   :  { %v348_v2 = vpop.f32.mrf.mxu2 }
 0x189   :  { %v458_v3 = vpack.c.bf16 %v348_v2, %v346_v1  ;;  %v363_v1 = vmul.f32 %v8571_v23, %v8612_v63  ;;  %v362_v2 = vmul.f32 %v8571_v23, %v8606_v59 }
 0x18b   :  { %1357 = vmatpush.bf16.msrb.mxu0 %v458_v3  ;;  %v578_v4 = vsel %vm459_vm1, %v458_v3, 0  ;;  %v424_v3 = vpack.c.bf16 %v363_v1, %v362_v2  ;;  %v38_v2 = vld [vmem:[%s14011_s3 + $0x20] sm:$0xff] }
 0x18c   :  { %580 = vmatpush.bf16.xpose.msra.mxu3 %v578_v4  ;;  %v8622_v4 = vpop.f32.mrf.mxu1 }
 0x18f   :  { %1358 = vmatpush.bf16.msrb.mxu0 %v457_v5  ;;  %v365_v5 = vmul.f32 %v8571_v23, %v8622_v4 }
 0x193   :  { %1359 = vmatpush.bf16.msrb.mxu0 %v456_v6  ;;  %v364_v6 = vmul.f32 %v8571_v23, %v8615_v0 }
 0x194   :  { %581 = vmatpush.bf16.xpose.msra.mxu3 %v575_v7  ;;  %v8628_v7 = vpop.f32.mrf.mxu1 }
 0x197   :  { %1360 = vmatpush.bf16.msrb.mxu0 %v455_v8  ;;  %v425_v8 = vpack.c.bf16 %v365_v5, %v364_v6  ;;  %v39_v6 = vld [vmem:[%s14011_s3 + $0x28] sm:$0xff] }
 0x19b   :  { %1361 = vmatpush.bf16.msrb.mxu0 %v454_v9 }
 0x19c   :  { %582 = vmatpush.bf16.xpose.msra.mxu3 %v572_v10  ;;  %v8631_v9 = vpop.f32.mrf.mxu1 }
 0x19d   :  { %v367_v10 = vmul.f32 %v8571_v23, %v8631_v9 }
 0x19f   :  { %1362 = vmatpush.bf16.msrb.mxu0 %v453_v12  ;;  %v366_v12 = vmul.f32 %v8571_v23, %v8628_v7 }
 0x1a3   :  { %1363 = vmatpush.bf16.msrb.mxu0 %v452_v13  ;;  %v426_v13 = vpack.c.bf16 %v367_v10, %v366_v12 }
 0x1a4   :  { %583 = vmatpush.bf16.xpose.msra.mxu3 %v569_v14  ;;  %v8639_v14 = vperm.slane %v8568_v22, 1 }
 0x1a6   :  { %14147 = vst [vmem:[#allocation15_spill] sm:$0xff] %v8639_v14  ;;  %v371_v41 = vmul.f32 %v8639_v14, %v8559_v18  ;;  %v373_v61 = vmul.f32 %v8639_v14, %v8574_v25  ;;  %v375_v12 = vmul.f32 %v8639_v14, %v8587_v44 }
 0x1a7   :  { %1364 = vmatpush.bf16.msrb.mxu0 %v451_v15  ;;  %v370_v15 = vmul.f32 %v8639_v14, %v8556_v16 }
 0x1ac   :  { %584 = vmatpush.bf16.xpose.msra.mxu3 %v566_v17  ;;  %v369_v17 = vmul.f32 %v8639_v14, %v8553_v11 }
 0x1b4   :  { %585 = vmatpush.bf16.xpose.msra.mxu3 %v563_v19  ;;  %v427_v19 = vpack.c.bf16 %v370_v15, %v369_v17  ;;  %v40_v17 = vld [vmem:[%s14011_s3 + $0x30] sm:$0xff] }
 0x1bc   :  { %586 = vmatpush.bf16.xpose.msra.mxu3 %v560_v21  ;;  %v34_v21 = vld [vmem:[%s14011_s3] sm:$0xff] }
 0x1c4   :  { %587 = vmatpush.bf16.xpose.msra.mxu3 %v557_v24 }
 0x1cb   :  { %6743 = vmatmul.msk.bf16.vlgmr.msra.gmra.mxu3 %vm459_vm1, %v419_v32  ;;  %v372_v32 = vmul.f32 %v8639_v14, %v8562_v20 }
 0x1cd   :  { %v428_v51 = vpack.c.bf16 %v372_v32, %v371_v41 }
 0x1db   :  { %6744 = vmatmul.msk.bf16.gmra.mxu3 %vm459_vm1, %v420_v47 }
 0x1eb   :  { %6745 = vmatmul.msk.bf16.gmra.mxu3 %vm459_vm1, %v421_v53 }
 0x1fb   :  { %6746 = vmatmul.msk.bf16.gmra.mxu3 %vm459_vm1, %v422_v58  ;;  %v374_v58 = vmul.f32 %v8639_v14, %v8581_v35 }
 0x1fd   :  { %v429_v1 = vpack.c.bf16 %v374_v58, %v373_v61  ;;  %v380_v58 = vmul.f32 %v8639_v14, %v8612_v63  ;;  %v379_v61 = vmul.f32 %v8639_v14, %v8606_v59 }
 0x20b   :  { %6747 = vmatmul.msk.bf16.gmra.mxu3 %vm459_vm1, %v423_v62 }
 0x21b   :  { %6748 = vmatmul.msk.bf16.gmra.mxu3 %vm459_vm1, %v424_v3 }
 0x22b   :  { %6749 = vmatmul.msk.bf16.gmra.mxu3 %vm459_vm1, %v425_v8  ;;  %v376_v8 = vmul.f32 %v8639_v14, %v8590_v50 }
 0x22d   :  { %v430_v15 = vpack.c.bf16 %v376_v8, %v375_v12  ;;  %v381_v8 = vmul.f32 %v8639_v14, %v8615_v0 }
 0x23b   :  { %6750 = vmatmul.msk.bf16.gmra.mxu3 %vm459_vm1, %v426_v13 }
 0x24b   :  { %6751 = vmatmul.msk.bf16.gmra.mxu3 %vm459_vm1, %v427_v19 }
 0x24e   :  { %v589_v24 = vpop.f32.mrf.mxu3 }
 0x24f   :  { %v8649_v26 = vadd.f32 %v589_v24, %v34_v21  ;;  %v41_v24 = vld [vmem:[%s14011_s3 + $0x38] sm:$0xff] }
 0x251   :  { %749 = vmax.xlane.f32.xlu0 %v8649_v26 }
 0x256   :  { %v591_v38 = vpop.f32.mrf.mxu3 }
 0x257   :  { %v8659_v47 = vadd.f32 %v591_v38, %v35_v29  ;;  %v378_v29 = vmul.f32 %v8639_v14, %v8601_v56  ;;  %v377_v38 = vmul.f32 %v8639_v14, %v8597_v54 }
 0x259   :  { %751 = vmax.xlane.f32.xlu0 %v8659_v47 }
 0x25b   :  { %6752 = vmatmul.msk.bf16.gmra.mxu3 %vm459_vm1, %v428_v51  ;;  %v431_v51 = vpack.c.bf16 %v378_v29, %v377_v38 }
 0x25e   :  { %v594_v53 = vpop.f32.mrf.mxu3 }
 0x25f   :  { %v8666_v55 = vadd.f32 %v594_v53, %v36_v52  ;;  %v42_v52 = vld [vmem:[%s14011_s3 + $0x40] sm:$0xff] }
 0x261   :  { %753 = vmax.xlane.f32.xlu1 %v8666_v55 }
 0x266   :  { %v596_v60 = vpop.f32.mrf.mxu3 }
 0x267   :  { %v8676_v62 = vadd.f32 %v596_v60, %v37_v57 }
 0x269   :  { %755 = vmax.xlane.f32.xlu1 %v8676_v62 }
 0x26b   :  { %6753 = vmatmul.msk.bf16.gmra.mxu3 %vm459_vm1, %v429_v1  ;;  %v432_v1 = vpack.c.bf16 %v380_v58, %v379_v61 }
 0x26e   :  { %v599_v3 = vpop.f32.mrf.mxu3 }
 0x26f   :  { %v8683_v5 = vadd.f32 %v599_v3, %v38_v2  ;;  %v382_v3 = vmul.f32 %v8639_v14, %v8622_v4 }
 0x271   :  { %757 = vmax.xlane.f32.xlu2 %v8683_v5 }
 0x276   :  { %v601_v10 = vpop.f32.mrf.mxu3 }
 0x277   :  { %v8693_v13 = vadd.f32 %v601_v10, %v39_v6  ;;  %v433_v10 = vpack.c.bf16 %v382_v3, %v381_v8 }
 0x279   :  { %759 = vmax.xlane.f32.xlu2 %v8693_v13 }
 0x27b   :  { %6754 = vmatmul.msk.bf16.gmra.mxu3 %vm459_vm1, %v430_v15  ;;  %v384_v15 = vmul.f32 %v8639_v14, %v8631_v9 }
 0x27e   :  { %v604_v19 = vpop.f32.mrf.mxu3 }
 0x27f   :  { %v8700_v21 = vadd.f32 %v604_v19, %v40_v17  ;;  %v383_v19 = vmul.f32 %v8639_v14, %v8628_v7  ;;  %v48_v14 = vld [vmem:[%s14011_s3 + $0x70] sm:$0xff] }
 0x281   :  { %761 = vmax.xlane.f32.xlu0 %v8700_v21 }
 0x286   :  { %v606_v32 = vpop.f32.mrf.mxu3 }
 0x287   :  { %v8710_v41 = vadd.f32 %v606_v32, %v41_v24  ;;  %v434_v24 = vpack.c.bf16 %v384_v15, %v383_v19  ;;  %v8742_v32 = vperm.slane %v8568_v22, 2 }
 0x289   :  { %763 = vmax.xlane.f32.xlu1 %v8710_v41  ;;  %14148 = vst [vmem:[#allocation16_spill] sm:$0xff] %v8742_v32 }
 0x28b   :  { %6755 = vmatmul.msk.bf16.gmra.mxu3 %vm459_vm1, %v431_v51  ;;  %v387_v51 = vmul.f32 %v8742_v32, %v8556_v16 }
 0x28e   :  { %v609_v53 = vpop.f32.mrf.mxu3 }
 0x28f   :  { %v8717_v57 = vadd.f32 %v609_v53, %v42_v52  ;;  %v386_v53 = vmul.f32 %v8742_v32, %v8553_v11 }
 0x291   :  { %765 = vmax.xlane.f32.xlu1 %v8717_v57  ;;  %v435_v61 = vpack.c.bf16 %v387_v51, %v386_v53  ;;  %v388_v53 = vmul.f32 %v8742_v32, %v8559_v18 }
 0x296   :  { %v611_v60 = vpop.f32.mrf.mxu3 }
 0x29b   :  { %6756 = vmatmul.msk.bf16.gmra.mxu3 %vm459_vm1, %v432_v1 }
 0x29e   :  { %v614_v2 = vpop.f32.mrf.mxu3 }
 0x2a6   :  { %v616_v6 = vpop.f32.mrf.mxu3 }
 0x2ab   :  { %6757 = vmatmul.msk.bf16.gmra.mxu3 %vm459_vm1, %v433_v10 }
 0x2ae   :  { %v8730_v12 = vpop.f32.mrf.mxu3 }
 0x2b6   :  { %v8734_v17 = vpop.f32.mrf.mxu3 }
 0x2bb   :  { %6758 = vmatmul.msk.bf16.gmra.mxu3 %vm459_vm1, %v434_v24 }
 0x2be   :  { %v8739_v29 = vpop.f32.mrf.mxu3 }
 0x2c4   :  { %v750_v38 = vpop.xlane.xlu0 %749 }
 0x2c5   :  { %v877_v52 = vsub.f32 %v8649_v26, %v750_v38  ;;  %v43_v26 = vld [vmem:[%s14011_s3 + $0x48] sm:$0xff]  ;;  %v389_v38 = vmul.f32 %v8742_v32, %v8562_v20 }
 0x2c6   :  { %v8749_v1 = vpop.f32.mrf.mxu3 }
 0x2c7   :  { %v941_v58 = vmul.f32 1.442695, %v877_v52  ;;  %v8764_v52 = vadd.f32 %v611_v60, %v43_v26 }
 0x2c9   :  { %7149 = vpow2.f32 %v941_v58 }
 0x2cb   :  { %6759 = vmatmul.msk.bf16.gmra.mxu3 %vm459_vm1, %v435_v61  ;;  %v436_v61 = vpack.c.bf16 %v389_v38, %v388_v53  ;;  %v45_v38 = vld [vmem:[%s14011_s3 + $0x58] sm:$0xff] }
 0x2cc   :  { %v752_v3 = vpop.xlane.xlu0 %751  ;;  %v8791_v53 = vadd.f32 %v616_v6, %v45_v38 }
 0x2cd   :  { %v878_v8 = vsub.f32 %v8659_v47, %v752_v3  ;;  %v44_v3 = vld [vmem:[%s14011_s3 + $0x50] sm:$0xff] }
 0x2ce   :  { %v8759_v19 = vpop.f32.mrf.mxu3 }
 0x2cf   :  { %v8753_v10 = vpop.eup %7149  ;;  %v943_v15 = vmul.f32 1.442695, %v878_v8  ;;  %v8777_v8 = vadd.f32 %v614_v2, %v44_v3 }
 0x2d0   :  { %1069 = vadd.xlane.f32.xlu2 %v8753_v10 }
 0x2d1   :  { %7151 = vpow2.f32 %v943_v15 }
 0x2d4   :  { %v754_v24 = vpop.xlane.xlu1 %753 }
 0x2d5   :  { %v879_v51 = vsub.f32 %v8666_v55, %v754_v24 }
 0x2d6   :  { %v8779_v15 = vpop.f32.mrf.mxu3 }
 0x2d7   :  { %v8766_v47 = vpop.eup %7151  ;;  %v945_v58 = vmul.f32 1.442695, %v879_v51 }
 0x2d8   :  { %767 = vmax.xlane.f32.xlu2 %v8764_v52  ;;  %1071 = vadd.xlane.f32.xlu0 %v8766_v47 }
 0x2d9   :  { %7153 = vpow2.f32 %v945_v58 }
 0x2db   :  { %6760 = vmatmul.msk.bf16.gmra.mxu3 %vm459_vm1, %v436_v61  ;;  %v390_v61 = vmul.f32 %v8742_v32, %v8574_v25 }
 0x2dc   :  { %v756_v55 = vpop.xlane.xlu1 %755 }
 0x2dd   :  { %v880_v60 = vsub.f32 %v8676_v62, %v756_v55  ;;  %v391_v62 = vmul.f32 %v8742_v32, %v8581_v35 }
 0x2de   :  { %v8797_v55 = vpop.f32.mrf.mxu3 }
 0x2df   :  { %v8781_v26 = vpop.eup %7153  ;;  %v947_v24 = vmul.f32 1.442695, %v880_v60  ;;  %v437_v60 = vpack.c.bf16 %v391_v62, %v390_v61  ;;  %v47_v61 = vld [vmem:[%s14011_s3 + $0x68] sm:$0xff] }
 0x2e0   :  { %769 = vmax.xlane.f32.xlu2 %v8777_v8  ;;  %1073 = vadd.xlane.f32.xlu0 %v8781_v26 }
 0x2e1   :  { %7155 = vpow2.f32 %v947_v24 }
 0x2e4   :  { %v758_v51 = vpop.xlane.xlu2 %757 }
 0x2e5   :  { %v881_v2 = vsub.f32 %v8683_v5, %v758_v51  ;;  %v46_v5 = vld [vmem:[%s14011_s3 + $0x60] sm:$0xff] }
 0x2e6   :  { %v8807_v38 = vadd.f32 %v8730_v12, %v46_v5  ;;  %v8813_v62 = vpop.f32.mrf.mxu3 }
 0x2e7   :  { %v8793_v58 = vpop.eup %7155  ;;  %v949_v3 = vmul.f32 1.442695, %v881_v2 }
 0x2e8   :  { %1075 = vadd.xlane.f32.xlu1 %v8793_v58  ;;  %771 = vmax.xlane.f32.xlu0 %v8791_v53 }
 0x2e9   :  { %7157 = vpow2.f32 %v949_v3 }
 0x2eb   :  { %6761 = vmatmul.msk.bf16.gmra.mxu3 %vm459_vm1, %v437_v60  ;;  %v8822_v60 = vadd.f32 %v8734_v17, %v47_v61 }
 0x2ec   :  { %v760_v6 = vpop.xlane.xlu2 %759 }
 0x2ed   :  { %v882_v24 = vsub.f32 %v8693_v13, %v760_v6  ;;  %v393_v13 = vmul.f32 %v8742_v32, %v8590_v50  ;;  %v392_v6 = vmul.f32 %v8742_v32, %v8587_v44 }
 0x2ef   :  { %v8809_v51 = vpop.eup %7157  ;;  %v951_v2 = vmul.f32 1.442695, %v882_v24 }
 0x2f0   :  { %1077 = vadd.xlane.f32.xlu1 %v8809_v51  ;;  %773 = vmax.xlane.f32.xlu0 %v8807_v38 }
 0x2f1   :  { %7159 = vpow2.f32 %v951_v2  ;;  %v438_v2 = vpack.c.bf16 %v393_v13, %v392_v6  ;;  %v49_v13 = vld [vmem:[%s14011_s3 + $0x78] sm:$0xff] }
 0x2f4   :  { %v762_v3 = vpop.xlane.xlu0 %761 }
 0x2f5   :  { %v883_v12 = vsub.f32 %v8700_v21, %v762_v3  ;;  %v8834_v21 = vpop.f32.mrf.mxu3  ;;  %v8838_v3 = vadd.f32 %v8739_v29, %v48_v14  ;;  %v8853_v29 = vadd.f32 %v8749_v1, %v49_v13 }
 0x2f7   :  { %v8824_v5 = vpop.eup %7159  ;;  %v953_v24 = vmul.f32 1.442695, %v883_v12 }
 0x2f8   :  { %775 = vmax.xlane.f32.xlu1 %v8822_v60  ;;  %1079 = vadd.xlane.f32.xlu2 %v8824_v5 }
 0x2f9   :  { %7161 = vpow2.f32 %v953_v24  ;;  %v395_v24 = vmul.f32 %v8742_v32, %v8601_v56 }
 0x2fb   :  { %6762 = vmatmul.msk.bf16.gmra.mxu3 %vm459_vm1, %v438_v2 }
 0x2fc   :  { %v764_v17 = vpop.xlane.xlu1 %763 }
 0x2fd   :  { %v884_v61 = vsub.f32 %v8710_v41, %v764_v17  ;;  %v8850_v14 = vpop.f32.mrf.mxu3 }
 0x2ff   :  { %v8840_v12 = vpop.eup %7161  ;;  %v955_v23 = vmul.f32 1.442695, %v884_v61 }
 0x300   :  { %1081 = vadd.xlane.f32.xlu2 %v8840_v12  ;;  %777 = vmax.xlane.f32.xlu1 %v8838_v3 }
 0x301   :  { %7163 = vpow2.f32 %v955_v23  ;;  %v394_v23 = vmul.f32 %v8742_v32, %v8597_v54 }
 0x303   :  { %v439_v61 = vpack.c.bf16 %v395_v24, %v394_v23  ;;  %v51_v24 = vld [vmem:[%s14011_s3 + $0x88] sm:$0xff] }
 0x304   :  { %v766_v6 = vpop.xlane.xlu1 %765  ;;  %v8880_v23 = vadd.f32 %v8779_v15, %v51_v24  ;;  %v399_v24 = vmul.f32 %v8742_v32, %v8622_v4 }
 0x305   :  { %v885_v41 = vsub.f32 %v8717_v57, %v766_v6  ;;  %v50_v57 = vld [vmem:[%s14011_s3 + $0x80] sm:$0xff]  ;;  %v8870_v6 = vpop.f32.mrf.mxu3 }
 0x306   :  { %v8866_v1 = vadd.f32 %v8759_v19, %v50_v57  ;;  %v396_v19 = vmul.f32 %v8742_v32, %v8606_v59  ;;  %v52_v57 = vld [vmem:[%s14011_s3 + $0x90] sm:$0xff] }
 0x307   :  { %v8855_v2 = vpop.eup %7163  ;;  %v957_v17 = vmul.f32 1.442695, %v885_v41  ;;  %v397_v41 = vmul.f32 %v8742_v32, %v8612_v63  ;;  %v8892_v49 = vadd.f32 %v8797_v55, %v52_v57  ;;  %v400_v55 = vmul.f32 %v8742_v32, %v8628_v7 }
 0x308   :  { %1083 = vadd.xlane.f32.xlu0 %v8855_v2  ;;  %779 = vmax.xlane.f32.xlu2 %v8853_v29 }
 0x309   :  { %7165 = vpow2.f32 %v957_v17  ;;  %v440_v17 = vpack.c.bf16 %v397_v41, %v396_v19  ;;  %v398_v41 = vmul.f32 %v8742_v32, %v8615_v0 }
 0x30b   :  { %6763 = vmatmul.msk.bf16.gmra.mxu3 %vm459_vm1, %v439_v61  ;;  %v441_v19 = vpack.c.bf16 %v399_v24, %v398_v41  ;;  %v404_v41 = vmul.f32 %v8914_v43, %v8556_v16 }
 0x30d   :  { %v8885_v61 = vpop.f32.mrf.mxu3 }
 0x30f   :  { %v8868_v13 = vpop.eup %7165 }
 0x310   :  { %1085 = vadd.xlane.f32.xlu0 %v8868_v13  ;;  %781 = vmax.xlane.f32.xlu2 %v8866_v1 }
 0x315   :  { %v8895_v15 = vpop.f32.mrf.mxu3 }
 0x318   :  { %783 = vmax.xlane.f32.xlu0 %v8880_v23 }
 0x31b   :  { %6764 = vmatmul.msk.bf16.gmra.mxu3 %vm459_vm1, %v440_v17  ;;  %v401_v17 = vmul.f32 %v8742_v32, %v8631_v9 }
 0x31d   :  { %v8902_v48 = vpop.f32.mrf.mxu3  ;;  %v442_v46 = vpack.c.bf16 %v401_v17, %v400_v55 }
 0x320   :  { %785 = vmax.xlane.f32.xlu0 %v8892_v49 }
 0x325   :  { %v8908_v57 = vpop.f32.mrf.mxu3 }
 0x32b   :  { %6765 = vmatmul.msk.bf16.gmra.mxu3 %vm459_vm1, %v441_v19  ;;  %v403_v19 = vmul.f32 %v8914_v43, %v8553_v11 }
 0x32d   :  { %v8911_v45 = vpop.f32.mrf.mxu3  ;;  %v443_v42 = vpack.c.bf16 %v404_v41, %v403_v19 }
 0x335   :  { %v8921_v17 = vpop.f32.mrf.mxu3 }
 0x33b   :  { %6766 = vmatmul.msk.bf16.gmra.mxu3 %vm459_vm1, %v442_v46 }
 0x343   :  { %v1070_v24 = vpop.xlane.xlu2 %1069 }
 0x344   :  { %7167 = vrcp.f32 %v1070_v24 }
 0x34a   :  { %v7168_v55 = vpop.eup %7167 }
 0x34b   :  { %v768_v32 = vpop.xlane.xlu2 %767  ;;  %v1072_v40 = vpop.xlane.xlu0 %1071  ;;  %6767 = vmatmul.msk.bf16.gmra.mxu3 %vm459_vm1, %v443_v42  ;;  %v1261_v36 = vmul.f32 %v7168_v55, %v8753_v10  ;;  %v406_v42 = vmul.f32 %v8914_v43, %v8562_v20 }
 0x34c   :  { %v886_v46 = vsub.f32 %v8764_v52, %v768_v32  ;;  %7169 = vrcp.f32 %v1072_v40  ;;  %v8931_v32 = vpop.f32.mrf.mxu3  ;;  %v405_v52 = vmul.f32 %v8914_v43, %v8559_v18 }
 0x34e   :  { %v959_v22 = vmul.f32 1.442695, %v886_v46  ;;  %v444_v10 = vpack.c.bf16 %v406_v42, %v405_v52  ;;  %v408_v42 = vmul.f32 %v8914_v43, %v8581_v35  ;;  %v54_v35 = vld [vmem:[%s14011_s3 + $0xa0] sm:$0xff] }
 0x350   :  { %7171 = vpow2.f32 %v959_v22 }
 0x352   :  { %v7170_v39 = vpop.eup %7169 }
 0x353   :  { %v770_v37 = vpop.xlane.xlu2 %769  ;;  %v1074_v16 = vpop.xlane.xlu0 %1073  ;;  %v1262_v11 = vmul.f32 %v7170_v39, %v8766_v47 }
 0x354   :  { %v887_v24 = vsub.f32 %v8777_v8, %v770_v37  ;;  %v8941_v18 = vpop.f32.mrf.mxu3 }
 0x355   :  { %v1325_v41 = vpack.c.bf16 %v1262_v11, %v1261_v36 }
 0x356   :  { %v8929_v19 = vpop.eup %7171  ;;  %v961_v40 = vmul.f32 1.442695, %v887_v24 }
 0x357   :  { %1365 = vmatmul.bf16.vlgmr.msrb.gmra.mxu0 %v1325_v41  ;;  %1087 = vadd.xlane.f32.xlu1 %v8929_v19 }
 0x358   :  { %7173 = vpow2.f32 %v961_v40 }
 0x359   :  { %7175 = vrcp.f32 %v1074_v16 }
 0x35b   :  { %v1076_v39 = vpop.xlane.xlu1 %1075  ;;  %v772_v37 = vpop.xlane.xlu0 %771  ;;  %6768 = vmatmul.msk.bf16.gmra.mxu3 %vm459_vm1, %v444_v10 }
 0x35c   :  { %7177 = vrcp.f32 %v1076_v39  ;;  %v888_v36 = vsub.f32 %v8791_v53, %v772_v37  ;;  %v53_v53 = vld [vmem:[%s14011_s3 + $0x98] sm:$0xff] }
 0x35d   :  { %v8954_v10 = vadd.f32 %v8813_v62, %v53_v53  ;;  %v410_v53 = vmul.f32 %v8914_v43, %v8590_v50  ;;  %v56_v50 = vld [vmem:[%s14011_s3 + $0xb0] sm:$0xff] }
 0x35e   :  { %v8938_v20 = vpop.eup %7173  ;;  %v963_v47 = vmul.f32 1.442695, %v888_v36  ;;  %v8970_v36 = vadd.f32 %v8834_v21, %v54_v35  ;;  %v9001_v35 = vadd.f32 %v8870_v6, %v56_v50  ;;  %v57_v6 = vld [vmem:[%s14011_s3 + $0xb8] sm:$0xff] }
 0x35f   :  { %1089 = vadd.xlane.f32.xlu1 %v8938_v20  ;;  %v7176_v8 = vpop.eup %7175 }
 0x360   :  { %7179 = vpow2.f32 %v963_v47  ;;  %v1263_v16 = vmul.f32 %v7176_v8, %v8781_v26  ;;  %v407_v26 = vmul.f32 %v8914_v43, %v8574_v25 }
 0x362   :  { %v7178_v46 = vpop.eup %7177 }
 0x363   :  { %v1078_v22 = vpop.xlane.xlu1 %1077  ;;  %v774_v55 = vpop.xlane.xlu0 %773  ;;  %v1264_v11 = vmul.f32 %v7178_v46, %v8793_v58  ;;  %v445_v58 = vpack.c.bf16 %v408_v42, %v407_v26 }
 0x364   :  { %v889_v24 = vsub.f32 %v8807_v38, %v774_v55  ;;  %v8960_v38 = vpop.f32.mrf.mxu3 }
 0x365   :  { %v1326_v41 = vpack.c.bf16 %v1264_v11, %v1263_v16  ;;  %v55_v11 = vld [vmem:[%s14011_s3 + $0xa8] sm:$0xff] }
 0x366   :  { %v8951_v40 = vpop.eup %7179  ;;  %v965_v52 = vmul.f32 1.442695, %v889_v24  ;;  %v8987_v26 = vadd.f32 %v8850_v14, %v55_v11 }
 0x367   :  { %1370 = vmatmul.bf16.gmra.mxu0 %v1326_v41  ;;  %1091 = vadd.xlane.f32.xlu2 %v8951_v40 }
 0x368   :  { %7181 = vpow2.f32 %v965_v52  ;;  %787 = vmax.xlane.f32.xlu1 %v8954_v10 }
 0x369   :  { %7183 = vrcp.f32 %v1078_v22 }
 0x36b   :  { %v776_v39 = vpop.xlane.xlu1 %775  ;;  %v1080_v62 = vpop.xlane.xlu2 %1079  ;;  %6769 = vmatmul.msk.bf16.gmra.mxu3 %vm459_vm1, %v445_v58 }
 0x36c   :  { %v890_v25 = vsub.f32 %v8822_v60, %v776_v39  ;;  %7185 = vrcp.f32 %v1080_v62  ;;  %v8982_v24 = vpop.f32.mrf.mxu3 }
 0x36e   :  { %v8967_v37 = vpop.eup %7181  ;;  %v967_v47 = vmul.f32 1.442695, %v890_v25 }
 0x36f   :  { %1093 = vadd.xlane.f32.xlu2 %v8967_v37  ;;  %v7184_v8 = vpop.eup %7183 }
 0x370   :  { %7187 = vpow2.f32 %v967_v47  ;;  %789 = vmax.xlane.f32.xlu1 %v8970_v36  ;;  %v1265_v16 = vmul.f32 %v7184_v8, %v8809_v51  ;;  %v409_v51 = vmul.f32 %v8914_v43, %v8587_v44 }
 0x372   :  { %v7186_v46 = vpop.eup %7185 }
 0x373   :  { %v1082_v22 = vpop.xlane.xlu2 %1081  ;;  %v778_v55 = vpop.xlane.xlu1 %777  ;;  %v1266_v60 = vmul.f32 %v7186_v46, %v8824_v5  ;;  %v446_v5 = vpack.c.bf16 %v410_v53, %v409_v51  ;;  %v9020_v53 = vadd.f32 %v8885_v61, %v57_v6 }
 0x374   :  { %v891_v21 = vsub.f32 %v8838_v3, %v778_v55  ;;  %v9003_v62 = vpop.f32.mrf.mxu3 }
 0x375   :  { %v1327_v42 = vpack.c.bf16 %v1266_v60, %v1265_v16  ;;  %v412_v16 = vmul.f32 %v8914_v43, %v8601_v56  ;;  %v58_v56 = vld [vmem:[%s14011_s3 + $0xc0] sm:$0xff] }
 0x376   :  { %v8984_v41 = vpop.eup %7187  ;;  %v969_v52 = vmul.f32 1.442695, %v891_v21 }
 0x377   :  { %1375 = vmatmul.bf16.gmra.mxu0 %v1327_v42  ;;  %1095 = vadd.xlane.f32.xlu0 %v8984_v41 }
 0x378   :  { %7189 = vpow2.f32 %v969_v52  ;;  %791 = vmax.xlane.f32.xlu2 %v8987_v26 }
 0x379   :  { %7191 = vrcp.f32 %v1082_v22 }
 0x37b   :  { %v1084_v3 = vpop.xlane.xlu0 %1083  ;;  %6770 = vmatmul.msk.bf16.gmra.mxu3 %vm459_vm1, %v446_v5  ;;  %v780_v14 = vpop.xlane.xlu2 %779  ;;  %v59_v5 = vld [vmem:[%s14011_s3 + $0xc8] sm:$0xff] }
 0x37c   :  { %7193 = vrcp.f32 %v1084_v3  ;;  %v892_v58 = vsub.f32 %v8853_v29, %v780_v14  ;;  %v414_v14 = vmul.f32 %v8914_v43, %v8612_v63 }
 0x37e   :  { %v8998_v44 = vpop.eup %7189  ;;  %v971_v39 = vmul.f32 1.442695, %v892_v58 }
 0x37f   :  { %1097 = vadd.xlane.f32.xlu0 %v8998_v44  ;;  %v7192_v25 = vpop.eup %7191 }
 0x380   :  { %7195 = vpow2.f32 %v971_v39  ;;  %793 = vmax.xlane.f32.xlu2 %v9001_v35  ;;  %v1267_v29 = vmul.f32 %v7192_v25, %v8840_v12  ;;  %v411_v12 = vmul.f32 %v8914_v43, %v8597_v54  ;;  %v9036_v54 = vadd.f32 %v8895_v15, %v58_v56 }
 0x381   :  { %v9049_v15 = vadd.f32 %v8902_v48, %v59_v5  ;;  %v413_v25 = vmul.f32 %v8914_v43, %v8606_v59  ;;  %v61_v59 = vld [vmem:[%s14011_s3 + $0xd8] sm:$0xff] }
 0x382   :  { %v7194_v47 = vpop.eup %7193 }
 0x383   :  { %v9007_v8 = vpop.xlane.xlu0 %1085  ;;  %v782_v46 = vpop.xlane.xlu2 %781  ;;  %v1268_v22 = vmul.f32 %v7194_v47, %v8855_v2  ;;  %v448_v47 = vpack.c.bf16 %v414_v14, %v413_v25 }
 0x384   :  { %v893_v55 = vsub.f32 %v8866_v1, %v782_v46  ;;  %v9026_v2 = vpop.f32.mrf.mxu3  ;;  %v447_v1 = vpack.c.bf16 %v412_v16, %v411_v12  ;;  %v62_v16 = vld [vmem:[%s14011_s3 + $0xe0] sm:$0xff] }
 0x385   :  { %v1328_v60 = vpack.c.bf16 %v1268_v22, %v1267_v29  ;;  %v416_v29 = vmul.f32 %v8914_v43, %v8622_v4  ;;  %v9076_v22 = vadd.f32 %v8911_v45, %v61_v59  ;;  %v417_v4 = vmul.f32 %v8914_v43, %v8628_v7 }
 0x386   :  { %v9017_v11 = vpop.eup %7195  ;;  %v973_v21 = vmul.f32 1.442695, %v893_v55 }
 0x387   :  { %1380 = vmatmul.bf16.gmra.mxu0 %v1328_v60  ;;  %1099 = vadd.xlane.f32.xlu1 %v9017_v11  ;;  %v9088_v60 = vadd.f32 %v8921_v17, %v62_v16 }
 0x388   :  { %7197 = vpow2.f32 %v973_v21  ;;  %795 = vmax.xlane.f32.xlu0 %v9020_v53 }
 0x38b   :  { %6771 = vmatmul.msk.bf16.gmra.mxu3 %vm459_vm1, %v447_v1  ;;  %v784_v61 = vpop.xlane.xlu0 %783 }
 0x38c   :  { %v894_v42 = vsub.f32 %v8880_v23, %v784_v61  ;;  %v9043_v50 = vpop.f32.mrf.mxu3 }
 0x38e   :  { %v9033_v52 = vpop.eup %7197  ;;  %v975_v51 = vmul.f32 1.442695, %v894_v42 }
 0x38f   :  { %1101 = vadd.xlane.f32.xlu1 %v9033_v52 }
 0x390   :  { %7199 = vpow2.f32 %v975_v51  ;;  %797 = vmax.xlane.f32.xlu0 %v9036_v54 }
 0x393   :  { %v786_v3 = vpop.xlane.xlu0 %785 }
 0x394   :  { %v895_v23 = vsub.f32 %v8892_v49, %v786_v3  ;;  %v60_v49 = vld [vmem:[%s14011_s3 + $0xd0] sm:$0xff]  ;;  %v9064_v63 = vpop.f32.mrf.mxu3 }
 0x395   :  { %v9062_v48 = vadd.f32 %v8908_v57, %v60_v49  ;;  %v415_v57 = vmul.f32 %v8914_v43, %v8615_v0  ;;  %v418_v0 = vmul.f32 %v8914_v43, %v8631_v9 }
 0x396   :  { %v9051_v58 = vpop.eup %7199  ;;  %v977_v39 = vmul.f32 1.442695, %v895_v23 }
 0x397   :  { %1103 = vadd.xlane.f32.xlu2 %v9051_v58  ;;  %799 = vmax.xlane.f32.xlu1 %v9049_v15  ;;  %v449_v55 = vpack.c.bf16 %v416_v29, %v415_v57  ;;  %v450_v21 = vpack.c.bf16 %v418_v0, %v417_v4 }
 0x398   :  { %7201 = vpow2.f32 %v977_v39 }
 0x399   :  { %7203 = vrcp.f32 %v9007_v8 }
 0x39b   :  { %6772 = vmatmul.msk.bf16.gmra.mxu3 %vm459_vm1, %v448_v47 }
 0x39c   :  { %v9080_v6 = vpop.f32.mrf.mxu3 }
 0x39e   :  { %v9066_v46 = vpop.eup %7201 }
 0x39f   :  { %1105 = vadd.xlane.f32.xlu2 %v9066_v46  ;;  %801 = vmax.xlane.f32.xlu1 %v9062_v48  ;;  %v7204_v17 = vpop.eup %7203 }
 0x3a0   :  { %v1269_v42 = vmul.f32 %v7204_v17, %v8868_v13 }
 0x3a4   :  { %v9091_v45 = vpop.f32.mrf.mxu3 }
 0x3a7   :  { %803 = vmax.xlane.f32.xlu2 %v9076_v22 }
 0x3ab   :  { %6773 = vmatmul.msk.bf16.gmra.mxu3 %vm459_vm1, %v449_v55 }
 0x3ac   :  { %v9097_v12 = vpop.f32.mrf.mxu3 }
 0x3af   :  { %805 = vmax.xlane.f32.xlu2 %v9088_v60 }
 0x3bb   :  { %6774 = vmatmul.msk.bf16.gmra.mxu3 %vm459_vm1, %v450_v21 }
 0x3ca   :  { %v1088_v1 = vpop.xlane.xlu1 %1087 }
 0x3cb   :  { %7205 = vrcp.f32 %v1088_v1  ;;  %v63_v1 = vld [vmem:[%s14011_s3 + $0xe8] sm:$0xff] }
 0x3d1   :  { %v7206_v56 = vpop.eup %7205 }
 0x3d2   :  { %v1090_v61 = vpop.xlane.xlu1 %1089  ;;  %v1270_v51 = vmul.f32 %v7206_v56, %v8929_v19 }
 0x3d3   :  { %7207 = vrcp.f32 %v1090_v61  ;;  %v9121_v61 = vadd.f32 %v8931_v32, %v63_v1 }
 0x3d4   :  { %v1329_v9 = vpack.c.bf16 %v1270_v51, %v1269_v42 }
 0x3d6   :  { %1385 = vmatmul.bf16.gmra.mxu0 %v1329_v9 }
 0x3d9   :  { %v7208_v14 = vpop.eup %7207 }
 0x3da   :  { %v1092_v7 = vpop.xlane.xlu2 %1091  ;;  %v1271_v25 = vmul.f32 %v7208_v14, %v8938_v20 }
 0x3db   :  { %7209 = vrcp.f32 %v1092_v7  ;;  %v788_v5 = vpop.xlane.xlu1 %787 }
 0x3dc   :  { %v896_v3 = vsub.f32 %v8954_v10, %v788_v5 }
 0x3de   :  { %v979_v23 = vmul.f32 1.442695, %v896_v3 }
 0x3e0   :  { %7211 = vpow2.f32 %v979_v23 }
 0x3e1   :  { %v7210_v8 = vpop.eup %7209 }
 0x3e2   :  { %v1094_v39 = vpop.xlane.xlu2 %1093  ;;  %v1272_v47 = vmul.f32 %v7210_v8, %v8951_v40  ;;  %v65_v8 = vld [vmem:[%s14011_s3 + $0xf8] sm:$0xff] }
 0x3e3   :  { %v790_v13 = vpop.xlane.xlu1 %789 }
 0x3e4   :  { %v897_v19 = vsub.f32 %v8970_v36, %v790_v13  ;;  %v1330_v49 = vpack.c.bf16 %v1272_v47, %v1271_v25  ;;  %v9144_v13 = vpop.f32.mrf.mxu0 }
 0x3e6   :  { %v9107_v59 = vpop.eup %7211  ;;  %v981_v29 = vmul.f32 1.442695, %v897_v19  ;;  %1390 = vmatmul.bf16.gmra.mxu0 %v1330_v49  ;;  %v9147_v19 = vadd.f32 %v8960_v38, %v65_v8  ;;  %v70_v8 = vld [vmem:[%s14011_s3 + $0x120] sm:$0xff] }
 0x3e7   :  { %1107 = vadd.xlane.f32.xlu0 %v9107_v59 }
 0x3e8   :  { %7213 = vpow2.f32 %v981_v29 }
 0x3e9   :  { %7215 = vrcp.f32 %v1094_v39 }
 0x3ea   :  { %v1096_v10 = vpop.xlane.xlu0 %1095 }
 0x3eb   :  { %7217 = vrcp.f32 %v1096_v10  ;;  %v792_v57 = vpop.xlane.xlu2 %791 }
 0x3ec   :  { %v898_v55 = vsub.f32 %v8987_v26, %v792_v57 }
 0x3ee   :  { %v9111_v20 = vpop.eup %7213  ;;  %v983_v40 = vmul.f32 1.442695, %v898_v55 }
 0x3ef   :  { %v7216_v16 = vpop.eup %7215  ;;  %1109 = vadd.xlane.f32.xlu0 %v9111_v20 }
 0x3f0   :  { %7219 = vpow2.f32 %v983_v40  ;;  %v1273_v4 = vmul.f32 %v7216_v16, %v8967_v37  ;;  %v64_v37 = vld [vmem:[%s14011_s3 + $0xf0] sm:$0xff]  ;;  %v9162_v16 = vpop.f32.mrf.mxu0 }
 0x3f1   :  { %v7218_v36 = vpop.eup %7217  ;;  %v9132_v9 = vadd.f32 %v8941_v18, %v64_v37 }
 0x3f2   :  { %v1098_v0 = vpop.xlane.xlu0 %1097  ;;  %v1274_v21 = vmul.f32 %v7218_v36, %v8984_v41 }
 0x3f3   :  { %v794_v17 = vpop.xlane.xlu2 %793 }
 0x3f4   :  { %v899_v26 = vsub.f32 %v9001_v35, %v794_v17  ;;  %v1331_v56 = vpack.c.bf16 %v1274_v21, %v1273_v4 }
 0x3f6   :  { %v9123_v42 = vpop.eup %7219  ;;  %v985_v51 = vmul.f32 1.442695, %v899_v26  ;;  %1395 = vmatmul.bf16.gmra.mxu0 %v1331_v56 }
 0x3f7   :  { %1111 = vadd.xlane.f32.xlu1 %v9123_v42  ;;  %807 = vmax.xlane.f32.xlu0 %v9121_v61 }
 0x3f8   :  { %7221 = vpow2.f32 %v985_v51  ;;  %v9179_v37 = vpop.f32.mrf.mxu0 }
 0x3f9   :  { %7223 = vrcp.f32 %v1098_v0 }
 0x3fa   :  { %v1100_v41 = vpop.xlane.xlu1 %1099 }
 0x3fb   :  { %v796_v35 = vpop.xlane.xlu0 %795  ;;  %7225 = vrcp.f32 %v1100_v41 }
 0x3fc   :  { %v900_v32 = vsub.f32 %v9020_v53, %v796_v35 }
 0x3fe   :  { %v9134_v7 = vpop.eup %7221  ;;  %v987_v5 = vmul.f32 1.442695, %v900_v32  ;;  %v69_v32 = vld [vmem:[%s14011_s3 + $0x118] sm:$0xff] }
 0x3ff   :  { %v7224_v3 = vpop.eup %7223  ;;  %1113 = vadd.xlane.f32.xlu1 %v9134_v7  ;;  %809 = vmax.xlane.f32.xlu0 %v9132_v9 }
 0x400   :  { %7227 = vpow2.f32 %v987_v5  ;;  %v1275_v53 = vmul.f32 %v7224_v3, %v8998_v44  ;;  %v66_v44 = vld [vmem:[%s14011_s3 + $0x100] sm:$0xff]  ;;  %v9195_v3 = vpop.f32.mrf.mxu0 }
 0x401   :  { %v7226_v23 = vpop.eup %7225  ;;  %v9158_v10 = vadd.f32 %v8982_v24, %v66_v44 }
 0x402   :  { %v1102_v14 = vpop.xlane.xlu1 %1101  ;;  %v1276_v18 = vmul.f32 %v7226_v23, %v9017_v11  ;;  %v9199_v23 = vadd.f32 %v9043_v50, %v69_v32  ;;  %v71_v50 = vld [vmem:[%s14011_s3 + $0x128] sm:$0xff] }
 0x403   :  { %v798_v39 = vpop.xlane.xlu0 %797 }
 0x404   :  { %v901_v25 = vsub.f32 %v9036_v54, %v798_v39  ;;  %v1332_v47 = vpack.c.bf16 %v1276_v18, %v1275_v53  ;;  %v9209_v53 = vadd.f32 %v9064_v63, %v70_v8  ;;  %v9221_v39 = vadd.f32 %v9080_v6, %v71_v50  ;;  %v72_v63 = vld [vmem:[%s14011_s3 + $0x130] sm:$0xff] }
 0x406   :  { %v9149_v49 = vpop.eup %7227  ;;  %v989_v29 = vmul.f32 1.442695, %v901_v25  ;;  %1400 = vmatmul.bf16.gmra.mxu0 %v1332_v47  ;;  %v9230_v47 = vadd.f32 %v9091_v45, %v72_v63 }
 0x407   :  { %811 = vmax.xlane.f32.xlu1 %v9147_v19  ;;  %1115 = vadd.xlane.f32.xlu2 %v9149_v49 }
 0x408   :  { %7229 = vpow2.f32 %v989_v29 }
 0x409   :  { %7231 = vrcp.f32 %v1102_v14 }
 0x40a   :  { %v1104_v11 = vpop.xlane.xlu2 %1103  ;;  %v800_v54 = vpop.xlane.xlu1 %799 }
 0x40b   :  { %7233 = vrcp.f32 %v1104_v11  ;;  %v902_v38 = vsub.f32 %v9049_v15, %v800_v54  ;;  %v67_v15 = vld [vmem:[%s14011_s3 + $0x108] sm:$0xff] }
 0x40c   :  { %v9175_v51 = vadd.f32 %v9003_v62, %v67_v15 }
 0x40d   :  { %v991_v57 = vmul.f32 1.442695, %v902_v38 }
 0x40e   :  { %v9160_v55 = vpop.eup %7229 }
 0x40f   :  { %v7232_v40 = vpop.eup %7231  ;;  %7235 = vpow2.f32 %v991_v57  ;;  %813 = vmax.xlane.f32.xlu1 %v9158_v10  ;;  %1117 = vadd.xlane.f32.xlu2 %v9160_v55 }
 0x410   :  { %v1277_v24 = vmul.f32 %v7232_v40, %v9033_v52  ;;  %v68_v52 = vld [vmem:[%s14011_s3 + $0x110] sm:$0xff] }
 0x411   :  { %v7234_v36 = vpop.eup %7233  ;;  %v9188_v62 = vadd.f32 %v9026_v2, %v68_v52 }
 0x412   :  { %v1106_v0 = vpop.xlane.xlu2 %1105  ;;  %v802_v4 = vpop.xlane.xlu1 %801  ;;  %v1278_v21 = vmul.f32 %v7234_v36, %v9051_v58 }
 0x413   :  { %v903_v1 = vsub.f32 %v9062_v48, %v802_v4 }
 0x414   :  { %v1333_v17 = vpack.c.bf16 %v1278_v21, %v1277_v24 }
 0x415   :  { %v9172_v26 = vpop.eup %7235  ;;  %v993_v56 = vmul.f32 1.442695, %v903_v1 }
 0x416   :  { %1405 = vmatmul.bf16.gmra.mxu0 %v1333_v17  ;;  %1119 = vadd.xlane.f32.xlu0 %v9172_v26 }
 0x417   :  { %7237 = vpow2.f32 %v993_v56  ;;  %815 = vmax.xlane.f32.xlu2 %v9175_v51 }
 0x41a   :  { %v804_v58 = vpop.xlane.xlu2 %803 }
 0x41b   :  { %v904_v48 = vsub.f32 %v9076_v22, %v804_v58 }
 0x41d   :  { %v9185_v41 = vpop.eup %7237  ;;  %v995_v35 = vmul.f32 1.442695, %v904_v48 }
 0x41e   :  { %1121 = vadd.xlane.f32.xlu0 %v9185_v41 }
 0x41f   :  { %7239 = vpow2.f32 %v995_v35  ;;  %817 = vmax.xlane.f32.xlu2 %v9188_v62 }
 0x422   :  { %v806_v5 = vpop.xlane.xlu2 %805 }
 0x423   :  { %v905_v22 = vsub.f32 %v9088_v60, %v806_v5  ;;  %v9213_v60 = vpop.f32.mrf.mxu0 }
 0x425   :  { %v9201_v2 = vpop.eup %7239  ;;  %v997_v14 = vmul.f32 1.442695, %v905_v22 }
 0x426   :  { %1123 = vadd.xlane.f32.xlu1 %v9201_v2  ;;  %819 = vmax.xlane.f32.xlu0 %v9199_v23 }
 0x427   :  { %7241 = vpow2.f32 %v997_v14  ;;  %v689_v14 = vpop.f32.mrf.mxu3 }
 0x428   :  { %7243 = vrcp.f32 %v1106_v0 }
 0x42b   :  { %v9224_v25 = vpop.f32.mrf.mxu0 }
 0x42d   :  { %v9211_v18 = vpop.eup %7241 }
 0x42e   :  { %1125 = vadd.xlane.f32.xlu1 %v9211_v18  ;;  %821 = vmax.xlane.f32.xlu0 %v9209_v53  ;;  %v7244_v38 = vpop.eup %7243 }
 0x42f   :  { %v1279_v36 = vmul.f32 %v7244_v38, %v9066_v46 }
 0x433   :  { %v9233_v29 = vpop.f32.mrf.mxu0 }
 0x436   :  { %823 = vmax.xlane.f32.xlu1 %v9221_v39 }
 0x43b   :  { %v9235_v44 = vpop.f32.mrf.mxu0 }
 0x43e   :  { %825 = vmax.xlane.f32.xlu1 %v9230_v47 }
 0x453   :  { %v9237_v11 = vpop.f32.mrf.mxu0 }
 0x45a   :  { %v1108_v6 = vpop.xlane.xlu0 %1107 }
 0x45b   :  { %7245 = vrcp.f32 %v1108_v6  ;;  %v9239_v54 = vpop.f32.mrf.mxu0 }
 0x461   :  { %v7246_v57 = vpop.eup %7245 }
 0x462   :  { %v1110_v40 = vpop.xlane.xlu0 %1109  ;;  %v1280_v45 = vmul.f32 %v7246_v57, %v9107_v59  ;;  %v691_v57 = vpop.f32.mrf.mxu3 }
 0x463   :  { %v9243_v4 = vpop.f32.mrf.mxu0  ;;  %7247 = vrcp.f32 %v1110_v40  ;;  %v73_v40 = vld [vmem:[%s14011_s3 + $0x138] sm:$0xff] }
 0x464   :  { %v1334_v15 = vpack.c.bf16 %v1280_v45, %v1279_v36 }
 0x466   :  { %1410 = vmatmul.bf16.gmra.mxu0 %v1334_v15 }
 0x469   :  { %v7248_v56 = vpop.eup %7247 }
 0x46a   :  { %v808_v24 = vpop.xlane.xlu0 %807  ;;  %v1112_v21 = vpop.xlane.xlu1 %1111  ;;  %v1281_v59 = vmul.f32 %v7248_v56, %v9111_v20 }
 0x46b   :  { %v906_v0 = vsub.f32 %v9121_v61, %v808_v24  ;;  %7249 = vrcp.f32 %v1112_v21  ;;  %v9246_v1 = vpop.f32.mrf.mxu0 }
 0x46d   :  { %v999_v17 = vmul.f32 1.442695, %v906_v0  ;;  %v9271_v0 = vadd.f32 %v9097_v12, %v73_v40 }
 0x46f   :  { %7251 = vpow2.f32 %v999_v17 }
 0x471   :  { %v7250_v52 = vpop.eup %7249 }
 0x472   :  { %v810_v58 = vpop.xlane.xlu0 %809  ;;  %v1114_v46 = vpop.xlane.xlu1 %1113  ;;  %v1282_v48 = vmul.f32 %v7250_v52, %v9123_v42 }
 0x473   :  { %v907_v35 = vsub.f32 %v9132_v9, %v810_v58  ;;  %v9251_v32 = vpop.f32.mrf.mxu0 }
 0x474   :  { %v1335_v5 = vpack.c.bf16 %v1282_v48, %v1281_v59  ;;  %v694_v59 = vpop.f32.mrf.mxu3 }
 0x475   :  { %v9253_v22 = vpop.eup %7251  ;;  %v1001_v61 = vmul.f32 1.442695, %v907_v35 }
 0x476   :  { %1127 = vadd.xlane.f32.xlu2 %v9253_v22  ;;  %1415 = vmatmul.bf16.gmra.mxu0 %v1335_v5 }
 0x477   :  { %7253 = vpow2.f32 %v1001_v61 }
 0x478   :  { %7255 = vrcp.f32 %v1114_v46 }
 0x47a   :  { %v1116_v8 = vpop.xlane.xlu2 %1115  ;;  %v812_v50 = vpop.xlane.xlu1 %811 }
 0x47b   :  { %7257 = vrcp.f32 %v1116_v8  ;;  %v908_v20 = vsub.f32 %v9147_v19, %v812_v50  ;;  %v9257_v42 = vpop.f32.mrf.mxu0  ;;  %v9292_v8 = vld [vmem:[%s14010_s4] sm:$0xff] }
 0x47d   :  { %v9259_v9 = vpop.eup %7253  ;;  %v1003_v63 = vmul.f32 1.442695, %v908_v20 }
 0x47e   :  { %1129 = vadd.xlane.f32.xlu2 %v9259_v9  ;;  %v7256_v6 = vpop.eup %7255 }
 0x47f   :  { %7259 = vpow2.f32 %v1003_v63  ;;  %v1283_v15 = vmul.f32 %v7256_v6, %v9134_v7  ;;  %v74_v7 = vld [vmem:[%s14011_s3 + $0x140] sm:$0xff] }
 0x480   :  { %v9283_v46 = vadd.f32 %v689_v14, %v74_v7  ;;  %v9298_v14 = vperm.slane %v9292_v8, 5 }
 0x481   :  { %v7258_v38 = vpop.eup %7257 }
 0x482   :  { %v1118_v36 = vpop.xlane.xlu2 %1117  ;;  %v814_v45 = vpop.xlane.xlu1 %813  ;;  %v1284_v19 = vmul.f32 %v7258_v38, %v9149_v49  ;;  %v75_v38 = vld [vmem:[%s14011_s3 + $0x148] sm:$0xff] }
 0x483   :  { %v909_v24 = vsub.f32 %v9158_v10, %v814_v45  ;;  %v9268_v21 = vpop.f32.mrf.mxu0 }
 0x484   :  { %v1336_v17 = vpack.c.bf16 %v1284_v19, %v1283_v15 }
 0x485   :  { %v9273_v56 = vpop.eup %7259  ;;  %v1005_v52 = vmul.f32 1.442695, %v909_v24 }
 0x486   :  { %827 = vmax.xlane.f32.xlu2 %v9271_v0  ;;  %1420 = vmatmul.bf16.gmra.mxu0 %v1336_v17 }
 0x487   :  { %7261 = vpow2.f32 %v1005_v52  ;;  %1131 = vadd.xlane.f32.xlu0 %v9273_v56 }
 0x488   :  { %7263 = vrcp.f32 %v1118_v36 }
 0x489   :  { %v1120_v49 = vpop.xlane.xlu0 %1119 }
 0x48a   :  { %v816_v10 = vpop.xlane.xlu2 %815  ;;  %7265 = vrcp.f32 %v1120_v49 }
 0x48b   :  { %v910_v12 = vsub.f32 %v9175_v51, %v816_v10  ;;  %v9281_v58 = vpop.f32.mrf.mxu0  ;;  %v9295_v51 = vperm.slane %v9292_v8, 4 }
 0x48c   :  { %14150 = vst [vmem:[#allocation18_spill] sm:$0xff] %v9281_v58 }
 0x48d   :  { %v9285_v48 = vpop.eup %7261  ;;  %v1007_v35 = vmul.f32 1.442695, %v910_v12  ;;  %v1527_v15 = vmul.f32 %v9295_v51, %v9144_v13  ;;  %v76_v13 = vld [vmem:[%s14011_s3 + $0x150] sm:$0xff] }
 0x48e   :  { %v7264_v5 = vpop.eup %7263  ;;  %829 = vmax.xlane.f32.xlu2 %v9283_v46  ;;  %v9323_v12 = vadd.f32 %v694_v59, %v76_v13 }
 0x48f   :  { %7267 = vpow2.f32 %v1007_v35  ;;  %1133 = vadd.xlane.f32.xlu0 %v9285_v48  ;;  %v1285_v20 = vmul.f32 %v7264_v5, %v9160_v55  ;;  %v9311_v55 = vadd.f32 %v691_v57, %v75_v38 }
 0x490   :  { %v7266_v61 = vpop.eup %7265 }
 0x491   :  { %v1122_v50 = vpop.xlane.xlu0 %1121  ;;  %v1286_v63 = vmul.f32 %v7266_v61, %v9172_v26  ;;  %v696_v26 = vpop.f32.mrf.mxu3 }
 0x492   :  { %v818_v6 = vpop.xlane.xlu2 %817 }
 0x493   :  { %v911_v40 = vsub.f32 %v9188_v62, %v818_v6  ;;  %v1406_v36 = vpop.f32.mrf.mxu0  ;;  %v1337_v45 = vpack.c.bf16 %v1286_v63, %v1285_v20 }
 0x494   :  { %v1544_v19 = vmul.f32 %v9298_v14, %v1406_v36 }
 0x495   :  { %v9309_v24 = vpop.eup %7267  ;;  %v1009_v17 = vmul.f32 1.442695, %v911_v40 }
 0x496   :  { %v9313_v52 = vadd.f32 %v1544_v19, %v1527_v15  ;;  %1135 = vadd.xlane.f32.xlu1 %v9309_v24  ;;  %1425 = vmatmul.bf16.gmra.mxu0 %v1337_v45 }
 0x497   :  { %7269 = vpow2.f32 %v1009_v17  ;;  %831 = vmax.xlane.f32.xlu0 %v9311_v55 }
 0x498   :  { %7271 = vrcp.f32 %v1122_v50 }
 0x499   :  { %v820_v62 = vpop.xlane.xlu0 %819  ;;  %v1124_v7 = vpop.xlane.xlu1 %1123 }
 0x49a   :  { %v912_v49 = vsub.f32 %v9199_v23, %v820_v62  ;;  %7273 = vrcp.f32 %v1124_v7  ;;  %v699_v61 = vpop.f32.mrf.mxu3  ;;  %v77_v23 = vld [vmem:[%s14011_s3 + $0x158] sm:$0xff]  ;;  %v79_v62 = vld [vmem:[%s14011_s3 + $0x168] sm:$0xff] }
 0x49b   :  { %v9335_v45 = vadd.f32 %v696_v26, %v77_v23  ;;  %v81_v23 = vld [vmem:[%s14011_s3 + $0x178] sm:$0xff] }
 0x49c   :  { %v1011_v57 = vmul.f32 1.442695, %v912_v49 }
 0x49d   :  { %v9321_v10 = vpop.eup %7269 }
 0x49e   :  { %v7272_v35 = vpop.eup %7271  ;;  %7275 = vpow2.f32 %v1011_v57  ;;  %1137 = vadd.xlane.f32.xlu1 %v9321_v10 }
 0x49f   :  { %833 = vmax.xlane.f32.xlu0 %v9323_v12  ;;  %v1287_v63 = vmul.f32 %v7272_v35, %v9185_v41  ;;  %v78_v41 = vld [vmem:[%s14011_s3 + $0x160] sm:$0xff] }
 0x4a0   :  { %v7274_v5 = vpop.eup %7273  ;;  %v9345_v17 = vadd.f32 %v699_v61, %v78_v41 }
 0x4a1   :  { %v822_v50 = vpop.xlane.xlu0 %821  ;;  %v1126_v20 = vpop.xlane.xlu1 %1125  ;;  %v1288_v6 = vmul.f32 %v7274_v5, %v9201_v2  ;;  %v80_v5 = vld [vmem:[%s14011_s3 + $0x170] sm:$0xff] }
 0x4a2   :  { %v913_v59 = vsub.f32 %v9209_v53, %v822_v50  ;;  %v701_v2 = vpop.f32.mrf.mxu3 }
 0x4a3   :  { %v1338_v38 = vpack.c.bf16 %v1288_v6, %v1287_v63  ;;  %v9353_v49 = vadd.f32 %v701_v2, %v79_v62  ;;  %v82_v6 = vld [vmem:[%s14011_s3 + $0x180] sm:$0xff] }
 0x4a4   :  { %v9333_v40 = vpop.eup %7275  ;;  %v1013_v36 = vmul.f32 1.442695, %v913_v59 }
 0x4a5   :  { %1139 = vadd.xlane.f32.xlu2 %v9333_v40 }
 0x4a6   :  { %7277 = vpow2.f32 %v1013_v36  ;;  %835 = vmax.xlane.f32.xlu1 %v9335_v45  ;;  %1430 = vmatmul.bf16.gmra.mxu0 %v1338_v38  ;;  %v9380_v36 = vpop.f32.mrf.mxu0 }
 0x4a9   :  { %v824_v15 = vpop.xlane.xlu1 %823 }
 0x4aa   :  { %v914_v53 = vsub.f32 %v9221_v39, %v824_v15  ;;  %v704_v57 = vpop.f32.mrf.mxu3  ;;  %v1529_v15 = vmul.f32 %v9295_v51, %v9179_v37  ;;  %v1531_v37 = vmul.f32 %v9295_v51, %v9213_v60 }
 0x4ab   :  { %v9362_v61 = vadd.f32 %v704_v57, %v80_v5 }
 0x4ac   :  { %v9343_v19 = vpop.eup %7277  ;;  %v1015_v26 = vmul.f32 1.442695, %v914_v53 }
 0x4ad   :  { %1141 = vadd.xlane.f32.xlu2 %v9343_v19 }
 0x4ae   :  { %7279 = vpow2.f32 %v1015_v26  ;;  %837 = vmax.xlane.f32.xlu1 %v9345_v17 }
 0x4b1   :  { %v826_v7 = vpop.xlane.xlu1 %825 }
 0x4b2   :  { %v915_v13 = vsub.f32 %v9230_v47, %v826_v7  ;;  %v706_v47 = vpop.f32.mrf.mxu3 }
 0x4b3   :  { %v9371_v63 = vadd.f32 %v706_v47, %v81_v23 }
 0x4b4   :  { %v9355_v39 = vpop.eup %7279  ;;  %v1017_v35 = vmul.f32 1.442695, %v915_v13 }
 0x4b5   :  { %839 = vmax.xlane.f32.xlu2 %v9353_v49  ;;  %1143 = vadd.xlane.f32.xlu0 %v9355_v39 }
 0x4b6   :  { %7281 = vpow2.f32 %v1017_v35 }
 0x4b7   :  { %7283 = vrcp.f32 %v1126_v20 }
 0x4ba   :  { %v709_v59 = vpop.f32.mrf.mxu3 }
 0x4bb   :  { %v9377_v38 = vadd.f32 %v709_v59, %v82_v6 }
 0x4bc   :  { %v9364_v50 = vpop.eup %7281 }
 0x4bd   :  { %841 = vmax.xlane.f32.xlu2 %v9362_v61  ;;  %1145 = vadd.xlane.f32.xlu0 %v9364_v50  ;;  %v7284_v7 = vpop.eup %7283 }
 0x4be   :  { %v1289_v35 = vmul.f32 %v7284_v7, %v9211_v18 }
 0x4c5   :  { %843 = vmax.xlane.f32.xlu0 %v9371_v63 }
 0x4cd   :  { %845 = vmax.xlane.f32.xlu0 %v9377_v38 }
 0x4e3   :  { %v1411_v41 = vpop.f32.mrf.mxu0 }
 0x4e4   :  { %v1546_v2 = vmul.f32 %v9298_v14, %v1411_v41 }
 0x4e6   :  { %v9385_v53 = vadd.f32 %v1546_v2, %v1529_v15 }
 0x4e9   :  { %v1128_v26 = vpop.xlane.xlu2 %1127 }
 0x4ea   :  { %7285 = vrcp.f32 %v1128_v26 }
 0x4eb   :  { %v9387_v62 = vpop.f32.mrf.mxu0 }
 0x4f0   :  { %v7286_v13 = vpop.eup %7285 }
 0x4f1   :  { %v1130_v57 = vpop.xlane.xlu2 %1129  ;;  %v1290_v5 = vmul.f32 %v7286_v13, %v9253_v22  ;;  %v711_v22 = vpop.f32.mrf.mxu3 }
 0x4f2   :  { %7287 = vrcp.f32 %v1130_v57 }
 0x4f3   :  { %v1416_v47 = vpop.f32.mrf.mxu0  ;;  %v1339_v23 = vpack.c.bf16 %v1290_v5, %v1289_v35 }
 0x4f4   :  { %v1548_v6 = vmul.f32 %v9298_v14, %v1416_v47 }
 0x4f5   :  { %1435 = vmatmul.bf16.gmra.mxu0 %v1339_v23 }
 0x4f6   :  { %v9394_v20 = vadd.f32 %v1548_v6, %v1531_v37 }
 0x4f8   :  { %v7288_v26 = vpop.eup %7287 }
 0x4f9   :  { %v828_v59 = vpop.xlane.xlu2 %827  ;;  %v1291_v5 = vmul.f32 %v7288_v26, %v9259_v9 }
 0x4fa   :  { %v916_v41 = vsub.f32 %v9271_v0, %v828_v59  ;;  %v1132_v15 = vpop.xlane.xlu0 %1131  ;;  %v1533_v0 = vmul.f32 %v9295_v51, %v9233_v29 }
 0x4fb   :  { %7289 = vrcp.f32 %v1132_v15  ;;  %v9397_v2 = vpop.f32.mrf.mxu0 }
 0x4fc   :  { %v1019_v18 = vmul.f32 1.442695, %v916_v41 }
 0x4fe   :  { %7291 = vpow2.f32 %v1019_v18 }
 0x501   :  { %v7290_v7 = vpop.eup %7289  ;;  %v830_v13 = vpop.xlane.xlu2 %829 }
 0x502   :  { %v917_v60 = vsub.f32 %v9283_v46, %v830_v13  ;;  %v1134_v35 = vpop.xlane.xlu0 %1133  ;;  %v1292_v57 = vmul.f32 %v7290_v7, %v9273_v56  ;;  %v714_v46 = vpop.f32.mrf.mxu3 }
 0x503   :  { %v1421_v47 = vpop.f32.mrf.mxu0 }
 0x504   :  { %v9402_v23 = vpop.eup %7291  ;;  %v1021_v37 = vmul.f32 1.442695, %v917_v60  ;;  %v1550_v6 = vmul.f32 %v9298_v14, %v1421_v47  ;;  %v1340_v59 = vpack.c.bf16 %v1292_v57, %v1291_v5  ;;  %v83_v60 = vld [vmem:[%s14011_s3 + $0x188] sm:$0xff] }
 0x505   :  { %1147 = vadd.xlane.f32.xlu1 %v9402_v23 }
 0x506   :  { %7293 = vpow2.f32 %v1021_v37  ;;  %v9408_v41 = vadd.f32 %v1550_v6, %v1533_v0  ;;  %1440 = vmatmul.bf16.gmra.mxu0 %v1340_v59  ;;  %v9422_v6 = vadd.f32 %v711_v22, %v83_v60 }
 0x507   :  { %7295 = vrcp.f32 %v1134_v35 }
 0x509   :  { %v1136_v9 = vpop.xlane.xlu1 %1135 }
 0x50a   :  { %v832_v56 = vpop.xlane.xlu0 %831  ;;  %7297 = vrcp.f32 %v1136_v9  ;;  %v716_v35 = vpop.f32.mrf.mxu3  ;;  %v1535_v9 = vmul.f32 %v9295_v51, %v9237_v11 }
 0x50b   :  { %v918_v15 = vsub.f32 %v9311_v55, %v832_v56  ;;  %v9411_v18 = vpop.f32.mrf.mxu0 }
 0x50c   :  { %v9413_v29 = vpop.eup %7293 }
 0x50d   :  { %v1023_v26 = vmul.f32 1.442695, %v918_v15  ;;  %1149 = vadd.xlane.f32.xlu1 %v9413_v29  ;;  %v7296_v7 = vpop.eup %7295 }
 0x50e   :  { %v1293_v57 = vmul.f32 %v7296_v7, %v9285_v48 }
 0x50f   :  { %7299 = vpow2.f32 %v1023_v26 }
 0x510   :  { %v7298_v13 = vpop.eup %7297 }
 0x511   :  { %v1138_v5 = vpop.xlane.xlu1 %1137  ;;  %v1294_v55 = vmul.f32 %v7298_v13, %v9309_v24  ;;  %v84_v24 = vld [vmem:[%s14011_s3 + $0x190] sm:$0xff] }
 0x512   :  { %v834_v47 = vpop.xlane.xlu0 %833  ;;  %7301 = vrcp.f32 %v1138_v5  ;;  %v9437_v7 = vadd.f32 %v714_v46, %v84_v24  ;;  %v719_v13 = vpop.f32.mrf.mxu3 }
 0x513   :  { %v919_v0 = vsub.f32 %v9323_v12, %v834_v47  ;;  %v1426_v37 = vpop.f32.mrf.mxu0  ;;  %v1341_v59 = vpack.c.bf16 %v1294_v55, %v1293_v57 }
 0x514   :  { %v1552_v56 = vmul.f32 %v9298_v14, %v1426_v37 }
 0x515   :  { %v9427_v15 = vpop.eup %7299  ;;  %v1025_v26 = vmul.f32 1.442695, %v919_v0  ;;  %847 = vmax.xlane.f32.xlu1 %v9422_v6 }
 0x516   :  { %v9430_v48 = vadd.f32 %v1552_v56, %v1535_v9  ;;  %1151 = vadd.xlane.f32.xlu2 %v9427_v15  ;;  %1445 = vmatmul.bf16.gmra.mxu0 %v1341_v59  ;;  %v85_v59 = vld [vmem:[%s14011_s3 + $0x198] sm:$0xff] }
 0x517   :  { %7303 = vpow2.f32 %v1025_v26 }
 0x518   :  { %v1140_v12 = vpop.xlane.xlu2 %1139  ;;  %v7302_v5 = vpop.eup %7301 }
 0x519   :  { %7305 = vrcp.f32 %v1140_v12  ;;  %v836_v11 = vpop.xlane.xlu1 %835  ;;  %v1295_v37 = vmul.f32 %v7302_v5, %v9321_v10  ;;  %v1537_v12 = vmul.f32 %v9295_v51, %v9243_v4  ;;  %v9456_v10 = vadd.f32 %v716_v35, %v85_v59  ;;  %v86_v4 = vld [vmem:[%s14011_s3 + $0x1a0] sm:$0xff] }
 0x51a   :  { %v920_v22 = vsub.f32 %v9335_v45, %v836_v11 }
 0x51b   :  { %v9439_v60 = vpop.f32.mrf.mxu0 }
 0x51c   :  { %v1027_v57 = vmul.f32 1.442695, %v920_v22 }
 0x51d   :  { %v9441_v55 = vpop.eup %7303  ;;  %849 = vmax.xlane.f32.xlu1 %v9437_v7 }
 0x51e   :  { %7307 = vpow2.f32 %v1027_v57  ;;  %1153 = vadd.xlane.f32.xlu2 %v9441_v55 }
 0x51f   :  { %v7306_v47 = vpop.eup %7305 }
 0x520   :  { %v1142_v0 = vpop.xlane.xlu2 %1141  ;;  %v1296_v45 = vmul.f32 %v7306_v47, %v9333_v40  ;;  %v721_v40 = vpop.f32.mrf.mxu3 }
 0x521   :  { %v838_v46 = vpop.xlane.xlu1 %837 }
 0x522   :  { %v921_v9 = vsub.f32 %v9345_v17, %v838_v46  ;;  %v1342_v56 = vpack.c.bf16 %v1296_v45, %v1295_v37  ;;  %v9468_v45 = vadd.f32 %v719_v13, %v86_v4 }
 0x523   :  { %v1431_v26 = vpop.f32.mrf.mxu0 }
 0x524   :  { %v9451_v24 = vpop.eup %7307  ;;  %v1029_v11 = vmul.f32 1.442695, %v921_v9  ;;  %v1554_v22 = vmul.f32 %v9298_v14, %v1431_v26 }
 0x525   :  { %1155 = vadd.xlane.f32.xlu0 %v9451_v24 }
 0x526   :  { %7309 = vpow2.f32 %v1029_v11  ;;  %v9459_v5 = vadd.f32 %v1554_v22, %v1537_v12  ;;  %851 = vmax.xlane.f32.xlu2 %v9456_v10  ;;  %1450 = vmatmul.bf16.gmra.mxu0 %v1342_v56  ;;  %v87_v12 = vld [vmem:[%s14011_s3 + $0x1a8] sm:$0xff] }
 0x527   :  { %7311 = vrcp.f32 %v1142_v0 }
 0x528   :  { %v840_v17 = vpop.xlane.xlu2 %839  ;;  %v1144_v57 = vpop.xlane.xlu0 %1143 }
 0x529   :  { %v922_v47 = vsub.f32 %v9353_v49, %v840_v17  ;;  %7313 = vrcp.f32 %v1144_v57  ;;  %v724_v59 = vpop.f32.mrf.mxu3  ;;  %v9480_v57 = vadd.f32 %v721_v40, %v87_v12  ;;  %v90_v12 = vld [vmem:[%s14011_s3 + $0x1c0] sm:$0xff] }
 0x52b   :  { %v1031_v35 = vmul.f32 1.442695, %v922_v47 }
 0x52c   :  { %v9466_v37 = vpop.eup %7309 }
 0x52d   :  { %v7312_v46 = vpop.eup %7311  ;;  %7315 = vpow2.f32 %v1031_v35  ;;  %1157 = vadd.xlane.f32.xlu0 %v9466_v37 }
 0x52e   :  { %853 = vmax.xlane.f32.xlu2 %v9468_v45  ;;  %v1297_v26 = vmul.f32 %v7312_v46, %v9343_v19  ;;  %v88_v19 = vld [vmem:[%s14011_s3 + $0x1b0] sm:$0xff]  ;;  %v89_v46 = vld [vmem:[%s14011_s3 + $0x1b8] sm:$0xff] }
 0x52f   :  { %v7314_v0 = vpop.eup %7313  ;;  %v9490_v35 = vadd.f32 %v724_v59, %v88_v19 }
 0x530   :  { %v842_v9 = vpop.xlane.xlu2 %841  ;;  %v1146_v56 = vpop.xlane.xlu0 %1145  ;;  %v1298_v49 = vmul.f32 %v7314_v0, %v9355_v39 }
 0x531   :  { %v923_v13 = vsub.f32 %v9362_v61, %v842_v9  ;;  %v726_v4 = vpop.f32.mrf.mxu3 }
 0x532   :  { %v1343_v11 = vpack.c.bf16 %v1298_v49, %v1297_v26  ;;  %v9498_v26 = vadd.f32 %v726_v4, %v89_v46 }
 0x533   :  { %v9478_v22 = vpop.eup %7315  ;;  %v1033_v17 = vmul.f32 1.442695, %v923_v13 }
 0x534   :  { %1159 = vadd.xlane.f32.xlu1 %v9478_v22 }
 0x535   :  { %7317 = vpow2.f32 %v1033_v17  ;;  %855 = vmax.xlane.f32.xlu0 %v9480_v57  ;;  %v91_v17 = vld [vmem:[%s14011_s3 + $0x1c8] sm:$0xff] }
 0x536   :  { %1455 = vmatmul.bf16.gmra.mxu0 %v1343_v11 }
 0x538   :  { %v844_v39 = vpop.xlane.xlu0 %843 }
 0x539   :  { %v924_v61 = vsub.f32 %v9371_v63, %v844_v39  ;;  %v729_v49 = vpop.f32.mrf.mxu3  ;;  %v92_v39 = vld [vmem:[%s14011_s3 + $0x1d0] sm:$0xff] }
 0x53a   :  { %v9507_v13 = vadd.f32 %v729_v49, %v90_v12 }
 0x53b   :  { %v9488_v47 = vpop.eup %7317  ;;  %v1035_v40 = vmul.f32 1.442695, %v924_v61 }
 0x53c   :  { %1161 = vadd.xlane.f32.xlu1 %v9488_v47 }
 0x53d   :  { %7319 = vpow2.f32 %v1035_v40  ;;  %857 = vmax.xlane.f32.xlu0 %v9490_v35  ;;  %v9525_v40 = vpop.f32.mrf.mxu0 }
 0x540   :  { %v846_v0 = vpop.xlane.xlu0 %845 }
 0x541   :  { %v925_v9 = vsub.f32 %v9377_v38, %v846_v0  ;;  %v731_v38 = vpop.f32.mrf.mxu3  ;;  %v1539_v0 = vmul.f32 %v9295_v51, %v9251_v32  ;;  %v1541_v32 = vmul.f32 %v9295_v51, %v9268_v21  ;;  %v9545_v21 = vperm.slane %v9292_v8, 6 }
 0x542   :  { %v9516_v19 = vadd.f32 %v731_v38, %v91_v17 }
 0x543   :  { %v9500_v63 = vpop.eup %7319  ;;  %v1037_v59 = vmul.f32 1.442695, %v925_v9 }
 0x544   :  { %859 = vmax.xlane.f32.xlu1 %v9498_v26  ;;  %1163 = vadd.xlane.f32.xlu2 %v9500_v63 }
 0x545   :  { %7321 = vpow2.f32 %v1037_v59 }
 0x546   :  { %7323 = vrcp.f32 %v1146_v56 }
 0x549   :  { %v734_v4 = vpop.f32.mrf.mxu3 }
 0x54a   :  { %v9522_v61 = vadd.f32 %v734_v4, %v92_v39 }
 0x54b   :  { %v9509_v11 = vpop.eup %7321 }
 0x54c   :  { %861 = vmax.xlane.f32.xlu1 %v9507_v13  ;;  %1165 = vadd.xlane.f32.xlu2 %v9509_v11  ;;  %v7324_v38 = vpop.eup %7323 }
 0x54d   :  { %v1299_v4 = vmul.f32 %v7324_v38, %v9364_v50 }
 0x551   :  { %v736_v8 = vpop.f32.mrf.mxu3 }
 0x554   :  { %863 = vmax.xlane.f32.xlu2 %v9516_v19 }
 0x55c   :  { %865 = vmax.xlane.f32.xlu2 %v9522_v61 }
 0x572   :  { %v1436_v46 = vpop.f32.mrf.mxu0 }
 0x573   :  { %v1556_v9 = vmul.f32 %v9298_v14, %v1436_v46 }
 0x575   :  { %v9530_v49 = vadd.f32 %v1556_v9, %v1539_v0 }
 0x578   :  { %v1148_v59 = vpop.xlane.xlu1 %1147 }
 0x579   :  { %7325 = vrcp.f32 %v1148_v59 }
 0x57a   :  { %v9532_v12 = vpop.f32.mrf.mxu0 }
 0x57f   :  { %v7326_v17 = vpop.eup %7325 }
 0x580   :  { %v1150_v39 = vpop.xlane.xlu1 %1149  ;;  %v1300_v43 = vmul.f32 %v7326_v17, %v9402_v23 }
 0x581   :  { %7327 = vrcp.f32 %v1150_v39 }
 0x582   :  { %v1344_v34 = vpack.c.bf16 %v1300_v43, %v1299_v4 }
 0x583   :  { %v1441_v58 = vpop.f32.mrf.mxu0 }
 0x584   :  { %v1558_v46 = vmul.f32 %v9298_v14, %v1441_v58  ;;  %1460 = vmatmul.bf16.gmra.mxu0 %v1344_v34 }
 0x586   :  { %v9539_v56 = vadd.f32 %v1558_v46, %v1541_v32 }
 0x587   :  { %v7328_v43 = vpop.eup %7327 }
 0x588   :  { %v848_v0 = vpop.xlane.xlu1 %847  ;;  %v1301_v17 = vmul.f32 %v7328_v43, %v9413_v29 }
 0x589   :  { %v1152_v9 = vpop.xlane.xlu2 %1151  ;;  %v926_v59 = vsub.f32 %v9422_v6, %v848_v0 }
 0x58a   :  { %7329 = vrcp.f32 %v1152_v9 }
 0x58b   :  { %v1039_v33 = vmul.f32 1.442695, %v926_v59  ;;  %v9542_v50 = vpop.f32.mrf.mxu0 }
 0x58d   :  { %7331 = vpow2.f32 %v1039_v33 }
 0x590   :  { %v7330_v23 = vpop.eup %7329  ;;  %v850_v38 = vpop.xlane.xlu1 %849 }
 0x591   :  { %v1154_v58 = vpop.xlane.xlu2 %1153  ;;  %v927_v34 = vsub.f32 %v9437_v7, %v850_v38  ;;  %v1302_v39 = vmul.f32 %v7330_v23, %v9427_v15 }
 0x593   :  { %v9550_v4 = vpop.eup %7331  ;;  %v1041_v6 = vmul.f32 1.442695, %v927_v34  ;;  %v1446_v32 = vpop.f32.mrf.mxu0  ;;  %v1345_v46 = vpack.c.bf16 %v1302_v39, %v1301_v17 }
 0x594   :  { %v1577_v33 = vmul.f32 %v9545_v21, %v1446_v32  ;;  %1167 = vadd.xlane.f32.xlu0 %v9550_v4 }
 0x595   :  { %7333 = vpow2.f32 %v1041_v6  ;;  %1465 = vmatmul.bf16.gmra.mxu0 %v1345_v46 }
 0x596   :  { %v9555_v0 = vadd.f32 %v1577_v33, %v9313_v52  ;;  %7335 = vrcp.f32 %v1154_v58  ;;  %v93_v52 = vld [vmem:[%s14011_s3 + $0x1d8] sm:$0xff]  ;;  %v739_v58 = vpop.f32.mrf.mxu3 }
 0x597   :  { %v9569_v46 = vadd.f32 %v736_v8, %v93_v52 }
 0x598   :  { %v1156_v7 = vpop.xlane.xlu0 %1155 }
 0x599   :  { %v852_v29 = vpop.xlane.xlu2 %851  ;;  %7337 = vrcp.f32 %v1156_v7 }
 0x59a   :  { %v928_v15 = vsub.f32 %v9456_v10, %v852_v29 }
 0x59b   :  { %v9558_v9 = vpop.eup %7333  ;;  %v9560_v59 = vpop.f32.mrf.mxu0 }
 0x59c   :  { %v1043_v43 = vmul.f32 1.442695, %v928_v15  ;;  %1169 = vadd.xlane.f32.xlu0 %v9558_v9  ;;  %v7336_v23 = vpop.eup %7335 }
 0x59d   :  { %v1303_v17 = vmul.f32 %v7336_v23, %v9441_v55 }
 0x59e   :  { %7339 = vpow2.f32 %v1043_v43 }
 0x59f   :  { %v7338_v38 = vpop.eup %7337 }
 0x5a0   :  { %v1158_v34 = vpop.xlane.xlu0 %1157  ;;  %v1304_v10 = vmul.f32 %v7338_v38, %v9451_v24  ;;  %v94_v24 = vld [vmem:[%s14011_s3 + $0x1e0] sm:$0xff]  ;;  %v741_v38 = vpop.f32.mrf.mxu3 }
 0x5a1   :  { %v854_v39 = vpop.xlane.xlu2 %853  ;;  %7341 = vrcp.f32 %v1158_v34  ;;  %v9583_v23 = vadd.f32 %v739_v58, %v94_v24 }
 0x5a2   :  { %v929_v6 = vsub.f32 %v9468_v45, %v854_v39  ;;  %v1346_v32 = vpack.c.bf16 %v1304_v10, %v1303_v17 }
 0x5a3   :  { %v1451_v33 = vpop.f32.mrf.mxu0 }
 0x5a4   :  { %v9571_v7 = vpop.eup %7339  ;;  %v1045_v29 = vmul.f32 1.442695, %v929_v6  ;;  %v1579_v15 = vmul.f32 %v9545_v21, %v1451_v33  ;;  %867 = vmax.xlane.f32.xlu0 %v9569_v46 }
 0x5a5   :  { %1171 = vadd.xlane.f32.xlu1 %v9571_v7  ;;  %1470 = vmatmul.bf16.gmra.mxu0 %v1346_v32  ;;  %v95_v32 = vld [vmem:[%s14011_s3 + $0x1e8] sm:$0xff] }
 0x5a6   :  { %7343 = vpow2.f32 %v1045_v29  ;;  %v9577_v55 = vadd.f32 %v1579_v15, %v9385_v53 }
 0x5a7   :  { %v1160_v45 = vpop.xlane.xlu1 %1159  ;;  %v7342_v52 = vpop.eup %7341 }
 0x5a8   :  { %v856_v8 = vpop.xlane.xlu0 %855  ;;  %7345 = vrcp.f32 %v1160_v45  ;;  %v1305_v6 = vmul.f32 %v7342_v52, %v9466_v37 }
 0x5a9   :  { %v930_v43 = vsub.f32 %v9480_v57, %v856_v8  ;;  %v9599_v8 = vadd.f32 %v741_v38, %v95_v32  ;;  %v96_v38 = vld [vmem:[%s14011_s3 + $0x1f0] sm:$0xff] }
 0x5ab   :  { %v1047_v34 = vmul.f32 1.442695, %v930_v43  ;;  %v9585_v17 = vpop.f32.mrf.mxu0  ;;  %v744_v43 = vpop.f32.mrf.mxu3 }
 0x5ac   :  { %v9587_v10 = vpop.eup %7343  ;;  %869 = vmax.xlane.f32.xlu0 %v9583_v23 }
 0x5ad   :  { %7347 = vpow2.f32 %v1047_v34  ;;  %1173 = vadd.xlane.f32.xlu1 %v9587_v10 }
 0x5ae   :  { %v7346_v53 = vpop.eup %7345 }
 0x5af   :  { %v1162_v39 = vpop.xlane.xlu1 %1161  ;;  %v1306_v57 = vmul.f32 %v7346_v53, %v9478_v22 }
 0x5b0   :  { %v858_v58 = vpop.xlane.xlu0 %857 }
 0x5b1   :  { %v931_v33 = vsub.f32 %v9490_v35, %v858_v58  ;;  %v1347_v29 = vpack.c.bf16 %v1306_v57, %v1305_v6  ;;  %v9613_v57 = vadd.f32 %v744_v43, %v96_v38 }
 0x5b3   :  { %v9597_v15 = vpop.eup %7347  ;;  %v1049_v24 = vmul.f32 1.442695, %v931_v33  ;;  %v1456_v45 = vpop.f32.mrf.mxu0 }
 0x5b4   :  { %v1581_v34 = vmul.f32 %v9545_v21, %v1456_v45  ;;  %1175 = vadd.xlane.f32.xlu2 %v9597_v15 }
 0x5b5   :  { %7349 = vpow2.f32 %v1049_v24  ;;  %871 = vmax.xlane.f32.xlu1 %v9599_v8  ;;  %1475 = vmatmul.bf16.gmra.mxu0 %v1347_v29  ;;  %v97_v29 = vld [vmem:[%s14011_s3 + $0x1f8] sm:$0xff] }
 0x5b6   :  { %7351 = vrcp.f32 %v1162_v39  ;;  %v9605_v37 = vadd.f32 %v1581_v34, %v9394_v20  ;;  %v746_v39 = vpop.f32.mrf.mxu3 }
 0x5b7   :  { %v1164_v22 = vpop.xlane.xlu2 %1163  ;;  %v860_v35 = vpop.xlane.xlu1 %859 }
 0x5b8   :  { %7353 = vrcp.f32 %v1164_v22  ;;  %v932_v52 = vsub.f32 %v9498_v26, %v860_v35  ;;  %v9625_v35 = vadd.f32 %v746_v39, %v97_v29 }
 0x5ba   :  { %v1051_v53 = vmul.f32 1.442695, %v932_v52 }
 0x5bb   :  { %v9611_v6 = vpop.eup %7349 }
 0x5bc   :  { %v7352_v58 = vpop.eup %7351  ;;  %7355 = vpow2.f32 %v1051_v53  ;;  %1177 = vadd.xlane.f32.xlu2 %v9611_v6 }
 0x5bd   :  { %873 = vmax.xlane.f32.xlu1 %v9613_v57  ;;  %v1307_v26 = vmul.f32 %v7352_v58, %v9488_v47 }
 0x5be   :  { %v7354_v20 = vpop.eup %7353 }
 0x5bf   :  { %v1166_v32 = vpop.xlane.xlu2 %1165  ;;  %v862_v33 = vpop.xlane.xlu1 %861  ;;  %v1308_v24 = vmul.f32 %v7354_v20, %v9500_v63 }
 0x5c0   :  { %v933_v45 = vsub.f32 %v9507_v13, %v862_v33 }
 0x5c1   :  { %v1348_v43 = vpack.c.bf16 %v1308_v24, %v1307_v26 }
 0x5c2   :  { %v9623_v34 = vpop.eup %7355  ;;  %v1053_v22 = vmul.f32 1.442695, %v933_v45 }
 0x5c3   :  { %1179 = vadd.xlane.f32.xlu0 %v9623_v34 }
 0x5c4   :  { %7357 = vpow2.f32 %v1053_v22  ;;  %875 = vmax.xlane.f32.xlu2 %v9625_v35 }
 0x5c5   :  { %1480 = vmatmul.bf16.gmra.mxu0 %v1348_v43 }
 0x5c7   :  { %v864_v38 = vpop.xlane.xlu2 %863 }
 0x5c8   :  { %v934_v52 = vsub.f32 %v9516_v19, %v864_v38  ;;  %v9640_v19 = vpop.f32.mrf.mxu0 }
 0x5ca   :  { %v9630_v47 = vpop.eup %7357  ;;  %v1055_v63 = vmul.f32 1.442695, %v934_v52 }
 0x5cb   :  { %1181 = vadd.xlane.f32.xlu0 %v9630_v47 }
 0x5cc   :  { %7359 = vpow2.f32 %v1055_v63 }
 0x5cf   :  { %v866_v13 = vpop.xlane.xlu2 %865 }
 0x5d0   :  { %v935_v53 = vsub.f32 %v9522_v61, %v866_v13 }
 0x5d2   :  { %v9634_v58 = vpop.eup %7359  ;;  %v1057_v20 = vmul.f32 1.442695, %v935_v53 }
 0x5d3   :  { %1183 = vadd.xlane.f32.xlu1 %v9634_v58 }
 0x5d4   :  { %7361 = vpow2.f32 %v1057_v20 }
 0x5d5   :  { %7363 = vrcp.f32 %v1166_v32 }
 0x5da   :  { %v9637_v39 = vpop.eup %7361 }
 0x5db   :  { %1185 = vadd.xlane.f32.xlu2 %v9637_v39  ;;  %v7364_v45 = vpop.eup %7363 }
 0x5dc   :  { %v1309_v38 = vmul.f32 %v7364_v45, %v9509_v11 }
 0x601   :  { %v1461_v33 = vpop.f32.mrf.mxu0 }
 0x602   :  { %v1583_v29 = vmul.f32 %v9545_v21, %v1461_v33 }
 0x604   :  { %v9644_v26 = vadd.f32 %v1583_v29, %v9408_v41 }
 0x607   :  { %v1168_v61 = vpop.xlane.xlu0 %1167 }
 0x608   :  { %7365 = vrcp.f32 %v1168_v61 }
 0x609   :  { %v9646_v24 = vpop.f32.mrf.mxu0 }
 0x60e   :  { %v7366_v43 = vpop.eup %7365 }
 0x60f   :  { %v1170_v22 = vpop.xlane.xlu0 %1169  ;;  %v1310_v52 = vmul.f32 %v7366_v43, %v9550_v4 }
 0x610   :  { %7367 = vrcp.f32 %v1170_v22 }
 0x611   :  { %v1349_v63 = vpack.c.bf16 %v1310_v52, %v1309_v38 }
 0x612   :  { %v1466_v13 = vpop.f32.mrf.mxu0 }
 0x613   :  { %v1585_v53 = vmul.f32 %v9545_v21, %v1466_v13  ;;  %1485 = vmatmul.bf16.gmra.mxu0 %v1349_v63 }
 0x615   :  { %v9652_v41 = vadd.f32 %v1585_v53, %v9430_v48 }
 0x616   :  { %v7368_v11 = vpop.eup %7367 }
 0x617   :  { %v868_v32 = vpop.xlane.xlu0 %867  ;;  %v1311_v52 = vmul.f32 %v7368_v11, %v9558_v9 }
 0x618   :  { %v936_v20 = vsub.f32 %v9569_v46, %v868_v32  ;;  %v1172_v33 = vpop.xlane.xlu1 %1171 }
 0x619   :  { %7369 = vrcp.f32 %v1172_v33 }
 0x61a   :  { %v1059_v29 = vmul.f32 1.442695, %v936_v20  ;;  %v9655_v61 = vpop.f32.mrf.mxu0 }
 0x61c   :  { %7371 = vpow2.f32 %v1059_v29 }
 0x61f   :  { %v7370_v4 = vpop.eup %7369  ;;  %v870_v45 = vpop.xlane.xlu0 %869 }
 0x620   :  { %v937_v43 = vsub.f32 %v9583_v23, %v870_v45  ;;  %v1174_v38 = vpop.xlane.xlu1 %1173  ;;  %v1312_v48 = vmul.f32 %v7370_v4, %v9571_v7 }
 0x622   :  { %v9660_v22 = vpop.eup %7371  ;;  %v1061_v63 = vmul.f32 1.442695, %v937_v43  ;;  %v1471_v46 = vpop.f32.mrf.mxu0  ;;  %v1350_v13 = vpack.c.bf16 %v1312_v48, %v1311_v52 }
 0x623   :  { %v1587_v53 = vmul.f32 %v9545_v21, %v1471_v46  ;;  %1187 = vadd.xlane.f32.xlu0 %v9660_v22 }
 0x624   :  { %7373 = vpow2.f32 %v1061_v63  ;;  %1490 = vmatmul.bf16.gmra.mxu0 %v1350_v13 }
 0x625   :  { %v9665_v32 = vadd.f32 %v1587_v53, %v9459_v5  ;;  %7375 = vrcp.f32 %v1174_v38 }
 0x627   :  { %v1176_v23 = vpop.xlane.xlu2 %1175 }
 0x628   :  { %7377 = vrcp.f32 %v1176_v23  ;;  %v872_v9 = vpop.xlane.xlu1 %871 }
 0x629   :  { %v938_v7 = vsub.f32 %v9599_v8, %v872_v9 }
 0x62a   :  { %v9668_v20 = vpop.eup %7373  ;;  %v9670_v33 = vpop.f32.mrf.mxu0 }
 0x62b   :  { %v1063_v29 = vmul.f32 1.442695, %v938_v7  ;;  %1189 = vadd.xlane.f32.xlu1 %v9668_v20  ;;  %v7376_v11 = vpop.eup %7375 }
 0x62c   :  { %v1313_v5 = vmul.f32 %v7376_v11, %v9587_v10 }
 0x62d   :  { %7379 = vpow2.f32 %v1063_v29 }
 0x62e   :  { %v7378_v4 = vpop.eup %7377 }
 0x62f   :  { %v1178_v45 = vpop.xlane.xlu2 %1177  ;;  %v1314_v43 = vmul.f32 %v7378_v4, %v9597_v15 }
 0x630   :  { %v874_v38 = vpop.xlane.xlu1 %873  ;;  %7381 = vrcp.f32 %v1178_v45 }
 0x631   :  { %v939_v52 = vsub.f32 %v9613_v57, %v874_v38  ;;  %v1351_v48 = vpack.c.bf16 %v1314_v43, %v1313_v5 }
 0x632   :  { %v1476_v8 = vpop.f32.mrf.mxu0 }
 0x633   :  { %v9676_v63 = vpop.eup %7379  ;;  %v1065_v46 = vmul.f32 1.442695, %v939_v52  ;;  %v1589_v13 = vmul.f32 %v9545_v21, %v1476_v8 }
 0x634   :  { %1495 = vmatmul.bf16.gmra.mxu0 %v1351_v48  ;;  %1191 = vadd.xlane.f32.xlu2 %v9676_v63 }
 0x635   :  { %7383 = vpow2.f32 %v1065_v46  ;;  %v9681_v53 = vadd.f32 %v1589_v13, %v9530_v49 }
 0x636   :  { %v1180_v10 = vpop.xlane.xlu0 %1179  ;;  %v7382_v23 = vpop.eup %7381 }
 0x637   :  { %v876_v15 = vpop.xlane.xlu2 %875  ;;  %7385 = vrcp.f32 %v1180_v10  ;;  %v1315_v4 = vmul.f32 %v7382_v23, %v9611_v6  ;;  %v7113_v10 = vld [vmem:[%s14012_s7 + $0x8] sm:$0xff] }
 0x638   :  { %v940_v57 = vsub.f32 %v9625_v35, %v876_v15  ;;  %1696 = vmatpush.bf16.msrb.mxu1 %v7113_v10 }
 0x63a   :  { %v1067_v9 = vmul.f32 1.442695, %v940_v57  ;;  %v9684_v7 = vpop.f32.mrf.mxu0 }
 0x63b   :  { %v9686_v29 = vpop.eup %7383 }
 0x63c   :  { %7387 = vpow2.f32 %v1067_v9  ;;  %1193 = vadd.xlane.f32.xlu0 %v9686_v29 }
 0x63d   :  { %v7386_v11 = vpop.eup %7385 }
 0x63e   :  { %v1316_v49 = vmul.f32 %v7386_v11, %v9623_v34  ;;  %v1182_v43 = vpop.xlane.xlu0 %1181  ;;  %v1528_v11 = vmul.f32 %v9295_v51, %v9162_v16 }
 0x63f   :  { %7389 = vrcp.f32 %v1182_v43 }
 0x640   :  { %v1352_v45 = vpack.c.bf16 %v1316_v49, %v1315_v4  ;;  %v1578_v4 = vmul.f32 %v9545_v21, %v9560_v59 }
 0x642   :  { %v9691_v5 = vpop.eup %7387  ;;  %v1481_v38 = vpop.f32.mrf.mxu0 }
 0x643   :  { %v1591_v35 = vmul.f32 %v9545_v21, %v1481_v38  ;;  %1195 = vadd.xlane.f32.xlu1 %v9691_v5 }
 0x644   :  { %1500 = vmatmul.bf16.gmra.mxu0 %v1352_v45 }
 0x645   :  { %v9696_v52 = vadd.f32 %v1591_v35, %v9539_v56  ;;  %v7390_v8 = vpop.eup %7389  ;;  %v7112_v56 = vld [vmem:[%s14012_s7] sm:$0xff] }
 0x646   :  { %v1184_v48 = vpop.xlane.xlu1 %1183  ;;  %v1317_v34 = vmul.f32 %v7390_v8, %v9630_v47  ;;  %1697 = vmatpush.bf16.msrb.mxu1 %v7112_v56  ;;  %v1545_v47 = vmul.f32 %v9298_v14, %v9380_v36 }
 0x647   :  { %7391 = vrcp.f32 %v1184_v48 }
 0x648   :  { %v1561_v45 = vadd.f32 %v1545_v47, %v1528_v11 }
 0x64a   :  { %v9706_v15 = vpop.f32.mrf.mxu0  ;;  %v1594_v36 = vadd.f32 %v1578_v4, %v1561_v45 }
 0x64d   :  { %v7392_v6 = vpop.eup %7391 }
 0x64e   :  { %v1318_v46 = vmul.f32 %v7392_v6, %v9634_v58  ;;  %v1186_v23 = vpop.xlane.xlu2 %1185  ;;  %v8178_v58 = vld [vmem:[%s14010_s4] sm:$0xff] }
 0x64f   :  { %v9713_v9 = vperm.slane %v8178_v58, 7  ;;  %7393 = vrcp.f32 %v1186_v23  ;;  %v1530_v23 = vmul.f32 %v9295_v51, %v9195_v3 }
 0x650   :  { %v1353_v13 = vpack.c.bf16 %v1318_v46, %v1317_v34 }
 0x654   :  { %1505 = vmatmul.bf16.gmra.mxu0 %v1353_v13 }
 0x655   :  { %v7394_v48 = vpop.eup %7393 }
 0x656   :  { %v1319_v16 = vmul.f32 %v7394_v48, %v9637_v39 }
 0x690   :  { %v1486_v57 = vpop.f32.mrf.mxu0 }
 0x691   :  { %v1610_v43 = vmul.f32 %v9713_v9, %v1486_v57  ;;  %v1547_v57 = vmul.f32 %v9298_v14, %v9387_v62 }
 0x693   :  { %v1626_v8 = vadd.f32 %v1610_v43, %v9555_v0  ;;  %v1580_v0 = vmul.f32 %v9545_v21, %v9585_v17  ;;  %v1563_v39 = vadd.f32 %v1547_v57, %v1530_v23 }
 0x695   :  { %v1596_v11 = vadd.f32 %v1580_v0, %v1563_v39  ;;  %v1534_v39 = vmul.f32 %v9295_v51, %v9235_v44  ;;  %v1553_v44 = vmul.f32 %v9298_v14, %v9439_v60  ;;  %v7115_v60 = vld [vmem:[%s14009_s6 + $0x18] sm:$0xff] }
 0x696   :  { %v1188_v49 = vpop.xlane.xlu0 %1187  ;;  %1877 = vmatpush.bf16.msra.mxu1 %v7115_v60 }
 0x697   :  { %7395 = vrcp.f32 %v1188_v49 }
 0x698   :  { %v1488_v38 = vpop.f32.mrf.mxu0 }
 0x699   :  { %v1611_v35 = vmul.f32 %v9713_v9, %v1488_v38 }
 0x69b   :  { %v1627_v6 = vadd.f32 %v1611_v35, %v1594_v36 }
 0x69d   :  { %v7396_v34 = vpop.eup %7395  ;;  %v1642_v46 = vpack.c.bf16 %v1627_v6, %v1626_v8  ;;  %v1549_v8 = vmul.f32 %v9298_v14, %v9397_v2  ;;  %v1582_v6 = vmul.f32 %v9545_v21, %v9640_v19 }
 0x69e   :  { %v1320_v59 = vmul.f32 %v7396_v34, %v9660_v22  ;;  %v1190_v56 = vpop.xlane.xlu1 %1189 }
 0x69f   :  { %6783 = vmatmul.msk.bf16.vlgmr.msrb.gmra.mxu1 %vm459_vm1, %v1642_v46  ;;  %7397 = vrcp.f32 %v1190_v56 }
 0x6a0   :  { %v1354_v13 = vpack.c.bf16 %v1320_v59, %v1319_v16 }
 0x6a1   :  { %v1491_v10 = vpop.f32.mrf.mxu0 }
 0x6a2   :  { %1510 = vmatmul.bf16.gmra.mxu0 %v1354_v13  ;;  %v1612_v22 = vmul.f32 %v9713_v9, %v1491_v10 }
 0x6a4   :  { %v1628_v45 = vadd.f32 %v1612_v22, %v9577_v55  ;;  %v1532_v55 = vmul.f32 %v9295_v51, %v9224_v25 }
 0x6a5   :  { %v7398_v49 = vpop.eup %7397 }
 0x6a6   :  { %v1321_v3 = vmul.f32 %v7398_v49, %v9668_v20  ;;  %v1565_v20 = vadd.f32 %v1549_v8, %v1532_v55  ;;  %v1555_v55 = vmul.f32 %v9298_v14, %v9525_v40 }
 0x6a7   :  { %v1192_v47 = vpop.xlane.xlu2 %1191 }
 0x6a8   :  { %7399 = vrcp.f32 %v1192_v47  ;;  %v1598_v16 = vadd.f32 %v1582_v6, %v1565_v20  ;;  %v1551_v47 = vmul.f32 %v9298_v14, %v9411_v18  ;;  %v1538_v6 = vmul.f32 %v9295_v51, %v9246_v1 }
 0x6a9   :  { %v1493_v58 = vpop.f32.mrf.mxu0 }
 0x6aa   :  { %v1613_v4 = vmul.f32 %v9713_v9, %v1493_v58  ;;  %v1567_v22 = vadd.f32 %v1551_v47, %v1534_v39 }
 0x6ac   :  { %v1629_v62 = vadd.f32 %v1613_v4, %v1596_v11 }
 0x6ae   :  { %v7400_v43 = vpop.eup %7399  ;;  %v1643_v38 = vpack.c.bf16 %v1629_v62, %v1628_v45  ;;  %v1586_v62 = vmul.f32 %v9545_v21, %v9655_v61 }
 0x6af   :  { %v1322_v17 = vmul.f32 %v7400_v43, %v9676_v63  ;;  %v1194_v48 = vpop.xlane.xlu0 %1193 }
 0x6b0   :  { %6784 = vmatmul.msk.bf16.gmra.mxu1 %vm459_vm1, %v1643_v38  ;;  %7401 = vrcp.f32 %v1194_v48 }
 0x6b1   :  { %v1496_v36 = vpop.f32.mrf.mxu0  ;;  %v1355_v35 = vpack.c.bf16 %v1322_v17, %v1321_v3 }
 0x6b2   :  { %v1614_v63 = vmul.f32 %v9713_v9, %v1496_v36 }
 0x6b3   :  { %1515 = vmatmul.bf16.gmra.mxu0 %v1355_v35 }
 0x6b4   :  { %v1630_v10 = vadd.f32 %v1614_v63, %v9605_v37  ;;  %v1584_v37 = vmul.f32 %v9545_v21, %v9646_v24  ;;  %v1536_v24 = vmul.f32 %v9295_v51, %v9239_v54  ;;  %v7114_v54 = vld [vmem:[%s14009_s6 + $0x10] sm:$0xff] }
 0x6b5   :  { %1819 = vmatpush.bf16.msrb.mxu2 %v7114_v54 }
 0x6b6   :  { %v1196_v34 = vpop.xlane.xlu1 %1195  ;;  %v7402_v13 = vpop.eup %7401  ;;  %v1600_v11 = vadd.f32 %v1584_v37, %v1567_v22  ;;  %v1569_v43 = vadd.f32 %v1553_v44, %v1536_v24  ;;  %v14155_v44 = vld [vmem:[#allocation18_spill] sm:$0xff] }
 0x6b7   :  { %7403 = vrcp.f32 %v1196_v34  ;;  %v1323_v25 = vmul.f32 %v7402_v13, %v9686_v29  ;;  %v1588_v34 = vmul.f32 %v9545_v21, %v9670_v33  ;;  %v1542_v24 = vmul.f32 %v9295_v51, %v14155_v44 }
 0x6b8   :  { %v1602_v17 = vadd.f32 %v1586_v62, %v1569_v43  ;;  %v14156_v43 = vld [vmem:[#allocation3_spill] sm:$0xff] }
 0x6b9   :  { %v1498_v46 = vpop.f32.mrf.mxu0 }
 0x6ba   :  { %v1615_v59 = vmul.f32 %v9713_v9, %v1498_v46  ;;  %v1571_v46 = vadd.f32 %v1555_v55, %v1538_v6  ;;  %v14158_v55 = vld [vmem:[#allocation4_spill] sm:$0xff] }
 0x6bc   :  { %v1631_v2 = vadd.f32 %v1615_v59, %v1598_v16 }
 0x6bd   :  { %v7404_v56 = vpop.eup %7403 }
 0x6be   :  { %v1644_v57 = vpack.c.bf16 %v1631_v2, %v1630_v10  ;;  %v1324_v23 = vmul.f32 %v7404_v56, %v9691_v5 }
 0x6c0   :  { %6785 = vmatmul.msk.bf16.gmra.mxu1 %vm459_vm1, %v1644_v57  ;;  %v1356_v19 = vpack.c.bf16 %v1324_v23, %v1323_v25  ;;  %v1557_v25 = vmul.f32 %v9298_v14, %v9532_v12 }
 0x6c1   :  { %v1501_v0 = vpop.f32.mrf.mxu0 }
 0x6c2   :  { %v1616_v58 = vmul.f32 %v9713_v9, %v1501_v0 }
 0x6c3   :  { %1520 = vmatmul.bf16.gmra.mxu0 %v1356_v19  ;;  %v1540_v19 = vmul.f32 %v9295_v51, %v9257_v42 }
 0x6c4   :  { %v1632_v4 = vadd.f32 %v1616_v58, %v9644_v26 }
 0x6c5   :  { %v1573_v39 = vadd.f32 %v1557_v25, %v1540_v19 }
 0x6c9   :  { %v1503_v29 = vpop.f32.mrf.mxu0 }
 0x6ca   :  { %v1617_v5 = vmul.f32 %v9713_v9, %v1503_v29 }
 0x6cc   :  { %v1633_v49 = vadd.f32 %v1617_v5, %v1600_v11 }
 0x6ce   :  { %v1645_v45 = vpack.c.bf16 %v1633_v49, %v1632_v4  ;;  %v1559_v49 = vmul.f32 %v9298_v14, %v9542_v50 }
 0x6d0   :  { %6786 = vmatmul.msk.bf16.gmra.mxu1 %vm459_vm1, %v1645_v45  ;;  %v14153_v45 = vld [vmem:[#allocation2_spill] sm:$0xff] }
 0x6d1   :  { %v1506_v18 = vpop.f32.mrf.mxu0 }
 0x6d2   :  { %v1618_v38 = vmul.f32 %v9713_v9, %v1506_v18 }
 0x6d4   :  { %v1634_v36 = vadd.f32 %v1618_v38, %v9652_v41 }
 0x6d9   :  { %v1508_v3 = vpop.f32.mrf.mxu0 }
 0x6da   :  { %v1619_v26 = vmul.f32 %v9713_v9, %v1508_v3  ;;  %v1575_v3 = vadd.f32 %v1559_v49, %v1542_v24 }
 0x6dc   :  { %v1635_v35 = vadd.f32 %v1619_v26, %v1602_v17 }
 0x6de   :  { %v1646_v48 = vpack.c.bf16 %v1635_v35, %v1634_v36 }
 0x6e0   :  { %6787 = vmatmul.msk.bf16.gmra.mxu1 %vm459_vm1, %v1646_v48 }
 0x71c   :  { %v1699_v61 = vpop.f32.mrf.mxu1 }
 0x71d   :  { %v9778_v41 = vadd.f32 %v1699_v61, %v8486_v27  ;;  %v1604_v27 = vadd.f32 %v1588_v34, %v1571_v46 }
 0x71f   :  { %v1511_v8 = vpop.f32.mrf.mxu0  ;;  %v14052_v59 = vmax.f32 %v9778_v41, 0.0 }
 0x720   :  { %v1620_v16 = vmul.f32 %v9713_v9, %v1511_v8 }
 0x722   :  { %v1636_v33 = vadd.f32 %v1620_v16, %v9665_v32  ;;  %v1590_v32 = vmul.f32 %v9545_v21, %v9684_v7 }
 0x724   :  { %v1701_v20 = vpop.f32.mrf.mxu1 }
 0x725   :  { %v9785_v63 = vadd.f32 %v1701_v20, %v8488_v28  ;;  %v14160_v20 = vld [vmem:[#allocation5_spill] sm:$0xff] }
 0x727   :  { %v14051_v40 = vmax.f32 %v9785_v63, 0.0  ;;  %v1513_v13 = vpop.f32.mrf.mxu0 }
 0x728   :  { %v1621_v10 = vmul.f32 %v9713_v9, %v1513_v13 }
 0x729   :  { %v1771_v1 = vpack.c.bf16 %v14051_v40, %v14052_v59 }
 0x72a   :  { %v1637_v28 = vadd.f32 %v1621_v10, %v1604_v27  ;;  %v14162_v10 = vld [vmem:[#allocation6_spill] sm:$0xff] }
 0x72b   :  { %6797 = vmatmul.msk.bf16.vlgmr.msrb.gmra.mxu2 %vm130_vm0, %v1771_v1 }
 0x72c   :  { %v1647_v2 = vpack.c.bf16 %v1637_v28, %v1636_v33 }
 0x72d   :  { %v1704_v56 = vpop.f32.mrf.mxu1 }
 0x72e   :  { %6788 = vmatmul.msk.bf16.gmra.mxu1 %vm459_vm1, %v1647_v2  ;;  %v9801_v23 = vadd.f32 %v1704_v56, %v8494_v30  ;;  %v1606_v30 = vadd.f32 %v1590_v32, %v1573_v39  ;;  %v14164_v2 = vld [vmem:[#allocation7_spill] sm:$0xff]  ;;  %v14166_v32 = vld [vmem:[#allocation8_spill] sm:$0xff] }
 0x730   :  { %v1516_v57 = vpop.f32.mrf.mxu0  ;;  %14151 = vst [vmem:[#allocation19_spill] sm:$0xff] %v9801_v23  ;;  %v14050_v22 = vmax.f32 %v9801_v23, 0.0 }
 0x731   :  { %v1622_v37 = vmul.f32 %v9713_v9, %v1516_v57 }
 0x733   :  { %v1638_v7 = vadd.f32 %v1622_v37, %v9681_v53  ;;  %v1592_v53 = vmul.f32 %v9545_v21, %v9706_v15  ;;  %v14168_v37 = vld [vmem:[#allocation9_spill] sm:$0xff] }
 0x735   :  { %v1706_v0 = vpop.f32.mrf.mxu1  ;;  %v1608_v35 = vadd.f32 %v1592_v53, %v1575_v3 }
 0x736   :  { %v9808_v47 = vadd.f32 %v1706_v0, %v8496_v31 }
 0x738   :  { %14152 = vst [vmem:[#allocation20_spill] sm:$0xff] %v9808_v47  ;;  %v14049_v12 = vmax.f32 %v9808_v47, 0.0  ;;  %v1518_v58 = vpop.f32.mrf.mxu0 }
 0x739   :  { %v1623_v29 = vmul.f32 %v9713_v9, %v1518_v58 }
 0x73a   :  { %v1772_v42 = vpack.c.bf16 %v14049_v12, %v14050_v22  ;;  %v14180_v12 = vld [vmem:[#allocation16_spill] sm:$0xff] }
 0x73b   :  { %v1639_v31 = vadd.f32 %v1623_v29, %v1606_v30 }
 0x73c   :  { %6798 = vmatmul.msk.bf16.gmra.mxu2 %vm130_vm0, %v1772_v42 }
 0x73d   :  { %v1648_v11 = vpack.c.bf16 %v1639_v31, %v1638_v7  ;;  %v1709_v5 = vpop.f32.mrf.mxu1  ;;  %v14170_v31 = vld [vmem:[#allocation10_spill] sm:$0xff] }
 0x73e   :  { %v9824_v18 = vadd.f32 %v1709_v5, %v14153_v45 }
 0x73f   :  { %6789 = vmatmul.msk.bf16.gmra.mxu1 %vm459_vm1, %v1648_v11 }
 0x740   :  { %v1521_v4 = vpop.f32.mrf.mxu0  ;;  %14154 = vst [vmem:[#allocation2_spill] sm:$0xff] %v9824_v18  ;;  %v14048_v26 = vmax.f32 %v9824_v18, 0.0 }
 0x741   :  { %v1624_v17 = vmul.f32 %v9713_v9, %v1521_v4  ;;  %v14172_v4 = vld [vmem:[#allocation11_spill] sm:$0xff] }
 0x743   :  { %v1640_v54 = vadd.f32 %v1624_v17, %v9696_v52  ;;  %v14176_v17 = vld [vmem:[#allocation13_spill] sm:$0xff] }
 0x745   :  { %v1711_v62 = vpop.f32.mrf.mxu1 }
 0x746   :  { %v9831_v38 = vadd.f32 %v1711_v62, %v14156_v43  ;;  %v14174_v62 = vld [vmem:[#allocation12_spill] sm:$0xff] }
 0x748   :  { %14157 = vst [vmem:[#allocation18_spill] sm:$0xff] %v9831_v38  ;;  %v14047_v50 = vmax.f32 %v9831_v38, 0.0  ;;  %v1523_v36 = vpop.f32.mrf.mxu0 }
 0x749   :  { %v1625_v48 = vmul.f32 %v9713_v9, %v1523_v36 }
 0x74a   :  { %v1773_v15 = vpack.c.bf16 %v14047_v50, %v14048_v26 }
 0x74b   :  { %v1641_v60 = vadd.f32 %v1625_v48, %v1608_v35 }
 0x74c   :  { %6799 = vmatmul.msk.bf16.gmra.mxu2 %vm130_vm0, %v1773_v15 }
 0x74d   :  { %v1649_v61 = vpack.c.bf16 %v1641_v60, %v1640_v54  ;;  %v1714_v8 = vpop.f32.mrf.mxu1 }
 0x74e   :  { %v9845_v6 = vadd.f32 %v1714_v8, %v14158_v55 }
 0x74f   :  { %6790 = vmatmul.msk.bf16.gmra.mxu1 %vm459_vm1, %v1649_v61 }
 0x750   :  { %14159 = vst [vmem:[#allocation3_spill] sm:$0xff] %v9845_v6  ;;  %v14046_v16 = vmax.f32 %v9845_v6, 0.0 }
 0x755   :  { %v1716_v34 = vpop.f32.mrf.mxu1 }
 0x756   :  { %v9848_v46 = vadd.f32 %v1716_v34, %v14160_v20 }
 0x758   :  { %14161 = vst [vmem:[#allocation4_spill] sm:$0xff] %v9848_v46  ;;  %v14045_v13 = vmax.f32 %v9848_v46, 0.0  ;;  %v14181_v46 = vld [vmem:[#allocation17_spill] sm:$0xff] }
 0x75a   :  { %v1774_v52 = vpack.c.bf16 %v14045_v13, %v14046_v16 }
 0x75c   :  { %6800 = vmatmul.msk.bf16.gmra.mxu2 %vm130_vm0, %v1774_v52 }
 0x75d   :  { %v1719_v27 = vpop.f32.mrf.mxu1 }
 0x75e   :  { %v9859_v33 = vadd.f32 %v1719_v27, %v14162_v10 }
 0x75f   :  { %6811 = vmatmul.msk.bf16.vlgmr.msra.gmra.mxu1 %vm130_vm0, %v1771_v1 }
 0x760   :  { %14163 = vst [vmem:[#allocation5_spill] sm:$0xff] %v9859_v33  ;;  %v14044_v57 = vmax.f32 %v9859_v33, 0.0 }
 0x765   :  { %v1721_v28 = vpop.f32.mrf.mxu1 }
 0x766   :  { %v9862_v56 = vadd.f32 %v1721_v28, %v14164_v2 }
 0x768   :  { %14165 = vst [vmem:[#allocation6_spill] sm:$0xff] %v9862_v56  ;;  %v14043_v25 = vmax.f32 %v9862_v56, 0.0 }
 0x76a   :  { %v1775_v19 = vpack.c.bf16 %v14043_v25, %v14044_v57 }
 0x76c   :  { %6801 = vmatmul.msk.bf16.gmra.mxu2 %vm130_vm0, %v1775_v19 }
 0x76f   :  { %6812 = vmatmul.msk.bf16.gmra.mxu1 %vm130_vm0, %v1772_v42 }
 0x77f   :  { %6813 = vmatmul.msk.bf16.gmra.mxu1 %vm130_vm0, %v1773_v15 }
 0x78f   :  { %6814 = vmatmul.msk.bf16.gmra.mxu1 %vm130_vm0, %v1774_v52 }
 0x79f   :  { %6815 = vmatmul.msk.bf16.gmra.mxu1 %vm130_vm0, %v1775_v19 }
 0x7ab   :  { %v1724_v1 = vpop.f32.mrf.mxu1 }
 0x7ac   :  { %v9876_v0 = vadd.f32 %v1724_v1, %v14166_v32 }
 0x7ae   :  { %14167 = vst [vmem:[#allocation7_spill] sm:$0xff] %v9876_v0  ;;  %v14042_v30 = vmax.f32 %v9876_v0, 0.0 }
 0x7b3   :  { %v1726_v39 = vpop.f32.mrf.mxu1 }
 0x7b4   :  { %v9879_v58 = vadd.f32 %v1726_v39, %v14168_v37 }
 0x7b6   :  { %14169 = vst [vmem:[#allocation8_spill] sm:$0xff] %v9879_v58  ;;  %v14041_v29 = vmax.f32 %v9879_v58, 0.0 }
 0x7b8   :  { %v1776_v42 = vpack.c.bf16 %v14041_v29, %v14042_v30 }
 0x7ba   :  { %6802 = vmatmul.msk.bf16.gmra.mxu2 %vm130_vm0, %v1776_v42  ;;  %6816 = vmatmul.msk.bf16.gmra.mxu1 %vm130_vm0, %v1776_v42 }
 0x7bc   :  { %v1729_v7 = vpop.f32.mrf.mxu1 }
 0x7bd   :  { %v9890_v11 = vadd.f32 %v1729_v7, %v14170_v31 }
 0x7bf   :  { %14171 = vst [vmem:[#allocation9_spill] sm:$0xff] %v9890_v11  ;;  %v14040_v45 = vmax.f32 %v9890_v11, 0.0 }
 0x7c4   :  { %v1731_v5 = vpop.f32.mrf.mxu1 }
 0x7c5   :  { %v9893_v49 = vadd.f32 %v1731_v5, %v14172_v4 }
 0x7c7   :  { %14173 = vst [vmem:[#allocation10_spill] sm:$0xff] %v9893_v49  ;;  %v14039_v44 = vmax.f32 %v9893_v49, 0.0 }
 0x7c9   :  { %v1777_v24 = vpack.c.bf16 %v14039_v44, %v14040_v45 }
 0x7cb   :  { %6803 = vmatmul.msk.bf16.gmra.mxu2 %vm130_vm0, %v1777_v24  ;;  %6817 = vmatmul.msk.bf16.gmra.mxu1 %vm130_vm0, %v1777_v24 }
 0x7cc   :  { %v1734_v53 = vpop.f32.mrf.mxu1 }
 0x7cd   :  { %v9904_v43 = vadd.f32 %v1734_v53, %v14174_v62 }
 0x7cf   :  { %14175 = vst [vmem:[#allocation11_spill] sm:$0xff] %v9904_v43  ;;  %v14038_v35 = vmax.f32 %v9904_v43, 0.0 }
 0x7d4   :  { %v1736_v3 = vpop.f32.mrf.mxu1 }
 0x7d5   :  { %v9907_v36 = vadd.f32 %v1736_v3, %v14176_v17  ;;  %v9920_v3 = vpop.f32.mrf.mxu2 }
 0x7d7   :  { %14177 = vst [vmem:[#allocation12_spill] sm:$0xff] %v9907_v36  ;;  %v14037_v48 = vmax.f32 %v9907_v36, 0.0 }
 0x7d9   :  { %v1778_v15 = vpack.c.bf16 %v14037_v48, %v14038_v35 }
 0x7db   :  { %6804 = vmatmul.msk.bf16.gmra.mxu2 %vm130_vm0, %v1778_v15  ;;  %6818 = vmatmul.msk.bf16.gmra.mxu1 %vm130_vm0, %v1778_v15 }
 0x7dc   :  { %v1879_v54 = vpop.f32.mrf.mxu1 }
 0x7e4   :  { %v1881_v60 = vpop.f32.mrf.mxu1 }
 0x7ec   :  { %v1884_v61 = vpop.f32.mrf.mxu1 }
 0x7f4   :  { %v1886_v8 = vpop.f32.mrf.mxu1 }
 0x7f5   :  { %v2016_v17 = vpack.c.bf16 %v1886_v8, %v1884_v61 }
 0x7fc   :  { %v1889_v55 = vpop.f32.mrf.mxu1 }
 0x804   :  { %v1891_v34 = vpop.f32.mrf.mxu1 }
 0x805   :  { %v2017_v62 = vpack.c.bf16 %v1891_v34, %v1889_v55  ;;  %v2123_v55 = vsel %vm459_vm1, %v2016_v17, 0 }
 0x80c   :  { %v1894_v20 = vpop.f32.mrf.mxu1 }
 0x814   :  { %v1896_v52 = vpop.f32.mrf.mxu1 }
 0x815   :  { %v2018_v24 = vpack.c.bf16 %v1896_v52, %v1894_v20  ;;  %v2126_v52 = vsel %vm459_vm1, %v2017_v62, 0 }
 0x81c   :  { %v1899_v27 = vpop.f32.mrf.mxu1 }
 0x824   :  { %v1901_v10 = vpop.f32.mrf.mxu1 }
 0x825   :  { %v2019_v4 = vpack.c.bf16 %v1901_v10, %v1899_v27  ;;  %v2129_v27 = vsel %vm459_vm1, %v2018_v24, 0 }
 0x827   :  { %v2132_v15 = vsel %vm459_vm1, %v2019_v4, 0 }
 0x837   :  { %v1904_v28 = vpop.f32.mrf.mxu1 }
 0x83f   :  { %v1906_v2 = vpop.f32.mrf.mxu1 }
 0x840   :  { %v2020_v31 = vpack.c.bf16 %v1906_v2, %v1904_v28  ;;  %v2015_v28 = vpack.c.bf16 %v1881_v60, %v1879_v54  ;;  %v9923_v2 = vpop.f32.mrf.mxu2  ;;  %v14178_v54 = vld [vmem:[#allocation14_spill] sm:$0xff] }
 0x841   :  { %v1920_v60 = vmul.f32 %v9923_v2, %v14178_v54  ;;  %v1919_v10 = vmul.f32 %v9920_v3, %v14178_v54 }
 0x842   :  { %v2135_v53 = vsel %vm459_vm1, %v2020_v31, 0  ;;  %v2120_v61 = vsel %vm459_vm1, %v2015_v28, 0 }
 0x848   :  { %v1909_v19 = vpop.f32.mrf.mxu1  ;;  %v9926_v20 = vpop.f32.mrf.mxu2 }
 0x850   :  { %v1911_v1 = vpop.f32.mrf.mxu1  ;;  %v9930_v34 = vpop.f32.mrf.mxu2 }
 0x851   :  { %v2021_v7 = vpack.c.bf16 %v1911_v1, %v1909_v19  ;;  %v1983_v19 = vpack.c.bf16 %v1920_v60, %v1919_v10 }
 0x853   :  { %v2138_v5 = vsel %vm459_vm1, %v2021_v7, 0 }
 0x858   :  { %v1914_v32 = vpop.f32.mrf.mxu1  ;;  %v9935_v8 = vpop.f32.mrf.mxu2 }
 0x860   :  { %v1916_v39 = vpop.f32.mrf.mxu1  ;;  %v9940_v1 = vpop.f32.mrf.mxu2 }
 0x861   :  { %v2022_v37 = vpack.c.bf16 %v1916_v39, %v1914_v32  ;;  %v1922_v32 = vmul.f32 %v9930_v34, %v14178_v54  ;;  %v1921_v39 = vmul.f32 %v9926_v20, %v14178_v54 }
 0x863   :  { %2920 = vmatpush.bf16.msrb.mxu1 %v2022_v37  ;;  %v2141_v42 = vsel %vm459_vm1, %v2022_v37, 0  ;;  %v1984_v37 = vpack.c.bf16 %v1922_v32, %v1921_v39 }
 0x864   :  { %2143 = vmatpush.bf16.xpose.msra.mxu2 %v2141_v42 }
 0x867   :  { %2921 = vmatpush.bf16.msrb.mxu1 %v2021_v7 }
 0x868   :  { %v9946_v42 = vpop.f32.mrf.mxu2 }
 0x86b   :  { %2922 = vmatpush.bf16.msrb.mxu1 %v2020_v31  ;;  %v1924_v31 = vmul.f32 %v9940_v1, %v14178_v54 }
 0x86c   :  { %2144 = vmatpush.bf16.xpose.msra.mxu2 %v2138_v5  ;;  %v1923_v5 = vmul.f32 %v9935_v8, %v14178_v54 }
 0x86f   :  { %2923 = vmatpush.bf16.msrb.mxu1 %v2019_v4  ;;  %v1985_v4 = vpack.c.bf16 %v1924_v31, %v1923_v5 }
 0x870   :  { %v9949_v7 = vpop.f32.mrf.mxu2 }
 0x873   :  { %2924 = vmatpush.bf16.msrb.mxu1 %v2018_v24 }
 0x874   :  { %2145 = vmatpush.bf16.xpose.msra.mxu2 %v2135_v53  ;;  %v1926_v53 = vmul.f32 %v9949_v7, %v14178_v54 }
 0x877   :  { %2925 = vmatpush.bf16.msrb.mxu1 %v2017_v62  ;;  %v1925_v62 = vmul.f32 %v9946_v42, %v14178_v54 }
 0x878   :  { %v9956_v24 = vpop.f32.mrf.mxu2 }
 0x87b   :  { %2926 = vmatpush.bf16.msrb.mxu1 %v2016_v17 }
 0x87c   :  { %2146 = vmatpush.bf16.xpose.msra.mxu2 %v2132_v15  ;;  %v1986_v15 = vpack.c.bf16 %v1926_v53, %v1925_v62 }
 0x87f   :  { %2927 = vmatpush.bf16.msrb.mxu1 %v2015_v28 }
 0x880   :  { %v9962_v17 = vpop.f32.mrf.mxu2 }
 0x884   :  { %2147 = vmatpush.bf16.xpose.msra.mxu2 %v2129_v27  ;;  %v1928_v27 = vmul.f32 %v9962_v17, %v14178_v54 }
 0x888   :  { %v9965_v28 = vpop.f32.mrf.mxu2 }
 0x88c   :  { %2148 = vmatpush.bf16.xpose.msra.mxu2 %v2126_v52  ;;  %v1927_v52 = vmul.f32 %v9956_v24, %v14178_v54 }
 0x894   :  { %2149 = vmatpush.bf16.xpose.msra.mxu2 %v2123_v55  ;;  %v1987_v55 = vpack.c.bf16 %v1928_v27, %v1927_v52  ;;  %v14179_v52 = vld [vmem:[#allocation15_spill] sm:$0xff] }
 0x895   :  { %v1940_v48 = vmul.f32 %v9940_v1, %v14179_v52  ;;  %v1942_v44 = vmul.f32 %v9949_v7, %v14179_v52  ;;  %v1944_v29 = vmul.f32 %v9962_v17, %v14179_v52 }
 0x89c   :  { %2150 = vmatpush.bf16.xpose.msra.mxu2 %v2120_v61  ;;  %v9971_v61 = vpop.f32.mrf.mxu2 }
 0x89d   :  { %v1930_v10 = vmul.f32 %v9971_v61, %v14178_v54  ;;  %v1946_v25 = vmul.f32 %v9971_v61, %v14179_v52 }
 0x8a3   :  { %6819 = vmatmul.msk.bf16.vlgmr.msra.gmra.mxu2 %vm459_vm1, %v1983_v19  ;;  %v1929_v19 = vmul.f32 %v9965_v28, %v14178_v54 }
 0x8a4   :  { %v9974_v60 = vpop.f32.mrf.mxu2 }
 0x8a5   :  { %v1988_v32 = vpack.c.bf16 %v1930_v10, %v1929_v19  ;;  %v1931_v31 = vmul.f32 %v9974_v60, %v14178_v54  ;;  %v1935_v10 = vmul.f32 %v9920_v3, %v14179_v52 }
 0x8ac   :  { %v9981_v39 = vpop.f32.mrf.mxu2 }
 0x8b3   :  { %6820 = vmatmul.msk.bf16.gmra.mxu2 %vm459_vm1, %v1984_v37  ;;  %v1932_v37 = vmul.f32 %v9981_v39, %v14178_v54 }
 0x8b4   :  { %v9987_v5 = vpop.f32.mrf.mxu2 }
 0x8bc   :  { %v9990_v53 = vpop.f32.mrf.mxu2 }
 0x8bd   :  { %v1934_v62 = vmul.f32 %v9990_v53, %v14178_v54  ;;  %v1950_v16 = vmul.f32 %v9990_v53, %v14179_v52  ;;  %v1966_v58 = vmul.f32 %v9990_v53, %v14180_v12 }
 0x8c3   :  { %6821 = vmatmul.msk.bf16.gmra.mxu2 %vm459_vm1, %v1985_v4  ;;  %v1989_v4 = vpack.c.bf16 %v1932_v37, %v1931_v31  ;;  %v8179_v37 = vld [vmem:[%s14011_s3] sm:$0xff] }
 0x8d3   :  { %6822 = vmatmul.msk.bf16.gmra.mxu2 %vm459_vm1, %v1986_v15  ;;  %v1933_v15 = vmul.f32 %v9987_v5, %v14178_v54 }
 0x8d5   :  { %v1990_v27 = vpack.c.bf16 %v1934_v62, %v1933_v15  ;;  %v1937_v15 = vmul.f32 %v9926_v20, %v14179_v52 }
 0x8e3   :  { %6823 = vmatmul.msk.bf16.gmra.mxu2 %vm459_vm1, %v1987_v55  ;;  %v1936_v55 = vmul.f32 %v9923_v2, %v14179_v52 }
 0x8e5   :  { %v1991_v19 = vpack.c.bf16 %v1936_v55, %v1935_v10 }
 0x8f3   :  { %6824 = vmatmul.msk.bf16.gmra.mxu2 %vm459_vm1, %v1988_v32 }
 0x903   :  { %6825 = vmatmul.msk.bf16.gmra.mxu2 %vm459_vm1, %v1989_v4  ;;  %v1938_v4 = vmul.f32 %v9930_v34, %v14179_v52 }
 0x905   :  { %v1992_v10 = vpack.c.bf16 %v1938_v4, %v1937_v15  ;;  %v8182_v4 = vld [vmem:[%s14011_s3 + $0x18] sm:$0xff] }
 0x913   :  { %6826 = vmatmul.msk.bf16.gmra.mxu2 %vm459_vm1, %v1990_v27  ;;  %v8180_v27 = vld [vmem:[%s14011_s3 + $0x8] sm:$0xff] }
 0x923   :  { %6827 = vmatmul.msk.bf16.gmra.mxu2 %vm459_vm1, %v1991_v19 }
 0x926   :  { %v2152_v32 = vpop.f32.mrf.mxu2 }
 0x927   :  { %v10005_v31 = vadd.f32 %v8179_v37, %v2152_v32  ;;  %v8181_v32 = vld [vmem:[%s14011_s3 + $0x10] sm:$0xff] }
 0x929   :  { %2312 = vmax.xlane.f32.xlu2 %v10005_v31 }
 0x92e   :  { %v2154_v62 = vpop.f32.mrf.mxu2 }
 0x92f   :  { %v10015_v55 = vadd.f32 %v8180_v27, %v2154_v62  ;;  %v1939_v62 = vmul.f32 %v9935_v8, %v14179_v52 }
 0x931   :  { %2314 = vmax.xlane.f32.xlu0 %v10015_v55  ;;  %v1993_v27 = vpack.c.bf16 %v1940_v48, %v1939_v62  ;;  %v8184_v48 = vld [vmem:[%s14011_s3 + $0x28] sm:$0xff] }
 0x933   :  { %6828 = vmatmul.msk.bf16.gmra.mxu2 %vm459_vm1, %v1992_v10 }
 0x936   :  { %v2157_v19 = vpop.f32.mrf.mxu2 }
 0x937   :  { %v10022_v37 = vadd.f32 %v8181_v32, %v2157_v19  ;;  %v8183_v19 = vld [vmem:[%s14011_s3 + $0x20] sm:$0xff] }
 0x939   :  { %2316 = vmax.xlane.f32.xlu1 %v10022_v37 }
 0x93e   :  { %v2159_v35 = vpop.f32.mrf.mxu2 }
 0x93f   :  { %v10032_v15 = vadd.f32 %v8182_v4, %v2159_v35  ;;  %v1941_v35 = vmul.f32 %v9946_v42, %v14179_v52 }
 0x941   :  { %2318 = vmax.xlane.f32.xlu2 %v10032_v15  ;;  %v1994_v4 = vpack.c.bf16 %v1942_v44, %v1941_v35  ;;  %v8186_v44 = vld [vmem:[%s14011_s3 + $0x38] sm:$0xff] }
 0x943   :  { %6829 = vmatmul.msk.bf16.gmra.mxu2 %vm459_vm1, %v1993_v27 }
 0x946   :  { %v2162_v10 = vpop.f32.mrf.mxu2 }
 0x947   :  { %v10039_v32 = vadd.f32 %v8183_v19, %v2162_v10  ;;  %v8185_v10 = vld [vmem:[%s14011_s3 + $0x30] sm:$0xff] }
 0x949   :  { %2320 = vmax.xlane.f32.xlu0 %v10039_v32 }
 0x94e   :  { %v2164_v45 = vpop.f32.mrf.mxu2 }
 0x94f   :  { %v10049_v62 = vadd.f32 %v8184_v48, %v2164_v45  ;;  %v1943_v45 = vmul.f32 %v9956_v24, %v14179_v52 }
 0x951   :  { %2322 = vmax.xlane.f32.xlu1 %v10049_v62  ;;  %v1995_v48 = vpack.c.bf16 %v1944_v29, %v1943_v45  ;;  %v1948_v45 = vmul.f32 %v9981_v39, %v14179_v52 }
 0x953   :  { %6830 = vmatmul.msk.bf16.gmra.mxu2 %vm459_vm1, %v1994_v4 }
 0x956   :  { %v2167_v27 = vpop.f32.mrf.mxu2 }
 0x957   :  { %v10056_v19 = vadd.f32 %v8185_v10, %v2167_v27  ;;  %v8187_v27 = vld [vmem:[%s14011_s3 + $0x40] sm:$0xff] }
 0x959   :  { %2324 = vmax.xlane.f32.xlu2 %v10056_v19 }
 0x95e   :  { %v2169_v30 = vpop.f32.mrf.mxu2 }
 0x95f   :  { %v10066_v35 = vadd.f32 %v8186_v44, %v2169_v30  ;;  %v1945_v30 = vmul.f32 %v9965_v28, %v14179_v52 }
 0x961   :  { %2326 = vmax.xlane.f32.xlu0 %v10066_v35  ;;  %v1996_v44 = vpack.c.bf16 %v1946_v25, %v1945_v30  ;;  %v1949_v25 = vmul.f32 %v9987_v5, %v14179_v52 }
 0x963   :  { %6831 = vmatmul.msk.bf16.gmra.mxu2 %vm459_vm1, %v1995_v48  ;;  %v1998_v30 = vpack.c.bf16 %v1950_v16, %v1949_v25 }
 0x966   :  { %v2172_v4 = vpop.f32.mrf.mxu2 }
 0x967   :  { %v10073_v10 = vadd.f32 %v8187_v27, %v2172_v4  ;;  %v1947_v4 = vmul.f32 %v9974_v60, %v14179_v52 }
 0x969   :  { %2328 = vmax.xlane.f32.xlu0 %v10073_v10  ;;  %v1997_v27 = vpack.c.bf16 %v1948_v45, %v1947_v4  ;;  %v1952_v45 = vmul.f32 %v9923_v2, %v14180_v12 }
 0x96e   :  { %v2174_v57 = vpop.f32.mrf.mxu2 }
 0x973   :  { %6832 = vmatmul.msk.bf16.gmra.mxu2 %vm459_vm1, %v1996_v44 }
 0x976   :  { %v2177_v29 = vpop.f32.mrf.mxu2 }
 0x97e   :  { %v2179_v48 = vpop.f32.mrf.mxu2 }
 0x983   :  { %6833 = vmatmul.msk.bf16.gmra.mxu2 %vm459_vm1, %v1997_v27  ;;  %v1951_v27 = vmul.f32 %v9920_v3, %v14180_v12 }
 0x985   :  { %v1999_v40 = vpack.c.bf16 %v1952_v45, %v1951_v27  ;;  %v1953_v27 = vmul.f32 %v9926_v20, %v14180_v12 }
 0x986   :  { %v10086_v13 = vpop.f32.mrf.mxu2 }
 0x98e   :  { %v10090_v50 = vpop.f32.mrf.mxu2 }
 0x993   :  { %6834 = vmatmul.msk.bf16.gmra.mxu2 %vm459_vm1, %v1998_v30 }
 0x996   :  { %v10095_v44 = vpop.f32.mrf.mxu2 }
 0x99c   :  { %v2313_v26 = vpop.xlane.xlu2 %2312 }
 0x99d   :  { %v2440_v4 = vsub.f32 %v10005_v31, %v2313_v26 }
 0x99e   :  { %v10102_v59 = vpop.f32.mrf.mxu2 }
 0x99f   :  { %v2504_v22 = vmul.f32 1.442695, %v2440_v4 }
 0x9a1   :  { %7405 = vpow2.f32 %v2504_v22  ;;  %v1954_v22 = vmul.f32 %v9930_v34, %v14180_v12 }
 0x9a3   :  { %6835 = vmatmul.msk.bf16.gmra.mxu2 %vm459_vm1, %v1999_v40  ;;  %v8188_v40 = vld [vmem:[%s14011_s3 + $0x48] sm:$0xff] }
 0x9a4   :  { %v2315_v16 = vpop.xlane.xlu0 %2314  ;;  %v10117_v4 = vadd.f32 %v8188_v40, %v2174_v57  ;;  %v8189_v57 = vld [vmem:[%s14011_s3 + $0x50] sm:$0xff] }
 0x9a5   :  { %v2441_v25 = vsub.f32 %v10015_v55, %v2315_v16  ;;  %v2000_v16 = vpack.c.bf16 %v1954_v22, %v1953_v27 }
 0x9a6   :  { %v10109_v26 = vpop.f32.mrf.mxu2 }
 0x9a7   :  { %v10106_v30 = vpop.eup %7405  ;;  %v2506_v52 = vmul.f32 1.442695, %v2441_v25 }
 0x9a8   :  { %2632 = vadd.xlane.f32.xlu1 %v10106_v30 }
 0x9a9   :  { %7407 = vpow2.f32 %v2506_v52 }
 0x9ac   :  { %v2317_v31 = vpop.xlane.xlu1 %2316 }
 0x9ad   :  { %v2442_v45 = vsub.f32 %v10022_v37, %v2317_v31  ;;  %v10130_v31 = vadd.f32 %v8189_v57, %v2177_v29  ;;  %v8190_v29 = vld [vmem:[%s14011_s3 + $0x58] sm:$0xff] }
 0x9ae   :  { %v10132_v40 = vpop.f32.mrf.mxu2 }
 0x9af   :  { %v10119_v55 = vpop.eup %7407  ;;  %v2508_v52 = vmul.f32 1.442695, %v2442_v45 }
 0x9b0   :  { %2634 = vadd.xlane.f32.xlu2 %v10119_v55  ;;  %2330 = vmax.xlane.f32.xlu1 %v10117_v4 }
 0x9b1   :  { %7409 = vpow2.f32 %v2508_v52  ;;  %v10144_v52 = vadd.f32 %v8190_v29, %v2179_v48 }
 0x9b3   :  { %6836 = vmatmul.msk.bf16.gmra.mxu2 %vm459_vm1, %v2000_v16 }
 0x9b4   :  { %v2319_v37 = vpop.xlane.xlu2 %2318 }
 0x9b5   :  { %v2443_v25 = vsub.f32 %v10032_v15, %v2319_v37  ;;  %v1956_v15 = vmul.f32 %v9940_v1, %v14180_v12  ;;  %v1955_v37 = vmul.f32 %v9935_v8, %v14180_v12 }
 0x9b6   :  { %v10150_v57 = vpop.f32.mrf.mxu2 }
 0x9b7   :  { %v10134_v45 = vpop.eup %7409  ;;  %v2510_v54 = vmul.f32 1.442695, %v2443_v25 }
 0x9b8   :  { %2636 = vadd.xlane.f32.xlu2 %v10134_v45  ;;  %2332 = vmax.xlane.f32.xlu1 %v10130_v31 }
 0x9b9   :  { %7411 = vpow2.f32 %v2510_v54  ;;  %v2001_v54 = vpack.c.bf16 %v1956_v15, %v1955_v37 }
 0x9bc   :  { %v2321_v22 = vpop.xlane.xlu0 %2320 }
 0x9bd   :  { %v2444_v27 = vsub.f32 %v10039_v32, %v2321_v22  ;;  %v8191_v22 = vld [vmem:[%s14011_s3 + $0x60] sm:$0xff] }
 0x9be   :  { %v10160_v29 = vadd.f32 %v8191_v22, %v10086_v13  ;;  %v10166_v15 = vpop.f32.mrf.mxu2  ;;  %v8192_v13 = vld [vmem:[%s14011_s3 + $0x68] sm:$0xff] }
 0x9bf   :  { %v10146_v16 = vpop.eup %7411  ;;  %v2512_v25 = vmul.f32 1.442695, %v2444_v27 }
 0x9c0   :  { %2334 = vmax.xlane.f32.xlu2 %v10144_v52  ;;  %2638 = vadd.xlane.f32.xlu0 %v10146_v16 }
 0x9c1   :  { %7413 = vpow2.f32 %v2512_v25 }
 0x9c3   :  { %6837 = vmatmul.msk.bf16.gmra.mxu2 %vm459_vm1, %v2001_v54  ;;  %v10175_v54 = vadd.f32 %v8192_v13, %v10090_v50  ;;  %v8193_v13 = vld [vmem:[%s14011_s3 + $0x70] sm:$0xff] }
 0x9c4   :  { %v2323_v32 = vpop.xlane.xlu1 %2322  ;;  %v10191_v43 = vadd.f32 %v8193_v13, %v10095_v44 }
 0x9c5   :  { %v2445_v48 = vsub.f32 %v10049_v62, %v2323_v32  ;;  %v1958_v62 = vmul.f32 %v9949_v7, %v14180_v12 }
 0x9c7   :  { %v10162_v27 = vpop.eup %7413  ;;  %v2514_v36 = vmul.f32 1.442695, %v2445_v48 }
 0x9c8   :  { %2336 = vmax.xlane.f32.xlu2 %v10160_v29  ;;  %2640 = vadd.xlane.f32.xlu0 %v10162_v27 }
 0x9c9   :  { %7415 = vpow2.f32 %v2514_v36  ;;  %v1957_v36 = vmul.f32 %v9946_v42, %v14180_v12 }
 0x9cb   :  { %v2002_v22 = vpack.c.bf16 %v1958_v62, %v1957_v36  ;;  %v1960_v36 = vmul.f32 %v9962_v17, %v14180_v12 }
 0x9cc   :  { %v2325_v37 = vpop.xlane.xlu2 %2324 }
 0x9cd   :  { %v2446_v25 = vsub.f32 %v10056_v19, %v2325_v37  ;;  %v10184_v19 = vpop.f32.mrf.mxu2 }
 0x9cf   :  { %v10177_v32 = vpop.eup %7415  ;;  %v2516_v48 = vmul.f32 1.442695, %v2446_v25 }
 0x9d0   :  { %2642 = vadd.xlane.f32.xlu1 %v10177_v32  ;;  %2338 = vmax.xlane.f32.xlu0 %v10175_v54 }
 0x9d1   :  { %7417 = vpow2.f32 %v2516_v48  ;;  %v8194_v48 = vld [vmem:[%s14011_s3 + $0x78] sm:$0xff] }
 0x9d2   :  { %v10204_v44 = vadd.f32 %v8194_v48, %v10102_v59  ;;  %v8195_v59 = vld [vmem:[%s14011_s3 + $0x80] sm:$0xff] }
 0x9d3   :  { %6838 = vmatmul.msk.bf16.gmra.mxu2 %vm459_vm1, %v2002_v22  ;;  %v10219_v13 = vadd.f32 %v8195_v59, %v10109_v26  ;;  %v1961_v26 = vmul.f32 %v9965_v28, %v14180_v12  ;;  %v8197_v59 = vld [vmem:[%s14011_s3 + $0x90] sm:$0xff] }
 0x9d4   :  { %v2327_v37 = vpop.xlane.xlu0 %2326  ;;  %v10245_v11 = vadd.f32 %v8197_v59, %v10150_v57  ;;  %v1965_v57 = vmul.f32 %v9987_v5, %v14180_v12 }
 0x9d5   :  { %v2447_v50 = vsub.f32 %v10066_v35, %v2327_v37  ;;  %v10206_v22 = vpop.f32.mrf.mxu2 }
 0x9d6   :  { %v2006_v0 = vpack.c.bf16 %v1966_v58, %v1965_v57 }
 0x9d7   :  { %v10193_v25 = vpop.eup %7417  ;;  %v2518_v49 = vmul.f32 1.442695, %v2447_v50 }
 0x9d8   :  { %2644 = vadd.xlane.f32.xlu1 %v10193_v25  ;;  %2340 = vmax.xlane.f32.xlu0 %v10191_v43 }
 0x9d9   :  { %7419 = vpow2.f32 %v2518_v49  ;;  %v1959_v49 = vmul.f32 %v9956_v24, %v14180_v12 }
 0x9dc   :  { %v2329_v62 = vpop.xlane.xlu0 %2328 }
 0x9dd   :  { %v2448_v35 = vsub.f32 %v10073_v10, %v2329_v62  ;;  %v2003_v10 = vpack.c.bf16 %v1960_v36, %v1959_v49  ;;  %v10223_v48 = vpop.f32.mrf.mxu2  ;;  %v1962_v36 = vmul.f32 %v9971_v61, %v14180_v12 }
 0x9df   :  { %v10208_v37 = vpop.eup %7419  ;;  %v2520_v50 = vmul.f32 1.442695, %v2448_v35  ;;  %v8196_v35 = vld [vmem:[%s14011_s3 + $0x88] sm:$0xff] }
 0x9e0   :  { %2646 = vadd.xlane.f32.xlu2 %v10208_v37  ;;  %2342 = vmax.xlane.f32.xlu1 %v10204_v44  ;;  %v10233_v49 = vadd.f32 %v8196_v35, %v10132_v40  ;;  %v1964_v35 = vmul.f32 %v9981_v39, %v14180_v12 }
 0x9e1   :  { %7421 = vpow2.f32 %v2520_v50  ;;  %v2004_v50 = vpack.c.bf16 %v1962_v36, %v1961_v26  ;;  %v1963_v36 = vmul.f32 %v9974_v60, %v14180_v12 }
 0x9e3   :  { %6839 = vmatmul.msk.bf16.gmra.mxu2 %vm459_vm1, %v2003_v10  ;;  %v2005_v26 = vpack.c.bf16 %v1964_v35, %v1963_v36  ;;  %v1968_v35 = vmul.f32 %v9923_v2, %v14181_v46  ;;  %v1967_v36 = vmul.f32 %v9920_v3, %v14181_v46 }
 0x9e5   :  { %v10238_v10 = vpop.f32.mrf.mxu2 }
 0x9e7   :  { %v10221_v62 = vpop.eup %7421 }
 0x9e8   :  { %2648 = vadd.xlane.f32.xlu2 %v10221_v62  ;;  %2344 = vmax.xlane.f32.xlu1 %v10219_v13 }
 0x9ed   :  { %v10248_v40 = vpop.f32.mrf.mxu2 }
 0x9f0   :  { %2346 = vmax.xlane.f32.xlu2 %v10233_v49 }
 0x9f3   :  { %6840 = vmatmul.msk.bf16.gmra.mxu2 %vm459_vm1, %v2004_v50 }
 0x9f5   :  { %v10255_v50 = vpop.f32.mrf.mxu2 }
 0x9f8   :  { %2348 = vmax.xlane.f32.xlu2 %v10245_v11 }
 0x9fd   :  { %v10261_v59 = vpop.f32.mrf.mxu2 }
 0xa03   :  { %6841 = vmatmul.msk.bf16.gmra.mxu2 %vm459_vm1, %v2005_v26  ;;  %v2007_v26 = vpack.c.bf16 %v1968_v35, %v1967_v36  ;;  %v1970_v36 = vmul.f32 %v9930_v34, %v14181_v46 }
 0xa05   :  { %v10264_v56 = vpop.f32.mrf.mxu2 }
 0xa0d   :  { %v10271_v12 = vpop.f32.mrf.mxu2 }
 0xa13   :  { %6842 = vmatmul.msk.bf16.gmra.mxu2 %vm459_vm1, %v2006_v0 }
 0xa1b   :  { %v2633_v33 = vpop.xlane.xlu1 %2632 }
 0xa1c   :  { %7423 = vrcp.f32 %v2633_v33 }
 0xa22   :  { %v7424_v57 = vpop.eup %7423 }
 0xa23   :  { %v2331_v6 = vpop.xlane.xlu1 %2330  ;;  %v2635_v38 = vpop.xlane.xlu2 %2634  ;;  %6843 = vmatmul.msk.bf16.gmra.mxu2 %vm459_vm1, %v2007_v26  ;;  %v2824_v2 = vmul.f32 %v7424_v57, %v10106_v30 }
 0xa24   :  { %v2449_v58 = vsub.f32 %v10117_v4, %v2331_v6  ;;  %7425 = vrcp.f32 %v2635_v38  ;;  %v10281_v6 = vpop.f32.mrf.mxu2  ;;  %v1969_v4 = vmul.f32 %v9926_v20, %v14181_v46 }
 0xa26   :  { %v2522_v0 = vmul.f32 1.442695, %v2449_v58 }
 0xa28   :  { %7427 = vpow2.f32 %v2522_v0 }
 0xa2a   :  { %v7426_v18 = vpop.eup %7425 }
 0xa2b   :  { %v2825_v47 = vmul.f32 %v7426_v18, %v10119_v55  ;;  %v2333_v3 = vpop.xlane.xlu1 %2332  ;;  %v2637_v35 = vpop.xlane.xlu2 %2636  ;;  %v2008_v18 = vpack.c.bf16 %v1970_v36, %v1969_v4 }
 0xa2c   :  { %v2450_v33 = vsub.f32 %v10130_v31, %v2333_v3  ;;  %v10291_v20 = vpop.f32.mrf.mxu2 }
 0xa2d   :  { %v2888_v26 = vpack.c.bf16 %v2825_v47, %v2824_v2 }
 0xa2e   :  { %v10279_v23 = vpop.eup %7427  ;;  %v2524_v38 = vmul.f32 1.442695, %v2450_v33 }
 0xa2f   :  { %2928 = vmatmul.bf16.vlgmr.msrb.gmra.mxu1 %v2888_v26  ;;  %2650 = vadd.xlane.f32.xlu0 %v10279_v23 }
 0xa30   :  { %7429 = vpow2.f32 %v2524_v38  ;;  %v8198_v38 = vld [vmem:[%s14011_s3 + $0x98] sm:$0xff] }
 0xa31   :  { %7431 = vrcp.f32 %v2637_v35  ;;  %v10304_v4 = vadd.f32 %v8198_v38, %v10166_v15  ;;  %v8200_v38 = vld [vmem:[%s14011_s3 + $0xa8] sm:$0xff] }
 0xa33   :  { %v2639_v30 = vpop.xlane.xlu0 %2638  ;;  %v2335_v55 = vpop.xlane.xlu2 %2334  ;;  %6844 = vmatmul.msk.bf16.gmra.mxu2 %vm459_vm1, %v2008_v18 }
 0xa34   :  { %7433 = vrcp.f32 %v2639_v30  ;;  %v2451_v47 = vsub.f32 %v10144_v52, %v2335_v55  ;;  %v1972_v52 = vmul.f32 %v9940_v1, %v14181_v46 }
 0xa36   :  { %v10288_v34 = vpop.eup %7429  ;;  %v2526_v31 = vmul.f32 1.442695, %v2451_v47 }
 0xa37   :  { %2652 = vadd.xlane.f32.xlu0 %v10288_v34  ;;  %v7432_v58 = vpop.eup %7431 }
 0xa38   :  { %7435 = vpow2.f32 %v2526_v31  ;;  %v2826_v3 = vmul.f32 %v7432_v58, %v10134_v45  ;;  %v1971_v45 = vmul.f32 %v9935_v8, %v14181_v46  ;;  %v8199_v8 = vld [vmem:[%s14011_s3 + $0xa0] sm:$0xff] }
 0xa39   :  { %v10320_v47 = vadd.f32 %v8199_v8, %v10184_v19  ;;  %v1974_v19 = vmul.f32 %v9949_v7, %v14181_v46 }
 0xa3a   :  { %v7434_v0 = vpop.eup %7433  ;;  %v2009_v1 = vpack.c.bf16 %v1972_v52, %v1971_v45 }
 0xa3b   :  { %v2641_v57 = vpop.xlane.xlu0 %2640  ;;  %v2337_v2 = vpop.xlane.xlu2 %2336  ;;  %v2827_v35 = vmul.f32 %v7434_v0, %v10146_v16 }
 0xa3c   :  { %v2452_v33 = vsub.f32 %v10160_v29, %v2337_v2  ;;  %v10310_v16 = vpop.f32.mrf.mxu2 }
 0xa3d   :  { %v2889_v36 = vpack.c.bf16 %v2827_v35, %v2826_v3 }
 0xa3e   :  { %v10298_v26 = vpop.eup %7435  ;;  %v2528_v18 = vmul.f32 1.442695, %v2452_v33 }
 0xa3f   :  { %2933 = vmatmul.bf16.gmra.mxu1 %v2889_v36  ;;  %2654 = vadd.xlane.f32.xlu1 %v10298_v26 }
 0xa40   :  { %7437 = vpow2.f32 %v2528_v18  ;;  %2350 = vmax.xlane.f32.xlu0 %v10304_v4  ;;  %v10337_v18 = vadd.f32 %v8200_v38, %v10206_v22 }
 0xa41   :  { %7439 = vrcp.f32 %v2641_v57 }
 0xa43   :  { %v2643_v29 = vpop.xlane.xlu1 %2642  ;;  %v2339_v30 = vpop.xlane.xlu0 %2338  ;;  %6845 = vmatmul.msk.bf16.gmra.mxu2 %vm459_vm1, %v2009_v1 }
 0xa44   :  { %7441 = vrcp.f32 %v2643_v29  ;;  %v2453_v15 = vsub.f32 %v10175_v54, %v2339_v30  ;;  %v10329_v33 = vpop.f32.mrf.mxu2 }
 0xa46   :  { %v10314_v55 = vpop.eup %7437  ;;  %v2530_v31 = vmul.f32 1.442695, %v2453_v15 }
 0xa47   :  { %2656 = vadd.xlane.f32.xlu1 %v10314_v55  ;;  %v7440_v58 = vpop.eup %7439 }
 0xa48   :  { %7443 = vpow2.f32 %v2530_v31  ;;  %2352 = vmax.xlane.f32.xlu0 %v10320_v47  ;;  %v2828_v54 = vmul.f32 %v7440_v58, %v10162_v27 }
 0xa4a   :  { %v7442_v0 = vpop.eup %7441 }
 0xa4b   :  { %v2645_v57 = vpop.xlane.xlu1 %2644  ;;  %v2341_v2 = vpop.xlane.xlu0 %2340  ;;  %v2829_v3 = vmul.f32 %v7442_v0, %v10177_v32  ;;  %v1973_v32 = vmul.f32 %v9946_v42, %v14181_v46  ;;  %v8201_v42 = vld [vmem:[%s14011_s3 + $0xb0] sm:$0xff] }
 0xa4c   :  { %v2454_v35 = vsub.f32 %v10191_v43, %v2341_v2  ;;  %v10351_v29 = vadd.f32 %v8201_v42, %v10223_v48  ;;  %v10353_v15 = vpop.f32.mrf.mxu2  ;;  %v1976_v2 = vmul.f32 %v9962_v17, %v14181_v46 }
 0xa4d   :  { %v2890_v52 = vpack.c.bf16 %v2829_v3, %v2828_v54  ;;  %v2010_v43 = vpack.c.bf16 %v1974_v19, %v1973_v32 }
 0xa4e   :  { %v10331_v36 = vpop.eup %7443  ;;  %v2532_v27 = vmul.f32 1.442695, %v2454_v35  ;;  %v8202_v35 = vld [vmem:[%s14011_s3 + $0xb8] sm:$0xff] }
 0xa4f   :  { %2938 = vmatmul.bf16.gmra.mxu1 %v2890_v52  ;;  %2658 = vadd.xlane.f32.xlu2 %v10331_v36  ;;  %v10370_v19 = vadd.f32 %v8202_v35, %v10238_v10  ;;  %v1981_v35 = vmul.f32 %v9987_v5, %v14181_v46 }
 0xa50   :  { %7445 = vpow2.f32 %v2532_v27  ;;  %2354 = vmax.xlane.f32.xlu1 %v10337_v18 }
 0xa51   :  { %7447 = vrcp.f32 %v2645_v57 }
 0xa53   :  { %v2647_v7 = vpop.xlane.xlu2 %2646  ;;  %6846 = vmatmul.msk.bf16.gmra.mxu2 %vm459_vm1, %v2010_v43  ;;  %v2343_v45 = vpop.xlane.xlu1 %2342 }
 0xa54   :  { %7449 = vrcp.f32 %v2647_v7  ;;  %v2455_v22 = vsub.f32 %v10204_v44, %v2343_v45  ;;  %v10376_v17 = vpop.f32.mrf.mxu2  ;;  %v1978_v45 = vmul.f32 %v9971_v61, %v14181_v46  ;;  %v8205_v61 = vld [vmem:[%s14011_s3 + $0xd0] sm:$0xff] }
 0xa56   :  { %v10345_v1 = vpop.eup %7445  ;;  %v2534_v30 = vmul.f32 1.442695, %v2455_v22  ;;  %v8204_v22 = vld [vmem:[%s14011_s3 + $0xc8] sm:$0xff] }
 0xa57   :  { %2660 = vadd.xlane.f32.xlu2 %v10345_v1  ;;  %v7448_v8 = vpop.eup %7447 }
 0xa58   :  { %7451 = vpow2.f32 %v2534_v30  ;;  %2356 = vmax.xlane.f32.xlu1 %v10351_v29  ;;  %v2830_v0 = vmul.f32 %v7448_v8, %v10193_v25  ;;  %v1975_v25 = vmul.f32 %v9956_v24, %v14181_v46  ;;  %v8203_v24 = vld [vmem:[%s14011_s3 + $0xc0] sm:$0xff]  ;;  %v1977_v8 = vmul.f32 %v9965_v28, %v14181_v46 }
 0xa59   :  { %v10386_v27 = vadd.f32 %v8203_v24, %v10248_v40  ;;  %v10399_v40 = vadd.f32 %v8204_v22, %v10255_v50  ;;  %v10412_v50 = vadd.f32 %v8205_v61, %v10261_v59  ;;  %v1980_v28 = vmul.f32 %v9981_v39, %v14181_v46  ;;  %v8207_v39 = vld [vmem:[%s14011_s3 + $0xe0] sm:$0xff] }
 0xa5a   :  { %v7450_v31 = vpop.eup %7449  ;;  %v1979_v59 = vmul.f32 %v9974_v60, %v14181_v46  ;;  %v1982_v60 = vmul.f32 %v9990_v53, %v14181_v46 }
 0xa5b   :  { %v10357_v44 = vpop.xlane.xlu2 %2648  ;;  %v2345_v58 = vpop.xlane.xlu1 %2344  ;;  %v2831_v57 = vmul.f32 %v7450_v31, %v10208_v37  ;;  %v2011_v37 = vpack.c.bf16 %v1976_v2, %v1975_v25 }
 0xa5c   :  { %v2456_v48 = vsub.f32 %v10219_v13, %v2345_v58  ;;  %v10390_v43 = vpop.f32.mrf.mxu2  ;;  %v2013_v2 = vpack.c.bf16 %v1980_v28, %v1979_v59 }
 0xa5d   :  { %v2891_v54 = vpack.c.bf16 %v2831_v57, %v2830_v0  ;;  %v8206_v0 = vld [vmem:[%s14011_s3 + $0xd8] sm:$0xff] }
 0xa5e   :  { %v10364_v3 = vpop.eup %7451  ;;  %v2536_v52 = vmul.f32 1.442695, %v2456_v48  ;;  %v10426_v57 = vadd.f32 %v8206_v0, %v10264_v56 }
 0xa5f   :  { %2943 = vmatmul.bf16.gmra.mxu1 %v2891_v54  ;;  %2662 = vadd.xlane.f32.xlu0 %v10364_v3  ;;  %v10438_v54 = vadd.f32 %v8207_v39, %v10271_v12 }
 0xa60   :  { %7453 = vpow2.f32 %v2536_v52  ;;  %2358 = vmax.xlane.f32.xlu2 %v10370_v19  ;;  %v2014_v52 = vpack.c.bf16 %v1982_v60, %v1981_v35 }
 0xa63   :  { %6847 = vmatmul.msk.bf16.gmra.mxu2 %vm459_vm1, %v2011_v37  ;;  %v2347_v13 = vpop.xlane.xlu2 %2346 }
 0xa64   :  { %v2457_v38 = vsub.f32 %v10233_v49, %v2347_v13  ;;  %v10414_v31 = vpop.f32.mrf.mxu2 }
 0xa66   :  { %v10380_v10 = vpop.eup %7453  ;;  %v2538_v32 = vmul.f32 1.442695, %v2457_v38 }
 0xa67   :  { %2664 = vadd.xlane.f32.xlu0 %v10380_v10 }
 0xa68   :  { %7455 = vpow2.f32 %v2538_v32  ;;  %2360 = vmax.xlane.f32.xlu2 %v10386_v27 }
 0xa6b   :  { %v2349_v7 = vpop.xlane.xlu2 %2348 }
 0xa6c   :  { %v2458_v49 = vsub.f32 %v10245_v11, %v2349_v7  ;;  %v2012_v11 = vpack.c.bf16 %v1978_v45, %v1977_v8  ;;  %v10430_v48 = vpop.f32.mrf.mxu2 }
 0xa6e   :  { %v10401_v42 = vpop.eup %7455  ;;  %v2540_v30 = vmul.f32 1.442695, %v2458_v49 }
 0xa6f   :  { %2666 = vadd.xlane.f32.xlu1 %v10401_v42  ;;  %2362 = vmax.xlane.f32.xlu0 %v10399_v40 }
 0xa70   :  { %7457 = vpow2.f32 %v2540_v30 }
 0xa71   :  { %7459 = vrcp.f32 %v10357_v44 }
 0xa73   :  { %6848 = vmatmul.msk.bf16.gmra.mxu2 %vm459_vm1, %v2012_v11 }
 0xa74   :  { %v10441_v56 = vpop.f32.mrf.mxu2 }
 0xa76   :  { %v10416_v58 = vpop.eup %7457 }
 0xa77   :  { %2668 = vadd.xlane.f32.xlu1 %v10416_v58  ;;  %2364 = vmax.xlane.f32.xlu0 %v10412_v50  ;;  %v7460_v12 = vpop.eup %7459 }
 0xa78   :  { %v2832_v24 = vmul.f32 %v7460_v12, %v10221_v62 }
 0xa7c   :  { %v10447_v25 = vpop.f32.mrf.mxu2 }
 0xa7f   :  { %2366 = vmax.xlane.f32.xlu1 %v10426_v57 }
 0xa83   :  { %6849 = vmatmul.msk.bf16.gmra.mxu2 %vm459_vm1, %v2013_v2 }
 0xa87   :  { %2368 = vmax.xlane.f32.xlu1 %v10438_v54 }
 0xa93   :  { %6850 = vmatmul.msk.bf16.gmra.mxu2 %vm459_vm1, %v2014_v52 }
 0xaa2   :  { %v2651_v37 = vpop.xlane.xlu0 %2650 }
 0xaa3   :  { %7461 = vrcp.f32 %v2651_v37 }
 0xaa9   :  { %v7462_v13 = vpop.eup %7461 }
 0xaaa   :  { %v2653_v38 = vpop.xlane.xlu0 %2652  ;;  %v2833_v32 = vmul.f32 %v7462_v13, %v10279_v23 }
 0xaab   :  { %7463 = vrcp.f32 %v2653_v38 }
 0xaac   :  { %v2892_v53 = vpack.c.bf16 %v2833_v32, %v2832_v24 }
 0xaae   :  { %2948 = vmatmul.bf16.gmra.mxu1 %v2892_v53 }
 0xab1   :  { %v7464_v22 = vpop.eup %7463 }
 0xab2   :  { %v2655_v5 = vpop.xlane.xlu1 %2654  ;;  %v2834_v8 = vmul.f32 %v7464_v22, %v10288_v34 }
 0xab3   :  { %7465 = vrcp.f32 %v2655_v5  ;;  %v2351_v7 = vpop.xlane.xlu0 %2350 }
 0xab4   :  { %v2459_v49 = vsub.f32 %v10304_v4, %v2351_v7 }
 0xab6   :  { %v2542_v45 = vmul.f32 1.442695, %v2459_v49 }
 0xab8   :  { %7467 = vpow2.f32 %v2542_v45 }
 0xab9   :  { %v7466_v44 = vpop.eup %7465 }
 0xaba   :  { %v2657_v30 = vpop.xlane.xlu1 %2656  ;;  %v2835_v11 = vmul.f32 %v7466_v44, %v10298_v26 }
 0xabb   :  { %v2353_v62 = vpop.xlane.xlu0 %2352 }
 0xabc   :  { %v2460_v23 = vsub.f32 %v10320_v47, %v2353_v62  ;;  %v2893_v61 = vpack.c.bf16 %v2835_v11, %v2834_v8  ;;  %v8210_v11 = vld [vmem:[%s14011_s3 + $0xf8] sm:$0xff] }
 0xabd   :  { %v10495_v62 = vadd.f32 %v8210_v11, %v10310_v16  ;;  %v8211_v16 = vld [vmem:[%s14011_s3 + $0x100] sm:$0xff] }
 0xabe   :  { %v10457_v28 = vpop.eup %7467  ;;  %v2544_v0 = vmul.f32 1.442695, %v2460_v23  ;;  %2953 = vmatmul.bf16.gmra.mxu1 %v2893_v61  ;;  %v10497_v23 = vpop.f32.mrf.mxu1 }
 0xabf   :  { %2670 = vadd.xlane.f32.xlu2 %v10457_v28 }
 0xac0   :  { %7469 = vpow2.f32 %v2544_v0 }
 0xac1   :  { %7471 = vrcp.f32 %v2657_v30 }
 0xac2   :  { %v2659_v4 = vpop.xlane.xlu2 %2658 }
 0xac3   :  { %7473 = vrcp.f32 %v2659_v4  ;;  %v2355_v59 = vpop.xlane.xlu1 %2354  ;;  %v10508_v4 = vadd.f32 %v8211_v16, %v10329_v33 }
 0xac4   :  { %v2461_v2 = vsub.f32 %v10337_v18, %v2355_v59  ;;  %v8208_v18 = vld [vmem:[%s14011_s3 + $0xe8] sm:$0xff] }
 0xac5   :  { %v10471_v38 = vadd.f32 %v8208_v18, %v10281_v6  ;;  %v8209_v6 = vld [vmem:[%s14011_s3 + $0xf0] sm:$0xff] }
 0xac6   :  { %v10461_v34 = vpop.eup %7469  ;;  %v2546_v26 = vmul.f32 1.442695, %v2461_v2  ;;  %v10482_v53 = vadd.f32 %v8209_v6, %v10291_v20 }
 0xac7   :  { %v7472_v39 = vpop.eup %7471  ;;  %2672 = vadd.xlane.f32.xlu2 %v10461_v34 }
 0xac8   :  { %7475 = vpow2.f32 %v2546_v26  ;;  %v2836_v35 = vmul.f32 %v7472_v39, %v10314_v55  ;;  %v10512_v39 = vpop.f32.mrf.mxu1 }
 0xac9   :  { %v7474_v47 = vpop.eup %7473 }
 0xaca   :  { %v2661_v60 = vpop.xlane.xlu2 %2660  ;;  %v2837_v52 = vmul.f32 %v7474_v47, %v10331_v36 }
 0xacb   :  { %v2357_v37 = vpop.xlane.xlu1 %2356 }
 0xacc   :  { %v2462_v12 = vsub.f32 %v10351_v29, %v2357_v37  ;;  %v2894_v13 = vpack.c.bf16 %v2837_v52, %v2836_v35 }
 0xace   :  { %v10473_v24 = vpop.eup %7475  ;;  %v2548_v32 = vmul.f32 1.442695, %v2462_v12  ;;  %2958 = vmatmul.bf16.gmra.mxu1 %v2894_v13  ;;  %v8212_v13 = vld [vmem:[%s14011_s3 + $0x108] sm:$0xff] }
 0xacf   :  { %2674 = vadd.xlane.f32.xlu0 %v10473_v24  ;;  %2370 = vmax.xlane.f32.xlu2 %v10471_v38  ;;  %v10525_v18 = vadd.f32 %v8212_v13, %v10353_v15 }
 0xad0   :  { %7477 = vpow2.f32 %v2548_v32 }
 0xad1   :  { %7479 = vrcp.f32 %v2661_v60 }
 0xad2   :  { %v2663_v55 = vpop.xlane.xlu0 %2662 }
 0xad3   :  { %v2359_v36 = vpop.xlane.xlu2 %2358  ;;  %7481 = vrcp.f32 %v2663_v55 }
 0xad4   :  { %v2463_v29 = vsub.f32 %v10370_v19, %v2359_v36  ;;  %v8213_v36 = vld [vmem:[%s14011_s3 + $0x110] sm:$0xff] }
 0xad5   :  { %v10538_v15 = vadd.f32 %v8213_v36, %v10376_v17 }
 0xad6   :  { %v10484_v5 = vpop.eup %7477  ;;  %v2550_v7 = vmul.f32 1.442695, %v2463_v29 }
 0xad7   :  { %v7480_v49 = vpop.eup %7479  ;;  %2676 = vadd.xlane.f32.xlu0 %v10484_v5  ;;  %2372 = vmax.xlane.f32.xlu2 %v10482_v53 }
 0xad8   :  { %7483 = vpow2.f32 %v2550_v7  ;;  %v2838_v19 = vmul.f32 %v7480_v49, %v10345_v1  ;;  %v8214_v49 = vld [vmem:[%s14011_s3 + $0x118] sm:$0xff] }
 0xad9   :  { %v7482_v45 = vpop.eup %7481 }
 0xada   :  { %v2665_v22 = vpop.xlane.xlu0 %2664  ;;  %v2839_v44 = vmul.f32 %v7482_v45, %v10364_v3  ;;  %v10549_v45 = vadd.f32 %v8214_v49, %v10390_v43  ;;  %v8216_v43 = vld [vmem:[%s14011_s3 + $0x128] sm:$0xff] }
 0xadb   :  { %v2361_v30 = vpop.xlane.xlu2 %2360 }
 0xadc   :  { %v2464_v8 = vsub.f32 %v10386_v27, %v2361_v30  ;;  %v2895_v20 = vpack.c.bf16 %v2839_v44, %v2838_v19  ;;  %v8215_v19 = vld [vmem:[%s14011_s3 + $0x120] sm:$0xff] }
 0xade   :  { %v10499_v61 = vpop.eup %7483  ;;  %v2552_v0 = vmul.f32 1.442695, %v2464_v8  ;;  %2963 = vmatmul.bf16.gmra.mxu1 %v2895_v20  ;;  %v10571_v8 = vadd.f32 %v8216_v43, %v10430_v48 }
 0xadf   :  { %2374 = vmax.xlane.f32.xlu0 %v10495_v62  ;;  %2678 = vadd.xlane.f32.xlu1 %v10499_v61 }
 0xae0   :  { %7485 = vpow2.f32 %v2552_v0 }
 0xae1   :  { %7487 = vrcp.f32 %v2665_v22 }
 0xae2   :  { %v2667_v1 = vpop.xlane.xlu1 %2666  ;;  %v2363_v3 = vpop.xlane.xlu0 %2362 }
 0xae3   :  { %7489 = vrcp.f32 %v2667_v1  ;;  %v2465_v27 = vsub.f32 %v10399_v40, %v2363_v3 }
 0xae5   :  { %v2554_v59 = vmul.f32 1.442695, %v2465_v27 }
 0xae6   :  { %v10510_v2 = vpop.eup %7485 }
 0xae7   :  { %v7488_v26 = vpop.eup %7487  ;;  %7491 = vpow2.f32 %v2554_v59  ;;  %2376 = vmax.xlane.f32.xlu0 %v10508_v4  ;;  %2680 = vadd.xlane.f32.xlu1 %v10510_v2 }
 0xae8   :  { %v2840_v35 = vmul.f32 %v7488_v26, %v10380_v10  ;;  %v10529_v10 = vpop.f32.mrf.mxu1 }
 0xae9   :  { %v7490_v47 = vpop.eup %7489 }
 0xaea   :  { %v2669_v40 = vpop.xlane.xlu1 %2668  ;;  %v2365_v60 = vpop.xlane.xlu0 %2364  ;;  %v2841_v52 = vmul.f32 %v7490_v47, %v10401_v42 }
 0xaeb   :  { %v2466_v33 = vsub.f32 %v10412_v50, %v2365_v60 }
 0xaec   :  { %v2896_v37 = vpack.c.bf16 %v2841_v52, %v2840_v35 }
 0xaed   :  { %v10519_v12 = vpop.eup %7491  ;;  %v2556_v32 = vmul.f32 1.442695, %v2466_v33 }
 0xaee   :  { %2968 = vmatmul.bf16.gmra.mxu1 %v2896_v37  ;;  %2682 = vadd.xlane.f32.xlu2 %v10519_v12 }
 0xaef   :  { %7493 = vpow2.f32 %v2556_v32  ;;  %2378 = vmax.xlane.f32.xlu1 %v10525_v18 }
 0xaf0   :  { %v10542_v7 = vpop.f32.mrf.mxu1 }
 0xaf2   :  { %v2367_v42 = vpop.xlane.xlu1 %2366 }
 0xaf3   :  { %v2467_v50 = vsub.f32 %v10426_v57, %v2367_v42 }
 0xaf5   :  { %v10532_v55 = vpop.eup %7493  ;;  %v2558_v29 = vmul.f32 1.442695, %v2467_v50 }
 0xaf6   :  { %2684 = vadd.xlane.f32.xlu2 %v10532_v55 }
 0xaf7   :  { %7495 = vpow2.f32 %v2558_v29  ;;  %2380 = vmax.xlane.f32.xlu1 %v10538_v15 }
 0xaf8   :  { %v10563_v30 = vpop.f32.mrf.mxu1 }
 0xafa   :  { %v2369_v6 = vpop.xlane.xlu1 %2368 }
 0xafb   :  { %v2468_v57 = vsub.f32 %v10438_v54, %v2369_v6  ;;  %v10559_v54 = vadd.f32 %v8215_v19, %v10414_v31  ;;  %v8217_v31 = vld [vmem:[%s14011_s3 + $0x130] sm:$0xff] }
 0xafc   :  { %v10580_v11 = vadd.f32 %v8217_v31, %v10441_v56 }
 0xafd   :  { %v10551_v17 = vpop.eup %7495  ;;  %v2560_v22 = vmul.f32 1.442695, %v2468_v57 }
 0xafe   :  { %2686 = vadd.xlane.f32.xlu0 %v10551_v17  ;;  %2382 = vmax.xlane.f32.xlu2 %v10549_v45 }
 0xaff   :  { %7497 = vpow2.f32 %v2560_v22  ;;  %v2252_v22 = vpop.f32.mrf.mxu2 }
 0xb00   :  { %v10574_v20 = vpop.f32.mrf.mxu1  ;;  %7499 = vrcp.f32 %v2669_v40 }
 0xb05   :  { %v10561_v44 = vpop.eup %7497 }
 0xb06   :  { %2688 = vadd.xlane.f32.xlu0 %v10561_v44  ;;  %2384 = vmax.xlane.f32.xlu2 %v10559_v54  ;;  %v7500_v16 = vpop.eup %7499 }
 0xb07   :  { %v2842_v47 = vmul.f32 %v7500_v16, %v10416_v58 }
 0xb08   :  { %v10583_v0 = vpop.f32.mrf.mxu1 }
 0xb0e   :  { %2386 = vmax.xlane.f32.xlu0 %v10571_v8 }
 0xb10   :  { %v10585_v1 = vpop.f32.mrf.mxu1 }
 0xb16   :  { %2388 = vmax.xlane.f32.xlu0 %v10580_v11 }
 0xb2b   :  { %v10587_v3 = vpop.f32.mrf.mxu1 }
 0xb32   :  { %v2671_v48 = vpop.xlane.xlu2 %2670 }
 0xb33   :  { %7501 = vrcp.f32 %v2671_v48  ;;  %v10589_v27 = vpop.f32.mrf.mxu1 }
 0xb39   :  { %v7502_v59 = vpop.eup %7501 }
 0xb3a   :  { %v2673_v26 = vpop.xlane.xlu2 %2672  ;;  %v2843_v56 = vmul.f32 %v7502_v59, %v10457_v28  ;;  %v2254_v59 = vpop.f32.mrf.mxu2 }
 0xb3b   :  { %v10593_v60 = vpop.f32.mrf.mxu1  ;;  %7503 = vrcp.f32 %v2673_v26 }
 0xb3c   :  { %v2897_v35 = vpack.c.bf16 %v2843_v56, %v2842_v47 }
 0xb3e   :  { %2973 = vmatmul.bf16.gmra.mxu1 %v2897_v35 }
 0xb41   :  { %v7504_v32 = vpop.eup %7503 }
 0xb42   :  { %v2371_v52 = vpop.xlane.xlu2 %2370  ;;  %v2675_v33 = vpop.xlane.xlu0 %2674  ;;  %v2844_v28 = vmul.f32 %v7504_v32, %v10461_v34 }
 0xb43   :  { %v2469_v40 = vsub.f32 %v10471_v38, %v2371_v52  ;;  %7505 = vrcp.f32 %v2675_v33  ;;  %v10596_v37 = vpop.f32.mrf.mxu1  ;;  %v8218_v33 = vld [vmem:[%s14011_s3 + $0x138] sm:$0xff] }
 0xb45   :  { %v2562_v13 = vmul.f32 1.442695, %v2469_v40  ;;  %v10621_v40 = vadd.f32 %v8218_v33, %v10447_v25  ;;  %v8219_v25 = vld [vmem:[%s14011_s3 + $0x140] sm:$0xff] }
 0xb47   :  { %7507 = vpow2.f32 %v2562_v13 }
 0xb49   :  { %v7506_v42 = vpop.eup %7505 }
 0xb4a   :  { %v2373_v50 = vpop.xlane.xlu2 %2372  ;;  %v2677_v58 = vpop.xlane.xlu0 %2676  ;;  %v2845_v36 = vmul.f32 %v7506_v42, %v10473_v24 }
 0xb4b   :  { %v2470_v29 = vsub.f32 %v10482_v53, %v2373_v50  ;;  %v10601_v6 = vpop.f32.mrf.mxu1 }
 0xb4c   :  { %v2898_v57 = vpack.c.bf16 %v2845_v36, %v2844_v28  ;;  %v2257_v28 = vpop.f32.mrf.mxu2 }
 0xb4d   :  { %v10603_v49 = vpop.eup %7507  ;;  %v2564_v38 = vmul.f32 1.442695, %v2470_v29 }
 0xb4e   :  { %2690 = vadd.xlane.f32.xlu1 %v10603_v49  ;;  %2978 = vmatmul.bf16.gmra.mxu1 %v2898_v57 }
 0xb4f   :  { %7509 = vpow2.f32 %v2564_v38 }
 0xb50   :  { %7511 = vrcp.f32 %v2677_v58  ;;  %v10633_v58 = vadd.f32 %v8219_v25, %v2252_v22 }
 0xb52   :  { %v2679_v19 = vpop.xlane.xlu1 %2678  ;;  %v2375_v43 = vpop.xlane.xlu0 %2374 }
 0xb53   :  { %7513 = vrcp.f32 %v2679_v19  ;;  %v2471_v34 = vsub.f32 %v10495_v62, %v2375_v43  ;;  %v10607_v24 = vpop.f32.mrf.mxu1 }
 0xb55   :  { %v10609_v53 = vpop.eup %7509  ;;  %v2566_v31 = vmul.f32 1.442695, %v2471_v34 }
 0xb56   :  { %2692 = vadd.xlane.f32.xlu1 %v10609_v53  ;;  %v7512_v48 = vpop.eup %7511 }
 0xb57   :  { %7515 = vpow2.f32 %v2566_v31  ;;  %v2846_v56 = vmul.f32 %v7512_v48, %v10484_v5 }
 0xb59   :  { %v7514_v16 = vpop.eup %7513 }
 0xb5a   :  { %v2681_v26 = vpop.xlane.xlu1 %2680  ;;  %v2377_v47 = vpop.xlane.xlu0 %2376  ;;  %v2847_v35 = vmul.f32 %v7514_v16, %v10499_v61  ;;  %v3089_v16 = vmul.f32 %v10497_v23, %v9295_v51 }
 0xb5b   :  { %v2472_v52 = vsub.f32 %v10508_v4, %v2377_v47  ;;  %v10615_v62 = vpop.f32.mrf.mxu1 }
 0xb5c   :  { %v2899_v13 = vpack.c.bf16 %v2847_v35, %v2846_v56  ;;  %v8220_v56 = vld [vmem:[%s14011_s3 + $0x148] sm:$0xff] }
 0xb5d   :  { %v10623_v32 = vpop.eup %7515  ;;  %v2568_v42 = vmul.f32 1.442695, %v2472_v52  ;;  %v10650_v35 = vadd.f32 %v8220_v56, %v2254_v59  ;;  %v8221_v59 = vld [vmem:[%s14011_s3 + $0x150] sm:$0xff] }
 0xb5e   :  { %2390 = vmax.xlane.f32.xlu1 %v10621_v40  ;;  %2983 = vmatmul.bf16.gmra.mxu1 %v2899_v13 }
 0xb5f   :  { %7517 = vpow2.f32 %v2568_v42  ;;  %2694 = vadd.xlane.f32.xlu2 %v10623_v32 }
 0xb60   :  { %7519 = vrcp.f32 %v2681_v26 }
 0xb61   :  { %v2683_v5 = vpop.xlane.xlu2 %2682 }
 0xb62   :  { %v2379_v61 = vpop.xlane.xlu1 %2378  ;;  %7521 = vrcp.f32 %v2683_v5  ;;  %v10662_v5 = vadd.f32 %v8221_v59, %v2257_v28  ;;  %v8222_v28 = vld [vmem:[%s14011_s3 + $0x158] sm:$0xff] }
 0xb63   :  { %v2473_v4 = vsub.f32 %v10525_v18, %v2379_v61  ;;  %v10628_v50 = vpop.f32.mrf.mxu1 }
 0xb65   :  { %v10635_v36 = vpop.eup %7517  ;;  %v2570_v29 = vmul.f32 1.442695, %v2473_v4 }
 0xb66   :  { %v7520_v57 = vpop.eup %7519  ;;  %2392 = vmax.xlane.f32.xlu1 %v10633_v58 }
 0xb67   :  { %7523 = vpow2.f32 %v2570_v29  ;;  %2696 = vadd.xlane.f32.xlu2 %v10635_v36  ;;  %v2848_v19 = vmul.f32 %v7520_v57, %v10510_v2 }
 0xb68   :  { %v7522_v38 = vpop.eup %7521 }
 0xb69   :  { %v2685_v18 = vpop.xlane.xlu2 %2684  ;;  %v2849_v43 = vmul.f32 %v7522_v38, %v10519_v12  ;;  %v2259_v12 = vpop.f32.mrf.mxu2 }
 0xb6a   :  { %v2381_v34 = vpop.xlane.xlu1 %2380 }
 0xb6b   :  { %v2474_v22 = vsub.f32 %v10538_v15, %v2381_v34  ;;  %v2969_v31 = vpop.f32.mrf.mxu1  ;;  %v2900_v48 = vpack.c.bf16 %v2849_v43, %v2848_v19  ;;  %v10674_v34 = vadd.f32 %v8222_v28, %v2259_v12  ;;  %v3091_v28 = vmul.f32 %v10529_v10, %v9295_v51 }
 0xb6c   :  { %v3105_v26 = vmul.f32 %v2969_v31, %v9298_v14  ;;  %v3093_v10 = vmul.f32 %v10563_v30, %v9295_v51 }
 0xb6d   :  { %v10645_v47 = vpop.eup %7523  ;;  %v2572_v2 = vmul.f32 1.442695, %v2474_v22 }
 0xb6e   :  { %v10652_v52 = vadd.f32 %v3105_v26, %v3089_v16  ;;  %2698 = vadd.xlane.f32.xlu0 %v10645_v47  ;;  %2988 = vmatmul.bf16.gmra.mxu1 %v2900_v48  ;;  %v8223_v48 = vld [vmem:[%s14011_s3 + $0x160] sm:$0xff] }
 0xb6f   :  { %7525 = vpow2.f32 %v2572_v2  ;;  %2394 = vmax.xlane.f32.xlu2 %v10650_v35 }
 0xb70   :  { %7527 = vrcp.f32 %v2685_v18 }
 0xb71   :  { %v2383_v23 = vpop.xlane.xlu2 %2382  ;;  %v2687_v15 = vpop.xlane.xlu0 %2686 }
 0xb72   :  { %v2475_v33 = vsub.f32 %v10549_v45, %v2383_v23  ;;  %7529 = vrcp.f32 %v2687_v15  ;;  %v2262_v25 = vpop.f32.mrf.mxu2 }
 0xb73   :  { %v10684_v16 = vadd.f32 %v8223_v48, %v2262_v25 }
 0xb74   :  { %v2574_v13 = vmul.f32 1.442695, %v2475_v33 }
 0xb75   :  { %v10657_v42 = vpop.eup %7525 }
 0xb76   :  { %v7528_v61 = vpop.eup %7527  ;;  %7531 = vpow2.f32 %v2574_v13  ;;  %2700 = vadd.xlane.f32.xlu0 %v10657_v42  ;;  %v8225_v13 = vld [vmem:[%s14011_s3 + $0x170] sm:$0xff] }
 0xb77   :  { %2396 = vmax.xlane.f32.xlu2 %v10662_v5  ;;  %v2850_v57 = vmul.f32 %v7528_v61, %v10532_v55 }
 0xb78   :  { %v7530_v4 = vpop.eup %7529 }
 0xb79   :  { %v2385_v29 = vpop.xlane.xlu2 %2384  ;;  %v2689_v45 = vpop.xlane.xlu0 %2688  ;;  %v2851_v38 = vmul.f32 %v7530_v4, %v10551_v17  ;;  %v8226_v4 = vld [vmem:[%s14011_s3 + $0x178] sm:$0xff] }
 0xb7a   :  { %v2476_v18 = vsub.f32 %v10559_v54, %v2385_v29  ;;  %v2264_v17 = vpop.f32.mrf.mxu2 }
 0xb7b   :  { %v2901_v19 = vpack.c.bf16 %v2851_v38, %v2850_v57  ;;  %v8227_v57 = vld [vmem:[%s14011_s3 + $0x180] sm:$0xff] }
 0xb7c   :  { %v10669_v43 = vpop.eup %7531  ;;  %v2576_v22 = vmul.f32 1.442695, %v2476_v18  ;;  %v10719_v18 = vpop.f32.mrf.mxu1 }
 0xb7d   :  { %2702 = vadd.xlane.f32.xlu1 %v10669_v43 }
 0xb7e   :  { %7533 = vpow2.f32 %v2576_v22  ;;  %2398 = vmax.xlane.f32.xlu0 %v10674_v34  ;;  %2993 = vmatmul.bf16.gmra.mxu1 %v2901_v19 }
 0xb81   :  { %v2387_v55 = vpop.xlane.xlu0 %2386 }
 0xb82   :  { %v2477_v54 = vsub.f32 %v10571_v8, %v2387_v55  ;;  %v8224_v8 = vld [vmem:[%s14011_s3 + $0x168] sm:$0xff]  ;;  %v2267_v15 = vpop.f32.mrf.mxu2 }
 0xb83   :  { %v10692_v12 = vadd.f32 %v8224_v8, %v2264_v17 }
 0xb84   :  { %v10679_v31 = vpop.eup %7533  ;;  %v2578_v26 = vmul.f32 1.442695, %v2477_v54 }
 0xb85   :  { %2704 = vadd.xlane.f32.xlu1 %v10679_v31 }
 0xb86   :  { %7535 = vpow2.f32 %v2578_v26  ;;  %2400 = vmax.xlane.f32.xlu0 %v10684_v16 }
 0xb89   :  { %v2389_v56 = vpop.xlane.xlu0 %2388 }
 0xb8a   :  { %v2478_v2 = vsub.f32 %v10580_v11, %v2389_v56  ;;  %v10701_v11 = vadd.f32 %v8225_v13, %v2267_v15  ;;  %v2269_v61 = vpop.f32.mrf.mxu2 }
 0xb8b   :  { %v10710_v25 = vadd.f32 %v8226_v4, %v2269_v61 }
 0xb8c   :  { %v10694_v23 = vpop.eup %7535  ;;  %v2580_v33 = vmul.f32 1.442695, %v2478_v2 }
 0xb8d   :  { %2402 = vmax.xlane.f32.xlu1 %v10692_v12  ;;  %2706 = vadd.xlane.f32.xlu2 %v10694_v23 }
 0xb8e   :  { %7537 = vpow2.f32 %v2580_v33 }
 0xb8f   :  { %7539 = vrcp.f32 %v2689_v45 }
 0xb92   :  { %v2272_v29 = vpop.f32.mrf.mxu2 }
 0xb93   :  { %v10716_v38 = vadd.f32 %v8227_v57, %v2272_v29 }
 0xb94   :  { %v10703_v59 = vpop.eup %7537 }
 0xb95   :  { %2404 = vmax.xlane.f32.xlu1 %v10701_v11  ;;  %2708 = vadd.xlane.f32.xlu2 %v10703_v59  ;;  %v7540_v48 = vpop.eup %7539 }
 0xb96   :  { %v2852_v2 = vmul.f32 %v7540_v48, %v10561_v44 }
 0xb9d   :  { %2406 = vmax.xlane.f32.xlu2 %v10710_v25 }
 0xba5   :  { %2408 = vmax.xlane.f32.xlu2 %v10716_v38 }
 0xbbb   :  { %v2974_v19 = vpop.f32.mrf.mxu1 }
 0xbbc   :  { %v3107_v22 = vmul.f32 %v2974_v19, %v9298_v14 }
 0xbbe   :  { %v10724_v55 = vadd.f32 %v3107_v22, %v3091_v28 }
 0xbc1   :  { %v2691_v17 = vpop.xlane.xlu1 %2690 }
 0xbc2   :  { %7541 = vrcp.f32 %v2691_v17 }
 0xbc3   :  { %v10726_v54 = vpop.f32.mrf.mxu1 }
 0xbc8   :  { %v7542_v26 = vpop.eup %7541 }
 0xbc9   :  { %v2693_v56 = vpop.xlane.xlu1 %2692  ;;  %v2853_v8 = vmul.f32 %v7542_v26, %v10603_v49  ;;  %v2274_v49 = vpop.f32.mrf.mxu2 }
 0xbca   :  { %7543 = vrcp.f32 %v2693_v56 }
 0xbcb   :  { %v2979_v15 = vpop.f32.mrf.mxu1  ;;  %v2902_v33 = vpack.c.bf16 %v2853_v8, %v2852_v2 }
 0xbcc   :  { %v3109_v13 = vmul.f32 %v2979_v15, %v9298_v14 }
 0xbcd   :  { %2998 = vmatmul.bf16.gmra.mxu1 %v2902_v33 }
 0xbce   :  { %v10733_v45 = vadd.f32 %v3109_v13, %v3093_v10 }
 0xbd0   :  { %v7544_v19 = vpop.eup %7543 }
 0xbd1   :  { %v2391_v61 = vpop.xlane.xlu1 %2390  ;;  %v2854_v48 = vmul.f32 %v7544_v19, %v10609_v53  ;;  %v7117_v53 = vld [vmem:[%s14012_s7 + $0x18] sm:$0xff] }
 0xbd2   :  { %v2479_v4 = vsub.f32 %v10621_v40, %v2391_v61  ;;  %v2695_v29 = vpop.xlane.xlu2 %2694  ;;  %v3095_v40 = vmul.f32 %v10583_v0, %v9295_v51  ;;  %3256 = vmatpush.bf16.msra.mxu0 %v7117_v53  ;;  %7145 = vmatpush.bf16.msrb.mxu3 %v7117_v53 }
 0xbd3   :  { %7545 = vrcp.f32 %v2695_v29  ;;  %v10736_v57 = vpop.f32.mrf.mxu1 }
 0xbd4   :  { %v2582_v44 = vmul.f32 1.442695, %v2479_v4 }
 0xbd6   :  { %7547 = vpow2.f32 %v2582_v44 }
 0xbd9   :  { %v7546_v28 = vpop.eup %7545  ;;  %v2393_v22 = vpop.xlane.xlu1 %2392 }
 0xbda   :  { %v2480_v30 = vsub.f32 %v10633_v58, %v2393_v22  ;;  %v2697_v17 = vpop.xlane.xlu2 %2696  ;;  %v2855_v26 = vmul.f32 %v7546_v28, %v10623_v32  ;;  %v2277_v32 = vpop.f32.mrf.mxu2 }
 0xbdb   :  { %v2984_v56 = vpop.f32.mrf.mxu1 }
 0xbdc   :  { %v10741_v2 = vpop.eup %7547  ;;  %v2584_v8 = vmul.f32 1.442695, %v2480_v30  ;;  %v3111_v15 = vmul.f32 %v2984_v56, %v9298_v14  ;;  %v2903_v33 = vpack.c.bf16 %v2855_v26, %v2854_v48 }
 0xbdd   :  { %2710 = vadd.xlane.f32.xlu0 %v10741_v2 }
 0xbde   :  { %7549 = vpow2.f32 %v2584_v8  ;;  %v10747_v10 = vadd.f32 %v3111_v15, %v3095_v40  ;;  %3003 = vmatmul.bf16.gmra.mxu1 %v2903_v33  ;;  %v3097_v15 = vmul.f32 %v10587_v3, %v9295_v51  ;;  %v8229_v3 = vld [vmem:[%s14011_s3 + $0x190] sm:$0xff] }
 0xbdf   :  { %7551 = vrcp.f32 %v2697_v17 }
 0xbe1   :  { %v2699_v58 = vpop.xlane.xlu0 %2698 }
 0xbe2   :  { %v2395_v0 = vpop.xlane.xlu2 %2394  ;;  %7553 = vrcp.f32 %v2699_v58  ;;  %v2279_v28 = vpop.f32.mrf.mxu2 }
 0xbe3   :  { %v2481_v13 = vsub.f32 %v10650_v35, %v2395_v0  ;;  %v10753_v61 = vpop.f32.mrf.mxu1  ;;  %v8228_v35 = vld [vmem:[%s14011_s3 + $0x188] sm:$0xff]  ;;  %v10779_v0 = vadd.f32 %v8229_v3, %v2277_v32 }
 0xbe4   :  { %v10755_v4 = vpop.eup %7549  ;;  %v10763_v26 = vadd.f32 %v8228_v35, %v2274_v49 }
 0xbe5   :  { %v2586_v29 = vmul.f32 1.442695, %v2481_v13  ;;  %2712 = vadd.xlane.f32.xlu0 %v10755_v4  ;;  %v7552_v44 = vpop.eup %7551 }
 0xbe6   :  { %v2856_v30 = vmul.f32 %v7552_v44, %v10635_v36 }
 0xbe7   :  { %7555 = vpow2.f32 %v2586_v29 }
 0xbe8   :  { %v7554_v19 = vpop.eup %7553 }
 0xbe9   :  { %v2701_v22 = vpop.xlane.xlu0 %2700  ;;  %v2857_v17 = vmul.f32 %v7554_v19, %v10645_v47 }
 0xbea   :  { %v2397_v48 = vpop.xlane.xlu2 %2396  ;;  %7557 = vrcp.f32 %v2701_v22  ;;  %v2282_v13 = vpop.f32.mrf.mxu2 }
 0xbeb   :  { %v2482_v56 = vsub.f32 %v10662_v5, %v2397_v48  ;;  %v2989_v40 = vpop.f32.mrf.mxu1  ;;  %v2904_v8 = vpack.c.bf16 %v2857_v17, %v2856_v30 }
 0xbec   :  { %v3113_v33 = vmul.f32 %v2989_v40, %v9298_v14 }
 0xbed   :  { %v10769_v53 = vpop.eup %7555  ;;  %v2588_v36 = vmul.f32 1.442695, %v2482_v56  ;;  %2410 = vmax.xlane.f32.xlu0 %v10763_v26 }
 0xbee   :  { %v10772_v47 = vadd.f32 %v3113_v33, %v3097_v15  ;;  %2714 = vadd.xlane.f32.xlu1 %v10769_v53  ;;  %3008 = vmatmul.bf16.gmra.mxu1 %v2904_v8  ;;  %v8230_v15 = vld [vmem:[%s14011_s3 + $0x198] sm:$0xff] }
 0xbef   :  { %7559 = vpow2.f32 %v2588_v36  ;;  %v10795_v33 = vadd.f32 %v8230_v15, %v2279_v28  ;;  %v3099_v36 = vmul.f32 %v10593_v60, %v9295_v51 }
 0xbf0   :  { %v2703_v5 = vpop.xlane.xlu1 %2702  ;;  %v7558_v44 = vpop.eup %7557 }
 0xbf1   :  { %7561 = vrcp.f32 %v2703_v5  ;;  %v2399_v49 = vpop.xlane.xlu0 %2398  ;;  %v2858_v17 = vmul.f32 %v7558_v44, %v10657_v42  ;;  %v8231_v44 = vld [vmem:[%s14011_s3 + $0x1a0] sm:$0xff] }
 0xbf2   :  { %v2483_v58 = vsub.f32 %v10674_v34, %v2399_v49 }
 0xbf3   :  { %v10781_v29 = vpop.f32.mrf.mxu1 }
 0xbf4   :  { %v2590_v19 = vmul.f32 1.442695, %v2483_v58 }
 0xbf5   :  { %v10783_v22 = vpop.eup %7559  ;;  %2412 = vmax.xlane.f32.xlu0 %v10779_v0 }
 0xbf6   :  { %7563 = vpow2.f32 %v2590_v19  ;;  %2716 = vadd.xlane.f32.xlu1 %v10783_v22  ;;  %v10810_v19 = vadd.f32 %v8231_v44, %v2282_v13  ;;  %v8232_v13 = vld [vmem:[%s14011_s3 + $0x1a8] sm:$0xff] }
 0xbf7   :  { %v7562_v30 = vpop.eup %7561 }
 0xbf8   :  { %v2705_v34 = vpop.xlane.xlu1 %2704  ;;  %v2859_v48 = vmul.f32 %v7562_v30, %v10669_v43  ;;  %v2284_v43 = vpop.f32.mrf.mxu2 }
 0xbf9   :  { %v2401_v32 = vpop.xlane.xlu0 %2400 }
 0xbfa   :  { %v2484_v35 = vsub.f32 %v10684_v16, %v2401_v32  ;;  %v2905_v56 = vpack.c.bf16 %v2859_v48, %v2858_v17 }
 0xbfb   :  { %v2994_v40 = vpop.f32.mrf.mxu1 }
 0xbfc   :  { %v10790_v8 = vpop.eup %7563  ;;  %v2592_v5 = vmul.f32 1.442695, %v2484_v35  ;;  %v3115_v42 = vmul.f32 %v2994_v40, %v9298_v14 }
 0xbfd   :  { %2718 = vadd.xlane.f32.xlu2 %v10790_v8 }
 0xbfe   :  { %7565 = vpow2.f32 %v2592_v5  ;;  %v10801_v16 = vadd.f32 %v3115_v42, %v3099_v36  ;;  %2414 = vmax.xlane.f32.xlu1 %v10795_v33  ;;  %3013 = vmatmul.bf16.gmra.mxu1 %v2905_v56  ;;  %v10822_v36 = vadd.f32 %v8232_v13, %v2284_v43 }
 0xbff   :  { %7567 = vrcp.f32 %v2705_v34 }
 0xc00   :  { %v2403_v49 = vpop.xlane.xlu1 %2402  ;;  %v2707_v58 = vpop.xlane.xlu2 %2706 }
 0xc01   :  { %v2485_v28 = vsub.f32 %v10692_v12, %v2403_v49  ;;  %7569 = vrcp.f32 %v2707_v58  ;;  %v2287_v17 = vpop.f32.mrf.mxu2  ;;  %v8233_v49 = vld [vmem:[%s14011_s3 + $0x1b0] sm:$0xff] }
 0xc02   :  { %v10832_v58 = vadd.f32 %v8233_v49, %v2287_v17  ;;  %v3101_v49 = vmul.f32 %v10601_v6, %v9295_v51  ;;  %v3103_v6 = vmul.f32 %v10615_v62, %v9295_v51 }
 0xc03   :  { %v2594_v3 = vmul.f32 1.442695, %v2485_v28 }
 0xc04   :  { %v10805_v60 = vpop.eup %7565 }
 0xc05   :  { %v7568_v30 = vpop.eup %7567  ;;  %7571 = vpow2.f32 %v2594_v3  ;;  %2720 = vadd.xlane.f32.xlu2 %v10805_v60 }
 0xc06   :  { %2416 = vmax.xlane.f32.xlu1 %v10810_v19  ;;  %v2860_v32 = vmul.f32 %v7568_v30, %v10679_v31 }
 0xc07   :  { %v7570_v34 = vpop.eup %7569 }
 0xc08   :  { %v2405_v48 = vpop.xlane.xlu1 %2404  ;;  %v2709_v12 = vpop.xlane.xlu2 %2708  ;;  %v2861_v35 = vmul.f32 %v7570_v34, %v10694_v23 }
 0xc09   :  { %v2486_v56 = vsub.f32 %v10701_v11, %v2405_v48  ;;  %v2289_v23 = vpop.f32.mrf.mxu2  ;;  %v8235_v48 = vld [vmem:[%s14011_s3 + $0x1c0] sm:$0xff] }
 0xc0a   :  { %v2906_v40 = vpack.c.bf16 %v2861_v35, %v2860_v32 }
 0xc0b   :  { %v10817_v15 = vpop.eup %7571  ;;  %v2596_v5 = vmul.f32 1.442695, %v2486_v56  ;;  %v8236_v56 = vld [vmem:[%s14011_s3 + $0x1c8] sm:$0xff] }
 0xc0c   :  { %2722 = vadd.xlane.f32.xlu0 %v10817_v15 }
 0xc0d   :  { %7573 = vpow2.f32 %v2596_v5  ;;  %2418 = vmax.xlane.f32.xlu2 %v10822_v36  ;;  %v8237_v5 = vld [vmem:[%s14011_s3 + $0x1d0] sm:$0xff] }
 0xc0e   :  { %3018 = vmatmul.bf16.gmra.mxu1 %v2906_v40 }
 0xc10   :  { %v2407_v31 = vpop.xlane.xlu2 %2406 }
 0xc11   :  { %v2487_v11 = vsub.f32 %v10710_v25, %v2407_v31  ;;  %v8234_v25 = vld [vmem:[%s14011_s3 + $0x1b8] sm:$0xff]  ;;  %v2292_v34 = vpop.f32.mrf.mxu2 }
 0xc12   :  { %v10840_v44 = vadd.f32 %v8234_v25, %v2289_v23  ;;  %v10867_v23 = vpop.f32.mrf.mxu1 }
 0xc13   :  { %v10827_v42 = vpop.eup %7573  ;;  %v2598_v43 = vmul.f32 1.442695, %v2487_v11 }
 0xc14   :  { %2724 = vadd.xlane.f32.xlu0 %v10827_v42 }
 0xc15   :  { %7575 = vpow2.f32 %v2598_v43  ;;  %2420 = vmax.xlane.f32.xlu2 %v10832_v58 }
 0xc18   :  { %v2409_v28 = vpop.xlane.xlu2 %2408 }
 0xc19   :  { %v2488_v3 = vsub.f32 %v10716_v38, %v2409_v28  ;;  %v10849_v38 = vadd.f32 %v8235_v48, %v2292_v34  ;;  %v2294_v35 = vpop.f32.mrf.mxu2 }
 0xc1a   :  { %v10858_v40 = vadd.f32 %v8236_v56, %v2294_v35 }
 0xc1b   :  { %v10842_v30 = vpop.eup %7575  ;;  %v2600_v17 = vmul.f32 1.442695, %v2488_v3 }
 0xc1c   :  { %2422 = vmax.xlane.f32.xlu0 %v10840_v44  ;;  %2726 = vadd.xlane.f32.xlu1 %v10842_v30 }
 0xc1d   :  { %7577 = vpow2.f32 %v2600_v17 }
 0xc1e   :  { %7579 = vrcp.f32 %v2709_v12 }
 0xc21   :  { %v2297_v13 = vpop.f32.mrf.mxu2 }
 0xc22   :  { %v10864_v31 = vadd.f32 %v8237_v5, %v2297_v13 }
 0xc23   :  { %v10851_v32 = vpop.eup %7577 }
 0xc24   :  { %2424 = vmax.xlane.f32.xlu0 %v10849_v38  ;;  %2728 = vadd.xlane.f32.xlu1 %v10851_v32  ;;  %v7580_v34 = vpop.eup %7579 }
 0xc25   :  { %v2862_v35 = vmul.f32 %v7580_v34, %v10703_v59 }
 0xc2c   :  { %2426 = vmax.xlane.f32.xlu1 %v10858_v40 }
 0xc34   :  { %2428 = vmax.xlane.f32.xlu1 %v10864_v31 }
 0xc4a   :  { %v2999_v11 = vpop.f32.mrf.mxu1 }
 0xc4b   :  { %v3117_v43 = vmul.f32 %v2999_v11, %v9298_v14 }
 0xc4d   :  { %v10872_v28 = vadd.f32 %v3117_v43, %v3101_v49 }
 0xc50   :  { %v2711_v3 = vpop.xlane.xlu0 %2710 }
 0xc51   :  { %7581 = vrcp.f32 %v2711_v3 }
 0xc52   :  { %v10874_v25 = vpop.f32.mrf.mxu1 }
 0xc57   :  { %v7582_v17 = vpop.eup %7581 }
 0xc58   :  { %v2713_v48 = vpop.xlane.xlu0 %2712  ;;  %v2863_v56 = vmul.f32 %v7582_v17, %v10741_v2 }
 0xc59   :  { %7583 = vrcp.f32 %v2713_v48 }
 0xc5a   :  { %v2907_v13 = vpack.c.bf16 %v2863_v56, %v2862_v35 }
 0xc5b   :  { %v3004_v5 = vpop.f32.mrf.mxu1 }
 0xc5c   :  { %v3119_v11 = vmul.f32 %v3004_v5, %v9298_v14  ;;  %3023 = vmatmul.bf16.gmra.mxu1 %v2907_v13 }
 0xc5e   :  { %v10881_v12 = vadd.f32 %v3119_v11, %v3103_v6 }
 0xc5f   :  { %v7584_v2 = vpop.eup %7583 }
 0xc60   :  { %v2411_v49 = vpop.xlane.xlu0 %2410  ;;  %v2864_v56 = vmul.f32 %v7584_v2, %v10755_v4 }
 0xc61   :  { %v2715_v43 = vpop.xlane.xlu1 %2714  ;;  %v2489_v3 = vsub.f32 %v10763_v26, %v2411_v49 }
 0xc62   :  { %7585 = vrcp.f32 %v2715_v43 }
 0xc63   :  { %v2602_v46 = vmul.f32 1.442695, %v2489_v3  ;;  %v10884_v59 = vpop.f32.mrf.mxu1 }
 0xc65   :  { %7587 = vpow2.f32 %v2602_v46  ;;  %v2299_v46 = vpop.f32.mrf.mxu2 }
 0xc68   :  { %v7586_v34 = vpop.eup %7585  ;;  %v2413_v17 = vpop.xlane.xlu0 %2412 }
 0xc69   :  { %v2717_v35 = vpop.xlane.xlu1 %2716  ;;  %v2490_v62 = vsub.f32 %v10779_v0, %v2413_v17  ;;  %v2865_v13 = vmul.f32 %v7586_v34, %v10769_v53 }
 0xc6b   :  { %v10889_v48 = vpop.eup %7587  ;;  %v2604_v5 = vmul.f32 1.442695, %v2490_v62  ;;  %v3009_v6 = vpop.f32.mrf.mxu1  ;;  %v2908_v26 = vpack.c.bf16 %v2865_v13, %v2864_v56 }
 0xc6c   :  { %v3137_v11 = vmul.f32 %v3009_v6, %v9545_v21  ;;  %2730 = vadd.xlane.f32.xlu2 %v10889_v48 }
 0xc6d   :  { %7589 = vpow2.f32 %v2604_v5  ;;  %3028 = vmatmul.bf16.gmra.mxu1 %v2908_v26  ;;  %v2302_v62 = vpop.f32.mrf.mxu2 }
 0xc6e   :  { %v10894_v49 = vadd.f32 %v3137_v11, %v10652_v52  ;;  %7591 = vrcp.f32 %v2717_v35 }
 0xc70   :  { %v2719_v0 = vpop.xlane.xlu2 %2718 }
 0xc71   :  { %v2415_v4 = vpop.xlane.xlu1 %2414  ;;  %7593 = vrcp.f32 %v2719_v0 }
 0xc72   :  { %v2491_v53 = vsub.f32 %v10795_v33, %v2415_v4  ;;  %v8238_v33 = vld [vmem:[%s14011_s3 + $0x1d8] sm:$0xff] }
 0xc73   :  { %v10897_v43 = vpop.eup %7589  ;;  %v10899_v3 = vpop.f32.mrf.mxu1  ;;  %v10907_v5 = vadd.f32 %v8238_v33, %v2299_v46 }
 0xc74   :  { %v2606_v2 = vmul.f32 1.442695, %v2491_v53  ;;  %2732 = vadd.xlane.f32.xlu2 %v10897_v43  ;;  %v7592_v34 = vpop.eup %7591 }
 0xc75   :  { %v2866_v52 = vmul.f32 %v7592_v34, %v10783_v22 }
 0xc76   :  { %7595 = vpow2.f32 %v2606_v2  ;;  %v8239_v2 = vld [vmem:[%s14011_s3 + $0x1e0] sm:$0xff] }
 0xc77   :  { %v7594_v17 = vpop.eup %7593  ;;  %v10922_v34 = vadd.f32 %v8239_v2, %v2302_v62 }
 0xc78   :  { %v2721_v56 = vpop.xlane.xlu2 %2720  ;;  %v2867_v35 = vmul.f32 %v7594_v17, %v10790_v8  ;;  %v2304_v17 = vpop.f32.mrf.mxu2 }
 0xc79   :  { %v2417_v13 = vpop.xlane.xlu1 %2416  ;;  %7597 = vrcp.f32 %v2721_v56 }
 0xc7a   :  { %v2492_v6 = vsub.f32 %v10810_v19, %v2417_v13  ;;  %v2909_v26 = vpack.c.bf16 %v2867_v35, %v2866_v52 }
 0xc7b   :  { %v3014_v11 = vpop.f32.mrf.mxu1 }
 0xc7c   :  { %v10910_v0 = vpop.eup %7595  ;;  %v2608_v4 = vmul.f32 1.442695, %v2492_v6  ;;  %v3139_v53 = vmul.f32 %v3014_v11, %v9545_v21  ;;  %2430 = vmax.xlane.f32.xlu2 %v10907_v5 }
 0xc7d   :  { %2734 = vadd.xlane.f32.xlu0 %v10910_v0  ;;  %3033 = vmatmul.bf16.gmra.mxu1 %v2909_v26 }
 0xc7e   :  { %7599 = vpow2.f32 %v2608_v4  ;;  %v10916_v22 = vadd.f32 %v3139_v53, %v10724_v55  ;;  %v8240_v53 = vld [vmem:[%s14011_s3 + $0x1e8] sm:$0xff] }
 0xc7f   :  { %v2723_v8 = vpop.xlane.xlu0 %2722  ;;  %v7598_v56 = vpop.eup %7597 }
 0xc80   :  { %v2419_v46 = vpop.xlane.xlu2 %2418  ;;  %7601 = vrcp.f32 %v2723_v8  ;;  %v2868_v33 = vmul.f32 %v7598_v56, %v10805_v60  ;;  %v10938_v8 = vadd.f32 %v8240_v53, %v2304_v17  ;;  %v2307_v2 = vpop.f32.mrf.mxu2 }
 0xc81   :  { %v2493_v19 = vsub.f32 %v10822_v36, %v2419_v46 }
 0xc83   :  { %v2610_v52 = vmul.f32 1.442695, %v2493_v19  ;;  %v10924_v35 = vpop.f32.mrf.mxu1 }
 0xc84   :  { %v10926_v13 = vpop.eup %7599  ;;  %2432 = vmax.xlane.f32.xlu2 %v10922_v34 }
 0xc85   :  { %7603 = vpow2.f32 %v2610_v52  ;;  %2736 = vadd.xlane.f32.xlu0 %v10926_v13 }
 0xc86   :  { %v7602_v55 = vpop.eup %7601 }
 0xc87   :  { %v2725_v36 = vpop.xlane.xlu0 %2724  ;;  %v2869_v6 = vmul.f32 %v7602_v55, %v10817_v15 }
 0xc88   :  { %v2421_v62 = vpop.xlane.xlu2 %2420 }
 0xc89   :  { %v2494_v26 = vsub.f32 %v10832_v58, %v2421_v62  ;;  %v2910_v11 = vpack.c.bf16 %v2869_v6, %v2868_v33  ;;  %v8241_v33 = vld [vmem:[%s14011_s3 + $0x1f0] sm:$0xff] }
 0xc8a   :  { %v10952_v6 = vadd.f32 %v8241_v33, %v2307_v2  ;;  %v8242_v2 = vld [vmem:[%s14011_s3 + $0x1f8] sm:$0xff] }
 0xc8b   :  { %v10933_v4 = vpop.eup %7603  ;;  %v2612_v46 = vmul.f32 1.442695, %v2494_v26  ;;  %v3019_v19 = vpop.f32.mrf.mxu1 }
 0xc8c   :  { %v3141_v52 = vmul.f32 %v3019_v19, %v9545_v21  ;;  %2738 = vadd.xlane.f32.xlu1 %v10933_v4 }
 0xc8d   :  { %7605 = vpow2.f32 %v2612_v46  ;;  %2434 = vmax.xlane.f32.xlu0 %v10938_v8  ;;  %3038 = vmatmul.bf16.gmra.mxu1 %v2910_v11 }
 0xc8e   :  { %7607 = vrcp.f32 %v2725_v36  ;;  %v10944_v60 = vadd.f32 %v3141_v52, %v10733_v45  ;;  %v2309_v36 = vpop.f32.mrf.mxu2 }
 0xc8f   :  { %v2727_v15 = vpop.xlane.xlu1 %2726  ;;  %v2423_v58 = vpop.xlane.xlu0 %2422 }
 0xc90   :  { %7609 = vrcp.f32 %v2727_v15  ;;  %v2495_v17 = vsub.f32 %v10840_v44, %v2423_v58  ;;  %v10964_v15 = vadd.f32 %v8242_v2, %v2309_v36 }
 0xc92   :  { %v2614_v56 = vmul.f32 1.442695, %v2495_v17 }
 0xc93   :  { %v10947_v55 = vpop.eup %7605 }
 0xc94   :  { %v7608_v62 = vpop.eup %7607  ;;  %7611 = vpow2.f32 %v2614_v56  ;;  %2740 = vadd.xlane.f32.xlu1 %v10947_v55 }
 0xc95   :  { %2436 = vmax.xlane.f32.xlu0 %v10952_v6  ;;  %v2870_v44 = vmul.f32 %v7608_v62, %v10827_v42 }
 0xc96   :  { %v7610_v45 = vpop.eup %7609 }
 0xc97   :  { %v2729_v26 = vpop.xlane.xlu1 %2728  ;;  %v2425_v11 = vpop.xlane.xlu0 %2424  ;;  %v2871_v53 = vmul.f32 %v7610_v45, %v10842_v30 }
 0xc98   :  { %v2496_v46 = vsub.f32 %v10849_v38, %v2425_v11 }
 0xc99   :  { %v2911_v19 = vpack.c.bf16 %v2871_v53, %v2870_v44 }
 0xc9a   :  { %v10959_v52 = vpop.eup %7611  ;;  %v2616_v58 = vmul.f32 1.442695, %v2496_v46 }
 0xc9b   :  { %2742 = vadd.xlane.f32.xlu2 %v10959_v52 }
 0xc9c   :  { %7613 = vpow2.f32 %v2616_v58  ;;  %2438 = vmax.xlane.f32.xlu1 %v10964_v15 }
 0xc9d   :  { %3043 = vmatmul.bf16.gmra.mxu1 %v2911_v19 }
 0xc9f   :  { %v2427_v42 = vpop.xlane.xlu1 %2426 }
 0xca0   :  { %v2497_v30 = vsub.f32 %v10858_v40, %v2427_v42  ;;  %v10979_v40 = vpop.f32.mrf.mxu1 }
 0xca2   :  { %v10969_v38 = vpop.eup %7613  ;;  %v2618_v17 = vmul.f32 1.442695, %v2497_v30 }
 0xca3   :  { %2744 = vadd.xlane.f32.xlu2 %v10969_v38 }
 0xca4   :  { %7615 = vpow2.f32 %v2618_v17 }
 0xca7   :  { %v2429_v56 = vpop.xlane.xlu1 %2428 }
 0xca8   :  { %v2498_v33 = vsub.f32 %v10864_v31, %v2429_v56  ;;  %v7116_v31 = vld [vmem:[%s14012_s7 + $0x10] sm:$0xff] }
 0xca9   :  { %3257 = vmatpush.bf16.msra.mxu0 %v7116_v31  ;;  %7146 = vmatpush.bf16.msrb.mxu3 %v7116_v31 }
 0xcaa   :  { %v10973_v62 = vpop.eup %7615  ;;  %v2620_v45 = vmul.f32 1.442695, %v2498_v33 }
 0xcab   :  { %2746 = vadd.xlane.f32.xlu0 %v10973_v62 }
 0xcac   :  { %7617 = vpow2.f32 %v2620_v45 }
 0xcad   :  { %7619 = vrcp.f32 %v2729_v26 }
 0xcb2   :  { %v10976_v36 = vpop.eup %7617 }
 0xcb3   :  { %2748 = vadd.xlane.f32.xlu1 %v10976_v36  ;;  %v7620_v2 = vpop.eup %7619 }
 0xcb4   :  { %v2872_v30 = vmul.f32 %v7620_v2, %v10851_v32 }
 0xcd9   :  { %v3024_v11 = vpop.f32.mrf.mxu1 }
 0xcda   :  { %v3143_v44 = vmul.f32 %v3024_v11, %v9545_v21 }
 0xcdc   :  { %v10983_v53 = vadd.f32 %v3143_v44, %v10747_v10 }
 0xcdf   :  { %v2731_v46 = vpop.xlane.xlu2 %2730 }
 0xce0   :  { %7621 = vrcp.f32 %v2731_v46 }
 0xce1   :  { %v10988_v19 = vpop.f32.mrf.mxu1 }
 0xce6   :  { %v7622_v58 = vpop.eup %7621 }
 0xce7   :  { %v2733_v42 = vpop.xlane.xlu2 %2732  ;;  %v2873_v17 = vmul.f32 %v7622_v58, %v10889_v48 }
 0xce8   :  { %7623 = vrcp.f32 %v2733_v42 }
 0xce9   :  { %v2912_v10 = vpack.c.bf16 %v2873_v17, %v2872_v30 }
 0xcea   :  { %v3029_v56 = vpop.f32.mrf.mxu1 }
 0xceb   :  { %v3145_v33 = vmul.f32 %v3029_v56, %v9545_v21  ;;  %3048 = vmatmul.bf16.gmra.mxu1 %v2912_v10 }
 0xced   :  { %v10994_v26 = vadd.f32 %v3145_v33, %v10772_v47 }
 0xcee   :  { %v7624_v32 = vpop.eup %7623 }
 0xcef   :  { %v2431_v45 = vpop.xlane.xlu2 %2430  ;;  %v2874_v17 = vmul.f32 %v7624_v32, %v10897_v43 }
 0xcf0   :  { %v2499_v11 = vsub.f32 %v10907_v5, %v2431_v45  ;;  %v2735_v44 = vpop.xlane.xlu0 %2734 }
 0xcf1   :  { %7625 = vrcp.f32 %v2735_v44 }
 0xcf2   :  { %v2622_v31 = vmul.f32 1.442695, %v2499_v11  ;;  %v10997_v46 = vpop.f32.mrf.mxu1 }
 0xcf4   :  { %7627 = vpow2.f32 %v2622_v31 }
 0xcf7   :  { %v7626_v48 = vpop.eup %7625  ;;  %v2433_v2 = vpop.xlane.xlu2 %2432 }
 0xcf8   :  { %v2500_v58 = vsub.f32 %v10922_v34, %v2433_v2  ;;  %v2737_v30 = vpop.xlane.xlu0 %2736  ;;  %v2875_v47 = vmul.f32 %v7626_v48, %v10910_v0 }
 0xcfa   :  { %v11002_v42 = vpop.eup %7627  ;;  %v2624_v10 = vmul.f32 1.442695, %v2500_v58  ;;  %v3034_v5 = vpop.f32.mrf.mxu1  ;;  %v2913_v56 = vpack.c.bf16 %v2875_v47, %v2874_v17 }
 0xcfb   :  { %v3147_v33 = vmul.f32 %v3034_v5, %v9545_v21  ;;  %2750 = vadd.xlane.f32.xlu2 %v11002_v42 }
 0xcfc   :  { %7629 = vpow2.f32 %v2624_v10  ;;  %3053 = vmatmul.bf16.gmra.mxu1 %v2913_v56 }
 0xcfd   :  { %v11007_v45 = vadd.f32 %v3147_v33, %v10801_v16  ;;  %7631 = vrcp.f32 %v2737_v30 }
 0xcff   :  { %v2739_v34 = vpop.xlane.xlu1 %2738 }
 0xd00   :  { %7633 = vrcp.f32 %v2739_v34  ;;  %v2435_v43 = vpop.xlane.xlu0 %2434 }
 0xd01   :  { %v2501_v0 = vsub.f32 %v10938_v8, %v2435_v43 }
 0xd02   :  { %v11010_v11 = vpop.eup %7629  ;;  %v11012_v44 = vpop.f32.mrf.mxu1 }
 0xd03   :  { %v2626_v31 = vmul.f32 1.442695, %v2501_v0  ;;  %2752 = vadd.xlane.f32.xlu0 %v11010_v11  ;;  %v7632_v32 = vpop.eup %7631 }
 0xd04   :  { %v2876_v16 = vmul.f32 %v7632_v32, %v10926_v13 }
 0xd05   :  { %7635 = vpow2.f32 %v2626_v31 }
 0xd06   :  { %v7634_v48 = vpop.eup %7633 }
 0xd07   :  { %v2741_v2 = vpop.xlane.xlu1 %2740  ;;  %v2877_v58 = vmul.f32 %v7634_v48, %v10933_v4 }
 0xd08   :  { %v2437_v30 = vpop.xlane.xlu0 %2436  ;;  %7637 = vrcp.f32 %v2741_v2 }
 0xd09   :  { %v2502_v17 = vsub.f32 %v10952_v6, %v2437_v30  ;;  %v2914_v47 = vpack.c.bf16 %v2877_v58, %v2876_v16 }
 0xd0a   :  { %v3039_v8 = vpop.f32.mrf.mxu1 }
 0xd0b   :  { %v11018_v10 = vpop.eup %7635  ;;  %v2628_v5 = vmul.f32 1.442695, %v2502_v17  ;;  %v3149_v56 = vmul.f32 %v3039_v8, %v9545_v21 }
 0xd0c   :  { %3058 = vmatmul.bf16.gmra.mxu1 %v2914_v47  ;;  %2754 = vadd.xlane.f32.xlu1 %v11018_v10 }
 0xd0d   :  { %7639 = vpow2.f32 %v2628_v5  ;;  %v11023_v33 = vadd.f32 %v3149_v56, %v10872_v28 }
 0xd0e   :  { %v2743_v13 = vpop.xlane.xlu2 %2742  ;;  %v7638_v34 = vpop.eup %7637 }
 0xd0f   :  { %v2439_v4 = vpop.xlane.xlu1 %2438  ;;  %7641 = vrcp.f32 %v2743_v13  ;;  %v2878_v48 = vmul.f32 %v7638_v34, %v10947_v55  ;;  %v3106_v34 = vmul.f32 %v10719_v18, %v9298_v14 }
 0xd10   :  { %v2503_v6 = vsub.f32 %v10964_v15, %v2439_v4 }
 0xd12   :  { %v2630_v43 = vmul.f32 1.442695, %v2503_v6  ;;  %v11026_v0 = vpop.f32.mrf.mxu1 }
 0xd13   :  { %v11028_v31 = vpop.eup %7639 }
 0xd14   :  { %7643 = vpow2.f32 %v2630_v43  ;;  %2756 = vadd.xlane.f32.xlu2 %v11028_v31  ;;  %v3138_v43 = vmul.f32 %v10899_v3, %v9545_v21 }
 0xd15   :  { %v7642_v32 = vpop.eup %7641 }
 0xd16   :  { %v2879_v28 = vmul.f32 %v7642_v32, %v10959_v52  ;;  %v2745_v58 = vpop.xlane.xlu2 %2744 }
 0xd17   :  { %7645 = vrcp.f32 %v2745_v58 }
 0xd18   :  { %v2915_v2 = vpack.c.bf16 %v2879_v28, %v2878_v48 }
 0xd1a   :  { %v11033_v16 = vpop.eup %7643  ;;  %v3044_v30 = vpop.f32.mrf.mxu1 }
 0xd1b   :  { %v3151_v15 = vmul.f32 %v3044_v30, %v9545_v21  ;;  %2758 = vadd.xlane.f32.xlu0 %v11033_v16 }
 0xd1c   :  { %3063 = vmatmul.bf16.gmra.mxu1 %v2915_v2 }
 0xd1d   :  { %v11038_v17 = vadd.f32 %v3151_v15, %v10881_v12  ;;  %v7646_v8 = vpop.eup %7645  ;;  %v3090_v12 = vmul.f32 %v10512_v39, %v9295_v51 }
 0xd1e   :  { %v2747_v47 = vpop.xlane.xlu0 %2746  ;;  %v2880_v52 = vmul.f32 %v7646_v8, %v10969_v38 }
 0xd1f   :  { %7647 = vrcp.f32 %v2747_v47  ;;  %v3122_v38 = vadd.f32 %v3106_v34, %v3090_v12 }
 0xd21   :  { %v3154_v28 = vadd.f32 %v3138_v43, %v3122_v38 }
 0xd22   :  { %v11042_v13 = vpop.f32.mrf.mxu1 }
 0xd25   :  { %v7648_v55 = vpop.eup %7647 }
 0xd26   :  { %v2881_v5 = vmul.f32 %v7648_v55, %v10973_v62  ;;  %v2749_v6 = vpop.xlane.xlu1 %2748 }
 0xd27   :  { %7649 = vrcp.f32 %v2749_v6 }
 0xd28   :  { %v2916_v56 = vpack.c.bf16 %v2881_v5, %v2880_v52  ;;  %v3108_v5 = vmul.f32 %v10726_v54, %v9298_v14 }
 0xd2c   :  { %3068 = vmatmul.bf16.gmra.mxu1 %v2916_v56  ;;  %v3092_v56 = vmul.f32 %v10542_v7, %v9295_v51 }
 0xd2d   :  { %v7650_v58 = vpop.eup %7649 }
 0xd2e   :  { %v2882_v39 = vmul.f32 %v7650_v58, %v10976_v36  ;;  %v3124_v36 = vadd.f32 %v3108_v5, %v3092_v56  ;;  %v3110_v58 = vmul.f32 %v10736_v57, %v9298_v14 }
 0xd68   :  { %v3049_v4 = vpop.f32.mrf.mxu1 }
 0xd69   :  { %v3169_v62 = vmul.f32 %v3049_v4, %v9713_v9 }
 0xd6b   :  { %v3185_v30 = vadd.f32 %v3169_v62, %v10894_v49  ;;  %v3140_v49 = vmul.f32 %v10924_v35, %v9545_v21 }
 0xd6d   :  { %v3156_v34 = vadd.f32 %v3140_v49, %v3124_v36  ;;  %v3112_v49 = vmul.f32 %v10753_v61, %v9298_v14 }
 0xd6e   :  { %v2751_v32 = vpop.xlane.xlu2 %2750 }
 0xd6f   :  { %7651 = vrcp.f32 %v2751_v32 }
 0xd70   :  { %v3051_v48 = vpop.f32.mrf.mxu1 }
 0xd71   :  { %v3170_v2 = vmul.f32 %v3051_v48, %v9713_v9 }
 0xd73   :  { %v3186_v18 = vadd.f32 %v3170_v2, %v3154_v28 }
 0xd75   :  { %v7652_v15 = vpop.eup %7651  ;;  %v3201_v47 = vpack.c.bf16 %v3186_v18, %v3185_v30  ;;  %v3142_v30 = vmul.f32 %v10979_v40, %v9545_v21 }
 0xd76   :  { %v2883_v3 = vmul.f32 %v7652_v15, %v11002_v42  ;;  %v2753_v52 = vpop.xlane.xlu0 %2752 }
 0xd77   :  { %6863 = vmatmul.msk.bf16.vlgmr.msra.gmra.mxu0 %vm459_vm1, %v3201_v47  ;;  %7653 = vrcp.f32 %v2753_v52 }
 0xd78   :  { %v2917_v8 = vpack.c.bf16 %v2883_v3, %v2882_v39 }
 0xd79   :  { %v3054_v55 = vpop.f32.mrf.mxu1 }
 0xd7a   :  { %3073 = vmatmul.bf16.gmra.mxu1 %v2917_v8  ;;  %v3171_v42 = vmul.f32 %v3054_v55, %v9713_v9 }
 0xd7c   :  { %v3187_v32 = vadd.f32 %v3171_v42, %v10916_v22  ;;  %v3094_v22 = vmul.f32 %v10574_v20, %v9295_v51 }
 0xd7d   :  { %v7654_v43 = vpop.eup %7653 }
 0xd7e   :  { %v2884_v7 = vmul.f32 %v7654_v43, %v11010_v11  ;;  %v3126_v11 = vadd.f32 %v3110_v58, %v3094_v22  ;;  %v14182_v58 = vmax.f32 %v9778_v41, 0.0 }
 0xd7f   :  { %v2755_v4 = vpop.xlane.xlu1 %2754 }
 0xd80   :  { %7655 = vrcp.f32 %v2755_v4  ;;  %v3158_v47 = vadd.f32 %v3142_v30, %v3126_v11  ;;  %v3096_v4 = vmul.f32 %v10585_v1, %v9295_v51  ;;  %v3114_v1 = vmul.f32 %v10781_v29, %v9298_v14 }
 0xd81   :  { %v3056_v6 = vpop.f32.mrf.mxu1  ;;  %v3100_v30 = vmul.f32 %v10596_v37, %v9295_v51 }
 0xd82   :  { %v3172_v12 = vmul.f32 %v3056_v6, %v9713_v9  ;;  %v3128_v36 = vadd.f32 %v3112_v49, %v3096_v4 }
 0xd84   :  { %v3188_v54 = vadd.f32 %v3172_v12, %v3156_v34 }
 0xd86   :  { %v7656_v38 = vpop.eup %7655  ;;  %v3202_v62 = vpack.c.bf16 %v3188_v54, %v3187_v32  ;;  %v3146_v32 = vmul.f32 %v10997_v46, %v9545_v21 }
 0xd87   :  { %v2885_v35 = vmul.f32 %v7656_v38, %v11018_v10  ;;  %v2757_v2 = vpop.xlane.xlu2 %2756 }
 0xd88   :  { %6864 = vmatmul.msk.bf16.vlgmr.msrb.gmra.mxu3 %vm459_vm1, %v3202_v62  ;;  %7657 = vrcp.f32 %v2757_v2  ;;  %v3116_v2 = vmul.f32 %v10867_v23, %v9298_v14 }
 0xd89   :  { %v3059_v48 = vpop.f32.mrf.mxu1  ;;  %v2918_v28 = vpack.c.bf16 %v2885_v35, %v2884_v7 }
 0xd8a   :  { %v3173_v10 = vmul.f32 %v3059_v48, %v9713_v9  ;;  %v3132_v23 = vadd.f32 %v3116_v2, %v3100_v30 }
 0xd8b   :  { %3078 = vmatmul.bf16.gmra.mxu1 %v2918_v28 }
 0xd8c   :  { %v3189_v8 = vadd.f32 %v3173_v10, %v10944_v60  ;;  %v3144_v60 = vmul.f32 %v10988_v19, %v9545_v21  ;;  %v3098_v19 = vmul.f32 %v10589_v27, %v9295_v51  ;;  %v7118_v27 = vld [vmem:[%s14009_s6 + $0x20] sm:$0xff]  ;;  %v14183_v10 = vmax.f32 %v9785_v63, 0.0 }
 0xd8d   :  { %3379 = vmatpush.bf16.msrb.mxu0 %v7118_v27  ;;  %v14190_v27 = vld [vmem:[#allocation2_spill] sm:$0xff] }
 0xd8e   :  { %v2759_v18 = vpop.xlane.xlu0 %2758  ;;  %v7658_v3 = vpop.eup %7657  ;;  %v3160_v6 = vadd.f32 %v3144_v60, %v3128_v36  ;;  %v3130_v54 = vadd.f32 %v3114_v1, %v3098_v19 }
 0xd8f   :  { %7659 = vrcp.f32 %v2759_v18  ;;  %v2886_v20 = vmul.f32 %v7658_v3, %v11028_v31  ;;  %v3148_v18 = vmul.f32 %v11012_v44, %v9545_v21 }
 0xd90   :  { %v3162_v7 = vadd.f32 %v3146_v32, %v3130_v54 }
 0xd91   :  { %v3061_v15 = vpop.f32.mrf.mxu1 }
 0xd92   :  { %v3174_v39 = vmul.f32 %v3061_v15, %v9713_v9 }
 0xd94   :  { %v3190_v57 = vadd.f32 %v3174_v39, %v3158_v47 }
 0xd95   :  { %v7660_v55 = vpop.eup %7659 }
 0xd96   :  { %v3203_v52 = vpack.c.bf16 %v3190_v57, %v3189_v8  ;;  %v2887_v5 = vmul.f32 %v7660_v55, %v11033_v16  ;;  %v3164_v8 = vadd.f32 %v3148_v18, %v3132_v23  ;;  %v14196_v23 = vld [vmem:[#allocation3_spill] sm:$0xff] }
 0xd98   :  { %6865 = vmatmul.msk.bf16.gmra.mxu3 %vm459_vm1, %v3203_v52  ;;  %v2919_v40 = vpack.c.bf16 %v2887_v5, %v2886_v20  ;;  %v3118_v20 = vmul.f32 %v10874_v25, %v9298_v14 }
 0xd99   :  { %v3064_v56 = vpop.f32.mrf.mxu1 }
 0xd9a   :  { %v3175_v42 = vmul.f32 %v3064_v56, %v9713_v9  ;;  %v3150_v56 = vmul.f32 %v11026_v0, %v9545_v21 }
 0xd9b   :  { %3083 = vmatmul.bf16.gmra.mxu1 %v2919_v40  ;;  %v3102_v40 = vmul.f32 %v10607_v24, %v9295_v51 }
 0xd9c   :  { %v3191_v34 = vadd.f32 %v3175_v42, %v10983_v53  ;;  %v14184_v42 = vld [vmem:[#allocation19_spill] sm:$0xff] }
 0xd9d   :  { %v3134_v49 = vadd.f32 %v3118_v20, %v3102_v40  ;;  %v14202_v40 = vld [vmem:[#allocation5_spill] sm:$0xff] }
 0xd9f   :  { %v3166_v60 = vadd.f32 %v3150_v56, %v3134_v49  ;;  %v14203_v56 = vmax.f32 %v14202_v40, 0.0 }
 0xda1   :  { %v3066_v31 = vpop.f32.mrf.mxu1 }
 0xda2   :  { %v3176_v16 = vmul.f32 %v3066_v31, %v9713_v9  ;;  %v14185_v31 = vmax.f32 %v14184_v42, 0.0 }
 0xda4   :  { %v3192_v12 = vadd.f32 %v3176_v16, %v3160_v6 }
 0xda6   :  { %v3204_v43 = vpack.c.bf16 %v3192_v12, %v3191_v34  ;;  %v14187_v12 = vld [vmem:[#allocation20_spill] sm:$0xff] }
 0xda7   :  { %v14188_v24 = vmax.f32 %v14187_v12, 0.0 }
 0xda8   :  { %6866 = vmatmul.msk.bf16.gmra.mxu3 %vm459_vm1, %v3204_v43 }
 0xda9   :  { %v3069_v61 = vpop.f32.mrf.mxu1 }
 0xdaa   :  { %v3177_v38 = vmul.f32 %v3069_v61, %v9713_v9 }
 0xdac   :  { %v3193_v35 = vadd.f32 %v3177_v38, %v10994_v26  ;;  %v7119_v26 = vld [vmem:[%s14009_s6 + $0x28] sm:$0xff]  ;;  %v3104_v38 = vmul.f32 %v10628_v50, %v9295_v51 }
 0xdad   :  { %3437 = vmatpush.bf16.msra.mxu3 %v7119_v26  ;;  %v14193_v26 = vld [vmem:[#allocation18_spill] sm:$0xff] }
 0xdae   :  { %v14194_v50 = vmax.f32 %v14193_v26, 0.0 }
 0xdb1   :  { %v3071_v62 = vpop.f32.mrf.mxu1 }
 0xdb2   :  { %v3178_v53 = vmul.f32 %v3071_v62, %v9713_v9  ;;  %v3152_v62 = vmul.f32 %v11042_v13, %v9545_v21 }
 0xdb4   :  { %v3194_v48 = vadd.f32 %v3178_v53, %v3162_v7 }
 0xdb6   :  { %v3205_v28 = vpack.c.bf16 %v3194_v48, %v3193_v35 }
 0xdb8   :  { %6867 = vmatmul.msk.bf16.gmra.mxu3 %vm459_vm1, %v3205_v28 }
 0xdf4   :  { %v3259_v29 = vpop.f32.mrf.mxu0 }
 0xdf5   :  { %v11107_v22 = vadd.f32 %v3259_v29, %v14182_v58  ;;  %v14191_v29 = vmax.f32 %v14190_v27, 0.0 }
 0xdf7   :  { %v3074_v46 = vpop.f32.mrf.mxu1  ;;  %v14086_v47 = vmax.f32 %v11107_v22, 0.0 }
 0xdf8   :  { %v3179_v41 = vmul.f32 %v3074_v46, %v9713_v9 }
 0xdfa   :  { %v3195_v63 = vadd.f32 %v3179_v41, %v11007_v45  ;;  %v14197_v41 = vmax.f32 %v14196_v23, 0.0  ;;  %v14223_v23 = vld [vmem:[#allocation12_spill] sm:$0xff] }
 0xdfc   :  { %v3261_v11 = vpop.f32.mrf.mxu0 }
 0xdfd   :  { %v11118_v15 = vadd.f32 %v3261_v11, %v14183_v10 }
 0xdff   :  { %v14085_v39 = vmax.f32 %v11118_v15, 0.0  ;;  %v3076_v3 = vpop.f32.mrf.mxu1 }
 0xe00   :  { %v3180_v37 = vmul.f32 %v3076_v3, %v9713_v9 }
 0xe01   :  { %v3331_v44 = vpack.c.bf16 %v14085_v39, %v14086_v47 }
 0xe02   :  { %v3196_v57 = vadd.f32 %v3180_v37, %v3164_v8  ;;  %v14199_v37 = vld [vmem:[#allocation4_spill] sm:$0xff] }
 0xe03   :  { %6877 = vmatmul.msk.bf16.vlgmr.msrb.gmra.mxu0 %vm130_vm0, %v3331_v44 }
 0xe04   :  { %v3206_v55 = vpack.c.bf16 %v3196_v57, %v3195_v63  ;;  %v14200_v63 = vmax.f32 %v14199_v37, 0.0 }
 0xe06   :  { %6868 = vmatmul.msk.bf16.gmra.mxu3 %vm459_vm1, %v3206_v55 }
 0xe08   :  { %v3079_v52 = vpop.f32.mrf.mxu1 }
 0xe09   :  { %v3181_v45 = vmul.f32 %v3079_v52, %v9713_v9 }
 0xe0b   :  { %v3264_v5 = vpop.f32.mrf.mxu3  ;;  %v3197_v25 = vadd.f32 %v3181_v45, %v11023_v33  ;;  %v3120_v33 = vmul.f32 %v10884_v59, %v9298_v14 }
 0xe0c   :  { %v11141_v6 = vadd.f32 %v3264_v5, %v14185_v31 }
 0xe0d   :  { %v3136_v7 = vadd.f32 %v3120_v33, %v3104_v38 }
 0xe0e   :  { %14186 = vst [vmem:[#allocation13_spill] sm:$0xff] %v11141_v6  ;;  %v14084_v61 = vmax.f32 %v11141_v6, 0.0 }
 0xe0f   :  { %v3168_v48 = vadd.f32 %v3152_v62, %v3136_v7  ;;  %v14214_v7 = vld [vmem:[#allocation9_spill] sm:$0xff] }
 0xe10   :  { %v3081_v4 = vpop.f32.mrf.mxu1 }
 0xe11   :  { %v3182_v36 = vmul.f32 %v3081_v4, %v9713_v9  ;;  %v14205_v4 = vld [vmem:[#allocation6_spill] sm:$0xff] }
 0xe13   :  { %v3198_v16 = vadd.f32 %v3182_v36, %v3166_v60  ;;  %v3266_v34 = vpop.f32.mrf.mxu3  ;;  %v14206_v60 = vmax.f32 %v14205_v4, 0.0 }
 0xe14   :  { %v11146_v43 = vadd.f32 %v3266_v34, %v14188_v24 }
 0xe15   :  { %v3207_v0 = vpack.c.bf16 %v3198_v16, %v3197_v25  ;;  %v14208_v16 = vld [vmem:[#allocation7_spill] sm:$0xff] }
 0xe16   :  { %14189 = vst [vmem:[#allocation19_spill] sm:$0xff] %v11146_v43  ;;  %v14083_v1 = vmax.f32 %v11146_v43, 0.0  ;;  %v14209_v34 = vmax.f32 %v14208_v16, 0.0 }
 0xe17   :  { %6869 = vmatmul.msk.bf16.gmra.mxu3 %vm459_vm1, %v3207_v0  ;;  %v14211_v0 = vld [vmem:[#allocation8_spill] sm:$0xff] }
 0xe18   :  { %v3332_v19 = vpack.c.bf16 %v14083_v1, %v14084_v61  ;;  %v3084_v32 = vpop.f32.mrf.mxu1 }
 0xe19   :  { %v3183_v53 = vmul.f32 %v3084_v32, %v9713_v9 }
 0xe1a   :  { %6878 = vmatmul.msk.bf16.gmra.mxu0 %vm130_vm0, %v3332_v19 }
 0xe1b   :  { %v3269_v54 = vpop.f32.mrf.mxu3  ;;  %v3199_v59 = vadd.f32 %v3183_v53, %v11038_v17  ;;  %v14215_v53 = vmax.f32 %v14214_v7, 0.0 }
 0xe1c   :  { %v11166_v46 = vadd.f32 %v3269_v54, %v14191_v29 }
 0xe1e   :  { %14192 = vst [vmem:[#allocation20_spill] sm:$0xff] %v11166_v46  ;;  %v14082_v18 = vmax.f32 %v11166_v46, 0.0 }
 0xe20   :  { %v3086_v35 = vpop.f32.mrf.mxu1 }
 0xe21   :  { %v3184_v28 = vmul.f32 %v3086_v35, %v9713_v9 }
 0xe23   :  { %v3200_v2 = vadd.f32 %v3184_v28, %v3168_v48  ;;  %v3271_v58 = vpop.f32.mrf.mxu3  ;;  %v14217_v28 = vld [vmem:[#allocation10_spill] sm:$0xff] }
 0xe24   :  { %v11171_v30 = vadd.f32 %v3271_v58, %v14194_v50  ;;  %v14218_v27 = vmax.f32 %v14217_v28, 0.0  ;;  %v14220_v50 = vld [vmem:[#allocation11_spill] sm:$0xff] }
 0xe25   :  { %v3208_v13 = vpack.c.bf16 %v3200_v2, %v3199_v59 }
 0xe26   :  { %14195 = vst [vmem:[#allocation2_spill] sm:$0xff] %v11171_v30  ;;  %v14081_v11 = vmax.f32 %v11171_v30, 0.0 }
 0xe27   :  { %6870 = vmatmul.msk.bf16.gmra.mxu3 %vm459_vm1, %v3208_v13  ;;  %v14221_v13 = vmax.f32 %v14220_v50, 0.0 }
 0xe28   :  { %v3333_v10 = vpack.c.bf16 %v14081_v11, %v14082_v18 }
 0xe2a   :  { %6879 = vmatmul.msk.bf16.gmra.mxu0 %vm130_vm0, %v3333_v10 }
 0xe2b   :  { %v3274_v17 = vpop.f32.mrf.mxu3 }
 0xe2c   :  { %v11183_v3 = vadd.f32 %v3274_v17, %v14197_v41  ;;  %v14224_v41 = vmax.f32 %v14223_v23, 0.0 }
 0xe2e   :  { %14198 = vst [vmem:[#allocation18_spill] sm:$0xff] %v11183_v3  ;;  %v14080_v55 = vmax.f32 %v11183_v3, 0.0 }
 0xe33   :  { %v3276_v8 = vpop.f32.mrf.mxu3 }
 0xe34   :  { %v11187_v57 = vadd.f32 %v3276_v8, %v14200_v63 }
 0xe36   :  { %14201 = vst [vmem:[#allocation3_spill] sm:$0xff] %v11187_v57  ;;  %v14079_v52 = vmax.f32 %v11187_v57, 0.0 }
 0xe37   :  { %6891 = vmatmul.msk.bf16.vlgmr.msra.gmra.mxu3 %vm130_vm0, %v3331_v44 }
 0xe38   :  { %v3334_v20 = vpack.c.bf16 %v14079_v52, %v14080_v55 }
 0xe3a   :  { %6880 = vmatmul.msk.bf16.gmra.mxu0 %vm130_vm0, %v3334_v20 }
 0xe3b   :  { %v3279_v5 = vpop.f32.mrf.mxu3 }
 0xe3c   :  { %v11199_v49 = vadd.f32 %v3279_v5, %v14203_v56 }
 0xe3e   :  { %14204 = vst [vmem:[#allocation4_spill] sm:$0xff] %v11199_v49  ;;  %v14078_v42 = vmax.f32 %v11199_v49, 0.0 }
 0xe43   :  { %v3281_v45 = vpop.f32.mrf.mxu3 }
 0xe44   :  { %v11203_v36 = vadd.f32 %v3281_v45, %v14206_v60 }
 0xe46   :  { %14207 = vst [vmem:[#allocation5_spill] sm:$0xff] %v11203_v36  ;;  %v14077_v44 = vmax.f32 %v11203_v36, 0.0 }
 0xe47   :  { %6892 = vmatmul.msk.bf16.gmra.mxu3 %vm130_vm0, %v3332_v19  ;;  %v14212_v19 = vmax.f32 %v14211_v0, 0.0 }
 0xe48   :  { %v3335_v31 = vpack.c.bf16 %v14077_v44, %v14078_v42 }
 0xe4a   :  { %6881 = vmatmul.msk.bf16.gmra.mxu0 %vm130_vm0, %v3335_v31 }
 0xe57   :  { %6893 = vmatmul.msk.bf16.gmra.mxu3 %vm130_vm0, %v3333_v10 }
 0xe67   :  { %6894 = vmatmul.msk.bf16.gmra.mxu3 %vm130_vm0, %v3334_v20 }
 0xe77   :  { %6895 = vmatmul.msk.bf16.gmra.mxu3 %vm130_vm0, %v3335_v31 }
 0xe80   :  { %v11267_v23 = vpop.f32.mrf.mxu0 }
 0xe89   :  { %v3284_v25 = vpop.f32.mrf.mxu3 }
 0xe8a   :  { %v11218_v12 = vadd.f32 %v3284_v25, %v14209_v34 }
 0xe8c   :  { %14210 = vst [vmem:[#allocation6_spill] sm:$0xff] %v11218_v12  ;;  %v14076_v33 = vmax.f32 %v11218_v12, 0.0 }
 0xe91   :  { %v3286_v24 = vpop.f32.mrf.mxu3 }
 0xe92   :  { %v11222_v32 = vadd.f32 %v3286_v24, %v14212_v19 }
 0xe94   :  { %14213 = vst [vmem:[#allocation7_spill] sm:$0xff] %v11222_v32  ;;  %v14075_v54 = vmax.f32 %v11222_v32, 0.0 }
 0xe96   :  { %v3336_v38 = vpack.c.bf16 %v14075_v54, %v14076_v33 }
 0xe98   :  { %6882 = vmatmul.msk.bf16.gmra.mxu0 %vm130_vm0, %v3336_v38  ;;  %6896 = vmatmul.msk.bf16.gmra.mxu3 %vm130_vm0, %v3336_v38 }
 0xe9a   :  { %v3289_v62 = vpop.f32.mrf.mxu3 }
 0xe9b   :  { %v11234_v35 = vadd.f32 %v3289_v62, %v14215_v53 }
 0xe9d   :  { %14216 = vst [vmem:[#allocation8_spill] sm:$0xff] %v11234_v35  ;;  %v14074_v59 = vmax.f32 %v11234_v35, 0.0 }
 0xea2   :  { %v3291_v48 = vpop.f32.mrf.mxu3 }
 0xea3   :  { %v11238_v29 = vadd.f32 %v3291_v48, %v14218_v27 }
 0xea5   :  { %14219 = vst [vmem:[#allocation9_spill] sm:$0xff] %v11238_v29  ;;  %v14073_v2 = vmax.f32 %v11238_v29, 0.0 }
 0xea7   :  { %v3337_v58 = vpack.c.bf16 %v14073_v2, %v14074_v59 }
 0xea9   :  { %6883 = vmatmul.msk.bf16.gmra.mxu0 %vm130_vm0, %v3337_v58  ;;  %6897 = vmatmul.msk.bf16.gmra.mxu3 %vm130_vm0, %v3337_v58 }
 0xeaa   :  { %v3294_v26 = vpop.f32.mrf.mxu3 }
 0xeab   :  { %v11250_v10 = vadd.f32 %v3294_v26, %v14221_v13 }
 0xead   :  { %14222 = vst [vmem:[#allocation10_spill] sm:$0xff] %v11250_v10  ;;  %v14072_v37 = vmax.f32 %v11250_v10, 0.0 }
 0xeb2   :  { %v3296_v17 = vpop.f32.mrf.mxu3 }
 0xeb3   :  { %v11254_v8 = vadd.f32 %v3296_v17, %v14224_v41 }
 0xeb5   :  { %14225 = vst [vmem:[#allocation11_spill] sm:$0xff] %v11254_v8  ;;  %v14071_v63 = vmax.f32 %v11254_v8, 0.0 }
 0xeb7   :  { %v3338_v20 = vpack.c.bf16 %v14071_v63, %v14072_v37 }
 0xeb9   :  { %6884 = vmatmul.msk.bf16.gmra.mxu0 %vm130_vm0, %v3338_v20  ;;  %6898 = vmatmul.msk.bf16.gmra.mxu3 %vm130_vm0, %v3338_v20 }
 0xeba   :  { %v3439_v5 = vpop.f32.mrf.mxu3 }
 0xec2   :  { %v3441_v40 = vpop.f32.mrf.mxu3 }
 0xeca   :  { %v3444_v56 = vpop.f32.mrf.mxu3 }
 0xed2   :  { %v3446_v45 = vpop.f32.mrf.mxu3 }
 0xed3   :  { %v3576_v41 = vpack.c.bf16 %v3446_v45, %v3444_v56 }
 0xeda   :  { %v3449_v4 = vpop.f32.mrf.mxu3 }
 0xee2   :  { %v3451_v60 = vpop.f32.mrf.mxu3 }
 0xee3   :  { %v3577_v17 = vpack.c.bf16 %v3451_v60, %v3449_v4  ;;  %v3683_v4 = vsel %vm459_vm1, %v3576_v41, 0 }
 0xeea   :  { %v3454_v31 = vpop.f32.mrf.mxu3 }
 0xef2   :  { %v3456_v25 = vpop.f32.mrf.mxu3 }
 0xef3   :  { %v3578_v50 = vpack.c.bf16 %v3456_v25, %v3454_v31  ;;  %v3686_v25 = vsel %vm459_vm1, %v3577_v17, 0 }
 0xefa   :  { %v3459_v16 = vpop.f32.mrf.mxu3 }
 0xf02   :  { %v3461_v34 = vpop.f32.mrf.mxu3 }
 0xf03   :  { %v3579_v26 = vpack.c.bf16 %v3461_v34, %v3459_v16  ;;  %v3689_v16 = vsel %vm459_vm1, %v3578_v50, 0 }
 0xf05   :  { %v3692_v20 = vsel %vm459_vm1, %v3579_v26, 0 }
 0xf1b   :  { %v3464_v24 = vpop.f32.mrf.mxu3 }
 0xf23   :  { %v3466_v0 = vpop.f32.mrf.mxu3 }
 0xf24   :  { %v3580_v27 = vpack.c.bf16 %v3466_v0, %v3464_v24  ;;  %v3575_v24 = vpack.c.bf16 %v3441_v40, %v3439_v5  ;;  %v11270_v0 = vpop.f32.mrf.mxu0  ;;  %v14226_v5 = vld [vmem:[#allocation14_spill] sm:$0xff] }
 0xf25   :  { %v3480_v40 = vmul.f32 %v11270_v0, %v14226_v5  ;;  %v3479_v34 = vmul.f32 %v11267_v23, %v14226_v5 }
 0xf26   :  { %v3695_v13 = vsel %vm459_vm1, %v3580_v27, 0  ;;  %v3680_v56 = vsel %vm459_vm1, %v3575_v24, 0 }
 0xf2c   :  { %v3469_v19 = vpop.f32.mrf.mxu3  ;;  %v11273_v31 = vpop.f32.mrf.mxu0 }
 0xf34   :  { %v3471_v38 = vpop.f32.mrf.mxu3  ;;  %v11277_v60 = vpop.f32.mrf.mxu0 }
 0xf35   :  { %v3581_v28 = vpack.c.bf16 %v3471_v38, %v3469_v19  ;;  %v3543_v19 = vpack.c.bf16 %v3480_v40, %v3479_v34 }
 0xf37   :  { %v3698_v58 = vsel %vm459_vm1, %v3581_v28, 0 }
 0xf3c   :  { %v3474_v62 = vpop.f32.mrf.mxu3  ;;  %v11282_v45 = vpop.f32.mrf.mxu0 }
 0xf44   :  { %v3476_v7 = vpop.f32.mrf.mxu3  ;;  %v11287_v38 = vpop.f32.mrf.mxu0 }
 0xf45   :  { %v3582_v53 = vpack.c.bf16 %v3476_v7, %v3474_v62  ;;  %v3482_v62 = vmul.f32 %v11277_v60, %v14226_v5  ;;  %v3481_v7 = vmul.f32 %v11273_v31, %v14226_v5 }
 0xf47   :  { %4480 = vmatpush.bf16.msrb.mxu2 %v3582_v53  ;;  %v3701_v48 = vsel %vm459_vm1, %v3582_v53, 0  ;;  %v3544_v53 = vpack.c.bf16 %v3482_v62, %v3481_v7 }
 0xf48   :  { %3703 = vmatpush.bf16.xpose.msra.mxu0 %v3701_v48 }
 0xf4b   :  { %4481 = vmatpush.bf16.msrb.mxu2 %v3581_v28 }
 0xf4c   :  { %v11293_v48 = vpop.f32.mrf.mxu0 }
 0xf4f   :  { %4482 = vmatpush.bf16.msrb.mxu2 %v3580_v27  ;;  %v3484_v27 = vmul.f32 %v11287_v38, %v14226_v5 }
 0xf50   :  { %3704 = vmatpush.bf16.xpose.msra.mxu0 %v3698_v58  ;;  %v3483_v58 = vmul.f32 %v11282_v45, %v14226_v5 }
 0xf53   :  { %4483 = vmatpush.bf16.msrb.mxu2 %v3579_v26  ;;  %v3545_v26 = vpack.c.bf16 %v3484_v27, %v3483_v58 }
 0xf54   :  { %v11296_v28 = vpop.f32.mrf.mxu0 }
 0xf57   :  { %4484 = vmatpush.bf16.msrb.mxu2 %v3578_v50 }
 0xf58   :  { %3705 = vmatpush.bf16.xpose.msra.mxu0 %v3695_v13  ;;  %v3486_v13 = vmul.f32 %v11296_v28, %v14226_v5 }
 0xf5b   :  { %4485 = vmatpush.bf16.msrb.mxu2 %v3577_v17  ;;  %v3485_v17 = vmul.f32 %v11293_v48, %v14226_v5 }
 0xf5c   :  { %v11303_v50 = vpop.f32.mrf.mxu0 }
 0xf5f   :  { %4486 = vmatpush.bf16.msrb.mxu2 %v3576_v41 }
 0xf60   :  { %3706 = vmatpush.bf16.xpose.msra.mxu0 %v3692_v20  ;;  %v3546_v20 = vpack.c.bf16 %v3486_v13, %v3485_v17 }
 0xf63   :  { %4487 = vmatpush.bf16.msrb.mxu2 %v3575_v24 }
 0xf64   :  { %v11309_v41 = vpop.f32.mrf.mxu0 }
 0xf68   :  { %3707 = vmatpush.bf16.xpose.msra.mxu0 %v3689_v16  ;;  %v3488_v16 = vmul.f32 %v11309_v41, %v14226_v5 }
 0xf6c   :  { %v11312_v24 = vpop.f32.mrf.mxu0 }
 0xf70   :  { %3708 = vmatpush.bf16.xpose.msra.mxu0 %v3686_v25  ;;  %v3487_v25 = vmul.f32 %v11303_v50, %v14226_v5 }
 0xf78   :  { %3709 = vmatpush.bf16.xpose.msra.mxu0 %v3683_v4  ;;  %v3547_v4 = vpack.c.bf16 %v3488_v16, %v3487_v25  ;;  %v14227_v25 = vld [vmem:[#allocation15_spill] sm:$0xff] }
 0xf79   :  { %v3500_v37 = vmul.f32 %v11287_v38, %v14227_v25  ;;  %v3502_v59 = vmul.f32 %v11296_v28, %v14227_v25  ;;  %v3504_v33 = vmul.f32 %v11309_v41, %v14227_v25  ;;  %v3505_v44 = vmul.f32 %v11312_v24, %v14227_v25 }
 0xf80   :  { %3710 = vmatpush.bf16.xpose.msra.mxu0 %v3680_v56  ;;  %v11318_v56 = vpop.f32.mrf.mxu0 }
 0xf81   :  { %v3490_v34 = vmul.f32 %v11318_v56, %v14226_v5 }
 0xf87   :  { %6899 = vmatmul.msk.bf16.vlgmr.msra.gmra.mxu0 %vm459_vm1, %v3543_v19  ;;  %v3489_v19 = vmul.f32 %v11312_v24, %v14226_v5 }
 0xf88   :  { %v11321_v40 = vpop.f32.mrf.mxu0 }
 0xf89   :  { %v3548_v62 = vpack.c.bf16 %v3490_v34, %v3489_v19  ;;  %v3491_v27 = vmul.f32 %v11321_v40, %v14226_v5  ;;  %v3495_v34 = vmul.f32 %v11267_v23, %v14227_v25 }
 0xf90   :  { %v11328_v7 = vpop.f32.mrf.mxu0 }
 0xf97   :  { %6900 = vmatmul.msk.bf16.gmra.mxu0 %vm459_vm1, %v3544_v53  ;;  %v3492_v53 = vmul.f32 %v11328_v7, %v14226_v5 }
 0xf98   :  { %v11334_v58 = vpop.f32.mrf.mxu0 }
 0xfa0   :  { %v11337_v13 = vpop.f32.mrf.mxu0 }
 0xfa1   :  { %v3494_v17 = vmul.f32 %v11337_v13, %v14226_v5 }
 0xfa7   :  { %6901 = vmatmul.msk.bf16.gmra.mxu0 %vm459_vm1, %v3545_v26  ;;  %v3549_v26 = vpack.c.bf16 %v3492_v53, %v3491_v27 }
 0xfb7   :  { %6902 = vmatmul.msk.bf16.gmra.mxu0 %vm459_vm1, %v3546_v20  ;;  %v3493_v20 = vmul.f32 %v11334_v58, %v14226_v5 }
 0xfb9   :  { %v3550_v16 = vpack.c.bf16 %v3494_v17, %v3493_v20  ;;  %v8244_v17 = vld [vmem:[%s14011_s3 + $0x8] sm:$0xff] }
 0xfc7   :  { %6903 = vmatmul.msk.bf16.gmra.mxu0 %vm459_vm1, %v3547_v4  ;;  %v3496_v4 = vmul.f32 %v11270_v0, %v14227_v25 }
 0xfc9   :  { %v3551_v27 = vpack.c.bf16 %v3496_v4, %v3495_v34  ;;  %v8245_v34 = vld [vmem:[%s14011_s3 + $0x10] sm:$0xff] }
 0xfd7   :  { %6904 = vmatmul.msk.bf16.gmra.mxu0 %vm459_vm1, %v3548_v62  ;;  %v8243_v62 = vld [vmem:[%s14011_s3] sm:$0xff] }
 0xfe7   :  { %6905 = vmatmul.msk.bf16.gmra.mxu0 %vm459_vm1, %v3549_v26 }
 0xff7   :  { %6906 = vmatmul.msk.bf16.gmra.mxu0 %vm459_vm1, %v3550_v16  ;;  %v3498_v16 = vmul.f32 %v11277_v60, %v14227_v25 }
0x1004   :  { %v3712_v19 = vpop.f32.mrf.mxu0 }
0x1005   :  { %v11351_v53 = vadd.f32 %v8243_v62, %v3712_v19  ;;  %v3497_v19 = vmul.f32 %v11273_v31, %v14227_v25 }
0x1007   :  { %3872 = vmax.xlane.f32.xlu1 %v11351_v53  ;;  %6907 = vmatmul.msk.bf16.gmra.mxu0 %vm459_vm1, %v3551_v27  ;;  %v3552_v27 = vpack.c.bf16 %v3498_v16, %v3497_v19  ;;  %v8247_v19 = vld [vmem:[%s14011_s3 + $0x20] sm:$0xff] }
0x100c   :  { %v3714_v26 = vpop.f32.mrf.mxu0 }
0x100d   :  { %v11358_v20 = vadd.f32 %v8244_v17, %v3714_v26  ;;  %v8246_v17 = vld [vmem:[%s14011_s3 + $0x18] sm:$0xff] }
0x100f   :  { %3874 = vmax.xlane.f32.xlu2 %v11358_v20 }
0x1014   :  { %v3717_v4 = vpop.f32.mrf.mxu0 }
0x1015   :  { %v11368_v62 = vadd.f32 %v8245_v34, %v3717_v4  ;;  %v3499_v4 = vmul.f32 %v11282_v45, %v14227_v25 }
0x1017   :  { %3876 = vmax.xlane.f32.xlu0 %v11368_v62  ;;  %6908 = vmatmul.msk.bf16.gmra.mxu0 %vm459_vm1, %v3552_v27  ;;  %v3553_v27 = vpack.c.bf16 %v3500_v37, %v3499_v4  ;;  %v8249_v4 = vld [vmem:[%s14011_s3 + $0x30] sm:$0xff] }
0x101c   :  { %v3719_v26 = vpop.f32.mrf.mxu0 }
0x101d   :  { %v11375_v63 = vadd.f32 %v8246_v17, %v3719_v26  ;;  %v8248_v17 = vld [vmem:[%s14011_s3 + $0x28] sm:$0xff] }
0x101f   :  { %3878 = vmax.xlane.f32.xlu1 %v11375_v63 }
0x1024   :  { %v3722_v16 = vpop.f32.mrf.mxu0 }
0x1025   :  { %v11385_v34 = vadd.f32 %v8247_v19, %v3722_v16  ;;  %v3501_v16 = vmul.f32 %v11293_v48, %v14227_v25 }
0x1027   :  { %3880 = vmax.xlane.f32.xlu2 %v11385_v34  ;;  %6909 = vmatmul.msk.bf16.gmra.mxu0 %vm459_vm1, %v3553_v27  ;;  %v3554_v27 = vpack.c.bf16 %v3502_v59, %v3501_v16  ;;  %v8251_v16 = vld [vmem:[%s14011_s3 + $0x40] sm:$0xff] }
0x102c   :  { %v3724_v26 = vpop.f32.mrf.mxu0 }
0x102d   :  { %v11392_v2 = vadd.f32 %v8248_v17, %v3724_v26  ;;  %v8250_v17 = vld [vmem:[%s14011_s3 + $0x38] sm:$0xff] }
0x102f   :  { %3882 = vmax.xlane.f32.xlu0 %v11392_v2 }
0x1034   :  { %v3727_v37 = vpop.f32.mrf.mxu0 }
0x1035   :  { %v11402_v19 = vadd.f32 %v8249_v4, %v3727_v37  ;;  %v3503_v37 = vmul.f32 %v11303_v50, %v14227_v25 }
0x1037   :  { %3884 = vmax.xlane.f32.xlu1 %v11402_v19  ;;  %6910 = vmatmul.msk.bf16.gmra.mxu0 %vm459_vm1, %v3554_v27  ;;  %v3555_v27 = vpack.c.bf16 %v3504_v33, %v3503_v37  ;;  %v3507_v33 = vmul.f32 %v11321_v40, %v14227_v25 }
0x103c   :  { %v3729_v26 = vpop.f32.mrf.mxu0 }
0x103d   :  { %v11409_v54 = vadd.f32 %v8250_v17, %v3729_v26  ;;  %v3506_v17 = vmul.f32 %v11318_v56, %v14227_v25 }
0x103f   :  { %3886 = vmax.xlane.f32.xlu2 %v11409_v54  ;;  %v3556_v52 = vpack.c.bf16 %v3506_v17, %v3505_v44  ;;  %v3509_v44 = vmul.f32 %v11334_v58, %v14227_v25 }
0x1044   :  { %v3732_v59 = vpop.f32.mrf.mxu0 }
0x1045   :  { %v11419_v4 = vadd.f32 %v8251_v16, %v3732_v59  ;;  %v3508_v59 = vmul.f32 %v11328_v7, %v14227_v25 }
0x1047   :  { %3888 = vmax.xlane.f32.xlu2 %v11419_v4  ;;  %6911 = vmatmul.msk.bf16.gmra.mxu0 %vm459_vm1, %v3555_v27  ;;  %v3557_v37 = vpack.c.bf16 %v3508_v59, %v3507_v33  ;;  %v3510_v27 = vmul.f32 %v11337_v13, %v14227_v25  ;;  %v14228_v33 = vld [vmem:[#allocation16_spill] sm:$0xff] }
0x1048   :  { %v3511_v39 = vmul.f32 %v11267_v23, %v14228_v33  ;;  %v3523_v12 = vmul.f32 %v11321_v40, %v14228_v33 }
0x104c   :  { %v3734_v26 = vpop.f32.mrf.mxu0 }
0x1054   :  { %v3737_v42 = vpop.f32.mrf.mxu0 }
0x1057   :  { %6912 = vmatmul.msk.bf16.gmra.mxu0 %vm459_vm1, %v3556_v52  ;;  %v3558_v52 = vpack.c.bf16 %v3510_v27, %v3509_v44 }
0x105c   :  { %v3739_v55 = vpop.f32.mrf.mxu0 }
0x1064   :  { %v3742_v16 = vpop.f32.mrf.mxu0 }
0x1067   :  { %6913 = vmatmul.msk.bf16.gmra.mxu0 %vm459_vm1, %v3557_v37  ;;  %v3512_v37 = vmul.f32 %v11270_v0, %v14228_v33 }
0x1069   :  { %v3559_v44 = vpack.c.bf16 %v3512_v37, %v3511_v39  ;;  %v3513_v37 = vmul.f32 %v11273_v31, %v14228_v33 }
0x106c   :  { %v11435_v11 = vpop.f32.mrf.mxu0 }
0x1074   :  { %v11441_v1 = vpop.f32.mrf.mxu0 }
0x1077   :  { %6914 = vmatmul.msk.bf16.gmra.mxu0 %vm459_vm1, %v3558_v52 }
0x107a   :  { %v3873_v17 = vpop.xlane.xlu1 %3872 }
0x107b   :  { %v4000_v18 = vsub.f32 %v11351_v53, %v3873_v17  ;;  %v8252_v17 = vld [vmem:[%s14011_s3 + $0x48] sm:$0xff] }
0x107c   :  { %v11450_v52 = vpop.f32.mrf.mxu0 }
0x107d   :  { %v4064_v59 = vmul.f32 1.442695, %v4000_v18 }
0x107f   :  { %7661 = vpow2.f32 %v4064_v59  ;;  %v11458_v59 = vadd.f32 %v8252_v17, %v3734_v26 }
0x1082   :  { %v3875_v61 = vpop.xlane.xlu2 %3874 }
0x1083   :  { %v4001_v47 = vsub.f32 %v11358_v20, %v3875_v61  ;;  %v3514_v20 = vmul.f32 %v11277_v60, %v14228_v33 }
0x1084   :  { %v11464_v39 = vpop.f32.mrf.mxu0 }
0x1085   :  { %v11448_v5 = vpop.eup %7661  ;;  %v4066_v27 = vmul.f32 1.442695, %v4001_v47  ;;  %v3560_v17 = vpack.c.bf16 %v3514_v20, %v3513_v37  ;;  %v3516_v37 = vmul.f32 %v11287_v38, %v14228_v33 }
0x1086   :  { %4192 = vadd.xlane.f32.xlu0 %v11448_v5 }
0x1087   :  { %7663 = vpow2.f32 %v4066_v27  ;;  %6915 = vmatmul.msk.bf16.gmra.mxu0 %vm459_vm1, %v3559_v44  ;;  %v8253_v27 = vld [vmem:[%s14011_s3 + $0x50] sm:$0xff] }
0x1088   :  { %v11474_v44 = vadd.f32 %v8253_v27, %v3737_v42  ;;  %v8254_v42 = vld [vmem:[%s14011_s3 + $0x58] sm:$0xff] }
0x1089   :  { %v11487_v27 = vadd.f32 %v8254_v42, %v3739_v55  ;;  %v8255_v55 = vld [vmem:[%s14011_s3 + $0x60] sm:$0xff] }
0x108a   :  { %v3877_v18 = vpop.xlane.xlu0 %3876 }
0x108b   :  { %v4002_v53 = vsub.f32 %v11368_v62, %v3877_v18 }
0x108d   :  { %v11460_v61 = vpop.eup %7663  ;;  %v4068_v47 = vmul.f32 1.442695, %v4002_v53 }
0x108e   :  { %4194 = vadd.xlane.f32.xlu1 %v11460_v61  ;;  %3890 = vmax.xlane.f32.xlu0 %v11458_v59 }
0x108f   :  { %7665 = vpow2.f32 %v4068_v47  ;;  %v11481_v47 = vpop.f32.mrf.mxu0 }
0x1092   :  { %v3879_v62 = vpop.xlane.xlu1 %3878 }
0x1093   :  { %v4003_v26 = vsub.f32 %v11375_v63, %v3879_v62 }
0x1095   :  { %v11476_v18 = vpop.eup %7665  ;;  %v4070_v53 = vmul.f32 1.442695, %v4003_v26 }
0x1096   :  { %4196 = vadd.xlane.f32.xlu1 %v11476_v18  ;;  %3892 = vmax.xlane.f32.xlu0 %v11474_v44 }
0x1097   :  { %7667 = vpow2.f32 %v4070_v53  ;;  %6916 = vmatmul.msk.bf16.gmra.mxu0 %vm459_vm1, %v3560_v17 }
0x109a   :  { %v3881_v63 = vpop.xlane.xlu2 %3880 }
0x109b   :  { %v4004_v62 = vsub.f32 %v11385_v34, %v3881_v63  ;;  %v3515_v34 = vmul.f32 %v11282_v45, %v14228_v33  ;;  %v11501_v63 = vadd.f32 %v8255_v55, %v3742_v16  ;;  %v8256_v16 = vld [vmem:[%s14011_s3 + $0x68] sm:$0xff] }
0x109d   :  { %v11489_v26 = vpop.eup %7667  ;;  %v4072_v20 = vmul.f32 1.442695, %v4004_v62  ;;  %v3757_v62 = vpop.f32.mrf.mxu0 }
0x109e   :  { %3894 = vmax.xlane.f32.xlu1 %v11487_v27  ;;  %4198 = vadd.xlane.f32.xlu2 %v11489_v26 }
0x109f   :  { %7669 = vpow2.f32 %v4072_v20  ;;  %v3561_v20 = vpack.c.bf16 %v3516_v37, %v3515_v34 }
0x10a2   :  { %v3883_v53 = vpop.xlane.xlu0 %3882 }
0x10a3   :  { %v4005_v17 = vsub.f32 %v11392_v2, %v3883_v53  ;;  %v11513_v53 = vadd.f32 %v8256_v16, %v11435_v11 }
0x10a5   :  { %v11503_v42 = vpop.eup %7669  ;;  %v4074_v8 = vmul.f32 1.442695, %v4005_v17  ;;  %v11517_v34 = vpop.f32.mrf.mxu0  ;;  %v8257_v17 = vld [vmem:[%s14011_s3 + $0x70] sm:$0xff] }
0x10a6   :  { %3896 = vmax.xlane.f32.xlu1 %v11501_v63  ;;  %4200 = vadd.xlane.f32.xlu2 %v11503_v42 }
0x10a7   :  { %7671 = vpow2.f32 %v4074_v8  ;;  %6917 = vmatmul.msk.bf16.gmra.mxu0 %vm459_vm1, %v3561_v20  ;;  %v11530_v20 = vadd.f32 %v8257_v17, %v11441_v1  ;;  %v8258_v1 = vld [vmem:[%s14011_s3 + $0x78] sm:$0xff] }
0x10a8   :  { %v11544_v17 = vadd.f32 %v8258_v1, %v11450_v52  ;;  %v8259_v52 = vld [vmem:[%s14011_s3 + $0x80] sm:$0xff]  ;;  %v8260_v1 = vld [vmem:[%s14011_s3 + $0x88] sm:$0xff] }
0x10aa   :  { %v3885_v10 = vpop.xlane.xlu1 %3884 }
0x10ab   :  { %v4006_v2 = vsub.f32 %v11402_v19, %v3885_v10  ;;  %v3518_v10 = vmul.f32 %v11296_v28, %v14228_v33  ;;  %v3517_v19 = vmul.f32 %v11293_v48, %v14228_v33 }
0x10ad   :  { %v11515_v55 = vpop.eup %7671  ;;  %v4076_v37 = vmul.f32 1.442695, %v4006_v2  ;;  %v11537_v29 = vpop.f32.mrf.mxu0 }
0x10ae   :  { %4202 = vadd.xlane.f32.xlu0 %v11515_v55  ;;  %3898 = vmax.xlane.f32.xlu2 %v11513_v53 }
0x10af   :  { %7673 = vpow2.f32 %v4076_v37  ;;  %v3562_v37 = vpack.c.bf16 %v3518_v10, %v3517_v19 }
0x10b2   :  { %v3887_v8 = vpop.xlane.xlu2 %3886 }
0x10b3   :  { %v4007_v11 = vsub.f32 %v11409_v54, %v3887_v8 }
0x10b5   :  { %v11532_v2 = vpop.eup %7673  ;;  %v4078_v16 = vmul.f32 1.442695, %v4007_v11  ;;  %v3520_v11 = vmul.f32 %v11309_v41, %v14228_v33 }
0x10b6   :  { %4204 = vadd.xlane.f32.xlu0 %v11532_v2  ;;  %3900 = vmax.xlane.f32.xlu2 %v11530_v20 }
0x10b7   :  { %7675 = vpow2.f32 %v4078_v16  ;;  %6918 = vmatmul.msk.bf16.gmra.mxu0 %vm459_vm1, %v3562_v37  ;;  %v11552_v16 = vpop.f32.mrf.mxu0  ;;  %v11560_v37 = vadd.f32 %v8259_v52, %v11464_v39  ;;  %v3522_v39 = vmul.f32 %v11318_v56, %v14228_v33 }
0x10ba   :  { %v3889_v54 = vpop.xlane.xlu2 %3888 }
0x10bb   :  { %v4008_v8 = vsub.f32 %v11419_v4, %v3889_v54  ;;  %v3519_v4 = vmul.f32 %v11303_v50, %v14228_v33 }
0x10bd   :  { %v11546_v10 = vpop.eup %7675  ;;  %v4080_v19 = vmul.f32 1.442695, %v4008_v8  ;;  %v3563_v8 = vpack.c.bf16 %v3520_v11, %v3519_v4  ;;  %v3521_v11 = vmul.f32 %v11312_v24, %v14228_v33  ;;  %v8261_v4 = vld [vmem:[%s14011_s3 + $0x90] sm:$0xff] }
0x10be   :  { %4206 = vadd.xlane.f32.xlu1 %v11546_v10  ;;  %3902 = vmax.xlane.f32.xlu0 %v11544_v17  ;;  %v11583_v52 = vadd.f32 %v8261_v4, %v3757_v62 }
0x10bf   :  { %7677 = vpow2.f32 %v4080_v19  ;;  %v11571_v19 = vadd.f32 %v8260_v1, %v11481_v47  ;;  %v11573_v35 = vpop.f32.mrf.mxu0  ;;  %v3524_v1 = vmul.f32 %v11328_v7, %v14228_v33 }
0x10c1   :  { %v3565_v25 = vpack.c.bf16 %v3524_v1, %v3523_v12  ;;  %v14229_v12 = vld [vmem:[#allocation17_spill] sm:$0xff] }
0x10c5   :  { %v11562_v54 = vpop.eup %7677 }
0x10c6   :  { %4208 = vadd.xlane.f32.xlu1 %v11562_v54  ;;  %3904 = vmax.xlane.f32.xlu0 %v11560_v37 }
0x10c7   :  { %6919 = vmatmul.msk.bf16.gmra.mxu0 %vm459_vm1, %v3563_v8  ;;  %v3564_v8 = vpack.c.bf16 %v3522_v39, %v3521_v11  ;;  %v11585_v32 = vpop.f32.mrf.mxu0  ;;  %v3526_v39 = vmul.f32 %v11337_v13, %v14228_v33  ;;  %v3525_v11 = vmul.f32 %v11334_v58, %v14228_v33  ;;  %v3527_v33 = vmul.f32 %v11267_v23, %v14229_v12 }
0x10ce   :  { %3906 = vmax.xlane.f32.xlu1 %v11571_v19 }
0x10cf   :  { %v11589_v47 = vpop.f32.mrf.mxu0 }
0x10d6   :  { %3908 = vmax.xlane.f32.xlu1 %v11583_v52 }
0x10d7   :  { %6920 = vmatmul.msk.bf16.gmra.mxu0 %vm459_vm1, %v3564_v8  ;;  %v11596_v62 = vpop.f32.mrf.mxu0  ;;  %v3566_v8 = vpack.c.bf16 %v3526_v39, %v3525_v11 }
0x10df   :  { %v11602_v4 = vpop.f32.mrf.mxu0 }
0x10e7   :  { %6921 = vmatmul.msk.bf16.gmra.mxu0 %vm459_vm1, %v3565_v25  ;;  %v11605_v49 = vpop.f32.mrf.mxu0  ;;  %v3528_v25 = vmul.f32 %v11270_v0, %v14229_v12 }
0x10e9   :  { %v3567_v46 = vpack.c.bf16 %v3528_v25, %v3527_v33 }
0x10f7   :  { %6922 = vmatmul.msk.bf16.gmra.mxu0 %vm459_vm1, %v3566_v8  ;;  %v11613_v8 = vpop.f32.mrf.mxu0 }
0x10f9   :  { %v4193_v36 = vpop.xlane.xlu0 %4192 }
0x10fa   :  { %7679 = vrcp.f32 %v4193_v36 }
0x1100   :  { %v7680_v39 = vpop.eup %7679 }
0x1101   :  { %v3891_v1 = vpop.xlane.xlu0 %3890  ;;  %v4195_v57 = vpop.xlane.xlu1 %4194  ;;  %v4384_v36 = vmul.f32 %v7680_v39, %v11448_v5 }
0x1102   :  { %v4009_v3 = vsub.f32 %v11458_v59, %v3891_v1  ;;  %7681 = vrcp.f32 %v4195_v57  ;;  %v11623_v5 = vpop.f32.mrf.mxu0 }
0x1104   :  { %v4082_v30 = vmul.f32 1.442695, %v4009_v3 }
0x1106   :  { %7683 = vpow2.f32 %v4082_v30 }
0x1107   :  { %6923 = vmatmul.msk.bf16.gmra.mxu0 %vm459_vm1, %v3567_v46  ;;  %v3530_v46 = vmul.f32 %v11277_v60, %v14229_v12 }
0x1108   :  { %v7682_v11 = vpop.eup %7681 }
0x1109   :  { %v4385_v0 = vmul.f32 %v7682_v11, %v11460_v61  ;;  %v3893_v43 = vpop.xlane.xlu0 %3892  ;;  %v4197_v6 = vpop.xlane.xlu1 %4196 }
0x110a   :  { %v4010_v57 = vsub.f32 %v11474_v44, %v3893_v43  ;;  %v3529_v43 = vmul.f32 %v11273_v31, %v14229_v12 }
0x110b   :  { %v4448_v59 = vpack.c.bf16 %v4385_v0, %v4384_v36 }
0x110c   :  { %v11618_v1 = vpop.eup %7683  ;;  %v4084_v3 = vmul.f32 1.442695, %v4010_v57  ;;  %v3568_v25 = vpack.c.bf16 %v3530_v46, %v3529_v43  ;;  %v11643_v46 = vpop.f32.mrf.mxu0  ;;  %v8263_v43 = vld [vmem:[%s14011_s3 + $0xa0] sm:$0xff] }
0x110d   :  { %4488 = vmatmul.bf16.vlgmr.msrb.gmra.mxu2 %v4448_v59  ;;  %4210 = vadd.xlane.f32.xlu2 %v11618_v1  ;;  %v8262_v59 = vld [vmem:[%s14011_s3 + $0x98] sm:$0xff] }
0x110e   :  { %7685 = vpow2.f32 %v4084_v3  ;;  %v11641_v3 = vadd.f32 %v8262_v59, %v11517_v34  ;;  %v3531_v34 = vmul.f32 %v11282_v45, %v14229_v12 }
0x110f   :  { %7687 = vrcp.f32 %v4197_v6 }
0x1111   :  { %v4199_v30 = vpop.xlane.xlu2 %4198  ;;  %v3895_v23 = vpop.xlane.xlu1 %3894 }
0x1112   :  { %7689 = vrcp.f32 %v4199_v30  ;;  %v4011_v33 = vsub.f32 %v11487_v27, %v3895_v23 }
0x1114   :  { %v11628_v61 = vpop.eup %7685  ;;  %v4086_v44 = vmul.f32 1.442695, %v4011_v33 }
0x1115   :  { %4212 = vadd.xlane.f32.xlu2 %v11628_v61  ;;  %v7688_v6 = vpop.eup %7687 }
0x1116   :  { %7691 = vpow2.f32 %v4086_v44  ;;  %v4386_v36 = vmul.f32 %v7688_v6, %v11476_v18  ;;  %v3532_v18 = vmul.f32 %v11287_v38, %v14229_v12  ;;  %v11658_v44 = vadd.f32 %v8263_v43, %v11537_v29 }
0x1117   :  { %6924 = vmatmul.msk.bf16.gmra.mxu0 %vm459_vm1, %v3568_v25 }
0x1118   :  { %v7690_v60 = vpop.eup %7689  ;;  %v3569_v38 = vpack.c.bf16 %v3532_v18, %v3531_v34 }
0x1119   :  { %v4201_v39 = vpop.xlane.xlu2 %4200  ;;  %v3897_v11 = vpop.xlane.xlu1 %3896  ;;  %v4387_v27 = vmul.f32 %v7690_v60, %v11489_v26 }
0x111a   :  { %v4012_v0 = vsub.f32 %v11501_v63, %v3897_v11  ;;  %v11661_v60 = vpop.f32.mrf.mxu0 }
0x111b   :  { %v4449_v31 = vpack.c.bf16 %v4387_v27, %v4386_v36 }
0x111c   :  { %v11635_v57 = vpop.eup %7691  ;;  %v4088_v30 = vmul.f32 1.442695, %v4012_v0 }
0x111d   :  { %4493 = vmatmul.bf16.gmra.mxu2 %v4449_v31  ;;  %4214 = vadd.xlane.f32.xlu0 %v11635_v57  ;;  %v8264_v31 = vld [vmem:[%s14011_s3 + $0xa8] sm:$0xff] }
0x111e   :  { %7693 = vpow2.f32 %v4088_v30  ;;  %3910 = vmax.xlane.f32.xlu2 %v11641_v3  ;;  %v11674_v59 = vadd.f32 %v8264_v31, %v11552_v16  ;;  %v3533_v16 = vmul.f32 %v11293_v48, %v14229_v12  ;;  %v3535_v31 = vmul.f32 %v11303_v50, %v14229_v12 }
0x111f   :  { %7695 = vrcp.f32 %v4201_v39 }
0x1121   :  { %v4203_v26 = vpop.xlane.xlu0 %4202  ;;  %v3899_v63 = vpop.xlane.xlu2 %3898 }
0x1122   :  { %7697 = vrcp.f32 %v4203_v26  ;;  %v4013_v23 = vsub.f32 %v11513_v53, %v3899_v63 }
0x1124   :  { %v11652_v33 = vpop.eup %7693  ;;  %v4090_v25 = vmul.f32 1.442695, %v4013_v23  ;;  %v8265_v23 = vld [vmem:[%s14011_s3 + $0xb0] sm:$0xff] }
0x1125   :  { %4216 = vadd.xlane.f32.xlu0 %v11652_v33  ;;  %v7696_v6 = vpop.eup %7695  ;;  %v11691_v34 = vadd.f32 %v8265_v23, %v11573_v35 }
0x1126   :  { %7699 = vpow2.f32 %v4090_v25  ;;  %3912 = vmax.xlane.f32.xlu2 %v11658_v44  ;;  %v4388_v11 = vmul.f32 %v7696_v6, %v11503_v42  ;;  %v11678_v42 = vpop.f32.mrf.mxu0 }
0x1127   :  { %6925 = vmatmul.msk.bf16.gmra.mxu0 %vm459_vm1, %v3569_v38 }
0x1128   :  { %v7698_v45 = vpop.eup %7697 }
0x1129   :  { %v4205_v53 = vpop.xlane.xlu0 %4204  ;;  %v3901_v39 = vpop.xlane.xlu2 %3900  ;;  %v4389_v29 = vmul.f32 %v7698_v45, %v11515_v55  ;;  %v3534_v55 = vmul.f32 %v11296_v28, %v14229_v12 }
0x112a   :  { %v4014_v36 = vsub.f32 %v11530_v20, %v3901_v39 }
0x112b   :  { %v4450_v27 = vpack.c.bf16 %v4389_v29, %v4388_v11  ;;  %v3570_v28 = vpack.c.bf16 %v3534_v55, %v3533_v16  ;;  %v8266_v29 = vld [vmem:[%s14011_s3 + $0xb8] sm:$0xff] }
0x112c   :  { %v11668_v0 = vpop.eup %7699  ;;  %v4092_v30 = vmul.f32 1.442695, %v4014_v36  ;;  %v11709_v36 = vadd.f32 %v8266_v29, %v11585_v32  ;;  %v8267_v32 = vld [vmem:[%s14011_s3 + $0xc0] sm:$0xff] }
0x112d   :  { %4498 = vmatmul.bf16.gmra.mxu2 %v4450_v27  ;;  %4218 = vadd.xlane.f32.xlu1 %v11668_v0  ;;  %v11724_v55 = vadd.f32 %v8267_v32, %v11589_v47 }
0x112e   :  { %7701 = vpow2.f32 %v4092_v30  ;;  %3914 = vmax.xlane.f32.xlu0 %v11674_v59 }
0x112f   :  { %7703 = vrcp.f32 %v4205_v53  ;;  %v11701_v53 = vpop.f32.mrf.mxu0 }
0x1131   :  { %v4207_v20 = vpop.xlane.xlu1 %4206  ;;  %v3903_v18 = vpop.xlane.xlu0 %3902 }
0x1132   :  { %7705 = vrcp.f32 %v4207_v20  ;;  %v4015_v26 = vsub.f32 %v11544_v17, %v3903_v18 }
0x1134   :  { %v11685_v63 = vpop.eup %7701  ;;  %v4094_v43 = vmul.f32 1.442695, %v4015_v26  ;;  %v8268_v26 = vld [vmem:[%s14011_s3 + $0xc8] sm:$0xff] }
0x1135   :  { %4220 = vadd.xlane.f32.xlu1 %v11685_v63  ;;  %v7704_v25 = vpop.eup %7703  ;;  %v11736_v47 = vadd.f32 %v8268_v26, %v11596_v62  ;;  %v8269_v62 = vld [vmem:[%s14011_s3 + $0xd0] sm:$0xff] }
0x1136   :  { %7707 = vpow2.f32 %v4094_v43  ;;  %3916 = vmax.xlane.f32.xlu0 %v11691_v34  ;;  %v4390_v6 = vmul.f32 %v7704_v25, %v11532_v2  ;;  %v3536_v2 = vmul.f32 %v11309_v41, %v14229_v12  ;;  %v11752_v25 = vadd.f32 %v8269_v62, %v11602_v4 }
0x1137   :  { %6926 = vmatmul.msk.bf16.gmra.mxu0 %vm459_vm1, %v3570_v28  ;;  %v11726_v18 = vpop.f32.mrf.mxu0  ;;  %v3537_v28 = vmul.f32 %v11312_v24, %v14229_v12  ;;  %v8270_v24 = vld [vmem:[%s14011_s3 + $0xd8] sm:$0xff]  ;;  %v3540_v4 = vmul.f32 %v11328_v7, %v14229_v12  ;;  %v3542_v7 = vmul.f32 %v11337_v13, %v14229_v12 }
0x1138   :  { %v7706_v48 = vpop.eup %7705  ;;  %v3571_v41 = vpack.c.bf16 %v3536_v2, %v3535_v31 }
0x1139   :  { %v11696_v17 = vpop.xlane.xlu1 %4208  ;;  %v3905_v38 = vpop.xlane.xlu0 %3904  ;;  %v4391_v45 = vmul.f32 %v7706_v48, %v11546_v10 }
0x113a   :  { %v4016_v35 = vsub.f32 %v11560_v37, %v3905_v38 }
0x113b   :  { %v4451_v39 = vpack.c.bf16 %v4391_v45, %v4390_v6  ;;  %v11765_v6 = vadd.f32 %v8270_v24, %v11605_v49  ;;  %v3539_v45 = vmul.f32 %v11321_v40, %v14229_v12  ;;  %v3541_v40 = vmul.f32 %v11334_v58, %v14229_v12 }
0x113c   :  { %v11703_v11 = vpop.eup %7707  ;;  %v4096_v27 = vmul.f32 1.442695, %v4016_v35  ;;  %v8271_v35 = vld [vmem:[%s14011_s3 + $0xe0] sm:$0xff] }
0x113d   :  { %4503 = vmatmul.bf16.gmra.mxu2 %v4451_v39  ;;  %4222 = vadd.xlane.f32.xlu2 %v11703_v11  ;;  %v11776_v39 = vadd.f32 %v8271_v35, %v11613_v8  ;;  %v3573_v49 = vpack.c.bf16 %v3540_v4, %v3539_v45  ;;  %v3574_v2 = vpack.c.bf16 %v3542_v7, %v3541_v40 }
0x113e   :  { %7709 = vpow2.f32 %v4096_v27  ;;  %3918 = vmax.xlane.f32.xlu1 %v11709_v36 }
0x113f   :  { %v11742_v43 = vpop.f32.mrf.mxu0 }
0x1141   :  { %v3907_v10 = vpop.xlane.xlu1 %3906 }
0x1142   :  { %v4017_v37 = vsub.f32 %v11571_v19, %v3907_v10 }
0x1144   :  { %v11718_v30 = vpop.eup %7709  ;;  %v4098_v20 = vmul.f32 1.442695, %v4017_v37 }
0x1145   :  { %4224 = vadd.xlane.f32.xlu2 %v11718_v30 }
0x1146   :  { %7711 = vpow2.f32 %v4098_v20  ;;  %3920 = vmax.xlane.f32.xlu1 %v11724_v55 }
0x1147   :  { %6927 = vmatmul.msk.bf16.gmra.mxu0 %vm459_vm1, %v3571_v41 }
0x1149   :  { %v3909_v50 = vpop.xlane.xlu1 %3908 }
0x114a   :  { %v4018_v19 = vsub.f32 %v11583_v52, %v3909_v50  ;;  %v3538_v52 = vmul.f32 %v11318_v56, %v14229_v12  ;;  %v11759_v56 = vpop.f32.mrf.mxu0 }
0x114c   :  { %v11738_v16 = vpop.eup %7711  ;;  %v4100_v23 = vmul.f32 1.442695, %v4018_v19  ;;  %v3572_v38 = vpack.c.bf16 %v3538_v52, %v3537_v28 }
0x114d   :  { %4226 = vadd.xlane.f32.xlu0 %v11738_v16  ;;  %3922 = vmax.xlane.f32.xlu2 %v11736_v47 }
0x114e   :  { %7713 = vpow2.f32 %v4100_v23 }
0x114f   :  { %7715 = vrcp.f32 %v11696_v17 }
0x1152   :  { %v11778_v29 = vpop.f32.mrf.mxu0 }
0x1154   :  { %v11754_v48 = vpop.eup %7713 }
0x1155   :  { %4228 = vadd.xlane.f32.xlu0 %v11754_v48  ;;  %3924 = vmax.xlane.f32.xlu2 %v11752_v25  ;;  %v7716_v37 = vpop.eup %7715 }
0x1156   :  { %v4392_v20 = vmul.f32 %v7716_v37, %v11562_v54 }
0x1157   :  { %6928 = vmatmul.msk.bf16.gmra.mxu0 %vm459_vm1, %v3572_v38 }
0x115a   :  { %v11782_v27 = vpop.f32.mrf.mxu0 }
0x115d   :  { %3926 = vmax.xlane.f32.xlu0 %v11765_v6 }
0x1162   :  { %v11788_v10 = vpop.f32.mrf.mxu0 }
0x1165   :  { %3928 = vmax.xlane.f32.xlu0 %v11776_v39 }
0x1167   :  { %6929 = vmatmul.msk.bf16.gmra.mxu0 %vm459_vm1, %v3573_v49 }
0x1177   :  { %6930 = vmatmul.msk.bf16.gmra.mxu0 %vm459_vm1, %v3574_v2 }
0x1180   :  { %v4211_v8 = vpop.xlane.xlu2 %4210 }
0x1181   :  { %7717 = vrcp.f32 %v4211_v8 }
0x1187   :  { %v7718_v31 = vpop.eup %7717 }
0x1188   :  { %v4213_v32 = vpop.xlane.xlu2 %4212  ;;  %v4393_v41 = vmul.f32 %v7718_v31, %v11618_v1 }
0x1189   :  { %7719 = vrcp.f32 %v4213_v32 }
0x118a   :  { %v4452_v13 = vpack.c.bf16 %v4393_v41, %v4392_v20 }
0x118c   :  { %4508 = vmatmul.bf16.gmra.mxu2 %v4452_v13 }
0x118f   :  { %v7720_v23 = vpop.eup %7719 }
0x1190   :  { %v4215_v58 = vpop.xlane.xlu0 %4214  ;;  %v4394_v28 = vmul.f32 %v7720_v23, %v11628_v61 }
0x1191   :  { %7721 = vrcp.f32 %v4215_v58  ;;  %v3911_v50 = vpop.xlane.xlu2 %3910 }
0x1192   :  { %v4019_v19 = vsub.f32 %v11641_v3, %v3911_v50 }
0x1194   :  { %v4102_v26 = vmul.f32 1.442695, %v4019_v19 }
0x1196   :  { %7723 = vpow2.f32 %v4102_v26 }
0x1197   :  { %v7722_v17 = vpop.eup %7721 }
0x1198   :  { %v4217_v52 = vpop.xlane.xlu0 %4216  ;;  %v4395_v62 = vmul.f32 %v7722_v17, %v11635_v57 }
0x1199   :  { %v3913_v54 = vpop.xlane.xlu2 %3912 }
0x119a   :  { %v4020_v1 = vsub.f32 %v11658_v44, %v3913_v54  ;;  %v4453_v38 = vpack.c.bf16 %v4395_v62, %v4394_v28  ;;  %v8274_v62 = vld [vmem:[%s14011_s3 + $0xf8] sm:$0xff] }
0x119b   :  { %v11836_v54 = vadd.f32 %v8274_v62, %v11661_v60  ;;  %v8275_v60 = vld [vmem:[%s14011_s3 + $0x100] sm:$0xff] }
0x119c   :  { %v11798_v24 = vpop.eup %7723  ;;  %v4104_v4 = vmul.f32 1.442695, %v4020_v1  ;;  %4513 = vmatmul.bf16.gmra.mxu2 %v4453_v38 }
0x119d   :  { %4230 = vadd.xlane.f32.xlu1 %v11798_v24 }
0x119e   :  { %7725 = vpow2.f32 %v4104_v4 }
0x119f   :  { %7727 = vrcp.f32 %v4217_v52 }
0x11a0   :  { %v4219_v3 = vpop.xlane.xlu1 %4218 }
0x11a1   :  { %7729 = vrcp.f32 %v4219_v3  ;;  %v3915_v45 = vpop.xlane.xlu0 %3914  ;;  %v11849_v3 = vadd.f32 %v8275_v60, %v11678_v42 }
0x11a2   :  { %v4021_v35 = vsub.f32 %v11674_v59, %v3915_v45  ;;  %v8272_v59 = vld [vmem:[%s14011_s3 + $0xe8] sm:$0xff] }
0x11a3   :  { %v11812_v32 = vadd.f32 %v8272_v59, %v11623_v5  ;;  %v8273_v5 = vld [vmem:[%s14011_s3 + $0xf0] sm:$0xff] }
0x11a4   :  { %v11802_v61 = vpop.eup %7725  ;;  %v4106_v57 = vmul.f32 1.442695, %v4021_v35  ;;  %v11823_v13 = vadd.f32 %v8273_v5, %v11643_v46 }
0x11a5   :  { %v7728_v49 = vpop.eup %7727  ;;  %4232 = vadd.xlane.f32.xlu1 %v11802_v61 }
0x11a6   :  { %7731 = vpow2.f32 %v4106_v57  ;;  %v4396_v40 = vmul.f32 %v7728_v49, %v11652_v33 }
0x11a7   :  { %v7730_v44 = vpop.eup %7729 }
0x11a8   :  { %v4221_v7 = vpop.xlane.xlu1 %4220  ;;  %v4397_v2 = vmul.f32 %v7730_v44, %v11668_v0 }
0x11a9   :  { %v3917_v8 = vpop.xlane.xlu0 %3916 }
0x11aa   :  { %v4022_v37 = vsub.f32 %v11691_v34, %v3917_v8  ;;  %v4454_v31 = vpack.c.bf16 %v4397_v2, %v4396_v40  ;;  %v8276_v8 = vld [vmem:[%s14011_s3 + $0x108] sm:$0xff] }
0x11ac   :  { %v11814_v20 = vpop.eup %7731  ;;  %v4108_v41 = vmul.f32 1.442695, %v4022_v37  ;;  %4518 = vmatmul.bf16.gmra.mxu2 %v4454_v31  ;;  %v11862_v37 = vadd.f32 %v8276_v8, %v11701_v53 }
0x11ad   :  { %4234 = vadd.xlane.f32.xlu2 %v11814_v20  ;;  %3930 = vmax.xlane.f32.xlu1 %v11812_v32 }
0x11ae   :  { %7733 = vpow2.f32 %v4108_v41 }
0x11af   :  { %7735 = vrcp.f32 %v4221_v7 }
0x11b0   :  { %v4223_v33 = vpop.xlane.xlu2 %4222 }
0x11b1   :  { %v3919_v0 = vpop.xlane.xlu1 %3918  ;;  %7737 = vrcp.f32 %v4223_v33 }
0x11b2   :  { %v4023_v34 = vsub.f32 %v11709_v36, %v3919_v0 }
0x11b4   :  { %v11825_v58 = vpop.eup %7733  ;;  %v4110_v50 = vmul.f32 1.442695, %v4023_v34 }
0x11b5   :  { %v7736_v19 = vpop.eup %7735  ;;  %4236 = vadd.xlane.f32.xlu2 %v11825_v58  ;;  %3932 = vmax.xlane.f32.xlu1 %v11823_v13 }
0x11b6   :  { %7739 = vpow2.f32 %v4110_v50  ;;  %v4398_v36 = vmul.f32 %v7736_v19, %v11685_v63 }
0x11b7   :  { %v7738_v26 = vpop.eup %7737 }
0x11b8   :  { %v4225_v23 = vpop.xlane.xlu2 %4224  ;;  %v4399_v17 = vmul.f32 %v7738_v26, %v11703_v11  ;;  %v11842_v11 = vpop.f32.mrf.mxu2 }
0x11b9   :  { %v3921_v52 = vpop.xlane.xlu1 %3920 }
0x11ba   :  { %v4024_v28 = vsub.f32 %v11724_v55, %v3921_v52  ;;  %v4455_v46 = vpack.c.bf16 %v4399_v17, %v4398_v36  ;;  %v8280_v52 = vld [vmem:[%s14011_s3 + $0x128] sm:$0xff] }
0x11bc   :  { %v11838_v1 = vpop.eup %7739  ;;  %v4112_v38 = vmul.f32 1.442695, %v4024_v28  ;;  %4523 = vmatmul.bf16.gmra.mxu2 %v4455_v46  ;;  %v11912_v28 = vadd.f32 %v8280_v52, %v11778_v29 }
0x11bd   :  { %3934 = vmax.xlane.f32.xlu2 %v11836_v54  ;;  %4238 = vadd.xlane.f32.xlu0 %v11838_v1 }
0x11be   :  { %7741 = vpow2.f32 %v4112_v38 }
0x11bf   :  { %7743 = vrcp.f32 %v4225_v23 }
0x11c0   :  { %v4227_v63 = vpop.xlane.xlu0 %4226  ;;  %v3923_v55 = vpop.xlane.xlu2 %3922 }
0x11c1   :  { %7745 = vrcp.f32 %v4227_v63  ;;  %v4025_v4 = vsub.f32 %v11736_v47, %v3923_v55  ;;  %v11864_v31 = vpop.f32.mrf.mxu2 }
0x11c3   :  { %v4114_v35 = vmul.f32 1.442695, %v4025_v4 }
0x11c4   :  { %v11851_v45 = vpop.eup %7741 }
0x11c5   :  { %v7744_v57 = vpop.eup %7743  ;;  %3936 = vmax.xlane.f32.xlu2 %v11849_v3  ;;  %4240 = vadd.xlane.f32.xlu0 %v11851_v45  ;;  %7747 = vpow2.f32 %v4114_v35 }
0x11c6   :  { %v4400_v47 = vmul.f32 %v7744_v57, %v11718_v30 }
0x11c7   :  { %v7746_v49 = vpop.eup %7745 }
0x11c8   :  { %v4229_v44 = vpop.xlane.xlu0 %4228  ;;  %v4401_v7 = vmul.f32 %v7746_v49, %v11738_v16  ;;  %v3925_v40 = vpop.xlane.xlu2 %3924 }
0x11c9   :  { %v4026_v2 = vsub.f32 %v11752_v25, %v3925_v40  ;;  %v8277_v25 = vld [vmem:[%s14011_s3 + $0x110] sm:$0xff]  ;;  %v11879_v34 = vpop.f32.mrf.mxu2 }
0x11ca   :  { %v4456_v42 = vpack.c.bf16 %v4401_v7, %v4400_v47  ;;  %v11875_v53 = vadd.f32 %v8277_v25, %v11726_v18  ;;  %v8278_v18 = vld [vmem:[%s14011_s3 + $0x118] sm:$0xff] }
0x11cb   :  { %v11866_v59 = vpop.eup %7747  ;;  %v4116_v41 = vmul.f32 1.442695, %v4026_v2  ;;  %v11890_v19 = vadd.f32 %v8278_v18, %v11742_v43 }
0x11cc   :  { %4528 = vmatmul.bf16.gmra.mxu2 %v4456_v42  ;;  %4242 = vadd.xlane.f32.xlu1 %v11866_v59 }
0x11cd   :  { %3938 = vmax.xlane.f32.xlu0 %v11862_v37  ;;  %7749 = vpow2.f32 %v4116_v41 }
0x11d0   :  { %v3927_v30 = vpop.xlane.xlu0 %3926 }
0x11d1   :  { %v4027_v16 = vsub.f32 %v11765_v6, %v3927_v30  ;;  %v11894_v23 = vpop.f32.mrf.mxu2 }
0x11d3   :  { %v4118_v33 = vmul.f32 1.442695, %v4027_v16  ;;  %v11877_v0 = vpop.eup %7749 }
0x11d4   :  { %4244 = vadd.xlane.f32.xlu1 %v11877_v0 }
0x11d5   :  { %7751 = vpow2.f32 %v4118_v33  ;;  %3940 = vmax.xlane.f32.xlu0 %v11875_v53 }
0x11d8   :  { %v3929_v5 = vpop.xlane.xlu0 %3928 }
0x11d9   :  { %v4028_v6 = vsub.f32 %v11776_v39, %v3929_v5  ;;  %v8279_v39 = vld [vmem:[%s14011_s3 + $0x120] sm:$0xff]  ;;  %v11906_v43 = vpop.f32.mrf.mxu2 }
0x11da   :  { %v11902_v17 = vadd.f32 %v8279_v39, %v11759_v56  ;;  %v8281_v56 = vld [vmem:[%s14011_s3 + $0x130] sm:$0xff] }
0x11db   :  { %v11884_v50 = vpop.eup %7751  ;;  %v4120_v26 = vmul.f32 1.442695, %v4028_v6  ;;  %v11919_v46 = vadd.f32 %v8281_v56, %v11782_v27 }
0x11dc   :  { %4246 = vadd.xlane.f32.xlu2 %v11884_v50  ;;  %3942 = vmax.xlane.f32.xlu1 %v11890_v19 }
0x11dd   :  { %7753 = vpow2.f32 %v4120_v26 }
0x11de   :  { %7755 = vrcp.f32 %v4229_v44 }
0x11e1   :  { %v11921_v62 = vpop.f32.mrf.mxu2 }
0x11e3   :  { %v11896_v36 = vpop.eup %7753 }
0x11e4   :  { %4248 = vadd.xlane.f32.xlu2 %v11896_v36  ;;  %3944 = vmax.xlane.f32.xlu1 %v11902_v17  ;;  %v7756_v4 = vpop.eup %7755 }
0x11e5   :  { %v4402_v27 = vmul.f32 %v7756_v4, %v11754_v48 }
0x11e9   :  { %v11924_v38 = vpop.f32.mrf.mxu2 }
0x11ec   :  { %3946 = vmax.xlane.f32.xlu2 %v11912_v28 }
0x11f1   :  { %v11926_v63 = vpop.f32.mrf.mxu2 }
0x11f4   :  { %3948 = vmax.xlane.f32.xlu2 %v11919_v46 }
0x120f   :  { %v11928_v29 = vpop.f32.mrf.mxu2 }
0x1210   :  { %v4231_v55 = vpop.xlane.xlu1 %4230 }
0x1211   :  { %7757 = vrcp.f32 %v4231_v55 }
0x1217   :  { %v7758_v60 = vpop.eup %7757  ;;  %v11930_v35 = vpop.f32.mrf.mxu2 }
0x1218   :  { %v4233_v57 = vpop.xlane.xlu1 %4232  ;;  %v4403_v49 = vmul.f32 %v7758_v60, %v11798_v24 }
0x1219   :  { %7759 = vrcp.f32 %v4233_v57 }
0x121a   :  { %v4457_v47 = vpack.c.bf16 %v4403_v49, %v4402_v27 }
0x121c   :  { %4533 = vmatmul.bf16.gmra.mxu2 %v4457_v47 }
0x121f   :  { %v11934_v7 = vpop.f32.mrf.mxu2  ;;  %v7760_v8 = vpop.eup %7759 }
0x1220   :  { %v3931_v40 = vpop.xlane.xlu1 %3930  ;;  %v4235_v44 = vpop.xlane.xlu2 %4234  ;;  %v4404_v24 = vmul.f32 %v7760_v8, %v11802_v61 }
0x1221   :  { %v4029_v2 = vsub.f32 %v11812_v32, %v3931_v40  ;;  %7761 = vrcp.f32 %v4235_v44  ;;  %v3812_v32 = vpop.f32.mrf.mxu0 }
0x1223   :  { %v4122_v42 = vmul.f32 1.442695, %v4029_v2 }
0x1225   :  { %7763 = vpow2.f32 %v4122_v42 }
0x1227   :  { %v7762_v41 = vpop.eup %7761  ;;  %v11937_v30 = vpop.f32.mrf.mxu2 }
0x1228   :  { %v3933_v16 = vpop.xlane.xlu1 %3932  ;;  %v4237_v48 = vpop.xlane.xlu2 %4236  ;;  %v4405_v25 = vmul.f32 %v7762_v41, %v11814_v20 }
0x1229   :  { %v4030_v33 = vsub.f32 %v11823_v13, %v3933_v16  ;;  %v3814_v4 = vpop.f32.mrf.mxu0 }
0x122a   :  { %v4458_v5 = vpack.c.bf16 %v4405_v25, %v4404_v24 }
0x122b   :  { %v11942_v6 = vpop.eup %7763  ;;  %v4124_v18 = vmul.f32 1.442695, %v4030_v33 }
0x122c   :  { %4250 = vadd.xlane.f32.xlu0 %v11942_v6  ;;  %4538 = vmatmul.bf16.gmra.mxu2 %v4458_v5 }
0x122d   :  { %7765 = vpow2.f32 %v4124_v18 }
0x122e   :  { %7767 = vrcp.f32 %v4237_v48 }
0x122f   :  { %v11945_v26 = vpop.f32.mrf.mxu2 }
0x1230   :  { %v4239_v39 = vpop.xlane.xlu0 %4238  ;;  %v3935_v52 = vpop.xlane.xlu2 %3934 }
0x1231   :  { %7769 = vrcp.f32 %v4239_v39  ;;  %v4031_v61 = vsub.f32 %v11836_v54, %v3935_v52  ;;  %v8282_v54 = vld [vmem:[%s14011_s3 + $0x138] sm:$0xff]  ;;  %v3817_v48 = vpop.f32.mrf.mxu0 }
0x1232   :  { %v11960_v44 = vadd.f32 %v8282_v54, %v11788_v10  ;;  %v8283_v10 = vld [vmem:[%s14011_s3 + $0x140] sm:$0xff] }
0x1233   :  { %v11948_v20 = vpop.eup %7765  ;;  %v4126_v13 = vmul.f32 1.442695, %v4031_v61  ;;  %v11972_v16 = vadd.f32 %v8283_v10, %v3812_v32 }
0x1234   :  { %4252 = vadd.xlane.f32.xlu0 %v11948_v20  ;;  %v7768_v56 = vpop.eup %7767 }
0x1235   :  { %7771 = vpow2.f32 %v4126_v13  ;;  %v4406_v49 = vmul.f32 %v7768_v56, %v11825_v58 }
0x1237   :  { %v7770_v55 = vpop.eup %7769  ;;  %v11951_v60 = vpop.f32.mrf.mxu2 }
0x1238   :  { %v4241_v57 = vpop.xlane.xlu0 %4240  ;;  %v3937_v27 = vpop.xlane.xlu2 %3936  ;;  %v4407_v47 = vmul.f32 %v7770_v55, %v11838_v1  ;;  %v8284_v55 = vld [vmem:[%s14011_s3 + $0x148] sm:$0xff] }
0x1239   :  { %v4032_v40 = vsub.f32 %v11849_v3, %v3937_v27 }
0x123a   :  { %v4459_v2 = vpack.c.bf16 %v4407_v47, %v4406_v49  ;;  %v3819_v49 = vpop.f32.mrf.mxu0 }
0x123b   :  { %v11962_v42 = vpop.eup %7771  ;;  %v4128_v8 = vmul.f32 1.442695, %v4032_v40 }
0x123c   :  { %3950 = vmax.xlane.f32.xlu0 %v11960_v44  ;;  %4543 = vmatmul.bf16.gmra.mxu2 %v4459_v2 }
0x123d   :  { %7773 = vpow2.f32 %v4128_v8  ;;  %4254 = vadd.xlane.f32.xlu1 %v11962_v42  ;;  %v8285_v8 = vld [vmem:[%s14011_s3 + $0x150] sm:$0xff] }
0x123e   :  { %7775 = vrcp.f32 %v4241_v57  ;;  %v11988_v57 = vadd.f32 %v8284_v55, %v3814_v4 }
0x123f   :  { %v11966_v58 = vpop.f32.mrf.mxu2  ;;  %v4243_v3 = vpop.xlane.xlu1 %4242 }
0x1240   :  { %v3939_v1 = vpop.xlane.xlu0 %3938  ;;  %7777 = vrcp.f32 %v4243_v3 }
0x1241   :  { %v4033_v41 = vsub.f32 %v11862_v37, %v3939_v1  ;;  %v12003_v1 = vadd.f32 %v8285_v8, %v3817_v48  ;;  %v8286_v48 = vld [vmem:[%s14011_s3 + $0x158] sm:$0xff] }
0x1242   :  { %v3822_v10 = vpop.f32.mrf.mxu0 }
0x1243   :  { %v11974_v24 = vpop.eup %7773  ;;  %v4130_v25 = vmul.f32 1.442695, %v4033_v41 }
0x1244   :  { %3952 = vmax.xlane.f32.xlu0 %v11972_v16  ;;  %v7776_v33 = vpop.eup %7775 }
0x1245   :  { %7779 = vpow2.f32 %v4130_v25  ;;  %4256 = vadd.xlane.f32.xlu1 %v11974_v24  ;;  %v4408_v52 = vmul.f32 %v7776_v33, %v11851_v45 }
0x1246   :  { %v7778_v5 = vpop.eup %7777 }
0x1247   :  { %v11978_v18 = vpop.f32.mrf.mxu2  ;;  %v4245_v39 = vpop.xlane.xlu1 %4244  ;;  %v4409_v32 = vmul.f32 %v7778_v5, %v11866_v59 }
0x1248   :  { %14230 = vst [vmem:[#allocation12_spill] sm:$0xff] %v11978_v18  ;;  %v3941_v37 = vpop.xlane.xlu0 %3940 }
0x1249   :  { %v4034_v61 = vsub.f32 %v11875_v53, %v3941_v37  ;;  %v4460_v13 = vpack.c.bf16 %v4409_v32, %v4408_v52  ;;  %v4649_v53 = vmul.f32 %v11842_v11, %v9295_v51  ;;  %v12013_v52 = vadd.f32 %v8286_v48, %v3819_v49 }
0x124b   :  { %v11983_v56 = vpop.eup %7779  ;;  %v4132_v27 = vmul.f32 1.442695, %v4034_v61 }
0x124c   :  { %4258 = vadd.xlane.f32.xlu2 %v11983_v56  ;;  %4548 = vmatmul.bf16.gmra.mxu2 %v4460_v13  ;;  %v8287_v13 = vld [vmem:[%s14011_s3 + $0x160] sm:$0xff] }
0x124d   :  { %7781 = vpow2.f32 %v4132_v27  ;;  %3954 = vmax.xlane.f32.xlu1 %v11988_v57  ;;  %v12023_v55 = vadd.f32 %v8287_v13, %v3822_v10 }
0x124e   :  { %7783 = vrcp.f32 %v4245_v39 }
0x124f   :  { %v4529_v45 = vpop.f32.mrf.mxu2  ;;  %v4247_v59 = vpop.xlane.xlu2 %4246 }
0x1250   :  { %v4665_v47 = vmul.f32 %v4529_v45, %v9298_v14  ;;  %v3943_v40 = vpop.xlane.xlu1 %3942  ;;  %7785 = vrcp.f32 %v4247_v59 }
0x1251   :  { %v4035_v4 = vsub.f32 %v11890_v19, %v3943_v40 }
0x1252   :  { %v11996_v54 = vadd.f32 %v4665_v47, %v4649_v53 }
0x1253   :  { %v11998_v2 = vpop.eup %7781  ;;  %v4134_v3 = vmul.f32 1.442695, %v4035_v4 }
0x1254   :  { %v7784_v41 = vpop.eup %7783  ;;  %4260 = vadd.xlane.f32.xlu2 %v11998_v2 }
0x1255   :  { %7787 = vpow2.f32 %v4134_v3  ;;  %3956 = vmax.xlane.f32.xlu1 %v12003_v1  ;;  %v4410_v25 = vmul.f32 %v7784_v41, %v11877_v0 }
0x1256   :  { %v7786_v11 = vpop.eup %7785 }
0x1257   :  { %v4249_v19 = vpop.xlane.xlu2 %4248  ;;  %v4411_v33 = vmul.f32 %v7786_v11, %v11884_v50  ;;  %v3824_v50 = vpop.f32.mrf.mxu0  ;;  %v8290_v11 = vld [vmem:[%s14011_s3 + $0x178] sm:$0xff] }
0x1258   :  { %v3945_v5 = vpop.xlane.xlu1 %3944 }
0x1259   :  { %v4036_v37 = vsub.f32 %v11902_v17, %v3945_v5  ;;  %v4461_v39 = vpack.c.bf16 %v4411_v33, %v4410_v25  ;;  %v8291_v33 = vld [vmem:[%s14011_s3 + $0x180] sm:$0xff] }
0x125b   :  { %v12015_v32 = vpop.eup %7787  ;;  %v4136_v61 = vmul.f32 1.442695, %v4036_v37  ;;  %v12060_v37 = vpop.f32.mrf.mxu2 }
0x125c   :  { %3958 = vmax.xlane.f32.xlu2 %v12013_v52  ;;  %4262 = vadd.xlane.f32.xlu0 %v12015_v32 }
0x125d   :  { %7789 = vpow2.f32 %v4136_v61  ;;  %4553 = vmatmul.bf16.gmra.mxu2 %v4461_v39  ;;  %v4651_v61 = vmul.f32 %v11879_v34, %v9295_v51  ;;  %v4653_v34 = vmul.f32 %v11906_v43, %v9295_v51 }
0x125f   :  { %v3947_v0 = vpop.xlane.xlu2 %3946  ;;  %v3827_v40 = vpop.f32.mrf.mxu0 }
0x1260   :  { %v4037_v17 = vsub.f32 %v11912_v28, %v3947_v0  ;;  %v8288_v28 = vld [vmem:[%s14011_s3 + $0x168] sm:$0xff] }
0x1261   :  { %v12035_v47 = vadd.f32 %v8288_v28, %v3824_v50 }
0x1262   :  { %v4138_v27 = vmul.f32 1.442695, %v4037_v17 }
0x1263   :  { %v12025_v49 = vpop.eup %7789 }
0x1264   :  { %7791 = vpow2.f32 %v4138_v27  ;;  %3960 = vmax.xlane.f32.xlu2 %v12023_v55  ;;  %4264 = vadd.xlane.f32.xlu0 %v12025_v49 }
0x1267   :  { %v3949_v45 = vpop.xlane.xlu2 %3948  ;;  %v3829_v41 = vpop.f32.mrf.mxu0 }
0x1268   :  { %v4038_v59 = vsub.f32 %v11919_v46, %v3949_v45  ;;  %v8289_v46 = vld [vmem:[%s14011_s3 + $0x170] sm:$0xff]  ;;  %v12051_v10 = vadd.f32 %v8290_v11, %v3829_v41 }
0x1269   :  { %v12044_v3 = vadd.f32 %v8289_v46, %v3827_v40 }
0x126a   :  { %v12030_v53 = vpop.eup %7791  ;;  %v4140_v4 = vmul.f32 1.442695, %v4038_v59 }
0x126b   :  { %4266 = vadd.xlane.f32.xlu1 %v12030_v53 }
0x126c   :  { %7793 = vpow2.f32 %v4140_v4  ;;  %3962 = vmax.xlane.f32.xlu0 %v12035_v47 }
0x126d   :  { %7795 = vrcp.f32 %v4249_v19 }
0x126f   :  { %v3832_v25 = vpop.f32.mrf.mxu0 }
0x1270   :  { %v12057_v5 = vadd.f32 %v8291_v33, %v3832_v25 }
0x1272   :  { %v12039_v8 = vpop.eup %7793 }
0x1273   :  { %4268 = vadd.xlane.f32.xlu1 %v12039_v8  ;;  %v7796_v17 = vpop.eup %7795 }
0x1274   :  { %3964 = vmax.xlane.f32.xlu0 %v12044_v3  ;;  %v4412_v59 = vmul.f32 %v7796_v17, %v11896_v36 }
0x1277   :  { %v3834_v25 = vpop.f32.mrf.mxu0 }
0x127b   :  { %3966 = vmax.xlane.f32.xlu1 %v12051_v10 }
0x1283   :  { %3968 = vmax.xlane.f32.xlu1 %v12057_v5 }
0x129f   :  { %v4251_v39 = vpop.xlane.xlu0 %4250  ;;  %v4534_v48 = vpop.f32.mrf.mxu2 }
0x12a0   :  { %7797 = vrcp.f32 %v4251_v39  ;;  %v4667_v0 = vmul.f32 %v4534_v48, %v9298_v14 }
0x12a2   :  { %v12065_v50 = vadd.f32 %v4667_v0, %v4651_v61 }
0x12a6   :  { %v7798_v13 = vpop.eup %7797 }
0x12a7   :  { %v4253_v27 = vpop.xlane.xlu0 %4252  ;;  %v12067_v45 = vpop.f32.mrf.mxu2  ;;  %v4413_v28 = vmul.f32 %v7798_v13, %v11942_v6 }
0x12a8   :  { %7799 = vrcp.f32 %v4253_v27 }
0x12a9   :  { %v4462_v19 = vpack.c.bf16 %v4413_v28, %v4412_v59  ;;  %v3837_v28 = vpop.f32.mrf.mxu0 }
0x12ab   :  { %4558 = vmatmul.bf16.gmra.mxu2 %v4462_v19 }
0x12ae   :  { %v7800_v36 = vpop.eup %7799 }
0x12af   :  { %v3951_v40 = vpop.xlane.xlu0 %3950  ;;  %v4539_v4 = vpop.f32.mrf.mxu2  ;;  %v4414_v43 = vmul.f32 %v7800_v36, %v11948_v20 }
0x12b0   :  { %v4039_v46 = vsub.f32 %v11960_v44, %v3951_v40  ;;  %v4669_v41 = vmul.f32 %v4539_v4, %v9298_v14  ;;  %v4255_v11 = vpop.xlane.xlu1 %4254 }
0x12b1   :  { %7801 = vrcp.f32 %v4255_v11  ;;  %v3839_v36 = vpop.f32.mrf.mxu0 }
0x12b2   :  { %v4142_v33 = vmul.f32 1.442695, %v4039_v46  ;;  %v12075_v39 = vadd.f32 %v4669_v41, %v4653_v34 }
0x12b4   :  { %7803 = vpow2.f32 %v4142_v33 }
0x12b7   :  { %v7802_v6 = vpop.eup %7801  ;;  %v3953_v48 = vpop.xlane.xlu0 %3952 }
0x12b8   :  { %v12077_v61 = vpop.f32.mrf.mxu2  ;;  %v4040_v0 = vsub.f32 %v11972_v16, %v3953_v48  ;;  %v4257_v17 = vpop.xlane.xlu1 %4256  ;;  %v4415_v44 = vmul.f32 %v7802_v6, %v11962_v42  ;;  %v4655_v16 = vmul.f32 %v11924_v38, %v9295_v51 }
0x12ba   :  { %v12082_v13 = vpop.eup %7803  ;;  %v4144_v27 = vmul.f32 1.442695, %v4040_v0  ;;  %v4463_v59 = vpack.c.bf16 %v4415_v44, %v4414_v43 }
0x12bb   :  { %4270 = vadd.xlane.f32.xlu2 %v12082_v13 }
0x12bc   :  { %7805 = vpow2.f32 %v4144_v27  ;;  %4563 = vmatmul.bf16.gmra.mxu2 %v4463_v59 }
0x12bd   :  { %7807 = vrcp.f32 %v4257_v17 }
0x12bf   :  { %v4259_v40 = vpop.xlane.xlu2 %4258 }
0x12c0   :  { %v4544_v19 = vpop.f32.mrf.mxu2  ;;  %v3955_v20 = vpop.xlane.xlu1 %3954  ;;  %7809 = vrcp.f32 %v4259_v40  ;;  %v4657_v40 = vmul.f32 %v11928_v29, %v9295_v51 }
0x12c1   :  { %v4671_v4 = vmul.f32 %v4544_v19, %v9298_v14  ;;  %v4041_v42 = vsub.f32 %v11988_v57, %v3955_v20  ;;  %v8292_v57 = vld [vmem:[%s14011_s3 + $0x188] sm:$0xff]  ;;  %v3842_v20 = vpop.f32.mrf.mxu0 }
0x12c2   :  { %v12089_v34 = vpop.eup %7805  ;;  %v12101_v43 = vadd.f32 %v8292_v57, %v3834_v25 }
0x12c3   :  { %v12091_v46 = vadd.f32 %v4671_v4, %v4655_v16  ;;  %v4146_v41 = vmul.f32 1.442695, %v4041_v42  ;;  %4272 = vadd.xlane.f32.xlu2 %v12089_v34  ;;  %v7808_v11 = vpop.eup %7807  ;;  %v8293_v16 = vld [vmem:[%s14011_s3 + $0x190] sm:$0xff] }
0x12c4   :  { %v4416_v48 = vmul.f32 %v7808_v11, %v11974_v24  ;;  %v12114_v4 = vadd.f32 %v8293_v16, %v3837_v28 }
0x12c5   :  { %7811 = vpow2.f32 %v4146_v41 }
0x12c6   :  { %v7810_v33 = vpop.eup %7809 }
0x12c7   :  { %v4261_v38 = vpop.xlane.xlu2 %4260  ;;  %v4417_v0 = vmul.f32 %v7810_v33, %v11983_v56 }
0x12c8   :  { %v12094_v6 = vpop.f32.mrf.mxu2  ;;  %v3957_v17 = vpop.xlane.xlu1 %3956 }
0x12c9   :  { %v4042_v44 = vsub.f32 %v12003_v1, %v3957_v17  ;;  %v4464_v27 = vpack.c.bf16 %v4417_v0, %v4416_v48 }
0x12cb   :  { %v12104_v59 = vpop.eup %7811  ;;  %v4148_v19 = vmul.f32 1.442695, %v4042_v44  ;;  %3970 = vmax.xlane.f32.xlu2 %v12101_v43 }
0x12cc   :  { %4274 = vadd.xlane.f32.xlu0 %v12104_v59  ;;  %4568 = vmatmul.bf16.gmra.mxu2 %v4464_v27  ;;  %v8294_v27 = vld [vmem:[%s14011_s3 + $0x198] sm:$0xff] }
0x12cd   :  { %7813 = vpow2.f32 %v4148_v19  ;;  %v12131_v19 = vadd.f32 %v8294_v27, %v3839_v36  ;;  %v4659_v36 = vmul.f32 %v11934_v7, %v9295_v51 }
0x12ce   :  { %7815 = vrcp.f32 %v4261_v38 }
0x12cf   :  { %v4263_v24 = vpop.xlane.xlu0 %4262  ;;  %v3959_v1 = vpop.xlane.xlu2 %3958 }
0x12d0   :  { %v4549_v56 = vpop.f32.mrf.mxu2  ;;  %7817 = vrcp.f32 %v4263_v24  ;;  %v4043_v42 = vsub.f32 %v12013_v52, %v3959_v1 }
0x12d1   :  { %v4673_v25 = vmul.f32 %v4549_v56, %v9298_v14  ;;  %v3844_v56 = vpop.f32.mrf.mxu0 }
0x12d2   :  { %v4150_v33 = vmul.f32 1.442695, %v4043_v42  ;;  %v8295_v42 = vld [vmem:[%s14011_s3 + $0x1a0] sm:$0xff] }
0x12d3   :  { %v12117_v41 = vadd.f32 %v4673_v25, %v4657_v40  ;;  %v12119_v11 = vpop.eup %7813  ;;  %3972 = vmax.xlane.f32.xlu2 %v12114_v4 }
0x12d4   :  { %v7816_v29 = vpop.eup %7815  ;;  %4276 = vadd.xlane.f32.xlu0 %v12119_v11  ;;  %7819 = vpow2.f32 %v4150_v33  ;;  %v12144_v33 = vadd.f32 %v8295_v42, %v3842_v20 }
0x12d5   :  { %v4418_v28 = vmul.f32 %v7816_v29, %v11998_v2 }
0x12d6   :  { %v7818_v38 = vpop.eup %7817 }
0x12d7   :  { %v4265_v48 = vpop.xlane.xlu0 %4264  ;;  %v4419_v17 = vmul.f32 %v7818_v38, %v12015_v32  ;;  %v3961_v52 = vpop.xlane.xlu2 %3960 }
0x12d8   :  { %v12123_v0 = vpop.f32.mrf.mxu2  ;;  %v4044_v57 = vsub.f32 %v12023_v55, %v3961_v52  ;;  %7821 = vrcp.f32 %v4265_v48 }
0x12d9   :  { %v4465_v44 = vpack.c.bf16 %v4419_v17, %v4418_v28  ;;  %v3847_v28 = vpop.f32.mrf.mxu0 }
0x12da   :  { %v12133_v24 = vpop.eup %7819  ;;  %v4152_v40 = vmul.f32 1.442695, %v4044_v57 }
0x12db   :  { %4278 = vadd.xlane.f32.xlu1 %v12133_v24 }
0x12dc   :  { %3974 = vmax.xlane.f32.xlu0 %v12131_v19  ;;  %4573 = vmatmul.bf16.gmra.mxu2 %v4465_v44  ;;  %7823 = vpow2.f32 %v4152_v40 }
0x12de   :  { %v4267_v2 = vpop.xlane.xlu1 %4266  ;;  %v7822_v16 = vpop.eup %7821 }
0x12df   :  { %v3963_v32 = vpop.xlane.xlu0 %3962  ;;  %7825 = vrcp.f32 %v4267_v2  ;;  %v4420_v17 = vmul.f32 %v7822_v16, %v12025_v49  ;;  %v8296_v2 = vld [vmem:[%s14011_s3 + $0x1a8] sm:$0xff] }
0x12e0   :  { %v4045_v55 = vsub.f32 %v12035_v47, %v3963_v32  ;;  %v4554_v25 = vpop.f32.mrf.mxu2  ;;  %v12160_v32 = vadd.f32 %v8296_v2, %v3844_v56  ;;  %v8301_v2 = vld [vmem:[%s14011_s3 + $0x1d0] sm:$0xff] }
0x12e1   :  { %v4675_v1 = vmul.f32 %v4554_v25, %v9298_v14 }
0x12e2   :  { %v4154_v29 = vmul.f32 1.442695, %v4045_v55  ;;  %v12146_v38 = vpop.eup %7823 }
0x12e3   :  { %v12148_v48 = vadd.f32 %v4675_v1, %v4659_v36  ;;  %4280 = vadd.xlane.f32.xlu1 %v12146_v38  ;;  %v8297_v36 = vld [vmem:[%s14011_s3 + $0x1b0] sm:$0xff] }
0x12e4   :  { %7827 = vpow2.f32 %v4154_v29  ;;  %3976 = vmax.xlane.f32.xlu0 %v12144_v33  ;;  %v12170_v1 = vadd.f32 %v8297_v36, %v3847_v28  ;;  %v4661_v36 = vmul.f32 %v11945_v26, %v9295_v51 }
0x12e5   :  { %v7826_v47 = vpop.eup %7825 }
0x12e6   :  { %v4269_v7 = vpop.xlane.xlu1 %4268  ;;  %v4421_v52 = vmul.f32 %v7826_v47, %v12030_v53  ;;  %v3849_v53 = vpop.f32.mrf.mxu0 }
0x12e7   :  { %v3965_v57 = vpop.xlane.xlu0 %3964 }
0x12e8   :  { %v4046_v20 = vsub.f32 %v12044_v3, %v3965_v57  ;;  %v4466_v44 = vpack.c.bf16 %v4421_v52, %v4420_v17 }
0x12ea   :  { %v12155_v27 = vpop.eup %7827  ;;  %v4156_v40 = vmul.f32 1.442695, %v4046_v20  ;;  %v8300_v20 = vld [vmem:[%s14011_s3 + $0x1c8] sm:$0xff] }
0x12eb   :  { %4282 = vadd.xlane.f32.xlu2 %v12155_v27  ;;  %3978 = vmax.xlane.f32.xlu1 %v12160_v32 }
0x12ec   :  { %7829 = vpow2.f32 %v4156_v40  ;;  %4578 = vmatmul.bf16.gmra.mxu2 %v4466_v44 }
0x12ee   :  { %v3967_v49 = vpop.xlane.xlu1 %3966  ;;  %v3852_v47 = vpop.f32.mrf.mxu0 }
0x12ef   :  { %v4047_v3 = vsub.f32 %v12051_v10, %v3967_v49  ;;  %v8298_v10 = vld [vmem:[%s14011_s3 + $0x1b8] sm:$0xff] }
0x12f0   :  { %v12180_v29 = vadd.f32 %v8298_v10, %v3849_v53  ;;  %v12205_v53 = vpop.f32.mrf.mxu2 }
0x12f1   :  { %v4158_v55 = vmul.f32 1.442695, %v4047_v3 }
0x12f2   :  { %v12165_v25 = vpop.eup %7829 }
0x12f3   :  { %7831 = vpow2.f32 %v4158_v55  ;;  %4284 = vadd.xlane.f32.xlu2 %v12165_v25  ;;  %3980 = vmax.xlane.f32.xlu1 %v12170_v1 }
0x12f6   :  { %v3969_v56 = vpop.xlane.xlu1 %3968  ;;  %v3854_v57 = vpop.f32.mrf.mxu0 }
0x12f7   :  { %v4048_v16 = vsub.f32 %v12057_v5, %v3969_v56  ;;  %v8299_v5 = vld [vmem:[%s14011_s3 + $0x1c0] sm:$0xff]  ;;  %v12196_v44 = vadd.f32 %v8300_v20, %v3854_v57 }
0x12f8   :  { %v12189_v52 = vadd.f32 %v8299_v5, %v3852_v47 }
0x12f9   :  { %v12175_v42 = vpop.eup %7831  ;;  %v4160_v17 = vmul.f32 1.442695, %v4048_v16 }
0x12fa   :  { %4286 = vadd.xlane.f32.xlu0 %v12175_v42 }
0x12fb   :  { %7833 = vpow2.f32 %v4160_v17  ;;  %3982 = vmax.xlane.f32.xlu2 %v12180_v29 }
0x12fc   :  { %7835 = vrcp.f32 %v4269_v7 }
0x12fe   :  { %v3857_v40 = vpop.f32.mrf.mxu0 }
0x12ff   :  { %v12202_v49 = vadd.f32 %v8301_v2, %v3857_v40 }
0x1301   :  { %v12184_v28 = vpop.eup %7833 }
0x1302   :  { %4288 = vadd.xlane.f32.xlu0 %v12184_v28  ;;  %v7836_v10 = vpop.eup %7835 }
0x1303   :  { %3984 = vmax.xlane.f32.xlu2 %v12189_v52  ;;  %v4422_v57 = vmul.f32 %v7836_v10, %v12039_v8 }
0x130a   :  { %3986 = vmax.xlane.f32.xlu0 %v12196_v44 }
0x1312   :  { %3988 = vmax.xlane.f32.xlu0 %v12202_v49 }
0x132e   :  { %v4559_v3 = vpop.f32.mrf.mxu2  ;;  %v4271_v55 = vpop.xlane.xlu2 %4270 }
0x132f   :  { %v4677_v56 = vmul.f32 %v4559_v3, %v9298_v14  ;;  %7837 = vrcp.f32 %v4271_v55  ;;  %v4663_v55 = vmul.f32 %v11966_v58, %v9295_v51 }
0x1331   :  { %v12210_v16 = vadd.f32 %v4677_v56, %v4661_v36 }
0x1335   :  { %v7838_v47 = vpop.eup %7837 }
0x1336   :  { %v12212_v17 = vpop.f32.mrf.mxu2  ;;  %v4273_v5 = vpop.xlane.xlu2 %4272  ;;  %v4423_v20 = vmul.f32 %v7838_v47, %v12082_v13 }
0x1337   :  { %7839 = vrcp.f32 %v4273_v5 }
0x1338   :  { %v4467_v7 = vpack.c.bf16 %v4423_v20, %v4422_v57 }
0x133a   :  { %4583 = vmatmul.bf16.gmra.mxu2 %v4467_v7 }
0x133d   :  { %v7840_v8 = vpop.eup %7839 }
0x133e   :  { %v3971_v40 = vpop.xlane.xlu2 %3970 }
0x133f   :  { %v4275_v2 = vpop.xlane.xlu0 %4274  ;;  %v4564_v26 = vpop.f32.mrf.mxu2  ;;  %v4049_v3 = vsub.f32 %v12101_v43, %v3971_v40  ;;  %v4424_v43 = vmul.f32 %v7840_v8, %v12089_v34 }
0x1340   :  { %7841 = vrcp.f32 %v4275_v2  ;;  %v4679_v36 = vmul.f32 %v4564_v26, %v9298_v14  ;;  %v3859_v2 = vpop.f32.mrf.mxu0 }
0x1341   :  { %v4162_v56 = vmul.f32 1.442695, %v4049_v3 }
0x1342   :  { %v12220_v12 = vadd.f32 %v4679_v36, %v4663_v55 }
0x1343   :  { %7843 = vpow2.f32 %v4162_v56 }
0x1346   :  { %v7842_v13 = vpop.eup %7841  ;;  %v3973_v10 = vpop.xlane.xlu2 %3972 }
0x1347   :  { %v4277_v47 = vpop.xlane.xlu0 %4276  ;;  %v12222_v5 = vpop.f32.mrf.mxu2  ;;  %v4050_v57 = vsub.f32 %v12114_v4, %v3973_v10  ;;  %v4425_v20 = vmul.f32 %v7842_v13, %v12104_v59 }
0x1349   :  { %v12227_v58 = vpop.eup %7843  ;;  %v4164_v7 = vmul.f32 1.442695, %v4050_v57  ;;  %v4468_v40 = vpack.c.bf16 %v4425_v20, %v4424_v43 }
0x134a   :  { %4290 = vadd.xlane.f32.xlu1 %v12227_v58 }
0x134b   :  { %7845 = vpow2.f32 %v4164_v7  ;;  %4588 = vmatmul.bf16.gmra.mxu2 %v4468_v40  ;;  %v3862_v40 = vpop.f32.mrf.mxu0 }
0x134c   :  { %7847 = vrcp.f32 %v4277_v47 }
0x134e   :  { %v4279_v36 = vpop.xlane.xlu1 %4278 }
0x134f   :  { %v3975_v26 = vpop.xlane.xlu0 %3974  ;;  %v4569_v3 = vpop.f32.mrf.mxu2  ;;  %7849 = vrcp.f32 %v4279_v36 }
0x1350   :  { %v4051_v55 = vsub.f32 %v12131_v19, %v3975_v26  ;;  %v4697_v4 = vmul.f32 %v4569_v3, %v9545_v21  ;;  %v8302_v19 = vld [vmem:[%s14011_s3 + $0x1d8] sm:$0xff] }
0x1351   :  { %v12232_v34 = vpop.eup %7845  ;;  %v12243_v57 = vadd.f32 %v8302_v19, %v3859_v2 }
0x1352   :  { %v4166_v59 = vmul.f32 1.442695, %v4051_v55  ;;  %v12235_v56 = vadd.f32 %v4697_v4, %v11996_v54  ;;  %4292 = vadd.xlane.f32.xlu1 %v12232_v34  ;;  %v7848_v8 = vpop.eup %7847 }
0x1353   :  { %v4426_v54 = vmul.f32 %v7848_v8, %v12119_v11  ;;  %v8303_v11 = vld [vmem:[%s14011_s3 + $0x1e0] sm:$0xff]  ;;  %v3864_v19 = vpop.f32.mrf.mxu0 }
0x1354   :  { %7851 = vpow2.f32 %v4166_v59 }
0x1355   :  { %v7850_v13 = vpop.eup %7849 }
0x1356   :  { %v4281_v20 = vpop.xlane.xlu1 %4280  ;;  %v4427_v7 = vmul.f32 %v7850_v13, %v12133_v24  ;;  %v12255_v24 = vadd.f32 %v8303_v11, %v3862_v40 }
0x1357   :  { %v3977_v10 = vpop.xlane.xlu0 %3976  ;;  %v12238_v47 = vpop.f32.mrf.mxu2 }
0x1358   :  { %v4052_v43 = vsub.f32 %v12144_v33, %v3977_v10  ;;  %v4469_v55 = vpack.c.bf16 %v4427_v7, %v4426_v54 }
0x135a   :  { %v12248_v26 = vpop.eup %7851  ;;  %v4168_v3 = vmul.f32 1.442695, %v4052_v43  ;;  %3990 = vmax.xlane.f32.xlu1 %v12243_v57 }
0x135b   :  { %4294 = vadd.xlane.f32.xlu2 %v12248_v26  ;;  %4593 = vmatmul.bf16.gmra.mxu2 %v4469_v55 }
0x135c   :  { %7853 = vpow2.f32 %v4168_v3 }
0x135d   :  { %7855 = vrcp.f32 %v4281_v20 }
0x135e   :  { %v4283_v2 = vpop.xlane.xlu2 %4282  ;;  %v3979_v36 = vpop.xlane.xlu1 %3978 }
0x135f   :  { %v4574_v4 = vpop.f32.mrf.mxu2  ;;  %7857 = vrcp.f32 %v4283_v2  ;;  %v4053_v59 = vsub.f32 %v12160_v32, %v3979_v36 }
0x1360   :  { %v4699_v33 = vmul.f32 %v4574_v4, %v9545_v21 }
0x1361   :  { %v4170_v43 = vmul.f32 1.442695, %v4053_v59 }
0x1362   :  { %v12259_v8 = vpop.eup %7853  ;;  %v12262_v13 = vadd.f32 %v4699_v33, %v12065_v50  ;;  %3992 = vmax.xlane.f32.xlu1 %v12255_v24  ;;  %v8304_v50 = vld [vmem:[%s14011_s3 + $0x1e8] sm:$0xff] }
0x1363   :  { %v7856_v10 = vpop.eup %7855  ;;  %4296 = vadd.xlane.f32.xlu2 %v12259_v8  ;;  %7859 = vpow2.f32 %v4170_v43  ;;  %v12273_v2 = vadd.f32 %v8304_v50, %v3864_v19 }
0x1364   :  { %v4428_v7 = vmul.f32 %v7856_v10, %v12146_v38  ;;  %v3867_v38 = vpop.f32.mrf.mxu0 }
0x1365   :  { %v7858_v20 = vpop.eup %7857 }
0x1366   :  { %v4285_v54 = vpop.xlane.xlu2 %4284  ;;  %v4429_v40 = vmul.f32 %v7858_v20, %v12155_v27  ;;  %v3981_v3 = vpop.xlane.xlu1 %3980 }
0x1367   :  { %v12268_v32 = vpop.f32.mrf.mxu2  ;;  %v4054_v4 = vsub.f32 %v12170_v1, %v3981_v3  ;;  %7861 = vrcp.f32 %v4285_v54  ;;  %v8305_v1 = vld [vmem:[%s14011_s3 + $0x1f0] sm:$0xff]  ;;  %v12290_v54 = vld [vmem:[%s14009_s6 + $0x38] sm:$0xff] }
0x1368   :  { %v4470_v55 = vpack.c.bf16 %v4429_v40, %v4428_v7  ;;  %v12285_v43 = vadd.f32 %v8305_v1, %v3867_v38  ;;  %4997 = vmatpush.bf16.msra.mxu2 %v12290_v54 }
0x1369   :  { %v12276_v11 = vpop.eup %7859  ;;  %v4172_v33 = vmul.f32 1.442695, %v4054_v4 }
0x136a   :  { %4298 = vadd.xlane.f32.xlu0 %v12276_v11 }
0x136b   :  { %3994 = vmax.xlane.f32.xlu2 %v12273_v2  ;;  %4598 = vmatmul.bf16.gmra.mxu2 %v4470_v55  ;;  %7863 = vpow2.f32 %v4172_v33 }
0x136c   :  { %v3869_v38 = vpop.f32.mrf.mxu0 }
0x136d   :  { %v4287_v27 = vpop.xlane.xlu0 %4286  ;;  %v7862_v7 = vpop.eup %7861 }
0x136e   :  { %7865 = vrcp.f32 %v4287_v27  ;;  %v3983_v36 = vpop.xlane.xlu2 %3982  ;;  %v4430_v33 = vmul.f32 %v7862_v7, %v12165_v25 }
0x136f   :  { %v4579_v59 = vpop.f32.mrf.mxu2  ;;  %v4055_v10 = vsub.f32 %v12180_v29, %v3983_v36 }
0x1370   :  { %v4701_v19 = vmul.f32 %v4579_v59, %v9545_v21 }
0x1371   :  { %v4174_v20 = vmul.f32 1.442695, %v4055_v10  ;;  %v12295_v3 = vpop.eup %7863  ;;  %v8306_v10 = vld [vmem:[%s14011_s3 + $0x1f8] sm:$0xff] }
0x1372   :  { %v12293_v40 = vadd.f32 %v4701_v19, %v12075_v39  ;;  %4300 = vadd.xlane.f32.xlu0 %v12295_v3  ;;  %v12308_v19 = vadd.f32 %v8306_v10, %v3869_v38 }
0x1373   :  { %7867 = vpow2.f32 %v4174_v20  ;;  %3996 = vmax.xlane.f32.xlu2 %v12285_v43 }
0x1374   :  { %v7866_v29 = vpop.eup %7865 }
0x1375   :  { %v4289_v55 = vpop.xlane.xlu0 %4288  ;;  %v4431_v50 = vmul.f32 %v7866_v29, %v12175_v42 }
0x1376   :  { %v3985_v4 = vpop.xlane.xlu2 %3984 }
0x1377   :  { %v4056_v39 = vsub.f32 %v12189_v52, %v3985_v4  ;;  %v4471_v27 = vpack.c.bf16 %v4431_v50, %v4430_v33 }
0x1379   :  { %v12303_v36 = vpop.eup %7867  ;;  %v4176_v59 = vmul.f32 1.442695, %v4056_v39 }
0x137a   :  { %4302 = vadd.xlane.f32.xlu1 %v12303_v36  ;;  %3998 = vmax.xlane.f32.xlu0 %v12308_v19 }
0x137b   :  { %7869 = vpow2.f32 %v4176_v59  ;;  %4603 = vmatmul.bf16.gmra.mxu2 %v4471_v27 }
0x137d   :  { %v3987_v25 = vpop.xlane.xlu0 %3986 }
0x137e   :  { %v4057_v42 = vsub.f32 %v12196_v44, %v3987_v25  ;;  %v12323_v44 = vpop.f32.mrf.mxu2 }
0x1380   :  { %v4178_v52 = vmul.f32 1.442695, %v4057_v42 }
0x1381   :  { %v12313_v1 = vpop.eup %7869 }
0x1382   :  { %7871 = vpow2.f32 %v4178_v52  ;;  %4304 = vadd.xlane.f32.xlu1 %v12313_v1 }
0x1385   :  { %v3989_v20 = vpop.xlane.xlu0 %3988 }
0x1386   :  { %v4058_v7 = vsub.f32 %v12202_v49, %v3989_v20 }
0x1388   :  { %v12317_v29 = vpop.eup %7871  ;;  %v4180_v50 = vmul.f32 1.442695, %v4058_v7 }
0x1389   :  { %4306 = vadd.xlane.f32.xlu2 %v12317_v29 }
0x138a   :  { %7873 = vpow2.f32 %v4180_v50 }
0x138b   :  { %7875 = vrcp.f32 %v4289_v55 }
0x1390   :  { %v12320_v4 = vpop.eup %7873 }
0x1391   :  { %4308 = vadd.xlane.f32.xlu0 %v12320_v4  ;;  %v7876_v27 = vpop.eup %7875 }
0x1392   :  { %v4432_v42 = vmul.f32 %v7876_v27, %v12184_v28 }
0x13bd   :  { %v4584_v33 = vpop.f32.mrf.mxu2  ;;  %v4291_v38 = vpop.xlane.xlu1 %4290 }
0x13be   :  { %v4703_v39 = vmul.f32 %v4584_v33, %v9545_v21  ;;  %7877 = vrcp.f32 %v4291_v38 }
0x13c0   :  { %v12327_v49 = vadd.f32 %v4703_v39, %v12091_v46 }
0x13c4   :  { %v7878_v59 = vpop.eup %7877 }
0x13c5   :  { %v12329_v10 = vpop.f32.mrf.mxu2  ;;  %v4293_v25 = vpop.xlane.xlu1 %4292  ;;  %v4433_v52 = vmul.f32 %v7878_v59, %v12227_v58 }
0x13c6   :  { %7879 = vrcp.f32 %v4293_v25 }
0x13c7   :  { %v4472_v20 = vpack.c.bf16 %v4433_v52, %v4432_v42 }
0x13c9   :  { %4608 = vmatmul.bf16.gmra.mxu2 %v4472_v20 }
0x13cc   :  { %v7880_v18 = vpop.eup %7879 }
0x13cd   :  { %v3991_v55 = vpop.xlane.xlu1 %3990  ;;  %v4434_v42 = vmul.f32 %v7880_v18, %v12232_v34 }
0x13ce   :  { %v4589_v7 = vpop.f32.mrf.mxu2  ;;  %v4059_v50 = vsub.f32 %v12243_v57, %v3991_v55  ;;  %v4295_v33 = vpop.xlane.xlu2 %4294 }
0x13cf   :  { %v4705_v46 = vmul.f32 %v4589_v7, %v9545_v21  ;;  %7881 = vrcp.f32 %v4295_v33 }
0x13d0   :  { %v4182_v38 = vmul.f32 1.442695, %v4059_v50 }
0x13d1   :  { %v12336_v39 = vadd.f32 %v4705_v46, %v12117_v41 }
0x13d2   :  { %7883 = vpow2.f32 %v4182_v38 }
0x13d5   :  { %v7882_v28 = vpop.eup %7881  ;;  %v3993_v27 = vpop.xlane.xlu1 %3992 }
0x13d6   :  { %v12338_v58 = vpop.f32.mrf.mxu2  ;;  %v4060_v59 = vsub.f32 %v12255_v24, %v3993_v27  ;;  %v4297_v25 = vpop.xlane.xlu2 %4296  ;;  %v4435_v57 = vmul.f32 %v7882_v28, %v12248_v26 }
0x13d8   :  { %v12343_v52 = vpop.eup %7883  ;;  %v4184_v20 = vmul.f32 1.442695, %v4060_v59  ;;  %v4473_v55 = vpack.c.bf16 %v4435_v57, %v4434_v42 }
0x13d9   :  { %4310 = vadd.xlane.f32.xlu1 %v12343_v52 }
0x13da   :  { %7885 = vpow2.f32 %v4184_v20  ;;  %4613 = vmatmul.bf16.gmra.mxu2 %v4473_v55 }
0x13db   :  { %7887 = vrcp.f32 %v4297_v25 }
0x13dd   :  { %v4299_v7 = vpop.xlane.xlu0 %4298 }
0x13de   :  { %v3995_v41 = vpop.xlane.xlu2 %3994  ;;  %v4594_v50 = vpop.f32.mrf.mxu2  ;;  %7889 = vrcp.f32 %v4299_v7 }
0x13df   :  { %v4061_v33 = vsub.f32 %v12273_v2, %v3995_v41  ;;  %v4707_v18 = vmul.f32 %v4594_v50, %v9545_v21 }
0x13e0   :  { %v12347_v24 = vpop.eup %7885 }
0x13e1   :  { %v4186_v34 = vmul.f32 1.442695, %v4061_v33  ;;  %4312 = vadd.xlane.f32.xlu2 %v12347_v24  ;;  %v12352_v26 = vadd.f32 %v4707_v18, %v12148_v48  ;;  %v7888_v46 = vpop.eup %7887  ;;  %v7122_v48 = vld [vmem:[%s14009_s6 + $0x30] sm:$0xff] }
0x13e2   :  { %v4436_v25 = vmul.f32 %v7888_v46, %v12259_v8  ;;  %4939 = vmatpush.bf16.msrb.mxu0 %v7122_v48  ;;  %7147 = vmatpush.bf16.msra.mxu1 %v7122_v48 }
0x13e3   :  { %7891 = vpow2.f32 %v4186_v34 }
0x13e4   :  { %v7890_v38 = vpop.eup %7889 }
0x13e5   :  { %v4301_v27 = vpop.xlane.xlu0 %4300  ;;  %v4437_v42 = vmul.f32 %v7890_v38, %v12276_v11 }
0x13e6   :  { %v3997_v28 = vpop.xlane.xlu2 %3996  ;;  %v12354_v59 = vpop.f32.mrf.mxu2 }
0x13e7   :  { %v4062_v2 = vsub.f32 %v12285_v43, %v3997_v28  ;;  %v4474_v55 = vpack.c.bf16 %v4437_v42, %v4436_v25 }
0x13e9   :  { %v12359_v57 = vpop.eup %7891  ;;  %v4188_v20 = vmul.f32 1.442695, %v4062_v2 }
0x13ea   :  { %4314 = vadd.xlane.f32.xlu0 %v12359_v57  ;;  %4618 = vmatmul.bf16.gmra.mxu2 %v4474_v55 }
0x13eb   :  { %7893 = vpow2.f32 %v4188_v20 }
0x13ec   :  { %7895 = vrcp.f32 %v4301_v27 }
0x13ed   :  { %v4303_v41 = vpop.xlane.xlu1 %4302  ;;  %v3999_v8 = vpop.xlane.xlu0 %3998 }
0x13ee   :  { %7897 = vrcp.f32 %v4303_v41  ;;  %v4599_v43 = vpop.f32.mrf.mxu2  ;;  %v4063_v11 = vsub.f32 %v12308_v19, %v3999_v8 }
0x13ef   :  { %v4709_v7 = vmul.f32 %v4599_v43, %v9545_v21  ;;  %v7121_v43 = vld [vmem:[%s14012_s7 + $0x28] sm:$0xff] }
0x13f0   :  { %v4190_v18 = vmul.f32 1.442695, %v4063_v11  ;;  %4816 = vmatpush.bf16.msrb.mxu3 %v7121_v43  ;;  %v7120_v11 = vld [vmem:[%s14012_s7 + $0x20] sm:$0xff]  ;;  %v4652_v43 = vmul.f32 %v11894_v23, %v9295_v51 }
0x13f1   :  { %v12367_v50 = vpop.eup %7893  ;;  %v12370_v34 = vadd.f32 %v4709_v7, %v12210_v16 }
0x13f2   :  { %v7896_v33 = vpop.eup %7895  ;;  %4316 = vadd.xlane.f32.xlu1 %v12367_v50  ;;  %7899 = vpow2.f32 %v4190_v18 }
0x13f3   :  { %v4438_v38 = vmul.f32 %v7896_v33, %v12295_v3  ;;  %v4666_v33 = vmul.f32 %v12060_v37, %v9298_v14 }
0x13f4   :  { %v7898_v46 = vpop.eup %7897  ;;  %4817 = vmatpush.bf16.msrb.mxu3 %v7120_v11 }
0x13f5   :  { %v4439_v28 = vmul.f32 %v7898_v46, %v12303_v36  ;;  %v4305_v2 = vpop.xlane.xlu1 %4304  ;;  %v4650_v46 = vmul.f32 %v11864_v31, %v9295_v51 }
0x13f6   :  { %v12375_v27 = vpop.f32.mrf.mxu2  ;;  %7901 = vrcp.f32 %v4305_v2 }
0x13f7   :  { %v4475_v19 = vpack.c.bf16 %v4439_v28, %v4438_v38  ;;  %v4698_v38 = vmul.f32 %v12238_v47, %v9545_v21 }
0x13f8   :  { %v12377_v25 = vpop.eup %7899  ;;  %7148 = vmatpush.bf16.msra.mxu3 %v12290_v54 }
0x13f9   :  { %4318 = vadd.xlane.f32.xlu2 %v12377_v25 }
0x13fa   :  { %4623 = vmatmul.bf16.gmra.mxu2 %v4475_v19  ;;  %v4682_v19 = vadd.f32 %v4666_v33, %v4650_v46 }
0x13fc   :  { %v4307_v16 = vpop.xlane.xlu2 %4306  ;;  %v7902_v55 = vpop.eup %7901 }
0x13fd   :  { %7903 = vrcp.f32 %v4307_v16  ;;  %v4440_v41 = vmul.f32 %v7902_v55, %v12313_v1 }
0x13fe   :  { %v4604_v42 = vpop.f32.mrf.mxu2 }
0x13ff   :  { %v4711_v20 = vmul.f32 %v4604_v42, %v9545_v21 }
0x1401   :  { %v12382_v3 = vadd.f32 %v4711_v20, %v12220_v12  ;;  %v4714_v20 = vadd.f32 %v4698_v38, %v4682_v19 }
0x1403   :  { %v7904_v36 = vpop.eup %7903 }
0x1404   :  { %v4441_v48 = vmul.f32 %v7904_v36, %v12317_v29  ;;  %v4309_v7 = vpop.xlane.xlu0 %4308 }
0x1405   :  { %7905 = vrcp.f32 %v4309_v7 }
0x1406   :  { %v4476_v8 = vpack.c.bf16 %v4441_v48, %v4440_v41  ;;  %v12393_v12 = vpop.f32.mrf.mxu2 }
0x140a   :  { %4628 = vmatmul.bf16.gmra.mxu2 %v4476_v8 }
0x140b   :  { %v7906_v18 = vpop.eup %7905 }
0x140c   :  { %v4442_v16 = vmul.f32 %v7906_v18, %v12320_v4  ;;  %v4668_v4 = vmul.f32 %v12067_v45, %v9298_v14 }
0x140e   :  { %v4684_v7 = vadd.f32 %v4668_v4, %v4652_v43  ;;  %v4672_v4 = vmul.f32 %v12094_v6, %v9298_v14 }
0x144c   :  { %v4609_v29 = vpop.f32.mrf.mxu2  ;;  %v4311_v1 = vpop.xlane.xlu1 %4310 }
0x144d   :  { %7907 = vrcp.f32 %v4311_v1  ;;  %v4729_v54 = vmul.f32 %v4609_v29, %v9713_v9 }
0x144f   :  { %v4745_v36 = vadd.f32 %v4729_v54, %v12235_v56  ;;  %v4700_v56 = vmul.f32 %v12268_v32, %v9545_v21 }
0x1451   :  { %v4716_v46 = vadd.f32 %v4700_v56, %v4684_v7 }
0x1453   :  { %v7908_v28 = vpop.eup %7907 }
0x1454   :  { %v4611_v2 = vpop.f32.mrf.mxu2  ;;  %v4443_v42 = vmul.f32 %v7908_v28, %v12343_v52  ;;  %v4313_v41 = vpop.xlane.xlu2 %4312 }
0x1455   :  { %v4730_v55 = vmul.f32 %v4611_v2, %v9713_v9  ;;  %7909 = vrcp.f32 %v4313_v41 }
0x1456   :  { %v4477_v37 = vpack.c.bf16 %v4443_v42, %v4442_v16  ;;  %v4654_v16 = vmul.f32 %v11921_v62, %v9295_v51 }
0x1457   :  { %v4746_v48 = vadd.f32 %v4730_v55, %v4714_v20 }
0x1458   :  { %4633 = vmatmul.bf16.gmra.mxu2 %v4477_v37 }
0x1459   :  { %v4761_v31 = vpack.c.bf16 %v4746_v48, %v4745_v36 }
0x145b   :  { %6943 = vmatmul.msk.bf16.vlgmr.msrb.gmra.mxu3 %vm459_vm1, %v4761_v31  ;;  %v7910_v52 = vpop.eup %7909 }
0x145c   :  { %v4444_v33 = vmul.f32 %v7910_v52, %v12347_v24  ;;  %v4670_v24 = vmul.f32 %v12077_v61, %v9298_v14 }
0x145d   :  { %v4614_v47 = vpop.f32.mrf.mxu2  ;;  %v4315_v8 = vpop.xlane.xlu0 %4314 }
0x145e   :  { %7911 = vrcp.f32 %v4315_v8  ;;  %v4731_v29 = vmul.f32 %v4614_v47, %v9713_v9  ;;  %v4686_v20 = vadd.f32 %v4670_v24, %v4654_v16 }
0x1460   :  { %v4747_v28 = vadd.f32 %v4731_v29, %v12262_v13  ;;  %v4702_v13 = vmul.f32 %v12323_v44, %v9545_v21 }
0x1462   :  { %v4718_v31 = vadd.f32 %v4702_v13, %v4686_v20  ;;  %v14231_v13 = vmax.f32 %v11107_v22, 0.0 }
0x1464   :  { %v7912_v11 = vpop.eup %7911 }
0x1465   :  { %v4616_v1 = vpop.f32.mrf.mxu2  ;;  %v4445_v18 = vmul.f32 %v7912_v11, %v12359_v57  ;;  %v4317_v54 = vpop.xlane.xlu1 %4316 }
0x1466   :  { %v4732_v38 = vmul.f32 %v4616_v1, %v9713_v9  ;;  %7913 = vrcp.f32 %v4317_v54 }
0x1467   :  { %v4478_v45 = vpack.c.bf16 %v4445_v18, %v4444_v33  ;;  %v4706_v33 = vmul.f32 %v12338_v58, %v9545_v21  ;;  %v4660_v58 = vmul.f32 %v11937_v30, %v9295_v51  ;;  %v14232_v30 = vmax.f32 %v11118_v15, 0.0 }
0x1468   :  { %v4748_v19 = vadd.f32 %v4732_v38, %v4716_v46  ;;  %v4678_v15 = vmul.f32 %v12212_v17, %v9298_v14 }
0x1469   :  { %4638 = vmatmul.bf16.gmra.mxu2 %v4478_v45 }
0x146a   :  { %v4762_v23 = vpack.c.bf16 %v4748_v19, %v4747_v28 }
0x146c   :  { %6944 = vmatmul.msk.bf16.gmra.mxu3 %vm459_vm1, %v4762_v23  ;;  %v4319_v2 = vpop.xlane.xlu2 %4318  ;;  %v7914_v57 = vpop.eup %7913 }
0x146d   :  { %v4619_v32 = vpop.f32.mrf.mxu2  ;;  %7915 = vrcp.f32 %v4319_v2  ;;  %v4446_v36 = vmul.f32 %v7914_v57, %v12367_v50  ;;  %v4656_v50 = vmul.f32 %v11926_v63, %v9295_v51  ;;  %v4674_v63 = vmul.f32 %v12123_v0, %v9298_v14 }
0x146e   :  { %v4733_v55 = vmul.f32 %v4619_v32, %v9713_v9  ;;  %v4708_v32 = vmul.f32 %v12354_v59, %v9545_v21 }
0x146f   :  { %v4688_v52 = vadd.f32 %v4672_v4, %v4656_v50  ;;  %v14233_v50 = vld [vmem:[#allocation13_spill] sm:$0xff] }
0x1470   :  { %v4749_v47 = vadd.f32 %v4733_v55, %v12293_v40 }
0x1473   :  { %v7916_v42 = vpop.eup %7915 }
0x1474   :  { %v4447_v48 = vmul.f32 %v7916_v42, %v12377_v25  ;;  %v4704_v25 = vmul.f32 %v12329_v10, %v9545_v21  ;;  %v4658_v10 = vmul.f32 %v11930_v35, %v9295_v51  ;;  %v4676_v35 = vmul.f32 %v12205_v53, %v9298_v14 }
0x1475   :  { %v4621_v37 = vpop.f32.mrf.mxu2 }
0x1476   :  { %v4734_v41 = vmul.f32 %v4621_v37, %v9713_v9  ;;  %v4479_v61 = vpack.c.bf16 %v4447_v48, %v4446_v36  ;;  %v4720_v40 = vadd.f32 %v4704_v25, %v4688_v52  ;;  %v4690_v18 = vadd.f32 %v4674_v63, %v4658_v10  ;;  %v14238_v10 = vld [vmem:[#allocation12_spill] sm:$0xff] }
0x1477   :  { %v4692_v2 = vadd.f32 %v4676_v35, %v4660_v58  ;;  %v14234_v25 = vmax.f32 %v14233_v50, 0.0  ;;  %v14242_v58 = vld [vmem:[#allocation2_spill] sm:$0xff] }
0x1478   :  { %v4750_v8 = vadd.f32 %v4734_v41, %v4718_v31  ;;  %v4722_v45 = vadd.f32 %v4706_v33, %v4690_v18  ;;  %v4662_v41 = vmul.f32 %v11951_v60, %v9295_v51  ;;  %v4664_v33 = vmul.f32 %v14238_v10, %v9295_v51 }
0x1479   :  { %4643 = vmatmul.bf16.gmra.mxu2 %v4479_v61  ;;  %v4710_v61 = vmul.f32 %v12375_v27, %v9545_v21  ;;  %v4712_v18 = vmul.f32 %v12393_v12, %v9545_v21 }
0x147a   :  { %v4763_v62 = vpack.c.bf16 %v4750_v8, %v4749_v47  ;;  %v4694_v47 = vadd.f32 %v4678_v15, %v4662_v41  ;;  %v14251_v41 = vld [vmem:[#allocation4_spill] sm:$0xff] }
0x147c   :  { %6945 = vmatmul.msk.bf16.gmra.mxu3 %vm459_vm1, %v4763_v62 }
0x147d   :  { %v4624_v44 = vpop.f32.mrf.mxu2 }
0x147e   :  { %v4735_v43 = vmul.f32 %v4624_v44, %v9713_v9  ;;  %v4726_v44 = vadd.f32 %v4710_v61, %v4694_v47  ;;  %v14252_v61 = vmax.f32 %v14251_v41, 0.0 }
0x1480   :  { %v4751_v7 = vadd.f32 %v4735_v43, %v12327_v49 }
0x1485   :  { %v4626_v56 = vpop.f32.mrf.mxu2 }
0x1486   :  { %v4736_v11 = vmul.f32 %v4626_v56, %v9713_v9 }
0x1488   :  { %v4752_v29 = vadd.f32 %v4736_v11, %v4720_v40  ;;  %v14235_v40 = vld [vmem:[#allocation19_spill] sm:$0xff] }
0x1489   :  { %v14236_v60 = vmax.f32 %v14235_v40, 0.0 }
0x148a   :  { %v4764_v1 = vpack.c.bf16 %v4752_v29, %v4751_v7 }
0x148c   :  { %6946 = vmatmul.msk.bf16.gmra.mxu3 %vm459_vm1, %v4764_v1 }
0x148d   :  { %v4629_v6 = vpop.f32.mrf.mxu2 }
0x148e   :  { %v4737_v46 = vmul.f32 %v4629_v6, %v9713_v9 }
0x1490   :  { %v4753_v28 = vadd.f32 %v4737_v46, %v12336_v39  ;;  %v4724_v39 = vadd.f32 %v4708_v32, %v4692_v2  ;;  %v14243_v32 = vmax.f32 %v14242_v58, 0.0 }
0x1495   :  { %v4631_v38 = vpop.f32.mrf.mxu2 }
0x1496   :  { %v4738_v49 = vmul.f32 %v4631_v38, %v9713_v9 }
0x1498   :  { %v4754_v19 = vadd.f32 %v4738_v49, %v4722_v45 }
0x149a   :  { %v4765_v23 = vpack.c.bf16 %v4754_v19, %v4753_v28  ;;  %v14239_v19 = vld [vmem:[#allocation20_spill] sm:$0xff] }
0x149c   :  { %6947 = vmatmul.msk.bf16.gmra.mxu3 %vm459_vm1, %v4765_v23  ;;  %v14240_v23 = vmax.f32 %v14239_v19, 0.0 }
0x14db   :  { %v4634_v0 = vpop.f32.mrf.mxu2 }
0x14dc   :  { %v4739_v24 = vmul.f32 %v4634_v0, %v9713_v9 }
0x14de   :  { %v4819_v54 = vpop.f32.mrf.mxu3  ;;  %v4755_v53 = vadd.f32 %v4739_v24, %v12352_v26 }
0x14df   :  { %v12461_v42 = vadd.f32 %v4819_v54, %v14231_v13 }
0x14e1   :  { %v14118_v36 = vmax.f32 %v12461_v42, 0.0 }
0x14e3   :  { %v4636_v57 = vpop.f32.mrf.mxu2 }
0x14e4   :  { %v4740_v16 = vmul.f32 %v4636_v57, %v9713_v9 }
0x14e6   :  { %v4756_v20 = vadd.f32 %v4740_v16, %v4724_v39  ;;  %v4821_v55 = vpop.f32.mrf.mxu3  ;;  %v14245_v16 = vld [vmem:[#allocation18_spill] sm:$0xff] }
0x14e7   :  { %v12466_v37 = vadd.f32 %v4821_v55, %v14232_v30  ;;  %v14246_v13 = vmax.f32 %v14245_v16, 0.0  ;;  %v14248_v55 = vld [vmem:[#allocation3_spill] sm:$0xff] }
0x14e8   :  { %v4766_v59 = vpack.c.bf16 %v4756_v20, %v4755_v53  ;;  %v14249_v30 = vmax.f32 %v14248_v55, 0.0 }
0x14e9   :  { %v14117_v48 = vmax.f32 %v12466_v37, 0.0 }
0x14ea   :  { %6948 = vmatmul.msk.bf16.gmra.mxu3 %vm459_vm1, %v4766_v59 }
0x14eb   :  { %v4891_v22 = vpack.c.bf16 %v14117_v48, %v14118_v36 }
0x14ec   :  { %v4639_v31 = vpop.f32.mrf.mxu2 }
0x14ed   :  { %6957 = vmatmul.msk.bf16.vlgmr.msrb.gmra.mxu0 %vm130_vm0, %v4891_v22  ;;  %6971 = vmatmul.msk.bf16.vlgmr.msra.gmra.mxu2 %vm130_vm0, %v4891_v22  ;;  %v4741_v8 = vmul.f32 %v4639_v31, %v9713_v9 }
0x14ef   :  { %v4824_v26 = vpop.f32.mrf.mxu3  ;;  %v4757_v17 = vadd.f32 %v4741_v8, %v12370_v34  ;;  %v4680_v34 = vmul.f32 %v12222_v5, %v9298_v14 }
0x14f0   :  { %v12487_v52 = vadd.f32 %v4824_v26, %v14234_v25 }
0x14f1   :  { %v4696_v46 = vadd.f32 %v4680_v34, %v4664_v33 }
0x14f2   :  { %v14116_v7 = vmax.f32 %v12487_v52, 0.0 }
0x14f3   :  { %v4728_v49 = vadd.f32 %v4712_v18, %v4696_v46 }
0x14f4   :  { %v4641_v62 = vpop.f32.mrf.mxu2 }
0x14f5   :  { %v4742_v4 = vmul.f32 %v4641_v62, %v9713_v9  ;;  %v14254_v62 = vld [vmem:[#allocation5_spill] sm:$0xff] }
0x14f7   :  { %v4758_v43 = vadd.f32 %v4742_v4, %v4726_v44  ;;  %v4826_v56 = vpop.f32.mrf.mxu3  ;;  %v14255_v44 = vmax.f32 %v14254_v62, 0.0 }
0x14f8   :  { %v12492_v11 = vadd.f32 %v4826_v56, %v14236_v60  ;;  %v14257_v60 = vld [vmem:[#allocation15_spill] sm:$0xff] }
0x14f9   :  { %v4767_v27 = vpack.c.bf16 %v4758_v43, %v4757_v17 }
0x14fa   :  { %14237 = vst [vmem:[#allocation13_spill] sm:$0xff] %v12492_v11  ;;  %v14115_v29 = vmax.f32 %v12492_v11, 0.0 }
0x14fb   :  { %6949 = vmatmul.msk.bf16.gmra.mxu3 %vm459_vm1, %v4767_v27 }
0x14fc   :  { %v4892_v1 = vpack.c.bf16 %v14115_v29, %v14116_v7  ;;  %v4644_v6 = vpop.f32.mrf.mxu2  ;;  %v14275_v7 = vld [vmem:[#allocation11_spill] sm:$0xff] }
0x14fd   :  { %v4743_v38 = vmul.f32 %v4644_v6, %v9713_v9  ;;  %v14276_v48 = vmax.f32 %v14275_v7, 0.0 }
0x14fe   :  { %6958 = vmatmul.msk.bf16.gmra.mxu0 %vm130_vm0, %v4892_v1  ;;  %6972 = vmatmul.msk.bf16.gmra.mxu2 %vm130_vm0, %v4892_v1  ;;  %v14258_v1 = vld [vmem:[#allocation16_spill] sm:$0xff] }
0x14ff   :  { %v4829_v63 = vpop.f32.mrf.mxu3  ;;  %v4759_v5 = vadd.f32 %v4743_v38, %v12382_v3  ;;  %v14260_v38 = vld [vmem:[#allocation6_spill] sm:$0xff] }
0x1500   :  { %v12513_v0 = vadd.f32 %v4829_v63, %v14240_v23  ;;  %v14259_v63 = vld [vmem:[#allocation17_spill] sm:$0xff] }
0x1502   :  { %14241 = vst [vmem:[#allocation19_spill] sm:$0xff] %v12513_v0  ;;  %v14114_v24 = vmax.f32 %v12513_v0, 0.0 }
0x1504   :  { %v4646_v45 = vpop.f32.mrf.mxu2 }
0x1505   :  { %v4744_v28 = vmul.f32 %v4646_v45, %v9713_v9  ;;  %v14261_v45 = vmax.f32 %v14260_v38, 0.0 }
0x1507   :  { %v4760_v35 = vadd.f32 %v4744_v28, %v4728_v49  ;;  %v4831_v54 = vpop.f32.mrf.mxu3 }
0x1508   :  { %v12518_v2 = vadd.f32 %v4831_v54, %v14243_v32 }
0x1509   :  { %v4768_v12 = vpack.c.bf16 %v4760_v35, %v4759_v5  ;;  %v14263_v35 = vld [vmem:[#allocation7_spill] sm:$0xff] }
0x150a   :  { %14244 = vst [vmem:[#allocation12_spill] sm:$0xff] %v12518_v2  ;;  %v14113_v57 = vmax.f32 %v12518_v2, 0.0  ;;  %v14264_v54 = vmax.f32 %v14263_v35, 0.0  ;;  %v14269_v35 = vld [vmem:[#allocation9_spill] sm:$0xff] }
0x150b   :  { %6950 = vmatmul.msk.bf16.gmra.mxu3 %vm459_vm1, %v4768_v12 }
0x150c   :  { %v4893_v39 = vpack.c.bf16 %v14113_v57, %v14114_v24 }
0x150e   :  { %6959 = vmatmul.msk.bf16.gmra.mxu0 %vm130_vm0, %v4893_v39  ;;  %6973 = vmatmul.msk.bf16.gmra.mxu2 %vm130_vm0, %v4893_v39 }
0x150f   :  { %v4834_v3 = vpop.f32.mrf.mxu3 }
0x1510   :  { %v12531_v53 = vadd.f32 %v4834_v3, %v14246_v13 }
0x1512   :  { %14247 = vst [vmem:[#allocation20_spill] sm:$0xff] %v12531_v53  ;;  %v14112_v22 = vmax.f32 %v12531_v53, 0.0 }
0x1517   :  { %v4836_v20 = vpop.f32.mrf.mxu3 }
0x1518   :  { %v12535_v59 = vadd.f32 %v4836_v20, %v14249_v30 }
0x151a   :  { %14250 = vst [vmem:[#allocation2_spill] sm:$0xff] %v12535_v59  ;;  %v14111_v31 = vmax.f32 %v12535_v59, 0.0 }
0x151c   :  { %v4894_v15 = vpack.c.bf16 %v14111_v31, %v14112_v22 }
0x151e   :  { %6960 = vmatmul.msk.bf16.gmra.mxu0 %vm130_vm0, %v4894_v15  ;;  %6974 = vmatmul.msk.bf16.gmra.mxu2 %vm130_vm0, %v4894_v15 }
0x151f   :  { %v4839_v26 = vpop.f32.mrf.mxu3 }
0x1520   :  { %v12547_v47 = vadd.f32 %v4839_v26, %v14252_v61 }
0x1522   :  { %14253 = vst [vmem:[#allocation18_spill] sm:$0xff] %v12547_v47  ;;  %v14105_v50 = vmax.f32 %v12547_v47, 0.0 }
0x1527   :  { %v4841_v8 = vpop.f32.mrf.mxu3 }
0x1528   :  { %v12551_v4 = vadd.f32 %v4841_v8, %v14255_v44  ;;  %v14266_v44 = vld [vmem:[#allocation8_spill] sm:$0xff] }
0x152a   :  { %14256 = vst [vmem:[#allocation3_spill] sm:$0xff] %v12551_v4  ;;  %v14106_v25 = vmax.f32 %v12551_v4, 0.0 }
0x152c   :  { %v4895_v17 = vpack.c.bf16 %v14106_v25, %v14105_v50 }
0x152e   :  { %6961 = vmatmul.msk.bf16.vlgmr.msra.gmra.mxu1 %vm130_vm0, %v4895_v17  ;;  %6975 = vmatmul.msk.bf16.gmra.mxu2 %vm130_vm0, %v4895_v17  ;;  %v14267_v17 = vmax.f32 %v14266_v44, 0.0 }
0x156a   :  { %v12561_v43 = vpop.f32.mrf.mxu0 }
0x156b   :  { %v12565_v27 = vmul.f32 %v12561_v43, %v14257_v60  ;;  %v12569_v6 = vmul.f32 %v12561_v43, %v14258_v1  ;;  %v12575_v10 = vmul.f32 %v12561_v43, %v14259_v63 }
0x156d   :  { %v4844_v56 = vpop.f32.mrf.mxu3 }
0x156e   :  { %v12591_v49 = vadd.f32 %v4844_v56, %v14261_v45 }
0x1570   :  { %v4999_v40 = vpop.f32.mrf.mxu2  ;;  %14262 = vst [vmem:[#allocation4_spill] sm:$0xff] %v12591_v49  ;;  %v14107_v32 = vmax.f32 %v12591_v49, 0.0 }
0x1572   :  { %v12571_v34 = vpop.f32.mrf.mxu0 }
0x1573   :  { %v12579_v33 = vmul.f32 %v12571_v34, %v14257_v60  ;;  %v12583_v18 = vmul.f32 %v12571_v34, %v14258_v1  ;;  %v12587_v46 = vmul.f32 %v12571_v34, %v14259_v63 }
0x1575   :  { %v4846_v28 = vpop.f32.mrf.mxu3 }
0x1576   :  { %v12601_v58 = vadd.f32 %v4846_v28, %v14264_v54  ;;  %v14270_v54 = vmax.f32 %v14269_v35, 0.0 }
0x1578   :  { %14265 = vst [vmem:[#allocation5_spill] sm:$0xff] %v12601_v58  ;;  %v14108_v12 = vmax.f32 %v12601_v58, 0.0  ;;  %v5001_v39 = vpop.f32.mrf.mxu2 }
0x1579   :  { %v12605_v3 = vpack.c.bf16 %v5001_v39, %v4999_v40 }
0x157a   :  { %v4896_v16 = vpack.c.bf16 %v14108_v12, %v14107_v32 }
0x157b   :  { %v12611_v13 = vpop.f32.mrf.mxu0 }
0x157c   :  { %6962 = vmatmul.msk.bf16.gmra.mxu1 %vm130_vm0, %v4896_v16  ;;  %6976 = vmatmul.msk.bf16.gmra.mxu2 %vm130_vm0, %v4896_v16  ;;  %v12617_v30 = vmul.f32 %v12611_v13, %v14257_v60  ;;  %v12621_v15 = vmul.f32 %v12611_v13, %v14258_v1  ;;  %v12627_v41 = vmul.f32 %v12611_v13, %v14259_v63 }
0x157e   :  { %v4849_v20 = vpop.f32.mrf.mxu3 }
0x157f   :  { %v12643_v56 = vadd.f32 %v4849_v20, %v14267_v17 }
0x1581   :  { %v5004_v55 = vpop.f32.mrf.mxu2  ;;  %14268 = vst [vmem:[#allocation15_spill] sm:$0xff] %v12643_v56  ;;  %v14109_v16 = vmax.f32 %v12643_v56, 0.0 }
0x1583   :  { %v12623_v26 = vpop.f32.mrf.mxu0 }
0x1584   :  { %v12631_v61 = vmul.f32 %v12623_v26, %v14257_v60  ;;  %v12635_v8 = vmul.f32 %v12623_v26, %v14258_v1  ;;  %v12639_v62 = vmul.f32 %v12623_v26, %v14259_v63 }
0x1586   :  { %v4851_v40 = vpop.f32.mrf.mxu3 }
0x1587   :  { %v12653_v39 = vadd.f32 %v4851_v40, %v14270_v54 }
0x1589   :  { %14271 = vst [vmem:[#allocation16_spill] sm:$0xff] %v12653_v39  ;;  %v14110_v44 = vmax.f32 %v12653_v39, 0.0  ;;  %v5006_v20 = vpop.f32.mrf.mxu2 }
0x158a   :  { %v5136_v17 = vpack.c.bf16 %v5006_v20, %v5004_v55 }
0x158b   :  { %v4897_v50 = vpack.c.bf16 %v14110_v44, %v14109_v16  ;;  %v12661_v25 = vpop.f32.mrf.mxu0  ;;  %v14272_v16 = vld [vmem:[#allocation10_spill] sm:$0xff] }
0x158c   :  { %v12667_v40 = vmul.f32 %v12661_v25, %v14257_v60  ;;  %v12671_v54 = vmul.f32 %v12661_v25, %v14258_v1  ;;  %v12677_v20 = vmul.f32 %v12661_v25, %v14259_v63  ;;  %v14273_v44 = vmax.f32 %v14272_v16, 0.0 }
0x158d   :  { %6963 = vmatmul.msk.bf16.gmra.mxu1 %vm130_vm0, %v4897_v50  ;;  %6977 = vmatmul.msk.bf16.vlgmr.msra.gmra.mxu3 %vm130_vm0, %v4897_v50 }
0x158e   :  { %v4854_v35 = vpop.f32.mrf.mxu3 }
0x158f   :  { %v12693_v31 = vadd.f32 %v4854_v35, %v14273_v44 }
0x1591   :  { %14274 = vst [vmem:[#allocation17_spill] sm:$0xff] %v12693_v31  ;;  %v14121_v28 = vmax.f32 %v12693_v31, 0.0  ;;  %v5009_v35 = vpop.f32.mrf.mxu2 }
0x1593   :  { %v12673_v55 = vpop.f32.mrf.mxu0 }
0x1594   :  { %v12681_v32 = vmul.f32 %v12673_v55, %v14257_v60  ;;  %v12685_v50 = vmul.f32 %v12673_v55, %v14258_v1  ;;  %v12689_v12 = vmul.f32 %v12673_v55, %v14259_v63 }
0x1596   :  { %v4856_v22 = vpop.f32.mrf.mxu3 }
0x1597   :  { %v12703_v36 = vadd.f32 %v4856_v22, %v14276_v48 }
0x1599   :  { %14277 = vst [vmem:[#allocation6_spill] sm:$0xff] %v12703_v36  ;;  %v14120_v16 = vmax.f32 %v12703_v36, 0.0  ;;  %v5011_v5 = vpop.f32.mrf.mxu2 }
0x159b   :  { %v4898_v44 = vpack.c.bf16 %v14120_v16, %v14121_v28 }
0x159d   :  { %6964 = vmatmul.msk.bf16.gmra.mxu1 %vm130_vm0, %v4898_v44  ;;  %6978 = vmatmul.msk.bf16.gmra.mxu3 %vm130_vm0, %v4898_v44 }
0x15a1   :  { %v5014_v29 = vpop.f32.mrf.mxu2 }
0x15a9   :  { %v5016_v24 = vpop.f32.mrf.mxu2 }
0x15aa   :  { %v5138_v58 = vpack.c.bf16 %v5016_v24, %v5014_v29  ;;  %v5243_v29 = vsel %vm459_vm1, %v5136_v17, 0  ;;  %v5240_v24 = vsel %vm459_vm1, %v12605_v3, 0 }
0x15b1   :  { %v5019_v48 = vpop.f32.mrf.mxu2 }
0x15b9   :  { %v5021_v45 = vpop.f32.mrf.mxu2 }
0x15ba   :  { %v5139_v49 = vpack.c.bf16 %v5021_v45, %v5019_v48 }
0x15ff   :  { %v5024_v57 = vpop.f32.mrf.mxu2 }
0x1607   :  { %v5026_v28 = vpop.f32.mrf.mxu2 }
0x1608   :  { %v5140_v44 = vpack.c.bf16 %v5026_v28, %v5024_v57  ;;  %v5249_v57 = vsel %vm459_vm1, %v5138_v58, 0  ;;  %v12737_v28 = vpop.f32.mrf.mxu0 }
0x160a   :  { %v5255_v56 = vsel %vm459_vm1, %v5140_v44, 0 }
0x1610   :  { %v5029_v7 = vpop.f32.mrf.mxu3 }
0x1618   :  { %v5031_v22 = vpop.f32.mrf.mxu3 }
0x1619   :  { %v5141_v16 = vpack.c.bf16 %v5031_v22, %v5029_v7 }
0x161b   :  { %v5258_v4 = vsel %vm459_vm1, %v5141_v16, 0 }
0x1620   :  { %v5034_v23 = vpop.f32.mrf.mxu3 }
0x1628   :  { %v5036_v38 = vpop.f32.mrf.mxu3 }
0x1629   :  { %v5142_v19 = vpack.c.bf16 %v5036_v38, %v5034_v23  ;;  %v5137_v23 = vpack.c.bf16 %v5011_v5, %v5009_v35 }
0x162b   :  { %6040 = vmatpush.bf16.msrb.mxu3 %v5142_v19  ;;  %v5261_v47 = vsel %vm459_vm1, %v5142_v19, 0  ;;  %v14278_v19 = vld [vmem:[#allocation14_spill] sm:$0xff] }
0x162c   :  { %5263 = vmatpush.bf16.xpose.msrb.mxu1 %v5261_v47  ;;  %v5252_v47 = vsel %vm459_vm1, %v5139_v49, 0  ;;  %v5040_v5 = vmul.f32 %v12571_v34, %v14278_v19  ;;  %v5041_v38 = vmul.f32 %v12611_v13, %v14278_v19  ;;  %v5043_v34 = vmul.f32 %v12661_v25, %v14278_v19 }
0x162f   :  { %6041 = vmatpush.bf16.msrb.mxu3 %v5141_v16  ;;  %v5045_v16 = vmul.f32 %v12737_v28, %v14278_v19 }
0x1633   :  { %6042 = vmatpush.bf16.msrb.mxu3 %v5140_v44 }
0x1634   :  { %5264 = vmatpush.bf16.xpose.msrb.mxu1 %v5258_v4  ;;  %v5246_v4 = vsel %vm459_vm1, %v5137_v23, 0 }
0x1637   :  { %6043 = vmatpush.bf16.msrb.mxu3 %v5139_v49  ;;  %v5039_v49 = vmul.f32 %v12561_v43, %v14278_v19 }
0x163b   :  { %6044 = vmatpush.bf16.msrb.mxu3 %v5138_v58  ;;  %v5042_v58 = vmul.f32 %v12623_v26, %v14278_v19  ;;  %v12742_v26 = vpop.f32.mrf.mxu0 }
0x163c   :  { %5265 = vmatpush.bf16.xpose.msrb.mxu1 %v5255_v56  ;;  %v5103_v56 = vpack.c.bf16 %v5040_v5, %v5039_v49  ;;  %v5046_v13 = vmul.f32 %v12742_v26, %v14278_v19 }
0x163d   :  { %v5104_v45 = vpack.c.bf16 %v5042_v58, %v5041_v38 }
0x163f   :  { %6045 = vmatpush.bf16.msrb.mxu3 %v5137_v23 }
0x1643   :  { %6046 = vmatpush.bf16.msrb.mxu3 %v5136_v17  ;;  %v12740_v17 = vpop.f32.mrf.mxu1 }
0x1644   :  { %5266 = vmatpush.bf16.xpose.msrb.mxu1 %v5252_v47  ;;  %v5047_v48 = vmul.f32 %v12740_v17, %v14278_v19 }
0x1647   :  { %6047 = vmatpush.bf16.msrb.mxu3 %v12605_v3  ;;  %v5044_v3 = vmul.f32 %v12673_v55, %v14278_v19  ;;  %v5106_v55 = vpack.c.bf16 %v5046_v13, %v5045_v16  ;;  %v14279_v16 = vpack.c.bf16 %v12579_v33, %v12565_v27  ;;  %v14280_v27 = vpack.c.bf16 %v12631_v61, %v12617_v30 }
0x1648   :  { %v14281_v30 = vpack.c.bf16 %v12681_v32, %v12667_v40  ;;  %v8313_v32 = vld [vmem:[%s14011_s3 + $0x30] sm:$0xff] }
0x1649   :  { %v5105_v43 = vpack.c.bf16 %v5044_v3, %v5043_v34 }
0x164b   :  { %v12748_v35 = vpop.f32.mrf.mxu1 }
0x164c   :  { %5267 = vmatpush.bf16.xpose.msrb.mxu1 %v5249_v57  ;;  %v5048_v7 = vmul.f32 %v12748_v35, %v14278_v19 }
0x164e   :  { %v5107_v22 = vpack.c.bf16 %v5048_v7, %v5047_v48 }
0x1653   :  { %v12751_v25 = vpop.f32.mrf.mxu1 }
0x1654   :  { %5268 = vmatpush.bf16.xpose.msrb.mxu1 %v5246_v4  ;;  %v5049_v57 = vmul.f32 %v12751_v25, %v14278_v19 }
0x165b   :  { %v12757_v44 = vpop.f32.mrf.mxu1 }
0x165c   :  { %5269 = vmatpush.bf16.xpose.msrb.mxu1 %v5243_v29  ;;  %v5050_v47 = vmul.f32 %v12757_v44, %v14278_v19 }
0x165e   :  { %v5108_v4 = vpack.c.bf16 %v5050_v47, %v5049_v57  ;;  %v8310_v57 = vld [vmem:[%s14011_s3 + $0x18] sm:$0xff] }
0x1663   :  { %v12760_v23 = vpop.f32.mrf.mxu1 }
0x1664   :  { %5270 = vmatpush.bf16.xpose.msrb.mxu1 %v5240_v24  ;;  %v5051_v5 = vmul.f32 %v12760_v23, %v14278_v19 }
0x166b   :  { %6979 = vmatmul.msk.bf16.vlgmr.msrb.gmra.mxu1 %vm459_vm1, %v5103_v56  ;;  %v12767_v29 = vpop.f32.mrf.mxu1 }
0x166c   :  { %v5052_v24 = vmul.f32 %v12767_v29, %v14278_v19 }
0x166e   :  { %v5109_v56 = vpack.c.bf16 %v5052_v24, %v5051_v5  ;;  %v8311_v5 = vld [vmem:[%s14011_s3 + $0x20] sm:$0xff] }
0x1673   :  { %v12773_v49 = vpop.f32.mrf.mxu1 }
0x167b   :  { %6980 = vmatmul.msk.bf16.gmra.mxu1 %vm459_vm1, %v5104_v45  ;;  %v12776_v58 = vpop.f32.mrf.mxu1  ;;  %v5053_v45 = vmul.f32 %v12773_v49, %v14278_v19 }
0x167c   :  { %v5054_v38 = vmul.f32 %v12776_v58, %v14278_v19  ;;  %v8308_v19 = vld [vmem:[%s14011_s3 + $0x8] sm:$0xff] }
0x167e   :  { %v5110_v3 = vpack.c.bf16 %v5054_v38, %v5053_v45  ;;  %v8312_v38 = vld [vmem:[%s14011_s3 + $0x28] sm:$0xff] }
0x168b   :  { %6981 = vmatmul.msk.bf16.gmra.mxu1 %vm459_vm1, %v5105_v43  ;;  %v8307_v43 = vld [vmem:[%s14011_s3] sm:$0xff] }
0x169b   :  { %6982 = vmatmul.msk.bf16.gmra.mxu1 %vm459_vm1, %v5106_v55 }
0x16ab   :  { %6983 = vmatmul.msk.bf16.gmra.mxu1 %vm459_vm1, %v5107_v22  ;;  %v8309_v22 = vld [vmem:[%s14011_s3 + $0x10] sm:$0xff] }
0x16bb   :  { %6984 = vmatmul.msk.bf16.gmra.mxu1 %vm459_vm1, %v5108_v4 }
0x16cb   :  { %6985 = vmatmul.msk.bf16.gmra.mxu1 %vm459_vm1, %v5109_v56 }
0x16db   :  { %6986 = vmatmul.msk.bf16.gmra.mxu1 %vm459_vm1, %v5110_v3  ;;  %v5062_v3 = vmul.f32 %v12742_v26, %v14257_v60 }
0x16e8   :  { %v5272_v34 = vpop.f32.mrf.mxu1 }
0x16e9   :  { %v12786_v13 = vadd.f32 %v8307_v43, %v5272_v34  ;;  %v5061_v34 = vmul.f32 %v12737_v28, %v14257_v60 }
0x16eb   :  { %5432 = vmax.xlane.f32.xlu0 %v12786_v13  ;;  %6987 = vmatmul.msk.bf16.gmra.mxu1 %vm459_vm1, %v14279_v16  ;;  %v5114_v16 = vpack.c.bf16 %v5062_v3, %v5061_v34 }
0x16f0   :  { %v5274_v55 = vpop.f32.mrf.mxu1 }
0x16f1   :  { %v12796_v7 = vadd.f32 %v8308_v19, %v5274_v55  ;;  %v8314_v19 = vld [vmem:[%s14011_s3 + $0x38] sm:$0xff] }
0x16f3   :  { %5434 = vmax.xlane.f32.xlu1 %v12796_v7 }
0x16f8   :  { %v5277_v48 = vpop.f32.mrf.mxu1 }
0x16f9   :  { %v12802_v47 = vadd.f32 %v8309_v22, %v5277_v48  ;;  %v5064_v22 = vmul.f32 %v12748_v35, %v14257_v60 }
0x16fb   :  { %5436 = vmax.xlane.f32.xlu2 %v12802_v47  ;;  %6988 = vmatmul.msk.bf16.gmra.mxu1 %vm459_vm1, %v14280_v27  ;;  %v5063_v27 = vmul.f32 %v12740_v17, %v14257_v60 }
0x1700   :  { %v5279_v33 = vpop.f32.mrf.mxu1 }
0x1701   :  { %v12812_v4 = vadd.f32 %v8310_v57, %v5279_v33  ;;  %v8315_v57 = vld [vmem:[%s14011_s3 + $0x40] sm:$0xff] }
0x1703   :  { %5438 = vmax.xlane.f32.xlu0 %v12812_v4 }
0x1708   :  { %v5282_v24 = vpop.f32.mrf.mxu1 }
0x1709   :  { %v12818_v56 = vadd.f32 %v8311_v5, %v5282_v24  ;;  %v5115_v5 = vpack.c.bf16 %v5064_v22, %v5063_v27  ;;  %v5070_v22 = vmul.f32 %v12776_v58, %v14257_v60 }
0x170b   :  { %5440 = vmax.xlane.f32.xlu1 %v12818_v56  ;;  %6989 = vmatmul.msk.bf16.gmra.mxu1 %vm459_vm1, %v14281_v30 }
0x1710   :  { %v5284_v61 = vpop.f32.mrf.mxu1 }
0x1711   :  { %v12828_v45 = vadd.f32 %v8312_v38, %v5284_v61  ;;  %v5066_v61 = vmul.f32 %v12757_v44, %v14257_v60  ;;  %v5065_v38 = vmul.f32 %v12751_v25, %v14257_v60 }
0x1713   :  { %5442 = vmax.xlane.f32.xlu2 %v12828_v45  ;;  %v5116_v34 = vpack.c.bf16 %v5066_v61, %v5065_v38 }
0x1718   :  { %v5287_v43 = vpop.f32.mrf.mxu1 }
0x1719   :  { %v12838_v40 = vadd.f32 %v8313_v32, %v5287_v43  ;;  %v5068_v32 = vmul.f32 %v12767_v29, %v14257_v60 }
0x171b   :  { %5444 = vmax.xlane.f32.xlu0 %v12838_v40  ;;  %6990 = vmatmul.msk.bf16.gmra.mxu1 %vm459_vm1, %v5114_v16  ;;  %v5067_v16 = vmul.f32 %v12760_v23, %v14257_v60 }
0x1720   :  { %v5289_v55 = vpop.f32.mrf.mxu1 }
0x1721   :  { %v12845_v48 = vadd.f32 %v8314_v19, %v5289_v55  ;;  %v5117_v55 = vpack.c.bf16 %v5068_v32, %v5067_v16 }
0x1723   :  { %5446 = vmax.xlane.f32.xlu1 %v12845_v48 }
0x1728   :  { %v5292_v33 = vpop.f32.mrf.mxu1 }
0x1729   :  { %v12855_v24 = vadd.f32 %v8315_v57, %v5292_v33  ;;  %v5069_v33 = vmul.f32 %v12773_v49, %v14257_v60  ;;  %v14282_v60 = vpack.c.bf16 %v12583_v18, %v12569_v6 }
0x172b   :  { %5448 = vmax.xlane.f32.xlu1 %v12855_v24  ;;  %6991 = vmatmul.msk.bf16.gmra.mxu1 %vm459_vm1, %v5115_v5  ;;  %v5118_v57 = vpack.c.bf16 %v5070_v22, %v5069_v33 }
0x1730   :  { %v5294_v30 = vpop.f32.mrf.mxu1 }
0x1738   :  { %v5297_v3 = vpop.f32.mrf.mxu1 }
0x173b   :  { %6992 = vmatmul.msk.bf16.gmra.mxu1 %vm459_vm1, %v5116_v34 }
0x1740   :  { %v5299_v43 = vpop.f32.mrf.mxu1 }
0x1748   :  { %v5302_v19 = vpop.f32.mrf.mxu1 }
0x174b   :  { %6993 = vmatmul.msk.bf16.gmra.mxu1 %vm459_vm1, %v5117_v55 }
0x1750   :  { %v5304_v27 = vpop.f32.mrf.mxu1 }
0x1758   :  { %v12875_v38 = vpop.f32.mrf.mxu1 }
0x175b   :  { %6994 = vmatmul.msk.bf16.gmra.mxu1 %vm459_vm1, %v5118_v57 }
0x175e   :  { %v5433_v5 = vpop.xlane.xlu0 %5432 }
0x175f   :  { %v5560_v61 = vsub.f32 %v12786_v13, %v5433_v5 }
0x1760   :  { %v12880_v39 = vpop.f32.mrf.mxu1 }
0x1761   :  { %v5624_v34 = vmul.f32 1.442695, %v5560_v61 }
0x1763   :  { %7917 = vpow2.f32 %v5624_v34 }
0x1766   :  { %v5435_v32 = vpop.xlane.xlu1 %5434 }
0x1767   :  { %v5561_v16 = vsub.f32 %v12796_v7, %v5435_v32  ;;  %v8316_v7 = vld [vmem:[%s14011_s3 + $0x48] sm:$0xff]  ;;  %v14283_v32 = vpack.c.bf16 %v12635_v8, %v12621_v15 }
0x1768   :  { %v12891_v33 = vadd.f32 %v8316_v7, %v5294_v30 }
0x1769   :  { %v12878_v55 = vpop.eup %7917  ;;  %v5626_v36 = vmul.f32 1.442695, %v5561_v16 }
0x176a   :  { %5752 = vadd.xlane.f32.xlu2 %v12878_v55 }
0x176b   :  { %7919 = vpow2.f32 %v5626_v36  ;;  %6995 = vmatmul.msk.bf16.gmra.mxu1 %vm459_vm1, %v14282_v60  ;;  %v12897_v36 = vpop.f32.mrf.mxu1 }
0x176e   :  { %v5437_v13 = vpop.xlane.xlu2 %5436 }
0x176f   :  { %v5562_v22 = vsub.f32 %v12802_v47, %v5437_v13  ;;  %v8317_v47 = vld [vmem:[%s14011_s3 + $0x50] sm:$0xff] }
0x1770   :  { %v12903_v61 = vadd.f32 %v8317_v47, %v5297_v3  ;;  %v8318_v3 = vld [vmem:[%s14011_s3 + $0x58] sm:$0xff]  ;;  %v14284_v47 = vpack.c.bf16 %v12685_v50, %v12671_v54  ;;  %v5078_v54 = vmul.f32 %v12742_v26, %v14258_v1 }
0x1771   :  { %v12893_v57 = vpop.eup %7919  ;;  %v5628_v5 = vmul.f32 1.442695, %v5562_v22  ;;  %v12919_v13 = vadd.f32 %v8318_v3, %v5299_v43 }
0x1772   :  { %5754 = vadd.xlane.f32.xlu0 %v12893_v57  ;;  %5450 = vmax.xlane.f32.xlu2 %v12891_v33 }
0x1773   :  { %7921 = vpow2.f32 %v5628_v5 }
0x1776   :  { %v5439_v6 = vpop.xlane.xlu0 %5438 }
0x1777   :  { %v5563_v18 = vsub.f32 %v12812_v4, %v5439_v6  ;;  %v12913_v4 = vpop.f32.mrf.mxu1 }
0x1779   :  { %v12905_v30 = vpop.eup %7921  ;;  %v5630_v34 = vmul.f32 1.442695, %v5563_v18 }
0x177a   :  { %5756 = vadd.xlane.f32.xlu0 %v12905_v30  ;;  %5452 = vmax.xlane.f32.xlu2 %v12903_v61 }
0x177b   :  { %7923 = vpow2.f32 %v5630_v34  ;;  %6996 = vmatmul.msk.bf16.gmra.mxu1 %vm459_vm1, %v14283_v32 }
0x177e   :  { %v5441_v16 = vpop.xlane.xlu1 %5440 }
0x177f   :  { %v5564_v60 = vsub.f32 %v12818_v56, %v5441_v16  ;;  %v8319_v56 = vld [vmem:[%s14011_s3 + $0x60] sm:$0xff]  ;;  %v5317_v6 = vpop.f32.mrf.mxu1 }
0x1780   :  { %v12929_v5 = vadd.f32 %v8319_v56, %v5302_v19  ;;  %v8320_v19 = vld [vmem:[%s14011_s3 + $0x68] sm:$0xff] }
0x1781   :  { %v12921_v22 = vpop.eup %7923  ;;  %v5632_v7 = vmul.f32 1.442695, %v5564_v60  ;;  %v12943_v32 = vadd.f32 %v8320_v19, %v5304_v27 }
0x1782   :  { %5454 = vmax.xlane.f32.xlu0 %v12919_v13  ;;  %5758 = vadd.xlane.f32.xlu1 %v12921_v22 }
0x1783   :  { %7925 = vpow2.f32 %v5632_v7  ;;  %v8321_v7 = vld [vmem:[%s14011_s3 + $0x70] sm:$0xff] }
0x1786   :  { %v5443_v15 = vpop.xlane.xlu2 %5442 }
0x1787   :  { %v5565_v8 = vsub.f32 %v12828_v45, %v5443_v15  ;;  %v12947_v3 = vpop.f32.mrf.mxu1  ;;  %v12960_v15 = vadd.f32 %v8321_v7, %v12875_v38  ;;  %v8322_v38 = vld [vmem:[%s14011_s3 + $0x78] sm:$0xff] }
0x1789   :  { %v12931_v43 = vpop.eup %7925  ;;  %v5634_v18 = vmul.f32 1.442695, %v5565_v8 }
0x178a   :  { %5456 = vmax.xlane.f32.xlu0 %v12929_v5  ;;  %5760 = vadd.xlane.f32.xlu1 %v12931_v43 }
0x178b   :  { %7927 = vpow2.f32 %v5634_v18  ;;  %6997 = vmatmul.msk.bf16.gmra.mxu1 %vm459_vm1, %v14284_v47 }
0x178e   :  { %v5445_v45 = vpop.xlane.xlu0 %5444 }
0x178f   :  { %v5566_v34 = vsub.f32 %v12838_v40, %v5445_v45  ;;  %v5077_v40 = vmul.f32 %v12737_v28, %v14258_v1  ;;  %v12967_v47 = vpop.f32.mrf.mxu1 }
0x1791   :  { %v12945_v16 = vpop.eup %7927  ;;  %v5636_v60 = vmul.f32 1.442695, %v5566_v34  ;;  %v5122_v18 = vpack.c.bf16 %v5078_v54, %v5077_v40  ;;  %v12974_v34 = vadd.f32 %v8322_v38, %v12880_v39  ;;  %v5080_v54 = vmul.f32 %v12748_v35, %v14258_v1  ;;  %v8323_v39 = vld [vmem:[%s14011_s3 + $0x80] sm:$0xff]  ;;  %v8325_v38 = vld [vmem:[%s14011_s3 + $0x90] sm:$0xff] }
0x1792   :  { %5762 = vadd.xlane.f32.xlu2 %v12945_v16  ;;  %5458 = vmax.xlane.f32.xlu1 %v12943_v32  ;;  %v12990_v40 = vadd.f32 %v8323_v39, %v12897_v36  ;;  %v5082_v36 = vmul.f32 %v12757_v44, %v14258_v1  ;;  %v5084_v39 = vmul.f32 %v12767_v29, %v14258_v1 }
0x1793   :  { %7929 = vpow2.f32 %v5636_v60 }
0x1796   :  { %v5447_v50 = vpop.xlane.xlu1 %5446 }
0x1797   :  { %v5567_v27 = vsub.f32 %v12845_v48, %v5447_v50  ;;  %v12982_v50 = vpop.f32.mrf.mxu1 }
0x1799   :  { %v12962_v8 = vpop.eup %7929  ;;  %v5638_v56 = vmul.f32 1.442695, %v5567_v27 }
0x179a   :  { %5764 = vadd.xlane.f32.xlu2 %v12962_v8  ;;  %5460 = vmax.xlane.f32.xlu1 %v12960_v15 }
0x179b   :  { %7931 = vpow2.f32 %v5638_v56  ;;  %6998 = vmatmul.msk.bf16.gmra.mxu1 %vm459_vm1, %v5122_v18  ;;  %v8324_v56 = vld [vmem:[%s14011_s3 + $0x88] sm:$0xff] }
0x179c   :  { %v13001_v18 = vadd.f32 %v8324_v56, %v12913_v4 }
0x179e   :  { %v5449_v48 = vpop.xlane.xlu1 %5448 }
0x179f   :  { %v5568_v45 = vsub.f32 %v12855_v24, %v5449_v48  ;;  %v5079_v24 = vmul.f32 %v12740_v17, %v14258_v1  ;;  %v13003_v48 = vpop.f32.mrf.mxu1 }
0x17a1   :  { %v12976_v19 = vpop.eup %7931  ;;  %v5640_v60 = vmul.f32 1.442695, %v5568_v45  ;;  %v5123_v7 = vpack.c.bf16 %v5080_v54, %v5079_v24  ;;  %v5081_v45 = vmul.f32 %v12751_v25, %v14258_v1 }
0x17a2   :  { %5766 = vadd.xlane.f32.xlu0 %v12976_v19  ;;  %5462 = vmax.xlane.f32.xlu2 %v12974_v34 }
0x17a3   :  { %7933 = vpow2.f32 %v5640_v60  ;;  %v13013_v60 = vadd.f32 %v8325_v38, %v5317_v6  ;;  %v5124_v54 = vpack.c.bf16 %v5082_v36, %v5081_v45  ;;  %v5086_v36 = vmul.f32 %v12776_v58, %v14258_v1 }
0x17a4   :  { %v5085_v45 = vmul.f32 %v12773_v49, %v14258_v1 }
0x17a7   :  { %v13015_v24 = vpop.f32.mrf.mxu1 }
0x17a9   :  { %v12992_v27 = vpop.eup %7933 }
0x17aa   :  { %5768 = vadd.xlane.f32.xlu0 %v12992_v27  ;;  %5464 = vmax.xlane.f32.xlu2 %v12990_v40 }
0x17ab   :  { %6999 = vmatmul.msk.bf16.gmra.mxu1 %vm459_vm1, %v5123_v7  ;;  %v5083_v7 = vmul.f32 %v12760_v23, %v14258_v1  ;;  %v14285_v1 = vpack.c.bf16 %v12587_v46, %v12575_v10 }
0x17ad   :  { %v5125_v56 = vpack.c.bf16 %v5084_v39, %v5083_v7 }
0x17af   :  { %v13019_v4 = vpop.f32.mrf.mxu1 }
0x17b2   :  { %5466 = vmax.xlane.f32.xlu0 %v13001_v18 }
0x17b7   :  { %v13026_v6 = vpop.f32.mrf.mxu1 }
0x17ba   :  { %5468 = vmax.xlane.f32.xlu0 %v13013_v60 }
0x17bb   :  { %7000 = vmatmul.msk.bf16.gmra.mxu1 %vm459_vm1, %v5124_v54  ;;  %v5126_v54 = vpack.c.bf16 %v5086_v36, %v5085_v45 }
0x17bf   :  { %v13032_v38 = vpop.f32.mrf.mxu1 }
0x17c7   :  { %v13035_v59 = vpop.f32.mrf.mxu1 }
0x17cb   :  { %7001 = vmatmul.msk.bf16.gmra.mxu1 %vm459_vm1, %v5125_v56 }
0x17cf   :  { %v13042_v45 = vpop.f32.mrf.mxu1 }
0x17db   :  { %7002 = vmatmul.msk.bf16.gmra.mxu1 %vm459_vm1, %v5126_v54 }
0x17dd   :  { %v5753_v31 = vpop.xlane.xlu2 %5752 }
0x17de   :  { %7935 = vrcp.f32 %v5753_v31 }
0x17e4   :  { %v7936_v2 = vpop.eup %7935 }
0x17e5   :  { %v5451_v39 = vpop.xlane.xlu2 %5450  ;;  %v5755_v7 = vpop.xlane.xlu0 %5754  ;;  %v5944_v54 = vmul.f32 %v7936_v2, %v12878_v55 }
0x17e6   :  { %v5569_v56 = vsub.f32 %v12891_v33, %v5451_v39  ;;  %7937 = vrcp.f32 %v5755_v7 }
0x17e8   :  { %v5642_v53 = vmul.f32 1.442695, %v5569_v56  ;;  %v13050_v56 = vpop.f32.mrf.mxu1 }
0x17ea   :  { %7939 = vpow2.f32 %v5642_v53 }
0x17eb   :  { %7003 = vmatmul.msk.bf16.gmra.mxu1 %vm459_vm1, %v14285_v1 }
0x17ec   :  { %v7938_v36 = vpop.eup %7937 }
0x17ed   :  { %v5945_v31 = vmul.f32 %v7938_v36, %v12893_v57  ;;  %v5453_v0 = vpop.xlane.xlu2 %5452  ;;  %v5757_v11 = vpop.xlane.xlu0 %5756 }
0x17ee   :  { %v5570_v33 = vsub.f32 %v12903_v61, %v5453_v0  ;;  %v14286_v61 = vpack.c.bf16 %v12639_v62, %v12627_v41 }
0x17ef   :  { %v6008_v39 = vpack.c.bf16 %v5945_v31, %v5944_v54 }
0x17f0   :  { %v13047_v7 = vpop.eup %7939  ;;  %v5644_v53 = vmul.f32 1.442695, %v5570_v33  ;;  %v13071_v62 = vpop.f32.mrf.mxu1 }
0x17f1   :  { %6048 = vmatmul.bf16.vlgmr.msrb.gmra.mxu3 %v6008_v39  ;;  %5770 = vadd.xlane.f32.xlu1 %v13047_v7 }
0x17f2   :  { %7941 = vpow2.f32 %v5644_v53  ;;  %v8326_v53 = vld [vmem:[%s14011_s3 + $0x98] sm:$0xff] }
0x17f3   :  { %7943 = vrcp.f32 %v5757_v11  ;;  %v13069_v41 = vadd.f32 %v8326_v53, %v12947_v3  ;;  %v8327_v3 = vld [vmem:[%s14011_s3 + $0xa0] sm:$0xff]  ;;  %v8328_v53 = vld [vmem:[%s14011_s3 + $0xa8] sm:$0xff] }
0x17f5   :  { %v5759_v10 = vpop.xlane.xlu1 %5758  ;;  %v5455_v46 = vpop.xlane.xlu0 %5454 }
0x17f6   :  { %7945 = vrcp.f32 %v5759_v10  ;;  %v5571_v2 = vsub.f32 %v12919_v13, %v5455_v46 }
0x17f8   :  { %v13053_v55 = vpop.eup %7941  ;;  %v5646_v57 = vmul.f32 1.442695, %v5571_v2  ;;  %v13082_v2 = vadd.f32 %v8327_v3, %v12967_v47 }
0x17f9   :  { %5772 = vadd.xlane.f32.xlu1 %v13053_v55  ;;  %v7944_v0 = vpop.eup %7943 }
0x17fa   :  { %7947 = vpow2.f32 %v5646_v57  ;;  %v5946_v54 = vmul.f32 %v7944_v0, %v12905_v30 }
0x17fb   :  { %7004 = vmatmul.msk.bf16.gmra.mxu1 %vm459_vm1, %v14286_v61  ;;  %v13085_v61 = vpop.f32.mrf.mxu1 }
0x17fc   :  { %v7946_v11 = vpop.eup %7945 }
0x17fd   :  { %v5761_v1 = vpop.xlane.xlu1 %5760  ;;  %v5457_v36 = vpop.xlane.xlu0 %5456  ;;  %v5947_v31 = vmul.f32 %v7946_v11, %v12921_v22 }
0x17fe   :  { %v5572_v13 = vsub.f32 %v12929_v5, %v5457_v36 }
0x17ff   :  { %v6009_v33 = vpack.c.bf16 %v5947_v31, %v5946_v54 }
0x1800   :  { %v13063_v39 = vpop.eup %7947  ;;  %v5648_v10 = vmul.f32 1.442695, %v5572_v13 }
0x1801   :  { %6053 = vmatmul.bf16.gmra.mxu3 %v6009_v33  ;;  %5774 = vadd.xlane.f32.xlu2 %v13063_v39 }
0x1802   :  { %7949 = vpow2.f32 %v5648_v10  ;;  %5470 = vmax.xlane.f32.xlu1 %v13069_v41 }
0x1803   :  { %7951 = vrcp.f32 %v5761_v1 }
0x1805   :  { %v5763_v30 = vpop.xlane.xlu2 %5762  ;;  %v5459_v22 = vpop.xlane.xlu1 %5458 }
0x1806   :  { %7953 = vrcp.f32 %v5763_v30  ;;  %v5573_v5 = vsub.f32 %v12943_v32, %v5459_v22  ;;  %v14287_v32 = vpack.c.bf16 %v12689_v12, %v12677_v20  ;;  %v13101_v12 = vadd.f32 %v8328_v53, %v12982_v50 }
0x1807   :  { %v5093_v50 = vmul.f32 %v12737_v28, %v14259_v63 }
0x1808   :  { %v13076_v46 = vpop.eup %7949  ;;  %v5650_v57 = vmul.f32 1.442695, %v5573_v5  ;;  %v8329_v5 = vld [vmem:[%s14011_s3 + $0xb0] sm:$0xff] }
0x1809   :  { %5776 = vadd.xlane.f32.xlu2 %v13076_v46  ;;  %v7952_v0 = vpop.eup %7951  ;;  %v13118_v3 = vadd.f32 %v8329_v5, %v13003_v48 }
0x180a   :  { %7955 = vpow2.f32 %v5650_v57  ;;  %5472 = vmax.xlane.f32.xlu1 %v13082_v2  ;;  %v5948_v47 = vmul.f32 %v7952_v0, %v12931_v43  ;;  %v13105_v43 = vpop.f32.mrf.mxu1 }
0x180b   :  { %7005 = vmatmul.msk.bf16.gmra.mxu1 %vm459_vm1, %v14287_v32 }
0x180c   :  { %v7954_v11 = vpop.eup %7953 }
0x180d   :  { %v5765_v1 = vpop.xlane.xlu2 %5764  ;;  %v5461_v36 = vpop.xlane.xlu1 %5460  ;;  %v5949_v54 = vmul.f32 %v7954_v11, %v12945_v16  ;;  %v5094_v16 = vmul.f32 %v12742_v26, %v14259_v63 }
0x180e   :  { %v5574_v31 = vsub.f32 %v12960_v15, %v5461_v36 }
0x180f   :  { %v6010_v13 = vpack.c.bf16 %v5949_v54, %v5948_v47  ;;  %v5130_v26 = vpack.c.bf16 %v5094_v16, %v5093_v50  ;;  %v8332_v50 = vld [vmem:[%s14011_s3 + $0xc8] sm:$0xff] }
0x1810   :  { %v13095_v33 = vpop.eup %7955  ;;  %v5652_v20 = vmul.f32 1.442695, %v5574_v31  ;;  %v8330_v31 = vld [vmem:[%s14011_s3 + $0xb8] sm:$0xff] }
0x1811   :  { %6058 = vmatmul.bf16.gmra.mxu3 %v6010_v13  ;;  %5778 = vadd.xlane.f32.xlu0 %v13095_v33  ;;  %v13136_v13 = vadd.f32 %v8330_v31, %v13015_v24  ;;  %v8331_v24 = vld [vmem:[%s14011_s3 + $0xc0] sm:$0xff] }
0x1812   :  { %7957 = vpow2.f32 %v5652_v20  ;;  %5474 = vmax.xlane.f32.xlu2 %v13101_v12  ;;  %v13128_v36 = vpop.f32.mrf.mxu1  ;;  %v5095_v20 = vmul.f32 %v12740_v17, %v14259_v63 }
0x1813   :  { %7959 = vrcp.f32 %v5765_v1 }
0x1815   :  { %v5767_v15 = vpop.xlane.xlu0 %5766  ;;  %v5463_v10 = vpop.xlane.xlu2 %5462 }
0x1816   :  { %7961 = vrcp.f32 %v5767_v15  ;;  %v5575_v30 = vsub.f32 %v12974_v34, %v5463_v10  ;;  %v13151_v15 = vadd.f32 %v8331_v24, %v13019_v4  ;;  %v13163_v4 = vadd.f32 %v8332_v50, %v13026_v6  ;;  %v8333_v6 = vld [vmem:[%s14011_s3 + $0xd0] sm:$0xff] }
0x1818   :  { %v13112_v22 = vpop.eup %7957  ;;  %v5654_v57 = vmul.f32 1.442695, %v5575_v30 }
0x1819   :  { %5780 = vadd.xlane.f32.xlu0 %v13112_v22  ;;  %v7960_v0 = vpop.eup %7959 }
0x181a   :  { %7963 = vpow2.f32 %v5654_v57  ;;  %5476 = vmax.xlane.f32.xlu2 %v13118_v3  ;;  %v5950_v11 = vmul.f32 %v7960_v0, %v12962_v8  ;;  %v5096_v8 = vmul.f32 %v12748_v35, %v14259_v63  ;;  %v13153_v30 = vpop.f32.mrf.mxu1  ;;  %v5097_v0 = vmul.f32 %v12751_v25, %v14259_v63  ;;  %v8334_v25 = vld [vmem:[%s14011_s3 + $0xd8] sm:$0xff] }
0x181b   :  { %7006 = vmatmul.msk.bf16.gmra.mxu1 %vm459_vm1, %v5130_v26 }
0x181c   :  { %v7962_v28 = vpop.eup %7961  ;;  %v5131_v35 = vpack.c.bf16 %v5096_v8, %v5095_v20 }
0x181d   :  { %v13123_v34 = vpop.xlane.xlu0 %5768  ;;  %v5465_v32 = vpop.xlane.xlu2 %5464  ;;  %v5951_v1 = vmul.f32 %v7962_v28, %v12976_v19  ;;  %v13179_v28 = vadd.f32 %v8333_v6, %v13032_v38  ;;  %v5100_v38 = vmul.f32 %v12767_v29, %v14259_v63  ;;  %v5102_v29 = vmul.f32 %v12776_v58, %v14259_v63 }
0x181e   :  { %v5576_v48 = vsub.f32 %v12990_v40, %v5465_v32 }
0x181f   :  { %v6011_v47 = vpack.c.bf16 %v5951_v1, %v5950_v11  ;;  %v13192_v1 = vadd.f32 %v8334_v25, %v13035_v59 }
0x1820   :  { %v13130_v54 = vpop.eup %7963  ;;  %v5656_v53 = vmul.f32 1.442695, %v5576_v48  ;;  %v5099_v48 = vmul.f32 %v12760_v23, %v14259_v63  ;;  %v5101_v23 = vmul.f32 %v12773_v49, %v14259_v63 }
0x1821   :  { %6063 = vmatmul.bf16.gmra.mxu3 %v6011_v47  ;;  %5782 = vadd.xlane.f32.xlu1 %v13130_v54  ;;  %v8335_v47 = vld [vmem:[%s14011_s3 + $0xe0] sm:$0xff] }
0x1822   :  { %7965 = vpow2.f32 %v5656_v53  ;;  %5478 = vmax.xlane.f32.xlu0 %v13136_v13  ;;  %v13169_v26 = vpop.f32.mrf.mxu1  ;;  %v13203_v31 = vadd.f32 %v8335_v47, %v13042_v45  ;;  %v5133_v59 = vpack.c.bf16 %v5100_v38, %v5099_v48 }
0x1825   :  { %v5467_v19 = vpop.xlane.xlu0 %5466 }
0x1826   :  { %v5577_v40 = vsub.f32 %v13001_v18, %v5467_v19  ;;  %v5134_v19 = vpack.c.bf16 %v5102_v29, %v5101_v23 }
0x1828   :  { %v13145_v16 = vpop.eup %7965  ;;  %v5658_v10 = vmul.f32 1.442695, %v5577_v40 }
0x1829   :  { %5784 = vadd.xlane.f32.xlu1 %v13145_v16 }
0x182a   :  { %7967 = vpow2.f32 %v5658_v10  ;;  %5480 = vmax.xlane.f32.xlu0 %v13151_v15 }
0x182b   :  { %7007 = vmatmul.msk.bf16.gmra.mxu1 %vm459_vm1, %v5131_v35 }
0x182d   :  { %v5469_v17 = vpop.xlane.xlu0 %5468 }
0x182e   :  { %v5578_v18 = vsub.f32 %v13013_v60, %v5469_v17  ;;  %v5098_v60 = vmul.f32 %v12757_v44, %v14259_v63  ;;  %v13186_v44 = vpop.f32.mrf.mxu1 }
0x1830   :  { %v13165_v5 = vpop.eup %7967  ;;  %v5660_v57 = vmul.f32 1.442695, %v5578_v18  ;;  %v5132_v11 = vpack.c.bf16 %v5098_v60, %v5097_v0 }
0x1831   :  { %5786 = vadd.xlane.f32.xlu2 %v13165_v5  ;;  %5482 = vmax.xlane.f32.xlu1 %v13163_v4 }
0x1832   :  { %7969 = vpow2.f32 %v5660_v57 }
0x1833   :  { %7971 = vrcp.f32 %v13123_v34 }
0x1836   :  { %v13205_v53 = vpop.f32.mrf.mxu1 }
0x1838   :  { %v13181_v32 = vpop.eup %7969 }
0x1839   :  { %5788 = vadd.xlane.f32.xlu2 %v13181_v32  ;;  %5484 = vmax.xlane.f32.xlu1 %v13179_v28  ;;  %v7972_v20 = vpop.eup %7971 }
0x183a   :  { %v5952_v35 = vmul.f32 %v7972_v20, %v12992_v27 }
0x183b   :  { %7008 = vmatmul.msk.bf16.gmra.mxu1 %vm459_vm1, %v5132_v11 }
0x183e   :  { %v13209_v8 = vpop.f32.mrf.mxu1 }
0x1841   :  { %5486 = vmax.xlane.f32.xlu2 %v13192_v1 }
0x1846   :  { %v13215_v40 = vpop.f32.mrf.mxu1 }
0x1849   :  { %5488 = vmax.xlane.f32.xlu2 %v13203_v31 }
0x184b   :  { %7009 = vmatmul.msk.bf16.gmra.mxu1 %vm459_vm1, %v5133_v59 }
0x185b   :  { %7010 = vmatmul.msk.bf16.gmra.mxu1 %vm459_vm1, %v5134_v19 }
0x1864   :  { %v5771_v45 = vpop.xlane.xlu1 %5770 }
0x1865   :  { %7973 = vrcp.f32 %v5771_v45 }
0x186b   :  { %v7974_v24 = vpop.eup %7973 }
0x186c   :  { %v5773_v10 = vpop.xlane.xlu1 %5772  ;;  %v5953_v17 = vmul.f32 %v7974_v24, %v13047_v7 }
0x186d   :  { %7975 = vrcp.f32 %v5773_v10 }
0x186e   :  { %v6012_v58 = vpack.c.bf16 %v5953_v17, %v5952_v35 }
0x1870   :  { %6068 = vmatmul.bf16.gmra.mxu3 %v6012_v58 }
0x1873   :  { %v7976_v57 = vpop.eup %7975 }
0x1874   :  { %v5775_v63 = vpop.xlane.xlu2 %5774  ;;  %v5954_v0 = vmul.f32 %v7976_v57, %v13053_v55 }
0x1875   :  { %7977 = vrcp.f32 %v5775_v63  ;;  %v5471_v49 = vpop.xlane.xlu1 %5470 }
0x1876   :  { %v5579_v18 = vsub.f32 %v13069_v41, %v5471_v49 }
0x1878   :  { %v5662_v50 = vmul.f32 1.442695, %v5579_v18 }
0x187a   :  { %7979 = vpow2.f32 %v5662_v50 }
0x187b   :  { %v7978_v34 = vpop.eup %7977 }
0x187c   :  { %v5777_v60 = vpop.xlane.xlu2 %5776  ;;  %v5955_v6 = vmul.f32 %v7978_v34, %v13063_v39 }
0x187d   :  { %v5473_v27 = vpop.xlane.xlu1 %5472 }
0x187e   :  { %v5580_v7 = vsub.f32 %v13082_v2, %v5473_v27  ;;  %v6013_v11 = vpack.c.bf16 %v5955_v6, %v5954_v0  ;;  %v8338_v6 = vld [vmem:[%s14011_s3 + $0xf8] sm:$0xff] }
0x187f   :  { %v13263_v27 = vadd.f32 %v8338_v6, %v13085_v61  ;;  %v8339_v61 = vld [vmem:[%s14011_s3 + $0x100] sm:$0xff] }
0x1880   :  { %v13225_v25 = vpop.eup %7979  ;;  %v5664_v38 = vmul.f32 1.442695, %v5580_v7  ;;  %6073 = vmatmul.bf16.gmra.mxu3 %v6013_v11 }
0x1881   :  { %5790 = vadd.xlane.f32.xlu0 %v13225_v25 }
0x1882   :  { %7981 = vpow2.f32 %v5664_v38 }
0x1883   :  { %7983 = vrcp.f32 %v5777_v60 }
0x1884   :  { %v5779_v41 = vpop.xlane.xlu0 %5778 }
0x1885   :  { %7985 = vrcp.f32 %v5779_v41  ;;  %v5475_v48 = vpop.xlane.xlu2 %5474  ;;  %v13276_v41 = vadd.f32 %v8339_v61, %v13105_v43 }
0x1886   :  { %v5581_v47 = vsub.f32 %v13101_v12, %v5475_v48  ;;  %v8336_v12 = vld [vmem:[%s14011_s3 + $0xe8] sm:$0xff] }
0x1887   :  { %v13239_v10 = vadd.f32 %v8336_v12, %v13050_v56  ;;  %v8337_v56 = vld [vmem:[%s14011_s3 + $0xf0] sm:$0xff] }
0x1888   :  { %v13229_v55 = vpop.eup %7981  ;;  %v5666_v39 = vmul.f32 1.442695, %v5581_v47  ;;  %v13250_v58 = vadd.f32 %v8337_v56, %v13071_v62 }
0x1889   :  { %v7984_v59 = vpop.eup %7983  ;;  %5792 = vadd.xlane.f32.xlu0 %v13229_v55 }
0x188a   :  { %7987 = vpow2.f32 %v5666_v39  ;;  %v5956_v23 = vmul.f32 %v7984_v59, %v13076_v46 }
0x188b   :  { %v7986_v2 = vpop.eup %7985 }
0x188c   :  { %v5781_v29 = vpop.xlane.xlu0 %5780  ;;  %v5957_v19 = vmul.f32 %v7986_v2, %v13095_v33 }
0x188d   :  { %v5477_v45 = vpop.xlane.xlu2 %5476 }
0x188e   :  { %v5582_v20 = vsub.f32 %v13118_v3, %v5477_v45  ;;  %v6014_v24 = vpack.c.bf16 %v5957_v19, %v5956_v23  ;;  %v8340_v45 = vld [vmem:[%s14011_s3 + $0x108] sm:$0xff] }
0x1890   :  { %v13241_v35 = vpop.eup %7987  ;;  %v5668_v17 = vmul.f32 1.442695, %v5582_v20  ;;  %6078 = vmatmul.bf16.gmra.mxu3 %v6014_v24  ;;  %v13289_v20 = vadd.f32 %v8340_v45, %v13128_v36 }
0x1891   :  { %5794 = vadd.xlane.f32.xlu1 %v13241_v35  ;;  %5490 = vmax.xlane.f32.xlu0 %v13239_v10 }
0x1892   :  { %7989 = vpow2.f32 %v5668_v17 }
0x1893   :  { %7991 = vrcp.f32 %v5781_v29 }
0x1894   :  { %v5783_v46 = vpop.xlane.xlu1 %5782 }
0x1895   :  { %v5479_v33 = vpop.xlane.xlu0 %5478  ;;  %7993 = vrcp.f32 %v5783_v46 }
0x1896   :  { %v5583_v3 = vsub.f32 %v13136_v13, %v5479_v33 }
0x1898   :  { %v13252_v63 = vpop.eup %7989  ;;  %v5670_v49 = vmul.f32 1.442695, %v5583_v3 }
0x1899   :  { %v7992_v18 = vpop.eup %7991  ;;  %5796 = vadd.xlane.f32.xlu1 %v13252_v63  ;;  %5492 = vmax.xlane.f32.xlu0 %v13250_v58 }
0x189a   :  { %7995 = vpow2.f32 %v5670_v49  ;;  %v5958_v13 = vmul.f32 %v7992_v18, %v13112_v22 }
0x189b   :  { %v7994_v50 = vpop.eup %7993 }
0x189c   :  { %v5785_v57 = vpop.xlane.xlu1 %5784  ;;  %v5959_v34 = vmul.f32 %v7994_v50, %v13130_v54  ;;  %v13269_v54 = vpop.f32.mrf.mxu3 }
0x189d   :  { %v5481_v60 = vpop.xlane.xlu0 %5480 }
0x189e   :  { %v5584_v0 = vsub.f32 %v13151_v15, %v5481_v60  ;;  %v6015_v62 = vpack.c.bf16 %v5959_v34, %v5958_v13  ;;  %v8344_v60 = vld [vmem:[%s14011_s3 + $0x128] sm:$0xff] }
0x18a0   :  { %v13265_v7 = vpop.eup %7995  ;;  %v5672_v11 = vmul.f32 1.442695, %v5584_v0  ;;  %6083 = vmatmul.bf16.gmra.mxu3 %v6015_v62  ;;  %v13339_v0 = vadd.f32 %v8344_v60, %v13205_v53 }
0x18a1   :  { %5494 = vmax.xlane.f32.xlu1 %v13263_v27  ;;  %5798 = vadd.xlane.f32.xlu2 %v13265_v7 }
0x18a2   :  { %7997 = vpow2.f32 %v5672_v11 }
0x18a3   :  { %7999 = vrcp.f32 %v5785_v57 }
0x18a4   :  { %v5787_v22 = vpop.xlane.xlu2 %5786  ;;  %v5483_v15 = vpop.xlane.xlu1 %5482 }
0x18a5   :  { %8001 = vrcp.f32 %v5787_v22  ;;  %v5585_v38 = vsub.f32 %v13163_v4, %v5483_v15  ;;  %v13291_v24 = vpop.f32.mrf.mxu3 }
0x18a7   :  { %v5674_v47 = vmul.f32 1.442695, %v5585_v38 }
0x18a8   :  { %v13278_v48 = vpop.eup %7997 }
0x18a9   :  { %v8000_v39 = vpop.eup %7999  ;;  %5496 = vmax.xlane.f32.xlu1 %v13276_v41  ;;  %5800 = vadd.xlane.f32.xlu2 %v13278_v48  ;;  %8003 = vpow2.f32 %v5674_v47 }
0x18aa   :  { %v5960_v4 = vmul.f32 %v8000_v39, %v13145_v16 }
0x18ab   :  { %v8002_v59 = vpop.eup %8001 }
0x18ac   :  { %v5789_v2 = vpop.xlane.xlu2 %5788  ;;  %v5961_v29 = vmul.f32 %v8002_v59, %v13165_v5  ;;  %v5485_v23 = vpop.xlane.xlu1 %5484 }
0x18ad   :  { %v5586_v19 = vsub.f32 %v13179_v28, %v5485_v23  ;;  %v8341_v28 = vld [vmem:[%s14011_s3 + $0x110] sm:$0xff]  ;;  %v13306_v3 = vpop.f32.mrf.mxu3 }
0x18ae   :  { %v6016_v43 = vpack.c.bf16 %v5961_v29, %v5960_v4  ;;  %v13302_v36 = vadd.f32 %v8341_v28, %v13153_v30  ;;  %v8342_v30 = vld [vmem:[%s14011_s3 + $0x118] sm:$0xff] }
0x18af   :  { %v13293_v12 = vpop.eup %8003  ;;  %v5676_v17 = vmul.f32 1.442695, %v5586_v19  ;;  %v13317_v18 = vadd.f32 %v8342_v30, %v13169_v26 }
0x18b0   :  { %6088 = vmatmul.bf16.gmra.mxu3 %v6016_v43  ;;  %5802 = vadd.xlane.f32.xlu0 %v13293_v12 }
0x18b1   :  { %5498 = vmax.xlane.f32.xlu2 %v13289_v20  ;;  %8005 = vpow2.f32 %v5676_v17 }
0x18b4   :  { %v5487_v16 = vpop.xlane.xlu2 %5486 }
0x18b5   :  { %v5587_v5 = vsub.f32 %v13192_v1, %v5487_v16  ;;  %v13321_v57 = vpop.f32.mrf.mxu3 }
0x18b7   :  { %v5678_v46 = vmul.f32 1.442695, %v5587_v5  ;;  %v13304_v33 = vpop.eup %8005 }
0x18b8   :  { %5804 = vadd.xlane.f32.xlu0 %v13304_v33 }
0x18b9   :  { %8007 = vpow2.f32 %v5678_v46  ;;  %5500 = vmax.xlane.f32.xlu2 %v13302_v36 }
0x18bc   :  { %v5489_v56 = vpop.xlane.xlu2 %5488 }
0x18bd   :  { %v5588_v1 = vsub.f32 %v13203_v31, %v5489_v56  ;;  %v8343_v31 = vld [vmem:[%s14011_s3 + $0x120] sm:$0xff]  ;;  %v13333_v26 = vpop.f32.mrf.mxu3 }
0x18be   :  { %v13329_v34 = vadd.f32 %v8343_v31, %v13186_v44  ;;  %v8345_v44 = vld [vmem:[%s14011_s3 + $0x130] sm:$0xff] }
0x18bf   :  { %v13311_v49 = vpop.eup %8007  ;;  %v5680_v50 = vmul.f32 1.442695, %v5588_v1  ;;  %v13346_v62 = vadd.f32 %v8345_v44, %v13209_v8 }
0x18c0   :  { %5806 = vadd.xlane.f32.xlu1 %v13311_v49  ;;  %5502 = vmax.xlane.f32.xlu0 %v13317_v18 }
0x18c1   :  { %8009 = vpow2.f32 %v5680_v50 }
0x18c2   :  { %8011 = vrcp.f32 %v5789_v2 }
0x18c5   :  { %v13348_v6 = vpop.f32.mrf.mxu3 }
0x18c7   :  { %v13323_v13 = vpop.eup %8009 }
0x18c8   :  { %5808 = vadd.xlane.f32.xlu1 %v13323_v13  ;;  %5504 = vmax.xlane.f32.xlu0 %v13329_v34  ;;  %v8012_v38 = vpop.eup %8011 }
0x18c9   :  { %v5962_v8 = vmul.f32 %v8012_v38, %v13181_v32 }
0x18cd   :  { %v13351_v11 = vpop.f32.mrf.mxu3 }
0x18d0   :  { %5506 = vmax.xlane.f32.xlu1 %v13339_v0 }
0x18d5   :  { %v13353_v22 = vpop.f32.mrf.mxu3 }
0x18d8   :  { %5508 = vmax.xlane.f32.xlu1 %v13346_v62 }
0x18f3   :  { %v13355_v53 = vpop.f32.mrf.mxu3 }
0x18f4   :  { %v5791_v15 = vpop.xlane.xlu0 %5790 }
0x18f5   :  { %8013 = vrcp.f32 %v5791_v15 }
0x18fb   :  { %v8014_v61 = vpop.eup %8013  ;;  %v13357_v47 = vpop.f32.mrf.mxu3 }
0x18fc   :  { %v5793_v39 = vpop.xlane.xlu0 %5792  ;;  %v5963_v59 = vmul.f32 %v8014_v61, %v13225_v25 }
0x18fd   :  { %8015 = vrcp.f32 %v5793_v39 }
0x18fe   :  { %v6017_v4 = vpack.c.bf16 %v5963_v59, %v5962_v8 }
0x1900   :  { %6093 = vmatmul.bf16.gmra.mxu3 %v6017_v4 }
0x1903   :  { %v13361_v29 = vpop.f32.mrf.mxu3  ;;  %v8016_v45 = vpop.eup %8015 }
0x1904   :  { %v5491_v23 = vpop.xlane.xlu0 %5490  ;;  %v5795_v2 = vpop.xlane.xlu1 %5794  ;;  %v5964_v25 = vmul.f32 %v8016_v45, %v13229_v55 }
0x1905   :  { %v5589_v19 = vsub.f32 %v13239_v10, %v5491_v23  ;;  %8017 = vrcp.f32 %v5795_v2  ;;  %v5372_v10 = vpop.f32.mrf.mxu1 }
0x1907   :  { %v5682_v43 = vmul.f32 1.442695, %v5589_v19 }
0x1909   :  { %8019 = vpow2.f32 %v5682_v43 }
0x190b   :  { %v8018_v17 = vpop.eup %8017  ;;  %v13364_v16 = vpop.f32.mrf.mxu3 }
0x190c   :  { %v5493_v5 = vpop.xlane.xlu0 %5492  ;;  %v5797_v32 = vpop.xlane.xlu1 %5796  ;;  %v5965_v28 = vmul.f32 %v8018_v17, %v13241_v35 }
0x190d   :  { %v5590_v46 = vsub.f32 %v13250_v58, %v5493_v5  ;;  %v5374_v38 = vpop.f32.mrf.mxu1 }
0x190e   :  { %v6018_v56 = vpack.c.bf16 %v5965_v28, %v5964_v25 }
0x190f   :  { %v13369_v1 = vpop.eup %8019  ;;  %v5684_v30 = vmul.f32 1.442695, %v5590_v46 }
0x1910   :  { %5810 = vadd.xlane.f32.xlu2 %v13369_v1  ;;  %6098 = vmatmul.bf16.gmra.mxu3 %v6018_v56 }
0x1911   :  { %8021 = vpow2.f32 %v5684_v30 }
0x1912   :  { %8023 = vrcp.f32 %v5797_v32 }
0x1913   :  { %v13372_v50 = vpop.f32.mrf.mxu3 }
0x1914   :  { %v5799_v31 = vpop.xlane.xlu2 %5798  ;;  %v5495_v60 = vpop.xlane.xlu1 %5494 }
0x1915   :  { %8025 = vrcp.f32 %v5799_v31  ;;  %v5591_v55 = vsub.f32 %v13263_v27, %v5495_v60  ;;  %v8346_v27 = vld [vmem:[%s14011_s3 + $0x138] sm:$0xff]  ;;  %v5377_v32 = vpop.f32.mrf.mxu1 }
0x1916   :  { %v13387_v2 = vadd.f32 %v8346_v27, %v13215_v40  ;;  %v8347_v40 = vld [vmem:[%s14011_s3 + $0x140] sm:$0xff] }
0x1917   :  { %v13375_v35 = vpop.eup %8021  ;;  %v5686_v58 = vmul.f32 1.442695, %v5591_v55  ;;  %v13399_v5 = vadd.f32 %v8347_v40, %v5372_v10 }
0x1918   :  { %5812 = vadd.xlane.f32.xlu2 %v13375_v35  ;;  %v8024_v44 = vpop.eup %8023 }
0x1919   :  { %8027 = vpow2.f32 %v5686_v58  ;;  %v5966_v59 = vmul.f32 %v8024_v44, %v13252_v63 }
0x191b   :  { %v8026_v15 = vpop.eup %8025  ;;  %v13378_v61 = vpop.f32.mrf.mxu3 }
0x191c   :  { %v5801_v39 = vpop.xlane.xlu2 %5800  ;;  %v5497_v8 = vpop.xlane.xlu1 %5496  ;;  %v5967_v4 = vmul.f32 %v8026_v15, %v13265_v7  ;;  %v8348_v15 = vld [vmem:[%s14011_s3 + $0x148] sm:$0xff] }
0x191d   :  { %v5592_v23 = vsub.f32 %v13276_v41, %v5497_v8 }
0x191e   :  { %v6019_v19 = vpack.c.bf16 %v5967_v4, %v5966_v59  ;;  %v5379_v59 = vpop.f32.mrf.mxu1 }
0x191f   :  { %v13389_v43 = vpop.eup %8027  ;;  %v5688_v45 = vmul.f32 1.442695, %v5592_v23 }
0x1920   :  { %5510 = vmax.xlane.f32.xlu2 %v13387_v2  ;;  %6103 = vmatmul.bf16.gmra.mxu3 %v6019_v19 }
0x1921   :  { %8029 = vpow2.f32 %v5688_v45  ;;  %5814 = vadd.xlane.f32.xlu0 %v13389_v43  ;;  %v8349_v45 = vld [vmem:[%s14011_s3 + $0x150] sm:$0xff] }
0x1922   :  { %8031 = vrcp.f32 %v5801_v39  ;;  %v13415_v39 = vadd.f32 %v8348_v15, %v5374_v38 }
0x1923   :  { %v13393_v63 = vpop.f32.mrf.mxu3  ;;  %v5803_v41 = vpop.xlane.xlu0 %5802 }
0x1924   :  { %v5499_v7 = vpop.xlane.xlu2 %5498  ;;  %8033 = vrcp.f32 %v5803_v41 }
0x1925   :  { %v5593_v17 = vsub.f32 %v13289_v20, %v5499_v7  ;;  %v13430_v7 = vadd.f32 %v8349_v45, %v5377_v32  ;;  %v8350_v32 = vld [vmem:[%s14011_s3 + $0x158] sm:$0xff] }
0x1926   :  { %v5382_v40 = vpop.f32.mrf.mxu1 }
0x1927   :  { %v13401_v25 = vpop.eup %8029  ;;  %v5690_v28 = vmul.f32 1.442695, %v5593_v17 }
0x1928   :  { %5512 = vmax.xlane.f32.xlu2 %v13399_v5  ;;  %v8032_v46 = vpop.eup %8031 }
0x1929   :  { %8035 = vpow2.f32 %v5690_v28  ;;  %5816 = vadd.xlane.f32.xlu0 %v13401_v25  ;;  %v5968_v60 = vmul.f32 %v8032_v46, %v13278_v48 }
0x192a   :  { %v8034_v56 = vpop.eup %8033 }
0x192b   :  { %v13405_v30 = vpop.f32.mrf.mxu3  ;;  %v5805_v31 = vpop.xlane.xlu0 %5804  ;;  %v5969_v10 = vmul.f32 %v8034_v56, %v13293_v12 }
0x192c   :  { %14288 = vst [vmem:[#allocation7_spill] sm:$0xff] %v13405_v30  ;;  %v5501_v20 = vpop.xlane.xlu2 %5500 }
0x192d   :  { %v5594_v55 = vsub.f32 %v13302_v36, %v5501_v20  ;;  %v6020_v58 = vpack.c.bf16 %v5969_v10, %v5968_v60  ;;  %v6209_v36 = vmul.f32 %v13269_v54, %v9295_v51  ;;  %v13440_v60 = vadd.f32 %v8350_v32, %v5379_v59 }
0x192f   :  { %v13410_v44 = vpop.eup %8035  ;;  %v5692_v8 = vmul.f32 1.442695, %v5594_v55 }
0x1930   :  { %5818 = vadd.xlane.f32.xlu1 %v13410_v44  ;;  %6108 = vmatmul.bf16.gmra.mxu3 %v6020_v58  ;;  %v8351_v58 = vld [vmem:[%s14011_s3 + $0x160] sm:$0xff] }
0x1931   :  { %8037 = vpow2.f32 %v5692_v8  ;;  %5514 = vmax.xlane.f32.xlu0 %v13415_v39  ;;  %v13450_v15 = vadd.f32 %v8351_v58, %v5382_v40 }
0x1932   :  { %8039 = vrcp.f32 %v5805_v31 }
0x1933   :  { %v6089_v48 = vpop.f32.mrf.mxu3  ;;  %v5807_v12 = vpop.xlane.xlu1 %5806 }
0x1934   :  { %v6225_v4 = vmul.f32 %v6089_v48, %v9298_v14  ;;  %v5503_v23 = vpop.xlane.xlu0 %5502  ;;  %8041 = vrcp.f32 %v5807_v12 }
0x1935   :  { %v5595_v38 = vsub.f32 %v13317_v18, %v5503_v23 }
0x1936   :  { %v13423_v27 = vadd.f32 %v6225_v4, %v6209_v36 }
0x1937   :  { %v13425_v19 = vpop.eup %8037  ;;  %v5694_v41 = vmul.f32 1.442695, %v5595_v38 }
0x1938   :  { %v8040_v17 = vpop.eup %8039  ;;  %5820 = vadd.xlane.f32.xlu1 %v13425_v19 }
0x1939   :  { %8043 = vpow2.f32 %v5694_v41  ;;  %5516 = vmax.xlane.f32.xlu0 %v13430_v7  ;;  %v5970_v28 = vmul.f32 %v8040_v17, %v13304_v33 }
0x193a   :  { %v8042_v54 = vpop.eup %8041 }
0x193b   :  { %v5809_v18 = vpop.xlane.xlu1 %5808  ;;  %v5971_v46 = vmul.f32 %v8042_v54, %v13311_v49  ;;  %v5384_v49 = vpop.f32.mrf.mxu1  ;;  %v8354_v54 = vld [vmem:[%s14011_s3 + $0x178] sm:$0xff] }
0x193c   :  { %v5505_v56 = vpop.xlane.xlu0 %5504 }
0x193d   :  { %v5596_v20 = vsub.f32 %v13329_v34, %v5505_v56  ;;  %v6021_v31 = vpack.c.bf16 %v5971_v46, %v5970_v28  ;;  %v8355_v46 = vld [vmem:[%s14011_s3 + $0x180] sm:$0xff] }
0x193f   :  { %v13442_v10 = vpop.eup %8043  ;;  %v5696_v55 = vmul.f32 1.442695, %v5596_v20  ;;  %v13487_v20 = vpop.f32.mrf.mxu3 }
0x1940   :  { %5518 = vmax.xlane.f32.xlu1 %v13440_v60  ;;  %5822 = vadd.xlane.f32.xlu2 %v13442_v10 }
0x1941   :  { %8045 = vpow2.f32 %v5696_v55  ;;  %6113 = vmatmul.bf16.gmra.mxu3 %v6021_v31  ;;  %v6211_v55 = vmul.f32 %v13306_v3, %v9295_v51  ;;  %v6213_v3 = vmul.f32 %v13333_v26, %v9295_v51 }
0x1943   :  { %v5507_v33 = vpop.xlane.xlu1 %5506  ;;  %v5387_v23 = vpop.f32.mrf.mxu1 }
0x1944   :  { %v5597_v34 = vsub.f32 %v13339_v0, %v5507_v33  ;;  %v8352_v0 = vld [vmem:[%s14011_s3 + $0x168] sm:$0xff] }
0x1945   :  { %v13462_v4 = vadd.f32 %v8352_v0, %v5384_v49 }
0x1946   :  { %v5698_v8 = vmul.f32 1.442695, %v5597_v34 }
0x1947   :  { %v13452_v59 = vpop.eup %8045 }
0x1948   :  { %8047 = vpow2.f32 %v5698_v8  ;;  %5520 = vmax.xlane.f32.xlu1 %v13450_v15  ;;  %5824 = vadd.xlane.f32.xlu2 %v13452_v59 }
0x194b   :  { %v5509_v48 = vpop.xlane.xlu1 %5508  ;;  %v5389_v17 = vpop.f32.mrf.mxu1 }
0x194c   :  { %v5598_v12 = vsub.f32 %v13346_v62, %v5509_v48  ;;  %v8353_v62 = vld [vmem:[%s14011_s3 + $0x170] sm:$0xff]  ;;  %v13478_v40 = vadd.f32 %v8354_v54, %v5389_v17 }
0x194d   :  { %v13471_v41 = vadd.f32 %v8353_v62, %v5387_v23 }
0x194e   :  { %v13457_v36 = vpop.eup %8047  ;;  %v5700_v38 = vmul.f32 1.442695, %v5598_v12 }
0x194f   :  { %5826 = vadd.xlane.f32.xlu0 %v13457_v36 }
0x1950   :  { %8049 = vpow2.f32 %v5700_v38  ;;  %5522 = vmax.xlane.f32.xlu2 %v13462_v4 }
0x1951   :  { %8051 = vrcp.f32 %v5809_v18 }
0x1953   :  { %v5392_v28 = vpop.f32.mrf.mxu1 }
0x1954   :  { %v13484_v56 = vadd.f32 %v8355_v46, %v5392_v28 }
0x1956   :  { %v13466_v45 = vpop.eup %8049 }
0x1957   :  { %5828 = vadd.xlane.f32.xlu0 %v13466_v45  ;;  %v8052_v34 = vpop.eup %8051 }
0x1958   :  { %5524 = vmax.xlane.f32.xlu2 %v13471_v41  ;;  %v5972_v12 = vmul.f32 %v8052_v34, %v13323_v13 }
0x195b   :  { %v5394_v28 = vpop.f32.mrf.mxu1 }
0x195f   :  { %5526 = vmax.xlane.f32.xlu0 %v13478_v40 }
0x1967   :  { %5528 = vmax.xlane.f32.xlu0 %v13484_v56 }
0x1983   :  { %v5811_v31 = vpop.xlane.xlu2 %5810  ;;  %v6094_v32 = vpop.f32.mrf.mxu3 }
0x1984   :  { %8053 = vrcp.f32 %v5811_v31  ;;  %v6227_v33 = vmul.f32 %v6094_v32, %v9298_v14 }
0x1986   :  { %v13492_v49 = vadd.f32 %v6227_v33, %v6211_v55 }
0x198a   :  { %v8054_v58 = vpop.eup %8053 }
0x198b   :  { %v5813_v8 = vpop.xlane.xlu2 %5812  ;;  %v13494_v48 = vpop.f32.mrf.mxu3  ;;  %v5973_v0 = vmul.f32 %v8054_v58, %v13369_v1 }
0x198c   :  { %8055 = vrcp.f32 %v5813_v8 }
0x198d   :  { %v6022_v18 = vpack.c.bf16 %v5973_v0, %v5972_v12  ;;  %v5397_v0 = vpop.f32.mrf.mxu1 }
0x198f   :  { %6118 = vmatmul.bf16.gmra.mxu3 %v6022_v18 }
0x1992   :  { %v8056_v13 = vpop.eup %8055 }
0x1993   :  { %v5511_v23 = vpop.xlane.xlu2 %5510  ;;  %v6099_v38 = vpop.f32.mrf.mxu3  ;;  %v5974_v26 = vmul.f32 %v8056_v13, %v13375_v35 }
0x1994   :  { %v5599_v62 = vsub.f32 %v13387_v2, %v5511_v23  ;;  %v6229_v17 = vmul.f32 %v6099_v38, %v9298_v14  ;;  %v5815_v54 = vpop.xlane.xlu0 %5814 }
0x1995   :  { %8057 = vrcp.f32 %v5815_v54  ;;  %v5399_v13 = vpop.f32.mrf.mxu1 }
0x1996   :  { %v5702_v46 = vmul.f32 1.442695, %v5599_v62  ;;  %v13502_v31 = vadd.f32 %v6229_v17, %v6213_v3 }
0x1998   :  { %8059 = vpow2.f32 %v5702_v46 }
0x199b   :  { %v8058_v1 = vpop.eup %8057  ;;  %v5513_v32 = vpop.xlane.xlu2 %5512 }
0x199c   :  { %v13504_v55 = vpop.f32.mrf.mxu3  ;;  %v5600_v33 = vsub.f32 %v13399_v5, %v5513_v32  ;;  %v5817_v34 = vpop.xlane.xlu0 %5816  ;;  %v5975_v2 = vmul.f32 %v8058_v1, %v13389_v43  ;;  %v6215_v5 = vmul.f32 %v13351_v11, %v9295_v51 }
0x199e   :  { %v13509_v58 = vpop.eup %8059  ;;  %v5704_v8 = vmul.f32 1.442695, %v5600_v33  ;;  %v6023_v12 = vpack.c.bf16 %v5975_v2, %v5974_v26 }
0x199f   :  { %5830 = vadd.xlane.f32.xlu1 %v13509_v58 }
0x19a0   :  { %8061 = vpow2.f32 %v5704_v8  ;;  %6123 = vmatmul.bf16.gmra.mxu3 %v6023_v12 }
0x19a1   :  { %8063 = vrcp.f32 %v5817_v34 }
0x19a3   :  { %v5819_v23 = vpop.xlane.xlu1 %5818 }
0x19a4   :  { %v6104_v18 = vpop.f32.mrf.mxu3  ;;  %v5515_v35 = vpop.xlane.xlu0 %5514  ;;  %8065 = vrcp.f32 %v5819_v23  ;;  %v6217_v23 = vmul.f32 %v13355_v53, %v9295_v51 }
0x19a5   :  { %v6231_v38 = vmul.f32 %v6104_v18, %v9298_v14  ;;  %v5601_v43 = vsub.f32 %v13415_v39, %v5515_v35  ;;  %v8356_v39 = vld [vmem:[%s14011_s3 + $0x188] sm:$0xff]  ;;  %v5402_v35 = vpop.f32.mrf.mxu1 }
0x19a6   :  { %v13516_v3 = vpop.eup %8061  ;;  %v13528_v26 = vadd.f32 %v8356_v39, %v5394_v28 }
0x19a7   :  { %v13518_v62 = vadd.f32 %v6231_v38, %v6215_v5  ;;  %v5706_v17 = vmul.f32 1.442695, %v5601_v43  ;;  %5832 = vadd.xlane.f32.xlu1 %v13516_v3  ;;  %v8064_v54 = vpop.eup %8063  ;;  %v8357_v5 = vld [vmem:[%s14011_s3 + $0x190] sm:$0xff] }
0x19a8   :  { %v5976_v32 = vmul.f32 %v8064_v54, %v13401_v25  ;;  %v13541_v38 = vadd.f32 %v8357_v5, %v5397_v0 }
0x19a9   :  { %8067 = vpow2.f32 %v5706_v17 }
0x19aa   :  { %v8066_v46 = vpop.eup %8065 }
0x19ab   :  { %v5821_v11 = vpop.xlane.xlu1 %5820  ;;  %v5977_v33 = vmul.f32 %v8066_v46, %v13410_v44 }
0x19ac   :  { %v13521_v1 = vpop.f32.mrf.mxu3  ;;  %v5517_v34 = vpop.xlane.xlu0 %5516 }
0x19ad   :  { %v5602_v2 = vsub.f32 %v13430_v7, %v5517_v34  ;;  %v6024_v8 = vpack.c.bf16 %v5977_v33, %v5976_v32 }
0x19af   :  { %v13531_v12 = vpop.eup %8067  ;;  %v5708_v18 = vmul.f32 1.442695, %v5602_v2  ;;  %5530 = vmax.xlane.f32.xlu1 %v13528_v26 }
0x19b0   :  { %5834 = vadd.xlane.f32.xlu2 %v13531_v12  ;;  %6128 = vmatmul.bf16.gmra.mxu3 %v6024_v8  ;;  %v8358_v8 = vld [vmem:[%s14011_s3 + $0x198] sm:$0xff] }
0x19b1   :  { %8069 = vpow2.f32 %v5708_v18  ;;  %v13558_v18 = vadd.f32 %v8358_v8, %v5399_v13  ;;  %v6219_v13 = vmul.f32 %v13361_v29, %v9295_v51 }
0x19b2   :  { %8071 = vrcp.f32 %v5821_v11 }
0x19b3   :  { %v5823_v25 = vpop.xlane.xlu2 %5822  ;;  %v5519_v7 = vpop.xlane.xlu1 %5518 }
0x19b4   :  { %v6109_v44 = vpop.f32.mrf.mxu3  ;;  %8073 = vrcp.f32 %v5823_v25  ;;  %v5603_v43 = vsub.f32 %v13440_v60, %v5519_v7 }
0x19b5   :  { %v6233_v28 = vmul.f32 %v6109_v44, %v9298_v14  ;;  %v5404_v44 = vpop.f32.mrf.mxu1 }
0x19b6   :  { %v5710_v46 = vmul.f32 1.442695, %v5603_v43  ;;  %v8359_v43 = vld [vmem:[%s14011_s3 + $0x1a0] sm:$0xff] }
0x19b7   :  { %v13544_v17 = vadd.f32 %v6233_v28, %v6217_v23  ;;  %v13546_v54 = vpop.eup %8069  ;;  %5532 = vmax.xlane.f32.xlu1 %v13541_v38 }
0x19b8   :  { %v8072_v53 = vpop.eup %8071  ;;  %5836 = vadd.xlane.f32.xlu2 %v13546_v54  ;;  %8075 = vpow2.f32 %v5710_v46  ;;  %v13571_v46 = vadd.f32 %v8359_v43, %v5402_v35 }
0x19b9   :  { %v5978_v0 = vmul.f32 %v8072_v53, %v13425_v19 }
0x19ba   :  { %v8074_v11 = vpop.eup %8073 }
0x19bb   :  { %v5825_v32 = vpop.xlane.xlu2 %5824  ;;  %v5979_v34 = vmul.f32 %v8074_v11, %v13442_v10  ;;  %v5521_v60 = vpop.xlane.xlu1 %5520 }
0x19bc   :  { %v13550_v33 = vpop.f32.mrf.mxu3  ;;  %v5604_v39 = vsub.f32 %v13450_v15, %v5521_v60  ;;  %8077 = vrcp.f32 %v5825_v32 }
0x19bd   :  { %v6025_v2 = vpack.c.bf16 %v5979_v34, %v5978_v0  ;;  %v5407_v0 = vpop.f32.mrf.mxu1 }
0x19be   :  { %v13560_v25 = vpop.eup %8075  ;;  %v5712_v23 = vmul.f32 1.442695, %v5604_v39 }
0x19bf   :  { %5838 = vadd.xlane.f32.xlu0 %v13560_v25 }
0x19c0   :  { %5534 = vmax.xlane.f32.xlu2 %v13558_v18  ;;  %6133 = vmatmul.bf16.gmra.mxu3 %v6025_v2  ;;  %8079 = vpow2.f32 %v5712_v23 }
0x19c2   :  { %v5827_v19 = vpop.xlane.xlu0 %5826  ;;  %v8078_v5 = vpop.eup %8077 }
0x19c3   :  { %v5523_v10 = vpop.xlane.xlu2 %5522  ;;  %8081 = vrcp.f32 %v5827_v19  ;;  %v5980_v34 = vmul.f32 %v8078_v5, %v13452_v59  ;;  %v8360_v19 = vld [vmem:[%s14011_s3 + $0x1a8] sm:$0xff] }
0x19c4   :  { %v5605_v15 = vsub.f32 %v13462_v4, %v5523_v10  ;;  %v6114_v28 = vpop.f32.mrf.mxu3  ;;  %v13587_v10 = vadd.f32 %v8360_v19, %v5404_v44  ;;  %v8365_v19 = vld [vmem:[%s14011_s3 + $0x1d0] sm:$0xff] }
0x19c5   :  { %v6235_v7 = vmul.f32 %v6114_v28, %v9298_v14 }
0x19c6   :  { %v5714_v53 = vmul.f32 1.442695, %v5605_v15  ;;  %v13573_v11 = vpop.eup %8079 }
0x19c7   :  { %v13575_v32 = vadd.f32 %v6235_v7, %v6219_v13  ;;  %5840 = vadd.xlane.f32.xlu0 %v13573_v11  ;;  %v8361_v13 = vld [vmem:[%s14011_s3 + $0x1b0] sm:$0xff] }
0x19c8   :  { %8083 = vpow2.f32 %v5714_v53  ;;  %5536 = vmax.xlane.f32.xlu2 %v13571_v46  ;;  %v13597_v7 = vadd.f32 %v8361_v13, %v5407_v0  ;;  %v6221_v13 = vmul.f32 %v13372_v50, %v9295_v51 }
0x19c9   :  { %v8082_v4 = vpop.eup %8081 }
0x19ca   :  { %v5829_v29 = vpop.xlane.xlu0 %5828  ;;  %v5981_v60 = vmul.f32 %v8082_v4, %v13457_v36  ;;  %v5409_v36 = vpop.f32.mrf.mxu1 }
0x19cb   :  { %v5525_v39 = vpop.xlane.xlu2 %5524 }
0x19cc   :  { %v5606_v35 = vsub.f32 %v13471_v41, %v5525_v39  ;;  %v6026_v2 = vpack.c.bf16 %v5981_v60, %v5980_v34 }
0x19ce   :  { %v13582_v8 = vpop.eup %8083  ;;  %v5716_v23 = vmul.f32 1.442695, %v5606_v35  ;;  %v8364_v35 = vld [vmem:[%s14011_s3 + $0x1c8] sm:$0xff] }
0x19cf   :  { %5842 = vadd.xlane.f32.xlu1 %v13582_v8  ;;  %5538 = vmax.xlane.f32.xlu0 %v13587_v10 }
0x19d0   :  { %8085 = vpow2.f32 %v5716_v23  ;;  %6138 = vmatmul.bf16.gmra.mxu3 %v6026_v2 }
0x19d2   :  { %v5527_v59 = vpop.xlane.xlu0 %5526  ;;  %v5412_v4 = vpop.f32.mrf.mxu1 }
0x19d3   :  { %v5607_v41 = vsub.f32 %v13478_v40, %v5527_v59  ;;  %v8362_v40 = vld [vmem:[%s14011_s3 + $0x1b8] sm:$0xff] }
0x19d4   :  { %v13607_v53 = vadd.f32 %v8362_v40, %v5409_v36  ;;  %v13632_v36 = vpop.f32.mrf.mxu3 }
0x19d5   :  { %v5718_v15 = vmul.f32 1.442695, %v5607_v41 }
0x19d6   :  { %v13592_v28 = vpop.eup %8085 }
0x19d7   :  { %8087 = vpow2.f32 %v5718_v15  ;;  %5844 = vadd.xlane.f32.xlu1 %v13592_v28  ;;  %5540 = vmax.xlane.f32.xlu0 %v13597_v7 }
0x19da   :  { %v5529_v44 = vpop.xlane.xlu0 %5528  ;;  %v5414_v39 = vpop.f32.mrf.mxu1 }
0x19db   :  { %v5608_v5 = vsub.f32 %v13484_v56, %v5529_v44  ;;  %v8363_v56 = vld [vmem:[%s14011_s3 + $0x1c0] sm:$0xff]  ;;  %v13623_v2 = vadd.f32 %v8364_v35, %v5414_v39 }
0x19dc   :  { %v13616_v60 = vadd.f32 %v8363_v56, %v5412_v4 }
0x19dd   :  { %v13602_v43 = vpop.eup %8087  ;;  %v5720_v34 = vmul.f32 1.442695, %v5608_v5 }
0x19de   :  { %5846 = vadd.xlane.f32.xlu2 %v13602_v43 }
0x19df   :  { %8089 = vpow2.f32 %v5720_v34  ;;  %5542 = vmax.xlane.f32.xlu1 %v13607_v53 }
0x19e0   :  { %8091 = vrcp.f32 %v5829_v29 }
0x19e2   :  { %v5417_v23 = vpop.f32.mrf.mxu1 }
0x19e3   :  { %v13629_v59 = vadd.f32 %v8365_v19, %v5417_v23 }
0x19e5   :  { %v13611_v0 = vpop.eup %8089 }
0x19e6   :  { %5848 = vadd.xlane.f32.xlu2 %v13611_v0  ;;  %v8092_v40 = vpop.eup %8091 }
0x19e7   :  { %5544 = vmax.xlane.f32.xlu1 %v13616_v60  ;;  %v5982_v39 = vmul.f32 %v8092_v40, %v13466_v45 }
0x19ee   :  { %5546 = vmax.xlane.f32.xlu2 %v13623_v2 }
0x19f6   :  { %5548 = vmax.xlane.f32.xlu2 %v13629_v59 }
0x1a12   :  { %v6119_v41 = vpop.f32.mrf.mxu3  ;;  %v5831_v15 = vpop.xlane.xlu1 %5830 }
0x1a13   :  { %v6237_v44 = vmul.f32 %v6119_v41, %v9298_v14  ;;  %8093 = vrcp.f32 %v5831_v15  ;;  %v6223_v15 = vmul.f32 %v13393_v63, %v9295_v51 }
0x1a15   :  { %v13637_v5 = vadd.f32 %v6237_v44, %v6221_v13 }
0x1a19   :  { %v8094_v4 = vpop.eup %8093 }
0x1a1a   :  { %v13639_v34 = vpop.f32.mrf.mxu3  ;;  %v5833_v56 = vpop.xlane.xlu1 %5832  ;;  %v5983_v35 = vmul.f32 %v8094_v4, %v13509_v58 }
0x1a1b   :  { %8095 = vrcp.f32 %v5833_v56 }
0x1a1c   :  { %v6027_v29 = vpack.c.bf16 %v5983_v35, %v5982_v39 }
0x1a1e   :  { %6143 = vmatmul.bf16.gmra.mxu3 %v6027_v29 }
0x1a21   :  { %v8096_v45 = vpop.eup %8095 }
0x1a22   :  { %v5531_v23 = vpop.xlane.xlu1 %5530 }
0x1a23   :  { %v5835_v19 = vpop.xlane.xlu2 %5834  ;;  %v6124_v50 = vpop.f32.mrf.mxu3  ;;  %v5609_v41 = vsub.f32 %v13528_v26, %v5531_v23  ;;  %v5984_v26 = vmul.f32 %v8096_v45, %v13516_v3 }
0x1a24   :  { %8097 = vrcp.f32 %v5835_v19  ;;  %v6239_v13 = vmul.f32 %v6124_v50, %v9298_v14  ;;  %v5419_v19 = vpop.f32.mrf.mxu1 }
0x1a25   :  { %v5722_v44 = vmul.f32 1.442695, %v5609_v41 }
0x1a26   :  { %v13647_v30 = vadd.f32 %v6239_v13, %v6223_v15 }
0x1a27   :  { %8099 = vpow2.f32 %v5722_v44 }
0x1a2a   :  { %v8098_v58 = vpop.eup %8097  ;;  %v5533_v40 = vpop.xlane.xlu1 %5532 }
0x1a2b   :  { %v5837_v4 = vpop.xlane.xlu2 %5836  ;;  %v13649_v56 = vpop.f32.mrf.mxu3  ;;  %v5610_v39 = vsub.f32 %v13541_v38, %v5533_v40  ;;  %v5985_v35 = vmul.f32 %v8098_v58, %v13531_v12 }
0x1a2d   :  { %v13654_v63 = vpop.eup %8099  ;;  %v5724_v29 = vmul.f32 1.442695, %v5610_v39  ;;  %v6028_v23 = vpack.c.bf16 %v5985_v35, %v5984_v26 }
0x1a2e   :  { %5850 = vadd.xlane.f32.xlu0 %v13654_v63 }
0x1a2f   :  { %8101 = vpow2.f32 %v5724_v29  ;;  %6148 = vmatmul.bf16.gmra.mxu3 %v6028_v23  ;;  %v5422_v23 = vpop.f32.mrf.mxu1 }
0x1a30   :  { %8103 = vrcp.f32 %v5837_v4 }
0x1a32   :  { %v5839_v13 = vpop.xlane.xlu0 %5838 }
0x1a33   :  { %v5535_v50 = vpop.xlane.xlu2 %5534  ;;  %v6129_v41 = vpop.f32.mrf.mxu3  ;;  %8105 = vrcp.f32 %v5839_v13 }
0x1a34   :  { %v5611_v15 = vsub.f32 %v13558_v18, %v5535_v50  ;;  %v6257_v38 = vmul.f32 %v6129_v41, %v9545_v21  ;;  %v8366_v18 = vld [vmem:[%s14011_s3 + $0x1d8] sm:$0xff] }
0x1a35   :  { %v13659_v3 = vpop.eup %8101  ;;  %v13670_v39 = vadd.f32 %v8366_v18, %v5419_v19 }
0x1a36   :  { %v5726_v12 = vmul.f32 1.442695, %v5611_v15  ;;  %v13662_v44 = vadd.f32 %v6257_v38, %v13423_v27  ;;  %5852 = vadd.xlane.f32.xlu0 %v13659_v3  ;;  %v8104_v45 = vpop.eup %8103 }
0x1a37   :  { %v5986_v27 = vmul.f32 %v8104_v45, %v13546_v54  ;;  %v8367_v54 = vld [vmem:[%s14011_s3 + $0x1e0] sm:$0xff]  ;;  %v5424_v18 = vpop.f32.mrf.mxu1 }
0x1a38   :  { %8107 = vpow2.f32 %v5726_v12 }
0x1a39   :  { %v8106_v58 = vpop.eup %8105 }
0x1a3a   :  { %v5841_v35 = vpop.xlane.xlu0 %5840  ;;  %v5987_v29 = vmul.f32 %v8106_v58, %v13560_v25  ;;  %v13682_v25 = vadd.f32 %v8367_v54, %v5422_v23 }
0x1a3b   :  { %v5537_v40 = vpop.xlane.xlu2 %5536  ;;  %v13665_v4 = vpop.f32.mrf.mxu3 }
0x1a3c   :  { %v5612_v26 = vsub.f32 %v13571_v46, %v5537_v40  ;;  %v6029_v15 = vpack.c.bf16 %v5987_v29, %v5986_v27 }
0x1a3e   :  { %v13675_v50 = vpop.eup %8107  ;;  %v5728_v41 = vmul.f32 1.442695, %v5612_v26  ;;  %5550 = vmax.xlane.f32.xlu0 %v13670_v39 }
0x1a3f   :  { %5854 = vadd.xlane.f32.xlu1 %v13675_v50  ;;  %6153 = vmatmul.bf16.gmra.mxu3 %v6029_v15 }
0x1a40   :  { %8109 = vpow2.f32 %v5728_v41 }
0x1a41   :  { %8111 = vrcp.f32 %v5841_v35 }
0x1a42   :  { %v5843_v19 = vpop.xlane.xlu1 %5842  ;;  %v5539_v13 = vpop.xlane.xlu0 %5538 }
0x1a43   :  { %v6134_v38 = vpop.f32.mrf.mxu3  ;;  %8113 = vrcp.f32 %v5843_v19  ;;  %v5613_v12 = vsub.f32 %v13587_v10, %v5539_v13 }
0x1a44   :  { %v6259_v46 = vmul.f32 %v6134_v38, %v9545_v21 }
0x1a45   :  { %v5730_v26 = vmul.f32 1.442695, %v5613_v12 }
0x1a46   :  { %v13686_v45 = vpop.eup %8109  ;;  %v13689_v58 = vadd.f32 %v6259_v46, %v13492_v49  ;;  %5552 = vmax.xlane.f32.xlu0 %v13682_v25  ;;  %v8368_v49 = vld [vmem:[%s14011_s3 + $0x1e8] sm:$0xff] }
0x1a47   :  { %v8112_v40 = vpop.eup %8111  ;;  %5856 = vadd.xlane.f32.xlu1 %v13686_v45  ;;  %8115 = vpow2.f32 %v5730_v26  ;;  %v13700_v19 = vadd.f32 %v8368_v49, %v5424_v18 }
0x1a48   :  { %v5988_v29 = vmul.f32 %v8112_v40, %v13573_v11  ;;  %v5427_v11 = vpop.f32.mrf.mxu1 }
0x1a49   :  { %v8114_v35 = vpop.eup %8113 }
0x1a4a   :  { %v5845_v27 = vpop.xlane.xlu1 %5844  ;;  %v5989_v23 = vmul.f32 %v8114_v35, %v13582_v8  ;;  %v5541_v41 = vpop.xlane.xlu0 %5540 }
0x1a4b   :  { %v13695_v10 = vpop.f32.mrf.mxu3  ;;  %v5614_v38 = vsub.f32 %v13597_v7, %v5541_v41  ;;  %8117 = vrcp.f32 %v5845_v27  ;;  %v8369_v7 = vld [vmem:[%s14011_s3 + $0x1f0] sm:$0xff] }
0x1a4c   :  { %v6030_v15 = vpack.c.bf16 %v5989_v23, %v5988_v29  ;;  %v13712_v26 = vadd.f32 %v8369_v7, %v5427_v11 }
0x1a4d   :  { %v13703_v54 = vpop.eup %8115  ;;  %v5732_v46 = vmul.f32 1.442695, %v5614_v38 }
0x1a4e   :  { %5858 = vadd.xlane.f32.xlu2 %v13703_v54 }
0x1a4f   :  { %5554 = vmax.xlane.f32.xlu1 %v13700_v19  ;;  %6158 = vmatmul.bf16.gmra.mxu3 %v6030_v15  ;;  %8119 = vpow2.f32 %v5732_v46 }
0x1a50   :  { %v5429_v46 = vpop.f32.mrf.mxu1 }
0x1a51   :  { %v5847_v8 = vpop.xlane.xlu2 %5846  ;;  %v8118_v27 = vpop.eup %8117 }
0x1a52   :  { %8121 = vrcp.f32 %v5847_v8  ;;  %v5543_v13 = vpop.xlane.xlu1 %5542  ;;  %v5990_v38 = vmul.f32 %v8118_v27, %v13592_v28 }
0x1a53   :  { %v6139_v12 = vpop.f32.mrf.mxu3  ;;  %v5615_v40 = vsub.f32 %v13607_v53, %v5543_v13 }
0x1a54   :  { %v6261_v18 = vmul.f32 %v6139_v12, %v9545_v21  ;;  %v8370_v12 = vld [vmem:[%s14011_s3 + $0x1f8] sm:$0xff] }
0x1a55   :  { %v5734_v35 = vmul.f32 1.442695, %v5615_v40  ;;  %v13717_v23 = vpop.eup %8119  ;;  %v13729_v40 = vadd.f32 %v8370_v12, %v5429_v46 }
0x1a56   :  { %v13715_v29 = vadd.f32 %v6261_v18, %v13502_v31  ;;  %5860 = vadd.xlane.f32.xlu2 %v13717_v23 }
0x1a57   :  { %8123 = vpow2.f32 %v5734_v35  ;;  %5556 = vmax.xlane.f32.xlu1 %v13712_v26 }
0x1a58   :  { %v8122_v41 = vpop.eup %8121 }
0x1a59   :  { %v5849_v53 = vpop.xlane.xlu2 %5848  ;;  %v5991_v15 = vmul.f32 %v8122_v41, %v13602_v43 }
0x1a5a   :  { %v5545_v49 = vpop.xlane.xlu1 %5544 }
0x1a5b   :  { %v5616_v11 = vsub.f32 %v13616_v60, %v5545_v49  ;;  %v6031_v8 = vpack.c.bf16 %v5991_v15, %v5990_v38 }
0x1a5d   :  { %v13724_v31 = vpop.eup %8123  ;;  %v5736_v13 = vmul.f32 1.442695, %v5616_v11 }
0x1a5e   :  { %5862 = vadd.xlane.f32.xlu0 %v13724_v31  ;;  %5558 = vmax.xlane.f32.xlu2 %v13729_v40 }
0x1a5f   :  { %8125 = vpow2.f32 %v5736_v13  ;;  %6163 = vmatmul.bf16.gmra.mxu3 %v6031_v8 }
0x1a61   :  { %v5547_v28 = vpop.xlane.xlu2 %5546 }
0x1a62   :  { %v5617_v43 = vsub.f32 %v13623_v2, %v5547_v28  ;;  %v13744_v2 = vpop.f32.mrf.mxu3 }
0x1a64   :  { %v5738_v60 = vmul.f32 1.442695, %v5617_v43 }
0x1a65   :  { %v13734_v18 = vpop.eup %8125 }
0x1a66   :  { %8127 = vpow2.f32 %v5738_v60  ;;  %5864 = vadd.xlane.f32.xlu0 %v13734_v18 }
0x1a69   :  { %v5549_v7 = vpop.xlane.xlu2 %5548 }
0x1a6a   :  { %v5618_v35 = vsub.f32 %v13629_v59, %v5549_v7 }
0x1a6c   :  { %v13738_v27 = vpop.eup %8127  ;;  %v5740_v41 = vmul.f32 1.442695, %v5618_v35 }
0x1a6d   :  { %5866 = vadd.xlane.f32.xlu1 %v13738_v27 }
0x1a6e   :  { %8129 = vpow2.f32 %v5740_v41 }
0x1a6f   :  { %8131 = vrcp.f32 %v5849_v53 }
0x1a74   :  { %v13741_v15 = vpop.eup %8129 }
0x1a75   :  { %5868 = vadd.xlane.f32.xlu2 %v13741_v15  ;;  %v8132_v11 = vpop.eup %8131 }
0x1a76   :  { %v5992_v28 = vmul.f32 %v8132_v11, %v13611_v0 }
0x1aa1   :  { %v6144_v49 = vpop.f32.mrf.mxu3  ;;  %v5851_v38 = vpop.xlane.xlu0 %5850 }
0x1aa2   :  { %v6263_v46 = vmul.f32 %v6144_v49, %v9545_v21  ;;  %8133 = vrcp.f32 %v5851_v38 }
0x1aa4   :  { %v13748_v59 = vadd.f32 %v6263_v46, %v13518_v62 }
0x1aa8   :  { %v8134_v8 = vpop.eup %8133 }
0x1aa9   :  { %v13750_v13 = vpop.f32.mrf.mxu3  ;;  %v5853_v12 = vpop.xlane.xlu0 %5852  ;;  %v5993_v43 = vmul.f32 %v8134_v8, %v13654_v63 }
0x1aaa   :  { %8135 = vrcp.f32 %v5853_v12 }
0x1aab   :  { %v6032_v60 = vpack.c.bf16 %v5993_v43, %v5992_v28 }
0x1aad   :  { %6168 = vmatmul.bf16.gmra.mxu3 %v6032_v60 }
0x1ab0   :  { %v8136_v46 = vpop.eup %8135 }
0x1ab1   :  { %v5551_v53 = vpop.xlane.xlu0 %5550  ;;  %v5994_v28 = vmul.f32 %v8136_v46, %v13659_v3 }
0x1ab2   :  { %v6149_v7 = vpop.f32.mrf.mxu3  ;;  %v5619_v35 = vsub.f32 %v13670_v39, %v5551_v53  ;;  %v5855_v41 = vpop.xlane.xlu1 %5854 }
0x1ab3   :  { %v6265_v62 = vmul.f32 %v6149_v7, %v9545_v21  ;;  %8137 = vrcp.f32 %v5855_v41 }
0x1ab4   :  { %v5742_v49 = vmul.f32 1.442695, %v5619_v35 }
0x1ab5   :  { %v13757_v38 = vadd.f32 %v6265_v62, %v13544_v17 }
0x1ab6   :  { %8139 = vpow2.f32 %v5742_v49 }
0x1ab9   :  { %v8138_v0 = vpop.eup %8137  ;;  %v5553_v11 = vpop.xlane.xlu0 %5552 }
0x1aba   :  { %v13759_v63 = vpop.f32.mrf.mxu3  ;;  %v5620_v8 = vsub.f32 %v13682_v25, %v5553_v11  ;;  %v5857_v12 = vpop.xlane.xlu1 %5856  ;;  %v5995_v39 = vmul.f32 %v8138_v0, %v13675_v50 }
0x1abc   :  { %v13764_v43 = vpop.eup %8139  ;;  %v5744_v60 = vmul.f32 1.442695, %v5620_v8  ;;  %v6033_v53 = vpack.c.bf16 %v5995_v39, %v5994_v28 }
0x1abd   :  { %5870 = vadd.xlane.f32.xlu0 %v13764_v43 }
0x1abe   :  { %8141 = vpow2.f32 %v5744_v60  ;;  %6173 = vmatmul.bf16.gmra.mxu3 %v6033_v53 }
0x1abf   :  { %8143 = vrcp.f32 %v5857_v12 }
0x1ac1   :  { %v5859_v7 = vpop.xlane.xlu2 %5858 }
0x1ac2   :  { %v5555_v17 = vpop.xlane.xlu1 %5554  ;;  %v6154_v35 = vpop.f32.mrf.mxu3  ;;  %8145 = vrcp.f32 %v5859_v7 }
0x1ac3   :  { %v5621_v41 = vsub.f32 %v13700_v19, %v5555_v17  ;;  %v6267_v3 = vmul.f32 %v6154_v35, %v9545_v21 }
0x1ac4   :  { %v13768_v25 = vpop.eup %8141 }
0x1ac5   :  { %v5746_v50 = vmul.f32 1.442695, %v5621_v41  ;;  %5872 = vadd.xlane.f32.xlu1 %v13768_v25  ;;  %v13773_v62 = vadd.f32 %v6267_v3, %v13575_v32  ;;  %v8144_v49 = vpop.eup %8143 }
0x1ac6   :  { %v5996_v12 = vmul.f32 %v8144_v49, %v13686_v45 }
0x1ac7   :  { %8147 = vpow2.f32 %v5746_v50 }
0x1ac8   :  { %v8146_v46 = vpop.eup %8145 }
0x1ac9   :  { %v5861_v11 = vpop.xlane.xlu2 %5860  ;;  %v5997_v28 = vmul.f32 %v8146_v46, %v13703_v54 }
0x1aca   :  { %v5557_v0 = vpop.xlane.xlu1 %5556  ;;  %v13775_v8 = vpop.f32.mrf.mxu3 }
0x1acb   :  { %v5622_v19 = vsub.f32 %v13712_v26, %v5557_v0  ;;  %v6034_v53 = vpack.c.bf16 %v5997_v28, %v5996_v12 }
0x1acd   :  { %v13780_v39 = vpop.eup %8147  ;;  %v5748_v60 = vmul.f32 1.442695, %v5622_v19 }
0x1ace   :  { %5874 = vadd.xlane.f32.xlu2 %v13780_v39  ;;  %6178 = vmatmul.bf16.gmra.mxu3 %v6034_v53 }
0x1acf   :  { %8149 = vpow2.f32 %v5748_v60 }
0x1ad0   :  { %8151 = vrcp.f32 %v5861_v11 }
0x1ad1   :  { %v5863_v32 = vpop.xlane.xlu0 %5862  ;;  %v5559_v17 = vpop.xlane.xlu2 %5558 }
0x1ad2   :  { %8153 = vrcp.f32 %v5863_v32  ;;  %v6159_v7 = vpop.f32.mrf.mxu3  ;;  %v5623_v35 = vsub.f32 %v13729_v40, %v5559_v17 }
0x1ad3   :  { %v6269_v26 = vmul.f32 %v6159_v7, %v9545_v21  ;;  %v7125_v7 = vld [vmem:[%s14012_s7 + $0x38] sm:$0xff] }
0x1ad4   :  { %v5750_v41 = vmul.f32 1.442695, %v5623_v35  ;;  %6376 = vmatpush.bf16.msra.mxu0 %v7125_v7  ;;  %v7124_v35 = vld [vmem:[%s14012_s7 + $0x30] sm:$0xff] }
0x1ad5   :  { %v13785_v45 = vpop.eup %8149  ;;  %v13788_v3 = vadd.f32 %v6269_v26, %v13637_v5 }
0x1ad6   :  { %v8152_v54 = vpop.eup %8151  ;;  %5876 = vadd.xlane.f32.xlu0 %v13785_v45  ;;  %8155 = vpow2.f32 %v5750_v41 }
0x1ad7   :  { %v5998_v49 = vmul.f32 %v8152_v54, %v13717_v23 }
0x1ad8   :  { %v8154_v50 = vpop.eup %8153  ;;  %6377 = vmatpush.bf16.msra.mxu0 %v7124_v35  ;;  %v6212_v35 = vmul.f32 %v13321_v57, %v9295_v51 }
0x1ad9   :  { %v5999_v46 = vmul.f32 %v8154_v50, %v13724_v31  ;;  %v5865_v11 = vpop.xlane.xlu0 %5864  ;;  %v6210_v50 = vmul.f32 %v13291_v24, %v9295_v51 }
0x1ada   :  { %v13793_v0 = vpop.f32.mrf.mxu3  ;;  %8157 = vrcp.f32 %v5865_v11 }
0x1adb   :  { %v6035_v40 = vpack.c.bf16 %v5999_v46, %v5998_v49  ;;  %v6258_v49 = vmul.f32 %v13665_v4, %v9545_v21 }
0x1adc   :  { %v13795_v19 = vpop.eup %8155 }
0x1add   :  { %5878 = vadd.xlane.f32.xlu1 %v13795_v19 }
0x1ade   :  { %6183 = vmatmul.bf16.gmra.mxu3 %v6035_v40 }
0x1ae0   :  { %v5867_v5 = vpop.xlane.xlu1 %5866  ;;  %v8158_v60 = vpop.eup %8157 }
0x1ae1   :  { %8159 = vrcp.f32 %v5867_v5  ;;  %v6000_v32 = vmul.f32 %v8158_v60, %v13734_v18  ;;  %v6226_v18 = vmul.f32 %v13487_v20, %v9298_v14 }
0x1ae2   :  { %v6164_v12 = vpop.f32.mrf.mxu3 }
0x1ae3   :  { %v6271_v28 = vmul.f32 %v6164_v12, %v9545_v21  ;;  %v6242_v40 = vadd.f32 %v6226_v18, %v6210_v50 }
0x1ae5   :  { %v13800_v23 = vadd.f32 %v6271_v28, %v13647_v30  ;;  %v6274_v60 = vadd.f32 %v6258_v49, %v6242_v40 }
0x1ae7   :  { %v8160_v31 = vpop.eup %8159 }
0x1ae8   :  { %v6001_v53 = vmul.f32 %v8160_v31, %v13738_v27  ;;  %v5869_v30 = vpop.xlane.xlu2 %5868 }
0x1ae9   :  { %8161 = vrcp.f32 %v5869_v30 }
0x1aea   :  { %v6036_v17 = vpack.c.bf16 %v6001_v53, %v6000_v32  ;;  %v13810_v26 = vpop.f32.mrf.mxu3 }
0x1aee   :  { %6188 = vmatmul.bf16.gmra.mxu3 %v6036_v17 }
0x1aef   :  { %v8162_v41 = vpop.eup %8161 }
0x1af0   :  { %v6002_v12 = vmul.f32 %v8162_v41, %v13741_v15  ;;  %v6228_v15 = vmul.f32 %v13494_v48, %v9298_v14 }
0x1b30   :  { %v6169_v54 = vpop.f32.mrf.mxu3  ;;  %v5871_v27 = vpop.xlane.xlu0 %5870 }
0x1b31   :  { %8163 = vrcp.f32 %v5871_v27  ;;  %v6289_v11 = vmul.f32 %v6169_v54, %v9713_v9  ;;  %v6244_v54 = vadd.f32 %v6228_v15, %v6212_v35 }
0x1b33   :  { %v6305_v53 = vadd.f32 %v6289_v11, %v13662_v44  ;;  %v6260_v44 = vmul.f32 %v13695_v10, %v9545_v21 }
0x1b35   :  { %v6276_v49 = vadd.f32 %v6260_v44, %v6244_v54 }
0x1b37   :  { %v8164_v46 = vpop.eup %8163 }
0x1b38   :  { %v6171_v5 = vpop.f32.mrf.mxu3  ;;  %v6003_v28 = vmul.f32 %v8164_v46, %v13764_v43  ;;  %v5873_v17 = vpop.xlane.xlu1 %5872 }
0x1b39   :  { %v6290_v31 = vmul.f32 %v6171_v5, %v9713_v9  ;;  %8165 = vrcp.f32 %v5873_v17 }
0x1b3a   :  { %v6037_v20 = vpack.c.bf16 %v6003_v28, %v6002_v12  ;;  %v6214_v28 = vmul.f32 %v13348_v6, %v9295_v51 }
0x1b3b   :  { %v6306_v32 = vadd.f32 %v6290_v31, %v6274_v60 }
0x1b3c   :  { %6193 = vmatmul.bf16.gmra.mxu3 %v6037_v20 }
0x1b3d   :  { %v6321_v24 = vpack.c.bf16 %v6306_v32, %v6305_v53 }
0x1b3f   :  { %7023 = vmatmul.msk.bf16.vlgmr.msra.gmra.mxu0 %vm459_vm1, %v6321_v24  ;;  %v8166_v43 = vpop.eup %8165 }
0x1b40   :  { %v6004_v41 = vmul.f32 %v8166_v43, %v13768_v25  ;;  %v6230_v25 = vmul.f32 %v13504_v55, %v9298_v14  ;;  %v6232_v43 = vmul.f32 %v13521_v1, %v9298_v14 }
0x1b41   :  { %v6174_v4 = vpop.f32.mrf.mxu3  ;;  %v5875_v7 = vpop.xlane.xlu2 %5874 }
0x1b42   :  { %8167 = vrcp.f32 %v5875_v7  ;;  %v6291_v27 = vmul.f32 %v6174_v4, %v9713_v9  ;;  %v6246_v31 = vadd.f32 %v6230_v25, %v6214_v28  ;;  %v6220_v25 = vmul.f32 %v13364_v16, %v9295_v51 }
0x1b44   :  { %v6307_v40 = vadd.f32 %v6291_v27, %v13689_v58  ;;  %v6262_v58 = vmul.f32 %v13744_v2, %v9545_v21 }
0x1b46   :  { %v6278_v17 = vadd.f32 %v6262_v58, %v6246_v31 }
0x1b48   :  { %v8168_v30 = vpop.eup %8167 }
0x1b49   :  { %v6176_v18 = vpop.f32.mrf.mxu3  ;;  %v6005_v50 = vmul.f32 %v8168_v30, %v13780_v39  ;;  %v5877_v5 = vpop.xlane.xlu0 %5876 }
0x1b4a   :  { %v6292_v46 = vmul.f32 %v6176_v18, %v9713_v9  ;;  %8169 = vrcp.f32 %v5877_v5 }
0x1b4b   :  { %v6038_v48 = vpack.c.bf16 %v6005_v50, %v6004_v41  ;;  %v6266_v50 = vmul.f32 %v13759_v63, %v9545_v21  ;;  %v14289_v63 = vmax.f32 %v12461_v42, 0.0 }
0x1b4c   :  { %v6308_v11 = vadd.f32 %v6292_v46, %v6276_v49 }
0x1b4d   :  { %6198 = vmatmul.bf16.gmra.mxu3 %v6038_v48 }
0x1b4e   :  { %v6322_v57 = vpack.c.bf16 %v6308_v11, %v6307_v40 }
0x1b50   :  { %7024 = vmatmul.msk.bf16.gmra.mxu0 %vm459_vm1, %v6322_v57  ;;  %v5879_v12 = vpop.xlane.xlu1 %5878  ;;  %v8170_v39 = vpop.eup %8169 }
0x1b51   :  { %v6179_v10 = vpop.f32.mrf.mxu3  ;;  %8171 = vrcp.f32 %v5879_v12  ;;  %v6006_v32 = vmul.f32 %v8170_v39, %v13785_v45  ;;  %v6216_v45 = vmul.f32 %v13353_v22, %v9295_v51  ;;  %v6234_v22 = vmul.f32 %v13550_v33, %v9298_v14 }
0x1b52   :  { %v6293_v20 = vmul.f32 %v6179_v10, %v9713_v9  ;;  %v6268_v39 = vmul.f32 %v13775_v8, %v9545_v21 }
0x1b53   :  { %v6248_v35 = vadd.f32 %v6232_v43, %v6216_v45 }
0x1b54   :  { %v6309_v7 = vadd.f32 %v6293_v20, %v13715_v29 }
0x1b57   :  { %v8172_v60 = vpop.eup %8171 }
0x1b58   :  { %v6007_v24 = vmul.f32 %v8172_v60, %v13795_v19  ;;  %v6264_v19 = vmul.f32 %v13750_v13, %v9545_v21  ;;  %v6218_v13 = vmul.f32 %v13357_v47, %v9295_v51  ;;  %v6236_v47 = vmul.f32 %v13632_v36, %v9298_v14 }
0x1b59   :  { %v6181_v53 = vpop.f32.mrf.mxu3 }
0x1b5a   :  { %v6294_v4 = vmul.f32 %v6181_v53, %v9713_v9  ;;  %v6039_v55 = vpack.c.bf16 %v6007_v24, %v6006_v32  ;;  %v6280_v29 = vadd.f32 %v6264_v19, %v6248_v35  ;;  %v6250_v49 = vadd.f32 %v6234_v22, %v6218_v13  ;;  %v14294_v13 = vld [vmem:[#allocation19_spill] sm:$0xff] }
0x1b5b   :  { %v6252_v60 = vadd.f32 %v6236_v47, %v6220_v25  ;;  %v6240_v22 = vmul.f32 %v13649_v56, %v9298_v14 }
0x1b5c   :  { %v6310_v15 = vadd.f32 %v6294_v4, %v6278_v17  ;;  %v6282_v40 = vadd.f32 %v6266_v50, %v6250_v49  ;;  %v14295_v50 = vmax.f32 %v14294_v13, 0.0 }
0x1b5d   :  { %6203 = vmatmul.bf16.gmra.mxu3 %v6039_v55  ;;  %v6284_v36 = vadd.f32 %v6268_v39, %v6252_v60  ;;  %v6238_v55 = vmul.f32 %v13639_v34, %v9298_v14  ;;  %v14301_v60 = vld [vmem:[#allocation2_spill] sm:$0xff] }
0x1b5e   :  { %v6323_v6 = vpack.c.bf16 %v6310_v15, %v6309_v7  ;;  %v14291_v7 = vmax.f32 %v12487_v52, 0.0 }
0x1b60   :  { %7025 = vmatmul.msk.bf16.gmra.mxu0 %vm459_vm1, %v6323_v6  ;;  %v6222_v6 = vmul.f32 %v13378_v61, %v9295_v51 }
0x1b61   :  { %v6184_v2 = vpop.f32.mrf.mxu3 }
0x1b62   :  { %v6295_v44 = vmul.f32 %v6184_v2, %v9713_v9  ;;  %v6270_v2 = vmul.f32 %v13793_v0, %v9545_v21  ;;  %v6254_v35 = vadd.f32 %v6238_v55, %v6222_v6  ;;  %v14305_v6 = vld [vmem:[#allocation16_spill] sm:$0xff] }
0x1b64   :  { %v6311_v27 = vadd.f32 %v6295_v44, %v13748_v59  ;;  %v6286_v34 = vadd.f32 %v6270_v2, %v6254_v35  ;;  %v14306_v2 = vmax.f32 %v14305_v6, 0.0  ;;  %v14309_v35 = vld [vmem:[#allocation15_spill] sm:$0xff] }
0x1b69   :  { %v6186_v30 = vpop.f32.mrf.mxu3 }
0x1b6a   :  { %v6296_v54 = vmul.f32 %v6186_v30, %v9713_v9 }
0x1b6c   :  { %v6312_v18 = vadd.f32 %v6296_v54, %v6280_v29 }
0x1b6e   :  { %v6324_v41 = vpack.c.bf16 %v6312_v18, %v6311_v27 }
0x1b70   :  { %7026 = vmatmul.msk.bf16.gmra.mxu0 %vm459_vm1, %v6324_v41 }
0x1b71   :  { %v6189_v1 = vpop.f32.mrf.mxu3 }
0x1b72   :  { %v6297_v46 = vmul.f32 %v6189_v1, %v9713_v9 }
0x1b74   :  { %v6313_v11 = vadd.f32 %v6297_v46, %v13757_v38  ;;  %v14290_v38 = vmax.f32 %v12466_v37, 0.0  ;;  %v14296_v46 = vld [vmem:[#allocation7_spill] sm:$0xff] }
0x1b79   :  { %v6191_v48 = vpop.f32.mrf.mxu3 }
0x1b7a   :  { %v6298_v59 = vmul.f32 %v6191_v48, %v9713_v9  ;;  %v6224_v48 = vmul.f32 %v14296_v46, %v9295_v51 }
0x1b7c   :  { %v6314_v57 = vadd.f32 %v6298_v59, %v6282_v40  ;;  %v6272_v40 = vmul.f32 %v13810_v26, %v9545_v21  ;;  %v14299_v21 = vld [vmem:[#allocation20_spill] sm:$0xff] }
0x1b7d   :  { %v14300_v26 = vmax.f32 %v14299_v21, 0.0  ;;  %v7133_v21 = vld [vmem:[%s14014_s8 + $0x38] sm:$0xff] }
0x1b7e   :  { %v6325_v5 = vpack.c.bf16 %v6314_v57, %v6313_v11 }
0x1b80   :  { %7027 = vmatmul.msk.bf16.gmra.mxu0 %vm459_vm1, %v6325_v5  ;;  %v6256_v5 = vadd.f32 %v6240_v22, %v6224_v48 }
0x1b82   :  { %v6288_v14 = vadd.f32 %v6272_v40, %v6256_v5 }
0x1bbc   :  { %v6379_v33 = vpop.f32.mrf.mxu0 }
0x1bbd   :  { %v6419_v12 = vadd.f32 %v6379_v33, %v14289_v63 }
0x1bbf   :  { %v6194_v10 = vpop.f32.mrf.mxu3  ;;  %v6435_v20 = vmax.f32 %v6419_v12, 0.0 }
0x1bc0   :  { %v6299_v31 = vmul.f32 %v6194_v10, %v9713_v9 }
0x1bc2   :  { %v6315_v16 = vadd.f32 %v6299_v31, %v13773_v62  ;;  %v14292_v62 = vld [vmem:[#allocation13_spill] sm:$0xff]  ;;  %v14302_v31 = vmax.f32 %v14301_v60, 0.0 }
0x1bc3   :  { %v14293_v45 = vmax.f32 %v14292_v62, 0.0  ;;  %v14307_v62 = vld [vmem:[#allocation6_spill] sm:$0xff] }
0x1bc4   :  { %v6381_v28 = vpop.f32.mrf.mxu0 }
0x1bc5   :  { %v6420_v58 = vadd.f32 %v6381_v28, %v14290_v38 }
0x1bc7   :  { %v6436_v53 = vmax.f32 %v6420_v58, 0.0  ;;  %v6196_v32 = vpop.f32.mrf.mxu3 }
0x1bc8   :  { %v6300_v42 = vmul.f32 %v6196_v32, %v9713_v9 }
0x1bc9   :  { %v13880_v24 = vpack.c.bf16 %v6436_v53, %v6435_v20 }
0x1bca   :  { %v6316_v17 = vadd.f32 %v6300_v42, %v6284_v36 }
0x1bcc   :  { %v6326_v4 = vpack.c.bf16 %v6316_v17, %v6315_v16 }
0x1bcd   :  { %v6384_v8 = vpop.f32.mrf.mxu0 }
0x1bce   :  { %7028 = vmatmul.msk.bf16.gmra.mxu0 %vm459_vm1, %v6326_v4  ;;  %v6421_v15 = vadd.f32 %v6384_v8, %v14291_v7 }
0x1bd0   :  { %v6199_v37 = vpop.f32.mrf.mxu3  ;;  %v6437_v30 = vmax.f32 %v6421_v15, 0.0 }
0x1bd1   :  { %v6301_v44 = vmul.f32 %v6199_v37, %v9713_v9  ;;  %v14303_v37 = vld [vmem:[#allocation17_spill] sm:$0xff] }
0x1bd2   :  { %v14304_v55 = vmax.f32 %v14303_v37, 0.0 }
0x1bd3   :  { %v6317_v61 = vadd.f32 %v6301_v44, %v13788_v3  ;;  %v14297_v3 = vld [vmem:[#allocation12_spill] sm:$0xff]  ;;  %v14310_v44 = vmax.f32 %v14309_v35, 0.0 }
0x1bd4   :  { %v14298_v11 = vmax.f32 %v14297_v3, 0.0 }
0x1bd5   :  { %v6386_v43 = vpop.f32.mrf.mxu0 }
0x1bd6   :  { %v6422_v19 = vadd.f32 %v6386_v43, %v14293_v45  ;;  %v14308_v45 = vmax.f32 %v14307_v62, 0.0  ;;  %v7139_v62 = vld [vmem:[%s14014_s8 + $0x68] sm:$0xff] }
0x1bd8   :  { %v6438_v29 = vmax.f32 %v6422_v19, 0.0  ;;  %v6201_v54 = vpop.f32.mrf.mxu3 }
0x1bd9   :  { %v6302_v52 = vmul.f32 %v6201_v54, %v9713_v9 }
0x1bda   :  { %v13896_v27 = vpack.c.bf16 %v6438_v29, %v6437_v30 }
0x1bdb   :  { %v6318_v18 = vadd.f32 %v6302_v52, %v6286_v34  ;;  %v14311_v34 = vld [vmem:[#allocation5_spill] sm:$0xff] }
0x1bdc   :  { %v14312_v52 = vmax.f32 %v14311_v34, 0.0 }
0x1bdd   :  { %v6327_v41 = vpack.c.bf16 %v6318_v18, %v6317_v61  ;;  %v6389_v0 = vpop.f32.mrf.mxu0 }
0x1bde   :  { %v6423_v49 = vadd.f32 %v6389_v0, %v14295_v50  ;;  %v14313_v0 = vld [vmem:[#allocation4_spill] sm:$0xff]  ;;  %v14315_v50 = vld [vmem:[#allocation3_spill] sm:$0xff] }
0x1bdf   :  { %7029 = vmatmul.msk.bf16.gmra.mxu0 %vm459_vm1, %v6327_v41 }
0x1be0   :  { %v6204_v1 = vpop.f32.mrf.mxu3  ;;  %v6439_v10 = vmax.f32 %v6423_v49, 0.0  ;;  %v14316_v49 = vmax.f32 %v14315_v50, 0.0 }
0x1be1   :  { %v6303_v33 = vmul.f32 %v6204_v1, %v9713_v9  ;;  %v14314_v1 = vmax.f32 %v14313_v0, 0.0 }
0x1be3   :  { %v6319_v25 = vadd.f32 %v6303_v33, %v13800_v23 }
0x1be5   :  { %v6391_v59 = vpop.f32.mrf.mxu0 }
0x1be6   :  { %v6424_v57 = vadd.f32 %v6391_v59, %v14298_v11  ;;  %v14317_v59 = vld [vmem:[#allocation18_spill] sm:$0xff] }
0x1be7   :  { %v14318_v3 = vmax.f32 %v14317_v59, 0.0 }
0x1be8   :  { %v6440_v47 = vmax.f32 %v6424_v57, 0.0  ;;  %v6206_v63 = vpop.f32.mrf.mxu3 }
0x1be9   :  { %v6304_v56 = vmul.f32 %v6206_v63, %v9713_v9  ;;  %v6451_v63 = vld [vmem:[%s14013_s1] sm:$0xff] }
0x1bea   :  { %v6455_v12 = vpack.c.bf16 %v6440_v47, %v6439_v10 }
0x1beb   :  { %v6320_v51 = vadd.f32 %v6304_v56, %v6288_v14  ;;  %v7128_v14 = vld [vmem:[%s14014_s8 + $0x10] sm:$0xff]  ;;  %v6452_v56 = vpack.c.bf16 %v6451_v63, %v6451_v63 }
0x1bed   :  { %v6328_v39 = vpack.c.bf16 %v6320_v51, %v6319_v25  ;;  %v6394_v28 = vpop.f32.mrf.mxu0  ;;  %v7127_v25 = vld [vmem:[%s14014_s8 + $0x8] sm:$0xff]  ;;  %v7126_v51 = vld [vmem:[%s14014_s8] sm:$0xff] }
0x1bee   :  { %v6425_v38 = vadd.f32 %v6394_v28, %v14300_v26  ;;  %v7134_v28 = vld [vmem:[%s14014_s8 + $0x40] sm:$0xff]  ;;  %v7132_v26 = vld [vmem:[%s14014_s8 + $0x30] sm:$0xff] }
0x1bef   :  { %7030 = vmatmul.msk.bf16.gmra.mxu0 %vm459_vm1, %v6328_v39  ;;  %v7135_v39 = vld [vmem:[%s14014_s8 + $0x48] sm:$0xff] }
0x1bf0   :  { %v6441_v53 = vmax.f32 %v6425_v38, 0.0 }
0x1bf5   :  { %v6396_v58 = vpop.f32.mrf.mxu0 }
0x1bf6   :  { %v6426_v20 = vadd.f32 %v6396_v58, %v14302_v31 }
0x1bf8   :  { %v6442_v32 = vmax.f32 %v6426_v20, 0.0 }
0x1bfa   :  { %v6456_v36 = vpack.c.bf16 %v6442_v32, %v6441_v53  ;;  %v7131_v53 = vld [vmem:[%s14014_s8 + $0x28] sm:$0xff]  ;;  %v7130_v32 = vld [vmem:[%s14014_s8 + $0x20] sm:$0xff] }
0x1bfd   :  { %v6399_v42 = vpop.f32.mrf.mxu0 }
0x1bfe   :  { %v6427_v11 = vadd.f32 %v6399_v42, %v14318_v3  ;;  %v7144_v42 = vld [vmem:[%s14014_s8 + $0x90] sm:$0xff] }
0x1c00   :  { %v6443_v10 = vmax.f32 %v6427_v11, 0.0 }
0x1c05   :  { %v6401_v9 = vpop.f32.mrf.mxu0 }
0x1c06   :  { %v6428_v46 = vadd.f32 %v6401_v9, %v14316_v49  ;;  %v7143_v9 = vld [vmem:[%s14014_s8 + $0x88] sm:$0xff] }
0x1c08   :  { %v6444_v5 = vmax.f32 %v6428_v46, 0.0 }
0x1c0a   :  { %v6457_v47 = vpack.c.bf16 %v6444_v5, %v6443_v10 }
0x1c4b   :  { %v6404_v16 = vpop.f32.mrf.mxu0 }
0x1c4c   :  { %v6429_v22 = vadd.f32 %v6404_v16, %v14314_v1  ;;  %v7142_v16 = vld [vmem:[%s14014_s8 + $0x80] sm:$0xff] }
0x1c4e   :  { %v6445_v57 = vmax.f32 %v6429_v22, 0.0 }
0x1c53   :  { %v6406_v17 = vpop.f32.mrf.mxu0 }
0x1c54   :  { %v6430_v61 = vadd.f32 %v6406_v17, %v14312_v52  ;;  %v6513_v17 = vld [vmem:[%s14014_s8 + $0x98] sm:$0xf] }
0x1c56   :  { %v6446_v48 = vmax.f32 %v6430_v61, 0.0 }
0x1c58   :  { %v6458_v33 = vpack.c.bf16 %v6446_v48, %v6445_v57 }
0x1c5c   :  { %v6409_v23 = vpop.f32.mrf.mxu0 }
0x1c5d   :  { %v6431_v30 = vadd.f32 %v6409_v23, %v14310_v44  ;;  %v7141_v23 = vld [vmem:[%s14014_s8 + $0x78] sm:$0xff] }
0x1c5f   :  { %v6447_v13 = vmax.f32 %v6431_v30, 0.0 }
0x1c64   :  { %v6411_v4 = vpop.f32.mrf.mxu0 }
0x1c65   :  { %v6432_v43 = vadd.f32 %v6411_v4, %v14306_v2  ;;  %v6514_v4 = vunpack.c.l.bf16 %v6513_v17 }
0x1c67   :  { %v6448_v18 = vmax.f32 %v6432_v43, 0.0  ;;  %v6567_v37 = vperm.slane %v6514_v4, 0  ;;  %v6571_v35 = vperm.slane %v6514_v4, 1 }
0x1c69   :  { %v6459_v40 = vpack.c.bf16 %v6448_v18, %v6447_v13 }
0x1c6c   :  { %v6414_v8 = vpop.f32.mrf.mxu0 }
0x1c6d   :  { %v6433_v7 = vadd.f32 %v6414_v8, %v14304_v55  ;;  %v7140_v8 = vld [vmem:[%s14014_s8 + $0x70] sm:$0xff] }
0x1c6f   :  { %v6449_v29 = vmax.f32 %v6433_v7, 0.0 }
0x1c74   :  { %v6416_v15 = vpop.f32.mrf.mxu0 }
0x1c75   :  { %v6434_v19 = vadd.f32 %v6416_v15, %v14308_v45  ;;  %v7138_v45 = vld [vmem:[%s14014_s8 + $0x60] sm:$0xff] }
0x1c77   :  { %v6450_v54 = vmax.f32 %v6434_v19, 0.0  ;;  %v7137_v19 = vld [vmem:[%s14014_s8 + $0x58] sm:$0xff] }
0x1c79   :  { %v6460_v41 = vpack.c.bf16 %v6450_v54, %v6449_v29  ;;  %v6634_v29 = vperm.slane %v6514_v4, 3 }
0x1c7b   :  { %6461 = vmatpush.bf16.msrb.mxu2 %v6460_v41  ;;  %v6638_v41 = vperm.slane %v6514_v4, 2 }
0x1c7f   :  { %6462 = vmatpush.bf16.msrb.mxu2 %v6459_v40 }
0x1c83   :  { %6463 = vmatpush.bf16.msrb.mxu2 %v6458_v33 }
0x1c87   :  { %6464 = vmatpush.bf16.msrb.mxu2 %v6457_v47 }
0x1c8b   :  { %6465 = vmatpush.bf16.msrb.mxu2 %v6456_v36  ;;  %v7129_v36 = vld [vmem:[%s14014_s8 + $0x18] sm:$0xff] }
0x1c8f   :  { %6466 = vmatpush.bf16.msrb.mxu2 %v6455_v12 }
0x1c93   :  { %6467 = vmatpush.bf16.msrb.mxu2 %v13896_v27  ;;  %v6474_v27 = vld [vmem:[%s14015_s2] sm:$0xff] }
0x1c94   :  { %v6516_v12 = vpack.c.bf16 %v6474_v27, %v6474_v27 }
0x1c97   :  { %6468 = vmatpush.bf16.msrb.mxu2 %v13880_v24  ;;  %v7136_v24 = vld [vmem:[%s14014_s8 + $0x50] sm:$0xff] }
0x1c9a   :  { %6469 = vmatmul.bf16.vlgmr.msrb.gmra.mxu2 %v6452_v56 }
0x1c9b   :  { %6538 = vmatpush.bf16.msra.mxu2 %v7128_v14 }
0x1c9f   :  { %6539 = vmatpush.bf16.msra.mxu2 %v7127_v25 }
0x1ca3   :  { %6561 = vmatpush.bf16.msrb.mxu2 %v7126_v51 }
0x1caa   :  { %7039 = vmatmul.msk.bf16.vlgmr.msra.gmra.mxu2 %vm459_vm1, %v6516_v12 }
0x1cab   :  { %6620 = vmatpush.bf16.msra.mxu2 %v7136_v24 }
0x1caf   :  { %6621 = vmatpush.bf16.msra.mxu2 %v7135_v39 }
0x1cb3   :  { %6622 = vmatpush.bf16.msra.mxu2 %v7134_v28 }
0x1cb7   :  { %6623 = vmatpush.bf16.msra.mxu2 %v7133_v21 }
0x1cbb   :  { %6624 = vmatpush.bf16.msra.mxu2 %v7132_v26 }
0x1cbf   :  { %6625 = vmatpush.bf16.msra.mxu2 %v7131_v53 }
0x1cc3   :  { %6626 = vmatpush.bf16.msra.mxu2 %v7130_v32 }
0x1cc7   :  { %6627 = vmatpush.bf16.msra.mxu2 %v7129_v36 }
0x1d1d   :  { %v6470_v38 = vpop.f32.mrf.mxu2 }
0x1d1e   :  { %v6515_v58 = vpack.c.bf16 %v6470_v38, %v6470_v38 }
0x1d20   :  { %7044 = vmatmul.msk.bf16.vlgmr.msrb.gmra.mxu2 %vm130_vm0, %v6515_v58 }
0x1d21   :  { %6687 = vmatpush.bf16.msrb.mxu2 %v7144_v42 }
0x1d25   :  { %v6472_v60 = vpop.f32.mrf.mxu2  ;;  %6688 = vmatpush.bf16.msrb.mxu2 %v7143_v9 }
0x1d29   :  { %6689 = vmatpush.bf16.msrb.mxu2 %v7142_v16 }
0x1d2d   :  { %v6541_v31 = vpop.f32.mrf.mxu2  ;;  %6690 = vmatpush.bf16.msrb.mxu2 %v7141_v23 }
0x1d31   :  { %6691 = vmatpush.bf16.msrb.mxu2 %v7140_v8 }
0x1d35   :  { %v6543_v20 = vpop.f32.mrf.mxu2  ;;  %6692 = vmatpush.bf16.msrb.mxu2 %v7139_v62 }
0x1d39   :  { %6693 = vmatpush.bf16.msrb.mxu2 %v7138_v45 }
0x1d3d   :  { %6694 = vmatpush.bf16.msrb.mxu2 %v7137_v19 }
0x1da3   :  { %v6563_v55 = vpop.f32.mrf.mxu2 }
0x1da4   :  { %v6564_v7 = vadd.f32 %v6563_v55, %v6541_v31 }
0x1da6   :  { %v6568_v15 = vadd.f32 %v6567_v37, %v6564_v7 }
0x1da8   :  { %8173 = vtanh.f32 %v6568_v15 }
0x1dab   :  { %v6565_v6 = vpop.f32.mrf.mxu2 }
0x1dae   :  { %v8174_v2 = vpop.eup %8173 }
0x1daf   :  { %v6570_v43 = vpack.c.bf16 %v8174_v2, %v8174_v2  ;;  %v6635_v54 = vmul.f32 %v8174_v2, %v6634_v29 }
0x1db1   :  { %6628 = vmatmul.bf16.vlgmr.msra.gmra.mxu2 %v6570_v43 }
0x1e34   :  { %v6629_v44 = vpop.f32.mrf.mxu2 }
0x1e35   :  { %v6630_v30 = vadd.f32 %v6629_v44, %v6571_v35 }
0x1e37   :  { %8175 = vtanh.f32 %v6630_v30 }
0x1e3c   :  { %v6631_v34 = vpop.f32.mrf.mxu2 }
0x1e3d   :  { %v8176_v52 = vpop.eup %8175 }
0x1e3e   :  { %v6636_v61 = vadd.f32 %v8176_v52, %v6635_v54 }
0x1e40   :  { %v6637_v18 = vpack.c.bf16 %v6636_v61, %v6636_v61 }
0x1e42   :  { %6695 = vmatmul.bf16.vlgmr.msrb.gmra.mxu2 %v6637_v18 }
0x1ec5   :  { %v6696_v0 = vpop.f32.mrf.mxu2 }
0x1ec6   :  { %v6697_v1 = vadd.f32 %v6696_v0, %v6638_v41 }
0x1ec8   :  { %6700 = vst [vmem:[%s14016_s9] sm:$0xff] %v6697_v1 }
0x1ecd   :  { %v6698_v22 = vpop.f32.mrf.mxu2 }

</bundles_post_ra>
